<compile_context>
chip_gen: v6e
topology: v6e:2x2x1
jax: 0.10.0
libtpu: 0.0.40
codegen_flags: <defaults>
</compile_context>

<pallas_src>
import functools

import numpy as np
import jax
import jax.numpy as jnp
from jax import lax
from jax.experimental import pallas as pl
from jax.experimental.pallas import tpu as pltpu

ENC_OPS = ['conv_2d_1x1', 'conv_2d_3x3', 'conv_2d_5x5', 'conv_2d_7x7',
           'skip_connect', 'sep_conv_3x3', 'sep_conv_5x5', 'sep_conv_7x7',
           'dil_conv_3x3', 'dil_conv_5x5', 'dil_conv_7x7',
           'asym_conv_3x3', 'asym_conv_5x5', 'asym_conv_7x7']


# ----------------------------------------------------------------------------
# The single fused Pallas kernel (one grid step == one batch sample)
# ----------------------------------------------------------------------------
def _cell_kernel(*refs, H, W, up_k, nas_meta, matrix, padmax, nbr_op):
    HW = H * W
    n_nas_refs = sum(2 for kind, _ in nas_meta if kind == "conv")
    n_in = 13 + n_nas_refs
    in_refs = refs[:n_in]
    out_ref = refs[n_in]
    pad_up_ref = refs[n_in + 1]
    pad_c_ref = refs[n_in + 2]

    (xup_ref, skip_ref, upw_ref, upb_ref, wg_ref, bg_ref, wx_ref, bx_ref,
     wp_ref, bp_ref, stwa_ref, stwu_ref, stb_ref) = in_refs[:13]
    nas_refs = in_refs[13:]

    f32, bf16 = jnp.float32, jnp.bfloat16

    # Zero the padded-row scratch once; interiors are fully overwritten per conv.
    pad_up_ref[...] = jnp.zeros_like(pad_up_ref)
    pad_c_ref[...] = jnp.zeros_like(pad_c_ref)

    # w-coordinate of every flattened (h, w) row -- hoisted, reused by all taps.
    wcol = lax.broadcasted_iota(jnp.int32, (HW, 1), 0) % W

    def conv_same(x, w_taps_ref, b_ref, k, pad_ref, relu):
        """KxK 'same' conv on a row-major (H*W, Cin) activation (f32 in/out)."""
        cout = b_ref.shape[-1]
        if k == 1:
            acc = jnp.dot(x.astype(bf16), w_taps_ref[0],
                          preferred_element_type=f32)
        else:
            p = k // 2
            pad_ref[padmax:padmax + HW, :] = x          # interior; pads stay 0
            acc = jnp.zeros((HW, cout), f32)
            t = 0
            for di in range(-p, p + 1):
                for dj in range(-p, p + 1):
                    s = di * W + dj
                    patch = pad_ref[padmax + s:padmax + s + HW, :]
                    if dj != 0:   # mask width wrap-around; height handled by pad
                        valid = jnp.logical_and(wcol + dj >= 0, wcol + dj < W)
                        patch = patch * valid.astype(f32)
                    acc = acc + jnp.dot(patch.astype(bf16), w_taps_ref[t],
                                        preferred_element_type=f32)
                    t += 1
        acc = acc + b_ref[...]
        if relu:
            acc = jnp.maximum(acc, 0.0)
        return acc

    x_up = xup_ref[...]        # (HW, prev_C) f32, already x2-upsampled
    skip_x = skip_ref[...]     # (HW, C)      f32

    # ops_list[0]: UpConv conv3x3 (+folded BN) + ReLU
    up = conv_same(x_up, upw_ref, upb_ref, up_k, pad_up_ref, relu=True)

    # ops_list[1]: attention gate (psi projection done on the VPU, width 1)
    g1 = jnp.dot(up.astype(bf16), wg_ref[...],
                 preferred_element_type=f32) + bg_ref[...]
    x1 = jnp.dot(skip_x.astype(bf16), wx_ref[...],
                 preferred_element_type=f32) + bx_ref[...]
    gate = jnp.maximum(g1 + x1, 0.0)
    psi = jax.nn.sigmoid(
        jnp.sum(gate * wp_ref[...], axis=-1, keepdims=True) + bp_ref[...])
    att = skip_x * psi

    # ops_list[2]: stem 1x1 on concat([att, up])  ==  att @ Wa + up @ Wu + b
    node0 = (jnp.dot(att.astype(bf16), stwa_ref[...], preferred_element_type=f32)
             + jnp.dot(up.astype(bf16), stwu_ref[...], preferred_element_type=f32)
             + stb_ref[...])

    # NAS DAG -- node sums stay in VMEM (free VPU adds).
    outputs = [None] * (nbr_op + 1)
    outputs[0] = node0
    ri = 0
    for op_idx in range(2, nbr_op + 1):
        kind, k = nas_meta[op_idx - 2]
        in_nodes = list(np.where(matrix[:, op_idx - 1] == 1)[0])
        node_in = outputs[in_nodes[0]]
        for i in in_nodes[1:]:
            node_in = node_in + outputs[i]
        if kind == "skip":
            outputs[op_idx - 1] = node_in
        else:
            w_ref, b_ref = nas_refs[ri], nas_refs[ri + 1]
            ri += 2
            outputs[op_idx - 1] = conv_same(node_in, w_ref, b_ref, k,
                                            pad_c_ref, relu=True)

    in_nodes = list(np.where(matrix[:, nbr_op] == 1)[0])
    y = outputs[in_nodes[0]]
    for i in in_nodes[1:]:
        y = y + outputs[i]
    out_ref[...] = y.astype(out_ref.dtype)


# ----------------------------------------------------------------------------
# Wrapper: layout plumbing + single pallas_call
# ----------------------------------------------------------------------------
def decoder_cell_forward(params, inputs_nchw, skip_nchw, matrix):
    NBR_OP = matrix.shape[0] - 1
    f32, bf16 = jnp.float32, jnp.bfloat16

    x = jnp.transpose(inputs_nchw, (0, 2, 3, 1)).astype(f32)   # NCHW -> NHWC
    skip = jnp.transpose(skip_nchw, (0, 2, 3, 1)).astype(f32)

    # Nearest x2 upsample (tiny; kept in the JAX wrapper).
    # TODO(synk): fold the nearest upsample into the conv tap offsets in-kernel.
    xu = jnp.repeat(jnp.repeat(x, 2, axis=1), 2, axis=2)
    Nb, H, W, Cp = xu.shape
    _, Hs, Ws, C = skip.shape
    assert (H, W) == (Hs, Ws)
    HW = H * W
    Ci = params["wg_w"].shape[0]

    def conv_taps(w_oihw):   # (Cout, Cin, kh, kw) -> (kh*kw, Cin, Cout)
        Cout, Cin, kh, kw = w_oihw.shape
        return jnp.transpose(w_oihw, (2, 3, 1, 0)).reshape(kh * kw, Cin, Cout)

    # --- pack parameters into kernel-ready layouts (MXU operands in bf16) ---
    up_k = int(params["up_w"].shape[-1])
    up_w = conv_taps(params["up_w"]).astype(bf16)
    up_b = params["up_b"].reshape(1, C).astype(f32)

    wg = params["wg_w"].reshape(Ci, C).T.astype(bf16)
    bg = params["wg_b"].reshape(1, Ci).astype(f32)
    wx = params["wx_w"].reshape(Ci, C).T.astype(bf16)
    bx = params["wx_b"].reshape(1, Ci).astype(f32)
    wp = params["psi_w"].reshape(1, Ci).astype(f32)   # VPU operand -> keep f32
    bp = params["psi_b"].reshape(1, 1).astype(f32)

    stem_m = params["stem_w"].reshape(C, 2 * C).T     # (2C, C)
    st_wa = stem_m[:C, :].astype(bf16)                # concat order: [att, up]
    st_wu = stem_m[C:, :].astype(bf16)
    st_b = params["stem_b"].reshape(1, C).astype(f32)

    nas_meta, nas_inputs = [], []
    kmax = up_k
    for kind, w_, b_ in params["nas"]:
        if kind == "skip":
            nas_meta.append(("skip", 1))
        else:
            k = int(w_.shape[-1])
            kmax = max(kmax, k)
            nas_meta.append(("conv", k))
            nas_inputs.append(conv_taps(w_).astype(bf16))
            nas_inputs.append(b_.reshape(1, C).astype(f32))

    PADMAX = (kmax // 2) * (W + 1)   # row-padding for the largest tap offset

    inputs_list = ([xu.reshape(Nb, HW, Cp), skip.reshape(Nb, HW, C),
                    up_w, up_b, wg, bg, wx, bx, wp, bp, st_wa, st_wu, st_b]
                   + nas_inputs)

    def full_spec(arr):
        nd = arr.ndim
        return pl.BlockSpec(arr.shape, lambda n, _nd=nd: (0,) * _nd)

    in_specs = ([pl.BlockSpec((None, HW, Cp), lambda n: (n, 0, 0)),
                 pl.BlockSpec((None, HW, C), lambda n: (n, 0, 0))]
                + [full_spec(a) for a in inputs_list[2:]])

    kernel = functools.partial(
        _cell_kernel, H=H, W=W, up_k=up_k, nas_meta=tuple(nas_meta),
        matrix=np.asarray(matrix), padmax=PADMAX, nbr_op=NBR_OP)

    out = pl.pallas_call(
        kernel,
        out_shape=jax.ShapeDtypeStruct((Nb, HW, C), jnp.float32),
        grid_spec=pltpu.PrefetchScalarGridSpec(
            num_scalar_prefetch=0,
            grid=(Nb,),
            in_specs=in_specs,
            out_specs=pl.BlockSpec((None, HW, C), lambda n: (n, 0, 0)),
            scratch_shapes=[
                pltpu.VMEM((HW + 2 * PADMAX, Cp), jnp.float32),  # UpConv pad
                pltpu.VMEM((HW + 2 * PADMAX, C), jnp.float32),   # NAS conv pad
            ]),
        compiler_params=pltpu.CompilerParams(
            dimension_semantics=("parallel",)),      # v7x: batch across 2 TCs
    )(*inputs_list)

    y = out.reshape(Nb, H, W, C)
    return jnp.transpose(y, (0, 3, 1, 2))            # back to NCHW


# ----------------------------------------------------------------------------
# Parameter construction (deterministic, PyTorch-default-style init)
# ----------------------------------------------------------------------------
def fold_bn(w, b, eps=1e-5):
    # eval-mode BatchNorm with default stats: y = x / sqrt(1 + eps)
    scale = 1.0 / np.sqrt(1.0 + eps)
    return w * scale, b * scale


def init_params(key, prev_C, C, ops_names):
    Ci = C // 2
    keys = iter(jax.random.split(key, 64))

    def uconv(shape):
        fan_in = int(np.prod(shape[1:]))
        bound = 1.0 / np.sqrt(fan_in)
        return jax.random.uniform(next(keys), shape, jnp.float32, -bound, bound)

    def ubias(n, fan_in):
        bound = 1.0 / np.sqrt(fan_in)
        return jax.random.uniform(next(keys), (n,), jnp.float32, -bound, bound)

    p = {}
    # UpConv(prev_C -> C): Upsample(x2) -> Conv3x3 -> BN -> ReLU
    w, b = uconv((C, prev_C, 3, 3)), ubias(C, prev_C * 9)
    p["up_w"], p["up_b"] = fold_bn(w, b)
    # AttentionBlock(F_g=C, F_l=C, F_int=C//2)
    w, b = uconv((Ci, C, 1, 1)), ubias(Ci, C)
    p["wg_w"], p["wg_b"] = fold_bn(w, b)
    w, b = uconv((Ci, C, 1, 1)), ubias(Ci, C)
    p["wx_w"], p["wx_b"] = fold_bn(w, b)
    w, b = uconv((1, Ci, 1, 1)), ubias(1, Ci)
    p["psi_w"], p["psi_b"] = fold_bn(w, b)
    # stem_conv: Conv2d(2C, C, 1), bias, no BN / activation
    p["stem_w"], p["stem_b"] = uconv((C, 2 * C, 1, 1)), ubias(C, 2 * C)
    # NAS ops chosen by `ops`
    nas = []
    for name in ops_names:
        if name == "skip_connect":
            nas.append(("skip", None, None))
        elif name.startswith("conv_2d_"):
            k = int(name.split("_")[-1].split("x")[0])
            w, b = uconv((C, C, k, k)), ubias(C, C * k * k)
            w, b = fold_bn(w, b)
            nas.append(("conv", w, b))
        else:
            # TODO(synk): sep/dil/asym conv NAS ops not instantiated in this synthetic cell.
            raise NotImplementedError(name)
    p["nas"] = nas
    return p


# ----------------------------------------------------------------------------
if __name__ == "__main__":
    key = jax.random.PRNGKey(0)
    k_in, k_skip, k_par = jax.random.split(key, 3)

    prev_C, current_C = 8, 4
    Nb, Hin, Win = 2, 8, 8

    # Cell DAG: node0 (stem) feeds op-node1 and op-node2; node1 feeds node2;
    # node2 feeds the output.  NBR_OP = 3, so 2 NAS ops.
    matrix = np.array([[0, 1, 1, 0],
                       [0, 0, 1, 0],
                       [0, 0, 0, 1],
                       [0, 0, 0, 0]], dtype=np.int32)
    ops = [1, 0]  # -> ['conv_2d_3x3', 'conv_2d_1x1']
    ops_names = [ENC_OPS[o] for o in ops]

    inputs = jax.random.normal(k_in, (Nb, prev_C, Hin, Win), jnp.float32)
    skip = jax.random.normal(k_skip, (Nb, current_C, 2 * Hin, 2 * Win),
                             jnp.float32)
    params = init_params(k_par, prev_C, current_C, ops_names)

    out = decoder_cell_forward(params, inputs, skip, matrix)
    out = jax.block_until_ready(out)
    assert out.shape == (Nb, current_C, 2 * Hin, 2 * Win)
    assert bool(jnp.all(jnp.isfinite(out)))
    print("KERNEL_OK")
</pallas_src>

<mosaic_0001>
module attributes {stable_mosaic.version = 11 : i64} {
  func.func @_cell_kernel(%arg0: i32, %arg1: memref<1x256x8xf32, #tpu.memory_space<vmem>>, %arg2: memref<1x256x4xf32, #tpu.memory_space<vmem>>, %arg3: memref<9x8x4xbf16, #tpu.memory_space<vmem>>, %arg4: memref<1x4xf32, #tpu.memory_space<vmem>>, %arg5: memref<4x2xbf16, #tpu.memory_space<vmem>>, %arg6: memref<1x2xf32, #tpu.memory_space<vmem>>, %arg7: memref<4x2xbf16, #tpu.memory_space<vmem>>, %arg8: memref<1x2xf32, #tpu.memory_space<vmem>>, %arg9: memref<1x2xf32, #tpu.memory_space<vmem>>, %arg10: memref<1x1xf32, #tpu.memory_space<vmem>>, %arg11: memref<4x4xbf16, #tpu.memory_space<vmem>>, %arg12: memref<4x4xbf16, #tpu.memory_space<vmem>>, %arg13: memref<1x4xf32, #tpu.memory_space<vmem>>, %arg14: memref<9x4x4xbf16, #tpu.memory_space<vmem>>, %arg15: memref<1x4xf32, #tpu.memory_space<vmem>>, %arg16: memref<1x4x4xbf16, #tpu.memory_space<vmem>>, %arg17: memref<1x4xf32, #tpu.memory_space<vmem>>, %arg18: memref<1x256x4xf32, #tpu.memory_space<vmem>>, %arg19: memref<290x8xf32, #tpu.memory_space<vmem>>, %arg20: memref<290x4xf32, #tpu.memory_space<vmem>>) attributes {dimension_semantics = [#tpu.dimension_semantics<parallel>], iteration_bounds = array<i64: 2>, scalar_prefetch = 0 : i64, scratch_operands = 2 : i64, tpu.core_type = #tpu.core_type<tc>, window_params = [{transform_indices = @transform_0, window_bounds = array<i64: 1, 256, 8>}, {transform_indices = @transform_1, window_bounds = array<i64: 1, 256, 4>}, {pipeline_mode = #tpu.pipeline_mode<synchronous>, transform_indices = @transform_2, window_bounds = array<i64: 9, 8, 4>}, {pipeline_mode = #tpu.pipeline_mode<synchronous>, transform_indices = @transform_3, window_bounds = array<i64: 1, 4>}, {pipeline_mode = #tpu.pipeline_mode<synchronous>, transform_indices = @transform_4, window_bounds = array<i64: 4, 2>}, {pipeline_mode = #tpu.pipeline_mode<synchronous>, transform_indices = @transform_5, window_bounds = array<i64: 1, 2>}, {pipeline_mode = #tpu.pipeline_mode<synchronous>, transform_indices = @transform_6, window_bounds = array<i64: 4, 2>}, {pipeline_mode = #tpu.pipeline_mode<synchronous>, transform_indices = @transform_7, window_bounds = array<i64: 1, 2>}, {pipeline_mode = #tpu.pipeline_mode<synchronous>, transform_indices = @transform_8, window_bounds = array<i64: 1, 2>}, {pipeline_mode = #tpu.pipeline_mode<synchronous>, transform_indices = @transform_9, window_bounds = array<i64: 1, 1>}, {pipeline_mode = #tpu.pipeline_mode<synchronous>, transform_indices = @transform_10, window_bounds = array<i64: 4, 4>}, {pipeline_mode = #tpu.pipeline_mode<synchronous>, transform_indices = @transform_11, window_bounds = array<i64: 4, 4>}, {pipeline_mode = #tpu.pipeline_mode<synchronous>, transform_indices = @transform_12, window_bounds = array<i64: 1, 4>}, {pipeline_mode = #tpu.pipeline_mode<synchronous>, transform_indices = @transform_13, window_bounds = array<i64: 9, 4, 4>}, {pipeline_mode = #tpu.pipeline_mode<synchronous>, transform_indices = @transform_14, window_bounds = array<i64: 1, 4>}, {pipeline_mode = #tpu.pipeline_mode<synchronous>, transform_indices = @transform_15, window_bounds = array<i64: 1, 4, 4>}, {pipeline_mode = #tpu.pipeline_mode<synchronous>, transform_indices = @transform_16, window_bounds = array<i64: 1, 4>}, {transform_indices = @transform_17, window_bounds = array<i64: 1, 256, 4>}]} {
    %cst = arith.constant 0.000000e+00 : f32
    %0 = vector.broadcast %cst : f32 to vector<290x8xf32>
    %c0 = arith.constant 0 : index
    %c0_0 = arith.constant 0 : index
    %1 = vector.load %arg19[%c0, %c0_0] : memref<290x8xf32, #tpu.memory_space<vmem>>, vector<290x8xf32>
    tpu.vector_store %arg19[%c0, %c0_0], %0 {strides = array<i32>} : memref<290x8xf32, #tpu.memory_space<vmem>>, vector<290x8xf32>,
    %cst_1 = arith.constant 0.000000e+00 : f32
    %2 = vector.broadcast %cst_1 : f32 to vector<290x4xf32>
    %c0_2 = arith.constant 0 : index
    %c0_3 = arith.constant 0 : index
    %3 = vector.load %arg20[%c0_2, %c0_3] : memref<290x4xf32, #tpu.memory_space<vmem>>, vector<290x4xf32>
    tpu.vector_store %arg20[%c0_2, %c0_3], %2 {strides = array<i32>} : memref<290x4xf32, #tpu.memory_space<vmem>>, vector<290x4xf32>,
    %4 = tpu.iota {dimensions = array<i32: 0>} : vector<256x1xi32>
    %c16_i32 = arith.constant 16 : i32
    %c0_i32 = arith.constant 0 : i32
    %5 = arith.cmpi eq, %c16_i32, %c0_i32 : i32
    %c1_i32 = arith.constant 1 : i32
    %6 = arith.select %5, %c1_i32, %c16_i32 : i32
    %7 = vector.broadcast %6 : i32 to vector<256x1xi32>
    %8 = arith.remsi %4, %7 : vector<256x1xi32>
    %c0_i32_4 = arith.constant 0 : i32
    %9 = vector.broadcast %c0_i32_4 : i32 to vector<256x1xi32>
    %10 = arith.cmpi ne, %8, %9 : vector<256x1xi32>
    %c0_i32_5 = arith.constant 0 : i32
    %11 = vector.broadcast %c0_i32_5 : i32 to vector<256x1xi32>
    %12 = arith.cmpi slt, %8, %11 : vector<256x1xi32>
    %c0_i32_6 = arith.constant 0 : i32
    %13 = arith.cmpi slt, %6, %c0_i32_6 : i32
    %14 = vector.broadcast %13 : i1 to vector<256x1xi1>
    %15 = vector.broadcast %14 : vector<256x1xi1> to vector<256x1xi1>
    %16 = arith.xori %12, %15 : vector<256x1xi1>
    %17 = arith.andi %16, %10 : vector<256x1xi1>
    %18 = vector.broadcast %6 : i32 to vector<256x1xi32>
    %19 = arith.addi %8, %18 : vector<256x1xi32>
    %20 = arith.select %17, %19, %8 : vector<256x1xi1>, vector<256x1xi32>
    %c0_7 = arith.constant 0 : index
    %c0_8 = arith.constant 0 : index
    %c0_9 = arith.constant 0 : index
    %21 = vector.load %arg1[%c0_7, %c0_8, %c0_9] : memref<1x256x8xf32, #tpu.memory_space<vmem>>, vector<1x256x8xf32>
    %22 = vector.shape_cast %21 : vector<1x256x8xf32> to vector<256x8xf32>
    %c0_10 = arith.constant 0 : index
    %c0_11 = arith.constant 0 : index
    %c0_12 = arith.constant 0 : index
    %23 = vector.load %arg2[%c0_10, %c0_11, %c0_12] : memref<1x256x4xf32, #tpu.memory_space<vmem>>, vector<1x256x4xf32>
    %24 = vector.shape_cast %23 : vector<1x256x4xf32> to vector<256x4xf32>
    %c17 = arith.constant 17 : index
    %c0_13 = arith.constant 0 : index
    %25 = vector.load %arg19[%c17, %c0_13] : memref<290x8xf32, #tpu.memory_space<vmem>>, vector<256x8xf32>
    tpu.vector_store %arg19[%c17, %c0_13], %22 {strides = array<i32>} : memref<290x8xf32, #tpu.memory_space<vmem>>, vector<256x8xf32>,
    %cst_14 = arith.constant 0.000000e+00 : f32
    %26 = vector.broadcast %cst_14 : f32 to vector<256x4xf32>
    %c0_15 = arith.constant 0 : index
    %c0_16 = arith.constant 0 : index
    %27 = vector.load %arg19[%c0_15, %c0_16] : memref<290x8xf32, #tpu.memory_space<vmem>>, vector<256x8xf32>
    %c-1_i32 = arith.constant -1 : i32
    %28 = vector.broadcast %c-1_i32 : i32 to vector<256x1xi32>
    %29 = arith.addi %20, %28 : vector<256x1xi32>
    %c0_i32_17 = arith.constant 0 : i32
    %30 = vector.broadcast %c0_i32_17 : i32 to vector<256x1xi32>
    %31 = arith.cmpi sge, %29, %30 : vector<256x1xi32>
    %c-1_i32_18 = arith.constant -1 : i32
    %32 = vector.broadcast %c-1_i32_18 : i32 to vector<256x1xi32>
    %33 = arith.addi %20, %32 : vector<256x1xi32>
    %c16_i32_19 = arith.constant 16 : i32
    %34 = vector.broadcast %c16_i32_19 : i32 to vector<256x1xi32>
    %35 = arith.cmpi slt, %33, %34 : vector<256x1xi32>
    %36 = arith.andi %31, %35 : vector<256x1xi1>
    %37 = arith.extui %36 : vector<256x1xi1> to vector<256x1xi32>
    %38 = arith.sitofp %37 : vector<256x1xi32> to vector<256x1xf32>
    %39 = vector.broadcast %38 : vector<256x1xf32> to vector<256x8xf32>
    %40 = arith.mulf %27, %39 : vector<256x8xf32>
    %41 = arith.truncf %40 : vector<256x8xf32> to vector<256x8xbf16>
    %c0_20 = arith.constant 0 : index
    %c0_21 = arith.constant 0 : index
    %c0_22 = arith.constant 0 : index
    %42 = vector.load %arg3[%c0_20, %c0_21, %c0_22] : memref<9x8x4xbf16, #tpu.memory_space<vmem>>, vector<1x8x4xbf16>
    %43 = vector.shape_cast %42 : vector<1x8x4xbf16> to vector<8x4xbf16>
    %cst_23 = arith.constant dense<0.000000e+00> : vector<256x4xf32>
    %44 = tpu.matmul %41, %43, %cst_23 {dimension_numbers = #tpu.dot_dimension_numbers<[1], [0], [0], [1], [0, 0, 1, 1], [], []>} : vector<256x8xbf16>, vector<8x4xbf16>, vector<256x4xf32> -> vector<256x4xf32>
    %45 = arith.addf %26, %44 : vector<256x4xf32>
    %c1 = arith.constant 1 : index
    %c0_24 = arith.constant 0 : index
    %46 = vector.load %arg19[%c1, %c0_24] : memref<290x8xf32, #tpu.memory_space<vmem>>, vector<256x8xf32>
    %47 = arith.truncf %46 : vector<256x8xf32> to vector<256x8xbf16>
    %c1_25 = arith.constant 1 : index
    %c0_26 = arith.constant 0 : index
    %c0_27 = arith.constant 0 : index
    %48 = vector.load %arg3[%c1_25, %c0_26, %c0_27] : memref<9x8x4xbf16, #tpu.memory_space<vmem>>, vector<1x8x4xbf16>
    %49 = vector.shape_cast %48 : vector<1x8x4xbf16> to vector<8x4xbf16>
    %cst_28 = arith.constant dense<0.000000e+00> : vector<256x4xf32>
    %50 = tpu.matmul %47, %49, %cst_28 {dimension_numbers = #tpu.dot_dimension_numbers<[1], [0], [0], [1], [0, 0, 1, 1], [], []>} : vector<256x8xbf16>, vector<8x4xbf16>, vector<256x4xf32> -> vector<256x4xf32>
    %51 = arith.addf %45, %50 : vector<256x4xf32>
    %c2 = arith.constant 2 : index
    %c0_29 = arith.constant 0 : index
    %52 = vector.load %arg19[%c2, %c0_29] : memref<290x8xf32, #tpu.memory_space<vmem>>, vector<256x8xf32>
    %c1_i32_30 = arith.constant 1 : i32
    %53 = vector.broadcast %c1_i32_30 : i32 to vector<256x1xi32>
    %54 = arith.addi %20, %53 : vector<256x1xi32>
    %c0_i32_31 = arith.constant 0 : i32
    %55 = vector.broadcast %c0_i32_31 : i32 to vector<256x1xi32>
    %56 = arith.cmpi sge, %54, %55 : vector<256x1xi32>
    %c1_i32_32 = arith.constant 1 : i32
    %57 = vector.broadcast %c1_i32_32 : i32 to vector<256x1xi32>
    %58 = arith.addi %20, %57 : vector<256x1xi32>
    %c16_i32_33 = arith.constant 16 : i32
    %59 = vector.broadcast %c16_i32_33 : i32 to vector<256x1xi32>
    %60 = arith.cmpi slt, %58, %59 : vector<256x1xi32>
    %61 = arith.andi %56, %60 : vector<256x1xi1>
    %62 = arith.extui %61 : vector<256x1xi1> to vector<256x1xi32>
    %63 = arith.sitofp %62 : vector<256x1xi32> to vector<256x1xf32>
    %64 = vector.broadcast %63 : vector<256x1xf32> to vector<256x8xf32>
    %65 = arith.mulf %52, %64 : vector<256x8xf32>
    %66 = arith.truncf %65 : vector<256x8xf32> to vector<256x8xbf16>
    %c2_34 = arith.constant 2 : index
    %c0_35 = arith.constant 0 : index
    %c0_36 = arith.constant 0 : index
    %67 = vector.load %arg3[%c2_34, %c0_35, %c0_36] : memref<9x8x4xbf16, #tpu.memory_space<vmem>>, vector<1x8x4xbf16>
    %68 = vector.shape_cast %67 : vector<1x8x4xbf16> to vector<8x4xbf16>
    %cst_37 = arith.constant dense<0.000000e+00> : vector<256x4xf32>
    %69 = tpu.matmul %66, %68, %cst_37 {dimension_numbers = #tpu.dot_dimension_numbers<[1], [0], [0], [1], [0, 0, 1, 1], [], []>} : vector<256x8xbf16>, vector<8x4xbf16>, vector<256x4xf32> -> vector<256x4xf32>
    %70 = arith.addf %51, %69 : vector<256x4xf32>
    %c16 = arith.constant 16 : index
    %c0_38 = arith.constant 0 : index
    %71 = vector.load %arg19[%c16, %c0_38] : memref<290x8xf32, #tpu.memory_space<vmem>>, vector<256x8xf32>
    %c-1_i32_39 = arith.constant -1 : i32
    %72 = vector.broadcast %c-1_i32_39 : i32 to vector<256x1xi32>
    %73 = arith.addi %20, %72 : vector<256x1xi32>
    %c0_i32_40 = arith.constant 0 : i32
    %74 = vector.broadcast %c0_i32_40 : i32 to vector<256x1xi32>
    %75 = arith.cmpi sge, %73, %74 : vector<256x1xi32>
    %c-1_i32_41 = arith.constant -1 : i32
    %76 = vector.broadcast %c-1_i32_41 : i32 to vector<256x1xi32>
    %77 = arith.addi %20, %76 : vector<256x1xi32>
    %c16_i32_42 = arith.constant 16 : i32
    %78 = vector.broadcast %c16_i32_42 : i32 to vector<256x1xi32>
    %79 = arith.cmpi slt, %77, %78 : vector<256x1xi32>
    %80 = arith.andi %75, %79 : vector<256x1xi1>
    %81 = arith.extui %80 : vector<256x1xi1> to vector<256x1xi32>
    %82 = arith.sitofp %81 : vector<256x1xi32> to vector<256x1xf32>
    %83 = vector.broadcast %82 : vector<256x1xf32> to vector<256x8xf32>
    %84 = arith.mulf %71, %83 : vector<256x8xf32>
    %85 = arith.truncf %84 : vector<256x8xf32> to vector<256x8xbf16>
    %c3 = arith.constant 3 : index
    %c0_43 = arith.constant 0 : index
    %c0_44 = arith.constant 0 : index
    %86 = vector.load %arg3[%c3, %c0_43, %c0_44] : memref<9x8x4xbf16, #tpu.memory_space<vmem>>, vector<1x8x4xbf16>
    %87 = vector.shape_cast %86 : vector<1x8x4xbf16> to vector<8x4xbf16>
    %cst_45 = arith.constant dense<0.000000e+00> : vector<256x4xf32>
    %88 = tpu.matmul %85, %87, %cst_45 {dimension_numbers = #tpu.dot_dimension_numbers<[1], [0], [0], [1], [0, 0, 1, 1], [], []>} : vector<256x8xbf16>, vector<8x4xbf16>, vector<256x4xf32> -> vector<256x4xf32>
    %89 = arith.addf %70, %88 : vector<256x4xf32>
    %c17_46 = arith.constant 17 : index
    %c0_47 = arith.constant 0 : index
    %90 = vector.load %arg19[%c17_46, %c0_47] : memref<290x8xf32, #tpu.memory_space<vmem>>, vector<256x8xf32>
    %91 = arith.truncf %90 : vector<256x8xf32> to vector<256x8xbf16>
    %c4 = arith.constant 4 : index
    %c0_48 = arith.constant 0 : index
    %c0_49 = arith.constant 0 : index
    %92 = vector.load %arg3[%c4, %c0_48, %c0_49] : memref<9x8x4xbf16, #tpu.memory_space<vmem>>, vector<1x8x4xbf16>
    %93 = vector.shape_cast %92 : vector<1x8x4xbf16> to vector<8x4xbf16>
    %cst_50 = arith.constant dense<0.000000e+00> : vector<256x4xf32>
    %94 = tpu.matmul %91, %93, %cst_50 {dimension_numbers = #tpu.dot_dimension_numbers<[1], [0], [0], [1], [0, 0, 1, 1], [], []>} : vector<256x8xbf16>, vector<8x4xbf16>, vector<256x4xf32> -> vector<256x4xf32>
    %95 = arith.addf %89, %94 : vector<256x4xf32>
    %c18 = arith.constant 18 : index
    %c0_51 = arith.constant 0 : index
    %96 = vector.load %arg19[%c18, %c0_51] : memref<290x8xf32, #tpu.memory_space<vmem>>, vector<256x8xf32>
    %c1_i32_52 = arith.constant 1 : i32
    %97 = vector.broadcast %c1_i32_52 : i32 to vector<256x1xi32>
    %98 = arith.addi %20, %97 : vector<256x1xi32>
    %c0_i32_53 = arith.constant 0 : i32
    %99 = vector.broadcast %c0_i32_53 : i32 to vector<256x1xi32>
    %100 = arith.cmpi sge, %98, %99 : vector<256x1xi32>
    %c1_i32_54 = arith.constant 1 : i32
    %101 = vector.broadcast %c1_i32_54 : i32 to vector<256x1xi32>
    %102 = arith.addi %20, %101 : vector<256x1xi32>
    %c16_i32_55 = arith.constant 16 : i32
    %103 = vector.broadcast %c16_i32_55 : i32 to vector<256x1xi32>
    %104 = arith.cmpi slt, %102, %103 : vector<256x1xi32>
    %105 = arith.andi %100, %104 : vector<256x1xi1>
    %106 = arith.extui %105 : vector<256x1xi1> to vector<256x1xi32>
    %107 = arith.sitofp %106 : vector<256x1xi32> to vector<256x1xf32>
    %108 = vector.broadcast %107 : vector<256x1xf32> to vector<256x8xf32>
    %109 = arith.mulf %96, %108 : vector<256x8xf32>
    %110 = arith.truncf %109 : vector<256x8xf32> to vector<256x8xbf16>
    %c5 = arith.constant 5 : index
    %c0_56 = arith.constant 0 : index
    %c0_57 = arith.constant 0 : index
    %111 = vector.load %arg3[%c5, %c0_56, %c0_57] : memref<9x8x4xbf16, #tpu.memory_space<vmem>>, vector<1x8x4xbf16>
    %112 = vector.shape_cast %111 : vector<1x8x4xbf16> to vector<8x4xbf16>
    %cst_58 = arith.constant dense<0.000000e+00> : vector<256x4xf32>
    %113 = tpu.matmul %110, %112, %cst_58 {dimension_numbers = #tpu.dot_dimension_numbers<[1], [0], [0], [1], [0, 0, 1, 1], [], []>} : vector<256x8xbf16>, vector<8x4xbf16>, vector<256x4xf32> -> vector<256x4xf32>
    %114 = arith.addf %95, %113 : vector<256x4xf32>
    %c32 = arith.constant 32 : index
    %c0_59 = arith.constant 0 : index
    %115 = vector.load %arg19[%c32, %c0_59] : memref<290x8xf32, #tpu.memory_space<vmem>>, vector<256x8xf32>
    %c-1_i32_60 = arith.constant -1 : i32
    %116 = vector.broadcast %c-1_i32_60 : i32 to vector<256x1xi32>
    %117 = arith.addi %20, %116 : vector<256x1xi32>
    %c0_i32_61 = arith.constant 0 : i32
    %118 = vector.broadcast %c0_i32_61 : i32 to vector<256x1xi32>
    %119 = arith.cmpi sge, %117, %118 : vector<256x1xi32>
    %c-1_i32_62 = arith.constant -1 : i32
    %120 = vector.broadcast %c-1_i32_62 : i32 to vector<256x1xi32>
    %121 = arith.addi %20, %120 : vector<256x1xi32>
    %c16_i32_63 = arith.constant 16 : i32
    %122 = vector.broadcast %c16_i32_63 : i32 to vector<256x1xi32>
    %123 = arith.cmpi slt, %121, %122 : vector<256x1xi32>
    %124 = arith.andi %119, %123 : vector<256x1xi1>
    %125 = arith.extui %124 : vector<256x1xi1> to vector<256x1xi32>
    %126 = arith.sitofp %125 : vector<256x1xi32> to vector<256x1xf32>
    %127 = vector.broadcast %126 : vector<256x1xf32> to vector<256x8xf32>
    %128 = arith.mulf %115, %127 : vector<256x8xf32>
    %129 = arith.truncf %128 : vector<256x8xf32> to vector<256x8xbf16>
    %c6 = arith.constant 6 : index
    %c0_64 = arith.constant 0 : index
    %c0_65 = arith.constant 0 : index
    %130 = vector.load %arg3[%c6, %c0_64, %c0_65] : memref<9x8x4xbf16, #tpu.memory_space<vmem>>, vector<1x8x4xbf16>
    %131 = vector.shape_cast %130 : vector<1x8x4xbf16> to vector<8x4xbf16>
    %cst_66 = arith.constant dense<0.000000e+00> : vector<256x4xf32>
    %132 = tpu.matmul %129, %131, %cst_66 {dimension_numbers = #tpu.dot_dimension_numbers<[1], [0], [0], [1], [0, 0, 1, 1], [], []>} : vector<256x8xbf16>, vector<8x4xbf16>, vector<256x4xf32> -> vector<256x4xf32>
    %133 = arith.addf %114, %132 : vector<256x4xf32>
    %c33 = arith.constant 33 : index
    %c0_67 = arith.constant 0 : index
    %134 = vector.load %arg19[%c33, %c0_67] : memref<290x8xf32, #tpu.memory_space<vmem>>, vector<256x8xf32>
    %135 = arith.truncf %134 : vector<256x8xf32> to vector<256x8xbf16>
    %c7 = arith.constant 7 : index
    %c0_68 = arith.constant 0 : index
    %c0_69 = arith.constant 0 : index
    %136 = vector.load %arg3[%c7, %c0_68, %c0_69] : memref<9x8x4xbf16, #tpu.memory_space<vmem>>, vector<1x8x4xbf16>
    %137 = vector.shape_cast %136 : vector<1x8x4xbf16> to vector<8x4xbf16>
    %cst_70 = arith.constant dense<0.000000e+00> : vector<256x4xf32>
    %138 = tpu.matmul %135, %137, %cst_70 {dimension_numbers = #tpu.dot_dimension_numbers<[1], [0], [0], [1], [0, 0, 1, 1], [], []>} : vector<256x8xbf16>, vector<8x4xbf16>, vector<256x4xf32> -> vector<256x4xf32>
    %139 = arith.addf %133, %138 : vector<256x4xf32>
    %c34 = arith.constant 34 : index
    %c0_71 = arith.constant 0 : index
    %140 = vector.load %arg19[%c34, %c0_71] : memref<290x8xf32, #tpu.memory_space<vmem>>, vector<256x8xf32>
    %c1_i32_72 = arith.constant 1 : i32
    %141 = vector.broadcast %c1_i32_72 : i32 to vector<256x1xi32>
    %142 = arith.addi %20, %141 : vector<256x1xi32>
    %c0_i32_73 = arith.constant 0 : i32
    %143 = vector.broadcast %c0_i32_73 : i32 to vector<256x1xi32>
    %144 = arith.cmpi sge, %142, %143 : vector<256x1xi32>
    %c1_i32_74 = arith.constant 1 : i32
    %145 = vector.broadcast %c1_i32_74 : i32 to vector<256x1xi32>
    %146 = arith.addi %20, %145 : vector<256x1xi32>
    %c16_i32_75 = arith.constant 16 : i32
    %147 = vector.broadcast %c16_i32_75 : i32 to vector<256x1xi32>
    %148 = arith.cmpi slt, %146, %147 : vector<256x1xi32>
    %149 = arith.andi %144, %148 : vector<256x1xi1>
    %150 = arith.extui %149 : vector<256x1xi1> to vector<256x1xi32>
    %151 = arith.sitofp %150 : vector<256x1xi32> to vector<256x1xf32>
    %152 = vector.broadcast %151 : vector<256x1xf32> to vector<256x8xf32>
    %153 = arith.mulf %140, %152 : vector<256x8xf32>
    %154 = arith.truncf %153 : vector<256x8xf32> to vector<256x8xbf16>
    %c8 = arith.constant 8 : index
    %c0_76 = arith.constant 0 : index
    %c0_77 = arith.constant 0 : index
    %155 = vector.load %arg3[%c8, %c0_76, %c0_77] : memref<9x8x4xbf16, #tpu.memory_space<vmem>>, vector<1x8x4xbf16>
    %156 = vector.shape_cast %155 : vector<1x8x4xbf16> to vector<8x4xbf16>
    %cst_78 = arith.constant dense<0.000000e+00> : vector<256x4xf32>
    %157 = tpu.matmul %154, %156, %cst_78 {dimension_numbers = #tpu.dot_dimension_numbers<[1], [0], [0], [1], [0, 0, 1, 1], [], []>} : vector<256x8xbf16>, vector<8x4xbf16>, vector<256x4xf32> -> vector<256x4xf32>
    %158 = arith.addf %139, %157 : vector<256x4xf32>
    %c0_79 = arith.constant 0 : index
    %c0_80 = arith.constant 0 : index
    %159 = vector.load %arg4[%c0_79, %c0_80] : memref<1x4xf32, #tpu.memory_space<vmem>>, vector<1x4xf32>
    %160 = vector.broadcast %159 : vector<1x4xf32> to vector<256x4xf32>
    %161 = arith.addf %158, %160 : vector<256x4xf32>
    %cst_81 = arith.constant 0.000000e+00 : f32
    %162 = vector.broadcast %cst_81 : f32 to vector<256x4xf32>
    %163 = arith.maximumf %161, %162 : vector<256x4xf32>
    %164 = arith.truncf %163 : vector<256x4xf32> to vector<256x4xbf16>
    %c0_82 = arith.constant 0 : index
    %c0_83 = arith.constant 0 : index
    %165 = vector.load %arg5[%c0_82, %c0_83] : memref<4x2xbf16, #tpu.memory_space<vmem>>, vector<4x2xbf16>
    %cst_84 = arith.constant dense<0.000000e+00> : vector<256x2xf32>
    %166 = tpu.matmul %164, %165, %cst_84 {dimension_numbers = #tpu.dot_dimension_numbers<[1], [0], [0], [1], [0, 0, 1, 1], [], []>} : vector<256x4xbf16>, vector<4x2xbf16>, vector<256x2xf32> -> vector<256x2xf32>
    %c0_85 = arith.constant 0 : index
    %c0_86 = arith.constant 0 : index
    %167 = vector.load %arg6[%c0_85, %c0_86] : memref<1x2xf32, #tpu.memory_space<vmem>>, vector<1x2xf32>
    %168 = vector.broadcast %167 : vector<1x2xf32> to vector<256x2xf32>
    %169 = arith.addf %166, %168 : vector<256x2xf32>
    %170 = arith.truncf %24 : vector<256x4xf32> to vector<256x4xbf16>
    %c0_87 = arith.constant 0 : index
    %c0_88 = arith.constant 0 : index
    %171 = vector.load %arg7[%c0_87, %c0_88] : memref<4x2xbf16, #tpu.memory_space<vmem>>, vector<4x2xbf16>
    %cst_89 = arith.constant dense<0.000000e+00> : vector<256x2xf32>
    %172 = tpu.matmul %170, %171, %cst_89 {dimension_numbers = #tpu.dot_dimension_numbers<[1], [0], [0], [1], [0, 0, 1, 1], [], []>} : vector<256x4xbf16>, vector<4x2xbf16>, vector<256x2xf32> -> vector<256x2xf32>
    %c0_90 = arith.constant 0 : index
    %c0_91 = arith.constant 0 : index
    %173 = vector.load %arg8[%c0_90, %c0_91] : memref<1x2xf32, #tpu.memory_space<vmem>>, vector<1x2xf32>
    %174 = vector.broadcast %173 : vector<1x2xf32> to vector<256x2xf32>
    %175 = arith.addf %172, %174 : vector<256x2xf32>
    %176 = arith.addf %169, %175 : vector<256x2xf32>
    %cst_92 = arith.constant 0.000000e+00 : f32
    %177 = vector.broadcast %cst_92 : f32 to vector<256x2xf32>
    %178 = arith.maximumf %176, %177 : vector<256x2xf32>
    %c0_93 = arith.constant 0 : index
    %c0_94 = arith.constant 0 : index
    %179 = vector.load %arg9[%c0_93, %c0_94] : memref<1x2xf32, #tpu.memory_space<vmem>>, vector<1x2xf32>
    %180 = vector.broadcast %179 : vector<1x2xf32> to vector<256x2xf32>
    %181 = arith.mulf %178, %180 : vector<256x2xf32>
    %cst_95 = arith.constant dense<0.000000e+00> : vector<256xf32>
    %182 = vector.multi_reduction <add>, %181, %cst_95 [1] : vector<256x2xf32> to vector<256xf32>
    %183 = vector.shape_cast %182 : vector<256xf32> to vector<256x1xf32>
    %c0_96 = arith.constant 0 : index
    %c0_97 = arith.constant 0 : index
    %184 = vector.load %arg10[%c0_96, %c0_97] : memref<1x1xf32, #tpu.memory_space<vmem>>, vector<1x1xf32>
    %185 = vector.broadcast %184 : vector<1x1xf32> to vector<256x1xf32>
    %186 = arith.addf %183, %185 : vector<256x1xf32>
    %187 = arith.negf %186 : vector<256x1xf32>
    %188 = math.exp %187 : vector<256x1xf32>
    %cst_98 = arith.constant 1.000000e+00 : f32
    %189 = vector.broadcast %cst_98 : f32 to vector<256x1xf32>
    %190 = arith.addf %189, %188 : vector<256x1xf32>
    %191 = arith.divf %189, %190 : vector<256x1xf32>
    %192 = vector.broadcast %191 : vector<256x1xf32> to vector<256x4xf32>
    %193 = arith.mulf %24, %192 : vector<256x4xf32>
    %194 = arith.truncf %193 : vector<256x4xf32> to vector<256x4xbf16>
    %c0_99 = arith.constant 0 : index
    %c0_100 = arith.constant 0 : index
    %195 = vector.load %arg11[%c0_99, %c0_100] : memref<4x4xbf16, #tpu.memory_space<vmem>>, vector<4x4xbf16>
    %cst_101 = arith.constant dense<0.000000e+00> : vector<256x4xf32>
    %196 = tpu.matmul %194, %195, %cst_101 {dimension_numbers = #tpu.dot_dimension_numbers<[1], [0], [0], [1], [0, 0, 1, 1], [], []>} : vector<256x4xbf16>, vector<4x4xbf16>, vector<256x4xf32> -> vector<256x4xf32>
    %197 = arith.truncf %163 : vector<256x4xf32> to vector<256x4xbf16>
    %c0_102 = arith.constant 0 : index
    %c0_103 = arith.constant 0 : index
    %198 = vector.load %arg12[%c0_102, %c0_103] : memref<4x4xbf16, #tpu.memory_space<vmem>>, vector<4x4xbf16>
    %cst_104 = arith.constant dense<0.000000e+00> : vector<256x4xf32>
    %199 = tpu.matmul %197, %198, %cst_104 {dimension_numbers = #tpu.dot_dimension_numbers<[1], [0], [0], [1], [0, 0, 1, 1], [], []>} : vector<256x4xbf16>, vector<4x4xbf16>, vector<256x4xf32> -> vector<256x4xf32>
    %200 = arith.addf %196, %199 : vector<256x4xf32>
    %c0_105 = arith.constant 0 : index
    %c0_106 = arith.constant 0 : index
    %201 = vector.load %arg13[%c0_105, %c0_106] : memref<1x4xf32, #tpu.memory_space<vmem>>, vector<1x4xf32>
    %202 = vector.broadcast %201 : vector<1x4xf32> to vector<256x4xf32>
    %203 = arith.addf %200, %202 : vector<256x4xf32>
    %c17_107 = arith.constant 17 : index
    %c0_108 = arith.constant 0 : index
    %204 = vector.load %arg20[%c17_107, %c0_108] : memref<290x4xf32, #tpu.memory_space<vmem>>, vector<256x4xf32>
    tpu.vector_store %arg20[%c17_107, %c0_108], %203 {strides = array<i32>} : memref<290x4xf32, #tpu.memory_space<vmem>>, vector<256x4xf32>,
    %cst_109 = arith.constant 0.000000e+00 : f32
    %205 = vector.broadcast %cst_109 : f32 to vector<256x4xf32>
    %c0_110 = arith.constant 0 : index
    %c0_111 = arith.constant 0 : index
    %206 = vector.load %arg20[%c0_110, %c0_111] : memref<290x4xf32, #tpu.memory_space<vmem>>, vector<256x4xf32>
    %c-1_i32_112 = arith.constant -1 : i32
    %207 = vector.broadcast %c-1_i32_112 : i32 to vector<256x1xi32>
    %208 = arith.addi %20, %207 : vector<256x1xi32>
    %c0_i32_113 = arith.constant 0 : i32
    %209 = vector.broadcast %c0_i32_113 : i32 to vector<256x1xi32>
    %210 = arith.cmpi sge, %208, %209 : vector<256x1xi32>
    %c-1_i32_114 = arith.constant -1 : i32
    %211 = vector.broadcast %c-1_i32_114 : i32 to vector<256x1xi32>
    %212 = arith.addi %20, %211 : vector<256x1xi32>
    %c16_i32_115 = arith.constant 16 : i32
    %213 = vector.broadcast %c16_i32_115 : i32 to vector<256x1xi32>
    %214 = arith.cmpi slt, %212, %213 : vector<256x1xi32>
    %215 = arith.andi %210, %214 : vector<256x1xi1>
    %216 = arith.extui %215 : vector<256x1xi1> to vector<256x1xi32>
    %217 = arith.sitofp %216 : vector<256x1xi32> to vector<256x1xf32>
    %218 = vector.broadcast %217 : vector<256x1xf32> to vector<256x4xf32>
    %219 = arith.mulf %206, %218 : vector<256x4xf32>
    %220 = arith.truncf %219 : vector<256x4xf32> to vector<256x4xbf16>
    %c0_116 = arith.constant 0 : index
    %c0_117 = arith.constant 0 : index
    %c0_118 = arith.constant 0 : index
    %221 = vector.load %arg14[%c0_116, %c0_117, %c0_118] : memref<9x4x4xbf16, #tpu.memory_space<vmem>>, vector<1x4x4xbf16>
    %222 = vector.shape_cast %221 : vector<1x4x4xbf16> to vector<4x4xbf16>
    %cst_119 = arith.constant dense<0.000000e+00> : vector<256x4xf32>
    %223 = tpu.matmul %220, %222, %cst_119 {dimension_numbers = #tpu.dot_dimension_numbers<[1], [0], [0], [1], [0, 0, 1, 1], [], []>} : vector<256x4xbf16>, vector<4x4xbf16>, vector<256x4xf32> -> vector<256x4xf32>
    %224 = arith.addf %205, %223 : vector<256x4xf32>
    %c1_120 = arith.constant 1 : index
    %c0_121 = arith.constant 0 : index
    %225 = vector.load %arg20[%c1_120, %c0_121] : memref<290x4xf32, #tpu.memory_space<vmem>>, vector<256x4xf32>
    %226 = arith.truncf %225 : vector<256x4xf32> to vector<256x4xbf16>
    %c1_122 = arith.constant 1 : index
    %c0_123 = arith.constant 0 : index
    %c0_124 = arith.constant 0 : index
    %227 = vector.load %arg14[%c1_122, %c0_123, %c0_124] : memref<9x4x4xbf16, #tpu.memory_space<vmem>>, vector<1x4x4xbf16>
    %228 = vector.shape_cast %227 : vector<1x4x4xbf16> to vector<4x4xbf16>
    %cst_125 = arith.constant dense<0.000000e+00> : vector<256x4xf32>
    %229 = tpu.matmul %226, %228, %cst_125 {dimension_numbers = #tpu.dot_dimension_numbers<[1], [0], [0], [1], [0, 0, 1, 1], [], []>} : vector<256x4xbf16>, vector<4x4xbf16>, vector<256x4xf32> -> vector<256x4xf32>
    %230 = arith.addf %224, %229 : vector<256x4xf32>
    %c2_126 = arith.constant 2 : index
    %c0_127 = arith.constant 0 : index
    %231 = vector.load %arg20[%c2_126, %c0_127] : memref<290x4xf32, #tpu.memory_space<vmem>>, vector<256x4xf32>
    %c1_i32_128 = arith.constant 1 : i32
    %232 = vector.broadcast %c1_i32_128 : i32 to vector<256x1xi32>
    %233 = arith.addi %20, %232 : vector<256x1xi32>
    %c0_i32_129 = arith.constant 0 : i32
    %234 = vector.broadcast %c0_i32_129 : i32 to vector<256x1xi32>
    %235 = arith.cmpi sge, %233, %234 : vector<256x1xi32>
    %c1_i32_130 = arith.constant 1 : i32
    %236 = vector.broadcast %c1_i32_130 : i32 to vector<256x1xi32>
    %237 = arith.addi %20, %236 : vector<256x1xi32>
    %c16_i32_131 = arith.constant 16 : i32
    %238 = vector.broadcast %c16_i32_131 : i32 to vector<256x1xi32>
    %239 = arith.cmpi slt, %237, %238 : vector<256x1xi32>
    %240 = arith.andi %235, %239 : vector<256x1xi1>
    %241 = arith.extui %240 : vector<256x1xi1> to vector<256x1xi32>
    %242 = arith.sitofp %241 : vector<256x1xi32> to vector<256x1xf32>
    %243 = vector.broadcast %242 : vector<256x1xf32> to vector<256x4xf32>
    %244 = arith.mulf %231, %243 : vector<256x4xf32>
    %245 = arith.truncf %244 : vector<256x4xf32> to vector<256x4xbf16>
    %c2_132 = arith.constant 2 : index
    %c0_133 = arith.constant 0 : index
    %c0_134 = arith.constant 0 : index
    %246 = vector.load %arg14[%c2_132, %c0_133, %c0_134] : memref<9x4x4xbf16, #tpu.memory_space<vmem>>, vector<1x4x4xbf16>
    %247 = vector.shape_cast %246 : vector<1x4x4xbf16> to vector<4x4xbf16>
    %cst_135 = arith.constant dense<0.000000e+00> : vector<256x4xf32>
    %248 = tpu.matmul %245, %247, %cst_135 {dimension_numbers = #tpu.dot_dimension_numbers<[1], [0], [0], [1], [0, 0, 1, 1], [], []>} : vector<256x4xbf16>, vector<4x4xbf16>, vector<256x4xf32> -> vector<256x4xf32>
    %249 = arith.addf %230, %248 : vector<256x4xf32>
    %c16_136 = arith.constant 16 : index
    %c0_137 = arith.constant 0 : index
    %250 = vector.load %arg20[%c16_136, %c0_137] : memref<290x4xf32, #tpu.memory_space<vmem>>, vector<256x4xf32>
    %c-1_i32_138 = arith.constant -1 : i32
    %251 = vector.broadcast %c-1_i32_138 : i32 to vector<256x1xi32>
    %252 = arith.addi %20, %251 : vector<256x1xi32>
    %c0_i32_139 = arith.constant 0 : i32
    %253 = vector.broadcast %c0_i32_139 : i32 to vector<256x1xi32>
    %254 = arith.cmpi sge, %252, %253 : vector<256x1xi32>
    %c-1_i32_140 = arith.constant -1 : i32
    %255 = vector.broadcast %c-1_i32_140 : i32 to vector<256x1xi32>
    %256 = arith.addi %20, %255 : vector<256x1xi32>
    %c16_i32_141 = arith.constant 16 : i32
    %257 = vector.broadcast %c16_i32_141 : i32 to vector<256x1xi32>
    %258 = arith.cmpi slt, %256, %257 : vector<256x1xi32>
    %259 = arith.andi %254, %258 : vector<256x1xi1>
    %260 = arith.extui %259 : vector<256x1xi1> to vector<256x1xi32>
    %261 = arith.sitofp %260 : vector<256x1xi32> to vector<256x1xf32>
    %262 = vector.broadcast %261 : vector<256x1xf32> to vector<256x4xf32>
    %263 = arith.mulf %250, %262 : vector<256x4xf32>
    %264 = arith.truncf %263 : vector<256x4xf32> to vector<256x4xbf16>
    %c3_142 = arith.constant 3 : index
    %c0_143 = arith.constant 0 : index
    %c0_144 = arith.constant 0 : index
    %265 = vector.load %arg14[%c3_142, %c0_143, %c0_144] : memref<9x4x4xbf16, #tpu.memory_space<vmem>>, vector<1x4x4xbf16>
    %266 = vector.shape_cast %265 : vector<1x4x4xbf16> to vector<4x4xbf16>
    %cst_145 = arith.constant dense<0.000000e+00> : vector<256x4xf32>
    %267 = tpu.matmul %264, %266, %cst_145 {dimension_numbers = #tpu.dot_dimension_numbers<[1], [0], [0], [1], [0, 0, 1, 1], [], []>} : vector<256x4xbf16>, vector<4x4xbf16>, vector<256x4xf32> -> vector<256x4xf32>
    %268 = arith.addf %249, %267 : vector<256x4xf32>
    %c17_146 = arith.constant 17 : index
    %c0_147 = arith.constant 0 : index
    %269 = vector.load %arg20[%c17_146, %c0_147] : memref<290x4xf32, #tpu.memory_space<vmem>>, vector<256x4xf32>
    %270 = arith.truncf %269 : vector<256x4xf32> to vector<256x4xbf16>
    %c4_148 = arith.constant 4 : index
    %c0_149 = arith.constant 0 : index
    %c0_150 = arith.constant 0 : index
    %271 = vector.load %arg14[%c4_148, %c0_149, %c0_150] : memref<9x4x4xbf16, #tpu.memory_space<vmem>>, vector<1x4x4xbf16>
    %272 = vector.shape_cast %271 : vector<1x4x4xbf16> to vector<4x4xbf16>
    %cst_151 = arith.constant dense<0.000000e+00> : vector<256x4xf32>
    %273 = tpu.matmul %270, %272, %cst_151 {dimension_numbers = #tpu.dot_dimension_numbers<[1], [0], [0], [1], [0, 0, 1, 1], [], []>} : vector<256x4xbf16>, vector<4x4xbf16>, vector<256x4xf32> -> vector<256x4xf32>
    %274 = arith.addf %268, %273 : vector<256x4xf32>
    %c18_152 = arith.constant 18 : index
    %c0_153 = arith.constant 0 : index
    %275 = vector.load %arg20[%c18_152, %c0_153] : memref<290x4xf32, #tpu.memory_space<vmem>>, vector<256x4xf32>
    %c1_i32_154 = arith.constant 1 : i32
    %276 = vector.broadcast %c1_i32_154 : i32 to vector<256x1xi32>
    %277 = arith.addi %20, %276 : vector<256x1xi32>
    %c0_i32_155 = arith.constant 0 : i32
    %278 = vector.broadcast %c0_i32_155 : i32 to vector<256x1xi32>
    %279 = arith.cmpi sge, %277, %278 : vector<256x1xi32>
    %c1_i32_156 = arith.constant 1 : i32
    %280 = vector.broadcast %c1_i32_156 : i32 to vector<256x1xi32>
    %281 = arith.addi %20, %280 : vector<256x1xi32>
    %c16_i32_157 = arith.constant 16 : i32
    %282 = vector.broadcast %c16_i32_157 : i32 to vector<256x1xi32>
    %283 = arith.cmpi slt, %281, %282 : vector<256x1xi32>
    %284 = arith.andi %279, %283 : vector<256x1xi1>
    %285 = arith.extui %284 : vector<256x1xi1> to vector<256x1xi32>
    %286 = arith.sitofp %285 : vector<256x1xi32> to vector<256x1xf32>
    %287 = vector.broadcast %286 : vector<256x1xf32> to vector<256x4xf32>
    %288 = arith.mulf %275, %287 : vector<256x4xf32>
    %289 = arith.truncf %288 : vector<256x4xf32> to vector<256x4xbf16>
    %c5_158 = arith.constant 5 : index
    %c0_159 = arith.constant 0 : index
    %c0_160 = arith.constant 0 : index
    %290 = vector.load %arg14[%c5_158, %c0_159, %c0_160] : memref<9x4x4xbf16, #tpu.memory_space<vmem>>, vector<1x4x4xbf16>
    %291 = vector.shape_cast %290 : vector<1x4x4xbf16> to vector<4x4xbf16>
    %cst_161 = arith.constant dense<0.000000e+00> : vector<256x4xf32>
    %292 = tpu.matmul %289, %291, %cst_161 {dimension_numbers = #tpu.dot_dimension_numbers<[1], [0], [0], [1], [0, 0, 1, 1], [], []>} : vector<256x4xbf16>, vector<4x4xbf16>, vector<256x4xf32> -> vector<256x4xf32>
    %293 = arith.addf %274, %292 : vector<256x4xf32>
    %c32_162 = arith.constant 32 : index
    %c0_163 = arith.constant 0 : index
    %294 = vector.load %arg20[%c32_162, %c0_163] : memref<290x4xf32, #tpu.memory_space<vmem>>, vector<256x4xf32>
    %c-1_i32_164 = arith.constant -1 : i32
    %295 = vector.broadcast %c-1_i32_164 : i32 to vector<256x1xi32>
    %296 = arith.addi %20, %295 : vector<256x1xi32>
    %c0_i32_165 = arith.constant 0 : i32
    %297 = vector.broadcast %c0_i32_165 : i32 to vector<256x1xi32>
    %298 = arith.cmpi sge, %296, %297 : vector<256x1xi32>
    %c-1_i32_166 = arith.constant -1 : i32
    %299 = vector.broadcast %c-1_i32_166 : i32 to vector<256x1xi32>
    %300 = arith.addi %20, %299 : vector<256x1xi32>
    %c16_i32_167 = arith.constant 16 : i32
    %301 = vector.broadcast %c16_i32_167 : i32 to vector<256x1xi32>
    %302 = arith.cmpi slt, %300, %301 : vector<256x1xi32>
    %303 = arith.andi %298, %302 : vector<256x1xi1>
    %304 = arith.extui %303 : vector<256x1xi1> to vector<256x1xi32>
    %305 = arith.sitofp %304 : vector<256x1xi32> to vector<256x1xf32>
    %306 = vector.broadcast %305 : vector<256x1xf32> to vector<256x4xf32>
    %307 = arith.mulf %294, %306 : vector<256x4xf32>
    %308 = arith.truncf %307 : vector<256x4xf32> to vector<256x4xbf16>
    %c6_168 = arith.constant 6 : index
    %c0_169 = arith.constant 0 : index
    %c0_170 = arith.constant 0 : index
    %309 = vector.load %arg14[%c6_168, %c0_169, %c0_170] : memref<9x4x4xbf16, #tpu.memory_space<vmem>>, vector<1x4x4xbf16>
    %310 = vector.shape_cast %309 : vector<1x4x4xbf16> to vector<4x4xbf16>
    %cst_171 = arith.constant dense<0.000000e+00> : vector<256x4xf32>
    %311 = tpu.matmul %308, %310, %cst_171 {dimension_numbers = #tpu.dot_dimension_numbers<[1], [0], [0], [1], [0, 0, 1, 1], [], []>} : vector<256x4xbf16>, vector<4x4xbf16>, vector<256x4xf32> -> vector<256x4xf32>
    %312 = arith.addf %293, %311 : vector<256x4xf32>
    %c33_172 = arith.constant 33 : index
    %c0_173 = arith.constant 0 : index
    %313 = vector.load %arg20[%c33_172, %c0_173] : memref<290x4xf32, #tpu.memory_space<vmem>>, vector<256x4xf32>
    %314 = arith.truncf %313 : vector<256x4xf32> to vector<256x4xbf16>
    %c7_174 = arith.constant 7 : index
    %c0_175 = arith.constant 0 : index
    %c0_176 = arith.constant 0 : index
    %315 = vector.load %arg14[%c7_174, %c0_175, %c0_176] : memref<9x4x4xbf16, #tpu.memory_space<vmem>>, vector<1x4x4xbf16>
    %316 = vector.shape_cast %315 : vector<1x4x4xbf16> to vector<4x4xbf16>
    %cst_177 = arith.constant dense<0.000000e+00> : vector<256x4xf32>
    %317 = tpu.matmul %314, %316, %cst_177 {dimension_numbers = #tpu.dot_dimension_numbers<[1], [0], [0], [1], [0, 0, 1, 1], [], []>} : vector<256x4xbf16>, vector<4x4xbf16>, vector<256x4xf32> -> vector<256x4xf32>
    %318 = arith.addf %312, %317 : vector<256x4xf32>
    %c34_178 = arith.constant 34 : index
    %c0_179 = arith.constant 0 : index
    %319 = vector.load %arg20[%c34_178, %c0_179] : memref<290x4xf32, #tpu.memory_space<vmem>>, vector<256x4xf32>
    %c1_i32_180 = arith.constant 1 : i32
    %320 = vector.broadcast %c1_i32_180 : i32 to vector<256x1xi32>
    %321 = arith.addi %20, %320 : vector<256x1xi32>
    %c0_i32_181 = arith.constant 0 : i32
    %322 = vector.broadcast %c0_i32_181 : i32 to vector<256x1xi32>
    %323 = arith.cmpi sge, %321, %322 : vector<256x1xi32>
    %c1_i32_182 = arith.constant 1 : i32
    %324 = vector.broadcast %c1_i32_182 : i32 to vector<256x1xi32>
    %325 = arith.addi %20, %324 : vector<256x1xi32>
    %c16_i32_183 = arith.constant 16 : i32
    %326 = vector.broadcast %c16_i32_183 : i32 to vector<256x1xi32>
    %327 = arith.cmpi slt, %325, %326 : vector<256x1xi32>
    %328 = arith.andi %323, %327 : vector<256x1xi1>
    %329 = arith.extui %328 : vector<256x1xi1> to vector<256x1xi32>
    %330 = arith.sitofp %329 : vector<256x1xi32> to vector<256x1xf32>
    %331 = vector.broadcast %330 : vector<256x1xf32> to vector<256x4xf32>
    %332 = arith.mulf %319, %331 : vector<256x4xf32>
    %333 = arith.truncf %332 : vector<256x4xf32> to vector<256x4xbf16>
    %c8_184 = arith.constant 8 : index
    %c0_185 = arith.constant 0 : index
    %c0_186 = arith.constant 0 : index
    %334 = vector.load %arg14[%c8_184, %c0_185, %c0_186] : memref<9x4x4xbf16, #tpu.memory_space<vmem>>, vector<1x4x4xbf16>
    %335 = vector.shape_cast %334 : vector<1x4x4xbf16> to vector<4x4xbf16>
    %cst_187 = arith.constant dense<0.000000e+00> : vector<256x4xf32>
    %336 = tpu.matmul %333, %335, %cst_187 {dimension_numbers = #tpu.dot_dimension_numbers<[1], [0], [0], [1], [0, 0, 1, 1], [], []>} : vector<256x4xbf16>, vector<4x4xbf16>, vector<256x4xf32> -> vector<256x4xf32>
    %337 = arith.addf %318, %336 : vector<256x4xf32>
    %c0_188 = arith.constant 0 : index
    %c0_189 = arith.constant 0 : index
    %338 = vector.load %arg15[%c0_188, %c0_189] : memref<1x4xf32, #tpu.memory_space<vmem>>, vector<1x4xf32>
    %339 = vector.broadcast %338 : vector<1x4xf32> to vector<256x4xf32>
    %340 = arith.addf %337, %339 : vector<256x4xf32>
    %cst_190 = arith.constant 0.000000e+00 : f32
    %341 = vector.broadcast %cst_190 : f32 to vector<256x4xf32>
    %342 = arith.maximumf %340, %341 : vector<256x4xf32>
    %343 = arith.addf %203, %342 : vector<256x4xf32>
    %344 = arith.truncf %343 : vector<256x4xf32> to vector<256x4xbf16>
    %c0_191 = arith.constant 0 : index
    %c0_192 = arith.constant 0 : index
    %c0_193 = arith.constant 0 : index
    %345 = vector.load %arg16[%c0_191, %c0_192, %c0_193] : memref<1x4x4xbf16, #tpu.memory_space<vmem>>, vector<1x4x4xbf16>
    %346 = vector.shape_cast %345 : vector<1x4x4xbf16> to vector<4x4xbf16>
    %cst_194 = arith.constant dense<0.000000e+00> : vector<256x4xf32>
    %347 = tpu.matmul %344, %346, %cst_194 {dimension_numbers = #tpu.dot_dimension_numbers<[1], [0], [0], [1], [0, 0, 1, 1], [], []>} : vector<256x4xbf16>, vector<4x4xbf16>, vector<256x4xf32> -> vector<256x4xf32>
    %c0_195 = arith.constant 0 : index
    %c0_196 = arith.constant 0 : index
    %348 = vector.load %arg17[%c0_195, %c0_196] : memref<1x4xf32, #tpu.memory_space<vmem>>, vector<1x4xf32>
    %349 = vector.broadcast %348 : vector<1x4xf32> to vector<256x4xf32>
    %350 = arith.addf %347, %349 : vector<256x4xf32>
    %cst_197 = arith.constant 0.000000e+00 : f32
    %351 = vector.broadcast %cst_197 : f32 to vector<256x4xf32>
    %352 = arith.maximumf %350, %351 : vector<256x4xf32>
    %c0_198 = arith.constant 0 : index
    %c0_199 = arith.constant 0 : index
    %c0_200 = arith.constant 0 : index
    %353 = vector.load %arg18[%c0_198, %c0_199, %c0_200] : memref<1x256x4xf32, #tpu.memory_space<vmem>>, vector<1x256x4xf32>
    %354 = vector.shape_cast %353 : vector<1x256x4xf32> to vector<256x4xf32>
    %355 = vector.shape_cast %352 : vector<256x4xf32> to vector<1x256x4xf32>
    tpu.vector_store %arg18[%c0_198, %c0_199, %c0_200], %355 {strides = array<i32>} : memref<1x256x4xf32, #tpu.memory_space<vmem>>, vector<1x256x4xf32>,
    return
  }
  func.func @transform_0(%arg0: i32) -> (i32, i32, i32) {
    %c0_i32 = arith.constant 0 : i32
    %c0_i32_0 = arith.constant 0 : i32
    %c0_i32_1 = arith.constant 0 : i32
    return %arg0, %c0_i32, %c0_i32_0 : i32, i32, i32
  }
  func.func @transform_1(%arg0: i32) -> (i32, i32, i32) {
    %c0_i32 = arith.constant 0 : i32
    %c0_i32_0 = arith.constant 0 : i32
    %c0_i32_1 = arith.constant 0 : i32
    return %arg0, %c0_i32, %c0_i32_0 : i32, i32, i32
  }
  func.func @transform_2(%arg0: i32) -> (i32, i32, i32) {
    %c0_i32 = arith.constant 0 : i32
    %c0_i32_0 = arith.constant 0 : i32
    %c0_i32_1 = arith.constant 0 : i32
    %c0_i32_2 = arith.constant 0 : i32
    return %c0_i32, %c0_i32_0, %c0_i32_1 : i32, i32, i32
  }
  func.func @transform_3(%arg0: i32) -> (i32, i32) {
    %c0_i32 = arith.constant 0 : i32
    %c0_i32_0 = arith.constant 0 : i32
    %c0_i32_1 = arith.constant 0 : i32
    return %c0_i32, %c0_i32_0 : i32, i32
  }
  func.func @transform_4(%arg0: i32) -> (i32, i32) {
    %c0_i32 = arith.constant 0 : i32
    %c0_i32_0 = arith.constant 0 : i32
    %c0_i32_1 = arith.constant 0 : i32
    return %c0_i32, %c0_i32_0 : i32, i32
  }
  func.func @transform_5(%arg0: i32) -> (i32, i32) {
    %c0_i32 = arith.constant 0 : i32
    %c0_i32_0 = arith.constant 0 : i32
    %c0_i32_1 = arith.constant 0 : i32
    return %c0_i32, %c0_i32_0 : i32, i32
  }
  func.func @transform_6(%arg0: i32) -> (i32, i32) {
    %c0_i32 = arith.constant 0 : i32
    %c0_i32_0 = arith.constant 0 : i32
    %c0_i32_1 = arith.constant 0 : i32
    return %c0_i32, %c0_i32_0 : i32, i32
  }
  func.func @transform_7(%arg0: i32) -> (i32, i32) {
    %c0_i32 = arith.constant 0 : i32
    %c0_i32_0 = arith.constant 0 : i32
    %c0_i32_1 = arith.constant 0 : i32
    return %c0_i32, %c0_i32_0 : i32, i32
  }
  func.func @transform_8(%arg0: i32) -> (i32, i32) {
    %c0_i32 = arith.constant 0 : i32
    %c0_i32_0 = arith.constant 0 : i32
    %c0_i32_1 = arith.constant 0 : i32
    return %c0_i32, %c0_i32_0 : i32, i32
  }
  func.func @transform_9(%arg0: i32) -> (i32, i32) {
    %c0_i32 = arith.constant 0 : i32
    %c0_i32_0 = arith.constant 0 : i32
    %c0_i32_1 = arith.constant 0 : i32
    return %c0_i32, %c0_i32_0 : i32, i32
  }
  func.func @transform_10(%arg0: i32) -> (i32, i32) {
    %c0_i32 = arith.constant 0 : i32
    %c0_i32_0 = arith.constant 0 : i32
    %c0_i32_1 = arith.constant 0 : i32
    return %c0_i32, %c0_i32_0 : i32, i32
  }
  func.func @transform_11(%arg0: i32) -> (i32, i32) {
    %c0_i32 = arith.constant 0 : i32
    %c0_i32_0 = arith.constant 0 : i32
    %c0_i32_1 = arith.constant 0 : i32
    return %c0_i32, %c0_i32_0 : i32, i32
  }
  func.func @transform_12(%arg0: i32) -> (i32, i32) {
    %c0_i32 = arith.constant 0 : i32
    %c0_i32_0 = arith.constant 0 : i32
    %c0_i32_1 = arith.constant 0 : i32
    return %c0_i32, %c0_i32_0 : i32, i32
  }
  func.func @transform_13(%arg0: i32) -> (i32, i32, i32) {
    %c0_i32 = arith.constant 0 : i32
    %c0_i32_0 = arith.constant 0 : i32
    %c0_i32_1 = arith.constant 0 : i32
    %c0_i32_2 = arith.constant 0 : i32
    return %c0_i32, %c0_i32_0, %c0_i32_1 : i32, i32, i32
  }
  func.func @transform_14(%arg0: i32) -> (i32, i32) {
    %c0_i32 = arith.constant 0 : i32
    %c0_i32_0 = arith.constant 0 : i32
    %c0_i32_1 = arith.constant 0 : i32
    return %c0_i32, %c0_i32_0 : i32, i32
  }
  func.func @transform_15(%arg0: i32) -> (i32, i32, i32) {
    %c0_i32 = arith.constant 0 : i32
    %c0_i32_0 = arith.constant 0 : i32
    %c0_i32_1 = arith.constant 0 : i32
    %c0_i32_2 = arith.constant 0 : i32
    return %c0_i32, %c0_i32_0, %c0_i32_1 : i32, i32, i32
  }
  func.func @transform_16(%arg0: i32) -> (i32, i32) {
    %c0_i32 = arith.constant 0 : i32
    %c0_i32_0 = arith.constant 0 : i32
    %c0_i32_1 = arith.constant 0 : i32
    return %c0_i32, %c0_i32_0 : i32, i32
  }
  func.func @transform_17(%arg0: i32) -> (i32, i32, i32) {
    %c0_i32 = arith.constant 0 : i32
    %c0_i32_0 = arith.constant 0 : i32
    %c0_i32_1 = arith.constant 0 : i32
    return %arg0, %c0_i32, %c0_i32_0 : i32, i32, i32
  }
}

</mosaic_0001>

<bundles_post_ra>
// kernel: tpu_custom_call.1
= control target key start
LH: loop header
LB: loop body
LE: loop exit
PB: predicated region body
PF: predicated region fallthrough
CT: control target
= control target key end

     0   :  { %s11142_s26 = smov 0   ;;  %s14950_s0 = inlined_call_operand.vmem [shape: f32[2,256,8], index: 0, kind: input, shape index: {}]   ;;  %s14951_s1 = inlined_call_operand.vmem [shape: f32[2,256,4], index: 1, kind: input, shape index: {}]   ;;  %s14952_s2 = inlined_call_operand.vmem [shape: bf16[9,8,4], index: 2, kind: input, shape index: {}]   ;;  %s14953_s3 = inlined_call_operand.vmem [shape: f32[1,4], index: 3, kind: input, shape index: {}]   ;;  %s14954_s4 = inlined_call_operand.vmem [shape: bf16[4,2], index: 4, kind: input, shape index: {}]   ;;  %s14955_s5 = inlined_call_operand.vmem [shape: f32[1,2], index: 5, kind: input, shape index: {}]   ;;  %s14956_s6 = inlined_call_operand.vmem [shape: bf16[4,2], index: 6, kind: input, shape index: {}]   ;;  %s14957_s7 = inlined_call_operand.vmem [shape: f32[1,2], index: 7, kind: input, shape index: {}]   ;;  %s14958_s8 = inlined_call_operand.vmem [shape: f32[1,2], index: 8, kind: input, shape index: {}]   ;;  %s14959_s9 = inlined_call_operand.<no memory space> [shape: f32[1,1], index: 9, kind: input, shape index: {}]   ;;  %s14960_s10 = inlined_call_operand.vmem [shape: bf16[4,4], index: 10, kind: input, shape index: {}]   ;;  %s14961_s11 = inlined_call_operand.vmem [shape: bf16[4,4], index: 11, kind: input, shape index: {}]   ;;  %s14962_s12 = inlined_call_operand.vmem [shape: f32[1,4], index: 12, kind: input, shape index: {}]   ;;  %s14963_s13 = inlined_call_operand.vmem [shape: bf16[9,4,4], index: 13, kind: input, shape index: {}]   ;;  %s14964_s14 = inlined_call_operand.vmem [shape: f32[1,4], index: 14, kind: input, shape index: {}]   ;;  %s14965_s15 = inlined_call_operand.vmem [shape: bf16[1,4,4], index: 15, kind: input, shape index: {}]   ;;  %s14966_s16 = inlined_call_operand.vmem [shape: f32[1,4], index: 16, kind: input, shape index: {}]   ;;  %s14967_s17 = inlined_call_operand.vmem [shape: f32[2,256,4], index: 17, kind: output, shape index: {}]  }
   0x1   :  { %15191 = sst [smem:[#allocation91_spill]] %s14950_s0  ;;  %v22_v0 = vstv %s14959_s9 }
   0x2   :  { %15192 = sst [smem:[#allocation92_spill]] %s14951_s1  ;;  %23 = vst [vmem:[#allocation4] sm:$0x1] %v22_v0 }
   0x3 LB: > { %s9196_s27 = sadd.s32 4294967295, %s11045_s26   ;;  %p9200_p0 = scmp.ge.s32.totalorder %s11045_s26, 1  ;;  %s11045_s26 = sphi %s11142_s26, %s29_s26  }
   0x4   : > { %p499_p1 = scmp.lt.s32.totalorder %s11045_s26, 3 }
   0x6   : > { %p500_p2 = pnand %p9200_p0, %p499_p1 }
   0x8   : > { %503 = sbr.rel (%p500_p2) target bundleno = 1938 (0x792), region = 88 }
   0xd   : > { %v9223_v1 = vld [vmem:[%s14952_s2 + $0x4] sm:$0xf]  ;;  %vm1534_vm0 = vcmask 1043456   ;;  %vm572_vm1 = vcmask 64512   ;;  %p11155_p3 = scmp.lt.s32.totalorder %s9196_s27, 1  ;;  %v14968_v3 = vmov 0.0   ;;  %v650_v15 = vlaneseq }
   0xe   : > { %10843 = vmatprep.subr.msk.bf16.mxu0 %vm1534_vm0, %v9223_v1  ;;  %10844 = vmatprep.subr.msk.bf16.mxu1 %vm1534_vm0, %v9223_v1  ;;  %v1536_v2 = vsel %vm1534_vm0, %v9223_v1, 0  ;;  %573 = vst.msk [vmem:[#allocation2] sm:$0xff] %vm572_vm1, %v14968_v3  ;;  %574 = vst.msk [vmem:[#allocation2 + $0x8] sm:$0xff] %vm572_vm1, %v14968_v3  ;;  %v11237_v4 = vld [vmem:[%s14952_s2] sm:$0xf]  ;;  %s15194_s22 = sld [smem:[#allocation91_spill]] }
   0xf   : > { %575 = vst.msk [vmem:[#allocation2 + $0x10] sm:$0xff] %vm572_vm1, %v14968_v3  ;;  %576 = vst.msk [vmem:[#allocation2 + $0x18] sm:$0xff] %vm572_vm1, %v14968_v3  ;;  %v11242_v5 = vld [vmem:[%s14952_s2 + $0x8] sm:$0xf]  ;;  %10060 = vmatpush3.bf16.msra.mxu0 %v1536_v2  ;;  %10842 = vmatpush3.bf16.msra.mxu1 %v1536_v2  ;;  %s15663_s27 = smov (!%p11155_p3, %s9196_s27), 1  ;;  %v11296_v29 = vshrl.u32 %v650_v15, 7 }
  0x10   : > { %577 = vst.msk [vmem:[#allocation2 + $0x20] sm:$0xff] %vm572_vm1, %v14968_v3  ;;  %578 = vst.msk [vmem:[#allocation2 + $0x28] sm:$0xff] %vm572_vm1, %v14968_v3  ;;  %10845 = vmatprep.subr.msk.bf16.mxu1 %vm1534_vm0, %v11237_v4  ;;  %10846 = vmatprep.subr.msk.bf16.mxu0 %vm1534_vm0, %v11242_v5  ;;  %s11252_s1 = sshll.u32 %s15663_s27, 8  ;;  %v11310_v36 = vld [vmem:[%s14952_s2 + $0x10] sm:$0xf]  ;;  %v2234_v41 = vsel %vm1534_vm0, %v11242_v5, 0 }
  0x11   : > { %579 = vst.msk [vmem:[#allocation2 + $0x30] sm:$0xff] %vm572_vm1, %v14968_v3  ;;  %580 = vst.msk [vmem:[#allocation2 + $0x38] sm:$0xff] %vm572_vm1, %v14968_v3  ;;  %v652_v47 = vadd.s32 8, %v11296_v29  ;;  %v1748_v48 = vsel %vm1534_vm0, %v11237_v4, 0  ;;  %v11328_v51 = vld [vmem:[%s14952_s2 + $0xc] sm:$0xf] }
  0x12   : > { %581 = vst.msk [vmem:[#allocation2 + $0x40] sm:$0xff] %vm572_vm1, %v14968_v3  ;;  %582 = vst.msk [vmem:[#allocation2 + $0x48] sm:$0xff] %vm572_vm1, %v14968_v3  ;;  %v654_v56 = vadd.s32 24, %v11296_v29  ;;  %v687_v2 = vand.u32 15, %v11296_v29  ;;  %v653_v4 = vadd.s32 16, %v11296_v29  ;;  %s15433_s29 = sld [smem:[#allocation92_spill]] }
  0x13   : > { %583 = vst.msk [vmem:[#allocation2 + $0x50] sm:$0xff] %vm572_vm1, %v14968_v3  ;;  %584 = vst.msk [vmem:[#allocation2 + $0x58] sm:$0xff] %vm572_vm1, %v14968_v3  ;;  %v694_v62 = vand.u32 15, %v652_v47  ;;  %v662_v47 = vadd.s32 88, %v11296_v29 }
  0x14   : > { %585 = vst.msk [vmem:[#allocation2 + $0x60] sm:$0xff] %vm572_vm1, %v14968_v3  ;;  %586 = vst.msk [vmem:[#allocation2 + $0x68] sm:$0xff] %vm572_vm1, %v14968_v3  ;;  %s11258_s23 = scalar_lea.vmem %s15194_s22, %s11252_s1 }
  0x15   : > { %587 = vst.msk [vmem:[#allocation2 + $0x70] sm:$0xff] %vm572_vm1, %v14968_v3  ;;  %588 = vst.msk [vmem:[#allocation2 + $0x78] sm:$0xff] %vm572_vm1, %v14968_v3  ;;  %v1067_v6 = vld [vmem:[%s11258_s23] sm:$0xff]  ;;  %v1068_v7 = vld [vmem:[%s11258_s23 + $0x8] sm:$0xff] }
  0x16   : > { %589 = vst.msk [vmem:[#allocation2 + $0x80] sm:$0xff] %vm572_vm1, %v14968_v3  ;;  %590 = vst.msk [vmem:[#allocation2 + $0x88] sm:$0xff] %vm572_vm1, %v14968_v3  ;;  %v1081_v8 = vld [vmem:[%s11258_s23 + $0x70] sm:$0xff]  ;;  %v1082_v9 = vld [vmem:[%s11258_s23 + $0x78] sm:$0xff] }
  0x17   : > { %591 = vst.msk [vmem:[#allocation2 + $0x90] sm:$0xff] %vm572_vm1, %v14968_v3  ;;  %592 = vst.msk [vmem:[#allocation2 + $0x98] sm:$0xff] %vm572_vm1, %v14968_v3  ;;  %v1083_v10 = vld [vmem:[%s11258_s23 + $0x80] sm:$0xff]  ;;  %v1084_v11 = vld [vmem:[%s11258_s23 + $0x88] sm:$0xff] }
  0x18   : > { %593 = vst.msk [vmem:[#allocation2 + $0xa0] sm:$0xff] %vm572_vm1, %v14968_v3  ;;  %594 = vst.msk [vmem:[#allocation2 + $0xa8] sm:$0xff] %vm572_vm1, %v14968_v3  ;;  %v1436_v12 = vld [vmem:[#allocation2 + $0x1] sm:$0xff]  ;;  %v1437_v13 = vld [vmem:[#allocation2 + $0x9] sm:$0xff]  ;;  %s12554_s9 = scalar_lea.vmem %s15433_s29, %s11252_s1  ;;  %s14850_s29 = scalar_lea.vmem %s14967_s17, %s11252_s1 }
  0x19   : > { %595 = vst.msk [vmem:[#allocation2 + $0xb0] sm:$0xff] %vm572_vm1, %v14968_v3  ;;  %596 = vst.msk [vmem:[#allocation2 + $0xb8] sm:$0xff] %vm572_vm1, %v14968_v3  ;;  %v1069_v14 = vld [vmem:[%s11258_s23 + $0x10] sm:$0xff]  ;;  %v1468_v16 = vpack.c.bf16 %v1437_v13, %v1436_v12  ;;  %v1070_v17 = vld [vmem:[%s11258_s23 + $0x18] sm:$0xff] }
  0x1a   : > { %597 = vst.msk [vmem:[#allocation2 + $0xc0] sm:$0xff] %vm572_vm1, %v14968_v3  ;;  %598 = vst.msk [vmem:[#allocation2 + $0xc8] sm:$0xff] %vm572_vm1, %v14968_v3  ;;  %v1071_v18 = vld [vmem:[%s11258_s23 + $0x20] sm:$0xff]  ;;  %v1072_v19 = vld [vmem:[%s11258_s23 + $0x28] sm:$0xff] }
  0x1b   : > { %599 = vst.msk [vmem:[#allocation2 + $0xd0] sm:$0xff] %vm572_vm1, %v14968_v3  ;;  %600 = vst.msk [vmem:[#allocation2 + $0xd8] sm:$0xff] %vm572_vm1, %v14968_v3  ;;  %v1085_v20 = vld [vmem:[%s11258_s23 + $0x90] sm:$0xff]  ;;  %v1086_v21 = vld [vmem:[%s11258_s23 + $0x98] sm:$0xff]  ;;  %10061 = vmatprep.mubr.msk.bf16.mxu0 %vm572_vm1, %v1468_v16  ;;  %v1944_v16 = vadd.s32 1, %v694_v62 }
  0x1c   : > { %601 = vst.msk [vmem:[#allocation2 + $0xe0] sm:$0xff] %vm572_vm1, %v14968_v3  ;;  %602 = vst.msk [vmem:[#allocation2 + $0xe8] sm:$0xff] %vm572_vm1, %v14968_v3  ;;  %v1087_v22 = vld [vmem:[%s11258_s23 + $0xa0] sm:$0xff]  ;;  %v1088_v23 = vld [vmem:[%s11258_s23 + $0xa8] sm:$0xff] }
  0x1d   : > { %603 = vst.msk [vmem:[#allocation2 + $0xf0] sm:$0xff] %vm572_vm1, %v14968_v3  ;;  %604 = vst.msk [vmem:[#allocation2 + $0xf8] sm:$0xff] %vm572_vm1, %v14968_v3  ;;  %v1073_v24 = vld [vmem:[%s11258_s23 + $0x30] sm:$0xff]  ;;  %v1074_v25 = vld [vmem:[%s11258_s23 + $0x38] sm:$0xff]  ;;  %vm2008_vm2 = vcmp.lt.s32.totalorder %v1944_v16, 16 }
  0x1e   : > { %605 = vst.msk [vmem:[#allocation2 + $0x100] sm:$0xff] %vm572_vm1, %v14968_v3  ;;  %606 = vst.msk [vmem:[#allocation2 + $0x108] sm:$0xff] %vm572_vm1, %v14968_v3  ;;  %v1075_v26 = vld [vmem:[%s11258_s23 + $0x40] sm:$0xff]  ;;  %v1076_v27 = vld [vmem:[%s11258_s23 + $0x48] sm:$0xff] }
  0x1f   : > { %607 = vst.msk [vmem:[#allocation2 + $0x110] sm:$0xff] %vm572_vm1, %v14968_v3  ;;  %608 = vst.msk [vmem:[#allocation2 + $0x118] sm:$0xff] %vm572_vm1, %v14968_v3  ;;  %v1089_v28 = vld [vmem:[%s11258_s23 + $0xb0] sm:$0xff]  ;;  %v1090_v30 = vld [vmem:[%s11258_s23 + $0xb8] sm:$0xff] }
  0x20   : > { %1131 = vst.msk [vmem:[#allocation2 + $0x11] sm:$0xff] %vm572_vm1, %v1067_v6  ;;  %1132 = vst.msk [vmem:[#allocation2 + $0x19] sm:$0xff] %vm572_vm1, %v1068_v7  ;;  %v1091_v31 = vld [vmem:[%s11258_s23 + $0xc0] sm:$0xff]  ;;  %v1092_v32 = vld [vmem:[%s11258_s23 + $0xc8] sm:$0xff] }
  0x21   : > { %1145 = vst.msk [vmem:[#allocation2 + $0x81] sm:$0xff] %vm572_vm1, %v1081_v8  ;;  %1146 = vst.msk [vmem:[#allocation2 + $0x89] sm:$0xff] %vm572_vm1, %v1082_v9  ;;  %v1077_v45 = vld [vmem:[%s11258_s23 + $0x50] sm:$0xff]  ;;  %v1078_v46 = vld [vmem:[%s11258_s23 + $0x58] sm:$0xff]  ;;  %v708_v9 = vand.u32 15, %v654_v56  ;;  %v11402_v56 = vsel %vm1534_vm0, %v11328_v51, 0 }
  0x22   : > { %1147 = vst.msk [vmem:[#allocation2 + $0x91] sm:$0xff] %vm572_vm1, %v1083_v10  ;;  %1148 = vst.msk [vmem:[#allocation2 + $0x99] sm:$0xff] %vm572_vm1, %v1084_v11  ;;  %v1079_v6 = vld [vmem:[%s11258_s23 + $0x60] sm:$0xff]  ;;  %v1080_v7 = vld [vmem:[%s11258_s23 + $0x68] sm:$0xff]  ;;  %v656_v10 = vadd.s32 40, %v11296_v29 }
  0x23   : > { %1133 = vst.msk [vmem:[#allocation2 + $0x21] sm:$0xff] %vm572_vm1, %v1069_v14  ;;  %1134 = vst.msk [vmem:[#allocation2 + $0x29] sm:$0xff] %vm572_vm1, %v1070_v17  ;;  %v1093_v8 = vld [vmem:[%s11258_s23 + $0xd0] sm:$0xff]  ;;  %v1094_v12 = vld [vmem:[%s11258_s23 + $0xd8] sm:$0xff]  ;;  %v1195_v17 = vadd.s32 4294967295, %v687_v2 }
  0x24   : > { %1135 = vst.msk [vmem:[#allocation2 + $0x31] sm:$0xff] %vm572_vm1, %v1071_v18  ;;  %1136 = vst.msk [vmem:[#allocation2 + $0x39] sm:$0xff] %vm572_vm1, %v1072_v19  ;;  %v1095_v13 = vld [vmem:[%s11258_s23 + $0xe0] sm:$0xff]  ;;  %v1096_v14 = vld [vmem:[%s11258_s23 + $0xe8] sm:$0xff]  ;;  %v701_v18 = vand.u32 15, %v653_v4  ;;  %v655_v19 = vadd.s32 32, %v11296_v29 }
  0x25   : > { %1149 = vst.msk [vmem:[#allocation2 + $0xa1] sm:$0xff] %vm572_vm1, %v1085_v20  ;;  %1150 = vst.msk [vmem:[#allocation2 + $0xa9] sm:$0xff] %vm572_vm1, %v1086_v21  ;;  %vm1227_vm3 = vcmp.ge.s32.totalorder %v1195_v17, 0  ;;  %v764_v4 = vand.u32 15, %v662_v47  ;;  %v663_v17 = vadd.s32 96, %v11296_v29 }
  0x26   : > { %1151 = vst.msk [vmem:[#allocation2 + $0xb1] sm:$0xff] %vm572_vm1, %v1087_v22  ;;  %1152 = vst.msk [vmem:[#allocation2 + $0xb9] sm:$0xff] %vm572_vm1, %v1088_v23  ;;  %v1946_v22 = vadd.s32 1, %v708_v9  ;;  %v722_v23 = vand.u32 15, %v656_v10 }
  0x27   : > { %1137 = vst.msk [vmem:[#allocation2 + $0x41] sm:$0xff] %vm572_vm1, %v1073_v24  ;;  %1138 = vst.msk [vmem:[#allocation2 + $0x49] sm:$0xff] %vm572_vm1, %v1074_v25  ;;  %v1438_v33 = vld [vmem:[#allocation2 + $0x11] sm:$0xff]  ;;  %v1439_v34 = vld [vmem:[#allocation2 + $0x19] sm:$0xff]  ;;  %v658_v24 = vadd.s32 56, %v11296_v29 }
  0x28   : > { %1139 = vst.msk [vmem:[#allocation2 + $0x51] sm:$0xff] %vm572_vm1, %v1075_v26  ;;  %1140 = vst.msk [vmem:[#allocation2 + $0x59] sm:$0xff] %vm572_vm1, %v1076_v27  ;;  %v1452_v35 = vld [vmem:[#allocation2 + $0x81] sm:$0xff]  ;;  %v11312_v37 = vpack.c.bf16 %v1439_v34, %v1438_v33  ;;  %v1453_v38 = vld [vmem:[#allocation2 + $0x89] sm:$0xff]  ;;  %v657_v27 = vadd.s32 48, %v11296_v29  ;;  %v1197_v34 = vadd.s32 4294967295, %v701_v18 }
  0x29   : > { %1153 = vst.msk [vmem:[#allocation2 + $0xc1] sm:$0xff] %vm572_vm1, %v1089_v28  ;;  %1154 = vst.msk [vmem:[#allocation2 + $0xc9] sm:$0xff] %vm572_vm1, %v1090_v30  ;;  %v1454_v39 = vld [vmem:[#allocation2 + $0x91] sm:$0xff]  ;;  %v1455_v40 = vld [vmem:[#allocation2 + $0x99] sm:$0xff]  ;;  %v1476_v42 = vpack.c.bf16 %v1453_v38, %v1452_v35  ;;  %v715_v35 = vand.u32 15, %v655_v19  ;;  %vm2010_vm4 = vcmp.lt.s32.totalorder %v1946_v22, 16 }
  0x2a   : > { %1155 = vst.msk [vmem:[#allocation2 + $0xd1] sm:$0xff] %vm572_vm1, %v1091_v31  ;;  %1156 = vst.msk [vmem:[#allocation2 + $0xd9] sm:$0xff] %vm572_vm1, %v1092_v32  ;;  %v1477_v43 = vpack.c.bf16 %v1455_v40, %v1454_v39  ;;  %v1440_v44 = vld [vmem:[#allocation2 + $0x21] sm:$0xff]  ;;  %10062 = vmatmul.mubr.msk.bf16.vlgmr.msra.gmra.mxu0 %vm572_vm1, %v11312_v37  ;;  %v1441_v49 = vld [vmem:[#allocation2 + $0x29] sm:$0xff]  ;;  %v660_v31 = vadd.s32 72, %v11296_v29  ;;  %v659_v32 = vadd.s32 64, %v11296_v29 }
  0x2b   : > { %15195 = vst [vmem:[#allocation5_spill] sm:$0xff] %v11312_v37  ;;  %v1442_v50 = vld [vmem:[#allocation2 + $0x31] sm:$0xff]  ;;  %1141 = vst.msk [vmem:[#allocation2 + $0x61] sm:$0xff] %vm572_vm1, %v1077_v45  ;;  %10077 = vmatprep.mubr.msk.bf16.mxu1 %vm572_vm1, %v1476_v42  ;;  %10128 = vmatpush3.bf16.msra.mxu0 %v2234_v41  ;;  %v11331_v52 = vpack.c.bf16 %v1441_v49, %v1440_v44  ;;  %v1443_v53 = vld [vmem:[#allocation2 + $0x39] sm:$0xff]  ;;  %v1948_v40 = vadd.s32 1, %v722_v23  ;;  %v736_v41 = vand.u32 15, %v658_v24 }
  0x2c   : > { %1142 = vst.msk [vmem:[#allocation2 + $0x69] sm:$0xff] %vm572_vm1, %v1078_v46  ;;  %v1456_v54 = vld [vmem:[#allocation2 + $0xa1] sm:$0xff]  ;;  %v1457_v55 = vld [vmem:[#allocation2 + $0xa9] sm:$0xff]  ;;  %10078 = vmatmul.mubr.msk.bf16.vlgmr.msra.gmra.mxu1 %vm572_vm1, %v1477_v43  ;;  %10848 = vmatprep.subr.msk.bf16.mxu0 %vm1534_vm0, %v11310_v36  ;;  %v11341_v63 = vpack.c.bf16 %v1443_v53, %v1442_v50  ;;  %1143 = vst.msk [vmem:[#allocation2 + $0x71] sm:$0xff] %vm572_vm1, %v1079_v6  ;;  %v11388_v45 = vsel %vm2008_vm2, 1.0, %v14968_v3  ;;  %v729_v46 = vand.u32 15, %v657_v27 }
  0x2d   : > { %15196 = vst [vmem:[#allocation6_spill] sm:$0xff] %v11331_v52  ;;  %v11335_v57 = vpack.c.bf16 %v1457_v55, %v1456_v54  ;;  %10094 = vmatpush3.bf16.msra.mxu1 %v1748_v48  ;;  %10065 = vmatprep.mubr.msk.bf16.mxu0 %vm572_vm1, %v11331_v52  ;;  %v1458_v60 = vld [vmem:[#allocation2 + $0xb1] sm:$0xff]  ;;  %v1459_v61 = vld [vmem:[#allocation2 + $0xb9] sm:$0xff]  ;;  %1144 = vst.msk [vmem:[#allocation2 + $0x79] sm:$0xff] %vm572_vm1, %v1080_v7  ;;  %v750_v49 = vand.u32 15, %v660_v31  ;;  %v743_v50 = vand.u32 15, %v659_v32 }
  0x2e   : > { %v1444_v58 = vld [vmem:[#allocation2 + $0x41] sm:$0xff]  ;;  %v1445_v59 = vld [vmem:[#allocation2 + $0x49] sm:$0xff]  ;;  %15198 = vst [vmem:[#allocation8_spill] sm:$0xff] %v11341_v63  ;;  %10847 = vmatprep.subr.msk.bf16.mxu1 %vm1534_vm0, %v11328_v51  ;;  %v11355_v11 = vpack.c.bf16 %v1459_v61, %v1458_v60  ;;  %1157 = vst.msk [vmem:[#allocation2 + $0xe1] sm:$0xff] %vm572_vm1, %v1093_v8  ;;  %v661_v53 = vadd.s32 80, %v11296_v29  ;;  %v11398_v55 = vsel %vm1227_vm3, 1.0, %v14968_v3 }
  0x2f   : > { %15197 = vst [vmem:[#allocation7_spill] sm:$0xff] %v11335_v57  ;;  %10081 = vmatprep.mubr.msk.bf16.mxu1 %vm572_vm1, %v11335_v57  ;;  %v11349_v5 = vpack.c.bf16 %v1445_v59, %v1444_v58  ;;  %1158 = vst.msk [vmem:[#allocation2 + $0xe9] sm:$0xff] %vm572_vm1, %v1094_v12  ;;  %v1446_v20 = vld [vmem:[#allocation2 + $0x51] sm:$0xff]  ;;  %v1447_v21 = vld [vmem:[#allocation2 + $0x59] sm:$0xff]  ;;  %v11406_v58 = vsel %vm1534_vm0, %v11310_v36, 0  ;;  %v1199_v59 = vadd.s32 4294967295, %v715_v35 }
  0x30   : > { %v1460_v0 = vld [vmem:[#allocation2 + $0xc1] sm:$0xff]  ;;  %v1461_v1 = vld [vmem:[#allocation2 + $0xc9] sm:$0xff]  ;;  %15200 = vst [vmem:[#allocation10_spill] sm:$0xff] %v11355_v11  ;;  %1159 = vst.msk [vmem:[#allocation2 + $0xf1] sm:$0xff] %vm572_vm1, %v1095_v13  ;;  %v11381_v33 = vpack.c.bf16 %v1447_v21, %v1446_v20  ;;  %vm1229_vm5 = vcmp.ge.s32.totalorder %v1197_v34, 0  ;;  %v11416_v36 = vsel %vm2010_vm4, 1.0, %v14968_v3 }
  0x31   : > { %15199 = vst [vmem:[#allocation9_spill] sm:$0xff] %v11349_v5  ;;  %v11363_v15 = vpack.c.bf16 %v1461_v1, %v1460_v0  ;;  %1160 = vst.msk [vmem:[#allocation2 + $0xf9] sm:$0xff] %vm572_vm1, %v1096_v14  ;;  %v1462_v28 = vld [vmem:[#allocation2 + $0xd1] sm:$0xff]  ;;  %v1463_v30 = vld [vmem:[#allocation2 + $0xd9] sm:$0xff]  ;;  %v1950_v0 = vadd.s32 1, %v736_v41  ;;  %v664_v1 = vadd.s32 104, %v11296_v29 }
  0x32   : > { %10066 = vmatmul.mubr.msk.bf16.gmra.mxu0 %vm572_vm1, %v11341_v63  ;;  %v1448_v25 = vld [vmem:[#allocation2 + $0x61] sm:$0xff]  ;;  %15202 = vst [vmem:[#allocation12_spill] sm:$0xff] %v11381_v33  ;;  %v11385_v42 = vpack.c.bf16 %v1463_v30, %v1462_v28  ;;  %v1912_v44 = vld [vmem:[#allocation2 + $0xa] sm:$0xff]  ;;  %15205 = vst [vmem:[#allocation15_spill] sm:$0xff] %v11388_v45  ;;  %vm2012_vm6 = vcmp.lt.s32.totalorder %v1948_v40, 16  ;;  %v1201_v2 = vadd.s32 4294967295, %v729_v46 }
  0x33   : > { %15201 = vst [vmem:[#allocation11_spill] sm:$0xff] %v11363_v15  ;;  %10069 = vmatprep.mubr.msk.bf16.mxu0 %vm572_vm1, %v11349_v5  ;;  %v1449_v26 = vld [vmem:[#allocation2 + $0x69] sm:$0xff]  ;;  %v1163_v54 = vld [vmem:[#allocation2] sm:$0xff]  ;;  %15207 = vst [vmem:[#allocation17_spill] sm:$0xff] %v11398_v55  ;;  %v2136_v62 = vmul.f32 %v11388_v45, %v1912_v44  ;;  %v1952_v9 = vadd.s32 1, %v750_v49  ;;  %v1203_v10 = vadd.s32 4294967295, %v743_v50 }
  0x34   : > { %10082 = vmatmul.mubr.msk.bf16.gmra.mxu1 %vm572_vm1, %v11355_v11  ;;  %v11383_v38 = vpack.c.bf16 %v1449_v26, %v1448_v25  ;;  %15204 = vst [vmem:[#allocation14_spill] sm:$0xff] %v11385_v42  ;;  %v1450_v60 = vld [vmem:[#allocation2 + $0x71] sm:$0xff]  ;;  %v1451_v61 = vld [vmem:[#allocation2 + $0x79] sm:$0xff]  ;;  %v1911_v51 = vld [vmem:[#allocation2 + $0x2] sm:$0xff]  ;;  %v1387_v8 = vmul.f32 %v11398_v55, %v1163_v54  ;;  %v757_v12 = vand.u32 15, %v661_v53  ;;  %v11425_v16 = vsel %vm1229_vm5, 1.0, %v14968_v3 }
  0x35   : > { %10085 = vmatprep.mubr.msk.bf16.mxu1 %vm572_vm1, %v11363_v15  ;;  %v1464_v39 = vld [vmem:[#allocation2 + $0xe1] sm:$0xff]  ;;  %15208 = vst [vmem:[#allocation18_spill] sm:$0xff] %v11416_v36  ;;  %v11421_v13 = vpack.c.bf16 %v1451_v61, %v1450_v60  ;;  %15210 = vst [vmem:[#allocation20_spill] sm:$0xff] %v11425_v16  ;;  %vm1231_vm7 = vcmp.ge.s32.totalorder %v1199_v59, 0  ;;  %v2167_v18 = vpack.c.bf16 %v2136_v62, %v1911_v51  ;;  %vm2014_vm8 = vcmp.lt.s32.totalorder %v1950_v0, 16  ;;  %v11433_v23 = vld [vmem:[#allocation2 + $0x2a] sm:$0xff] }
  0x36   : > { %15203 = vst [vmem:[#allocation13_spill] sm:$0xff] %v11383_v38  ;;  %v1465_v43 = vld [vmem:[#allocation2 + $0xe9] sm:$0xff]  ;;  %v11428_v19 = vld [vmem:[#allocation2 + $0x1a] sm:$0xff]  ;;  %v778_v20 = vand.u32 15, %v664_v1  ;;  %v666_v21 = vadd.s32 120, %v11296_v29  ;;  %v11437_v24 = vsel %vm2012_vm6, 1.0, %v14968_v3 }
  0x37   : > { %v11391_v48 = vpack.c.bf16 %v1465_v43, %v1464_v39  ;;  %v1466_v6 = vld [vmem:[#allocation2 + $0xf1] sm:$0xff]  ;;  %15209 = vst [vmem:[#allocation19_spill] sm:$0xff] %v11421_v13  ;;  %v1164_v14 = vld [vmem:[#allocation2 + $0x8] sm:$0xff]  ;;  %15212 = vst [vmem:[#allocation22_spill] sm:$0xff] %v11437_v24  ;;  %vm1233_vm9 = vcmp.ge.s32.totalorder %v1201_v2, 0  ;;  %v1954_v25 = vadd.s32 1, %v764_v4  ;;  %v2138_v30 = vmul.f32 %v11416_v36, %v11428_v19 }
  0x38   : > { %v1467_v7 = vld [vmem:[#allocation2 + $0xf9] sm:$0xff]  ;;  %v1419_v26 = vpack.c.bf16 %v1164_v14, %v1387_v8  ;;  %v11439_v27 = vld [vmem:[#allocation2 + $0x10] sm:$0xff]  ;;  %vm2016_vm10 = vcmp.lt.s32.totalorder %v1952_v9, 16  ;;  %vm1235_vm11 = vcmp.ge.s32.totalorder %v1203_v10, 0  ;;  %v1205_v28 = vadd.s32 4294967295, %v757_v12  ;;  %v11472_v50 = vld [vmem:[#allocation2 + $0x22] sm:$0xff] }
  0x39   : > { %15206 = vst [vmem:[#allocation16_spill] sm:$0xff] %v11391_v48  ;;  %v11431_v22 = vpack.c.bf16 %v1467_v7, %v1466_v6  ;;  %15213 = vst [vmem:[#allocation23_spill] sm:$0xff] %v11439_v27  ;;  %v11445_v31 = vld [vmem:[#allocation2 + $0x20] sm:$0xff]  ;;  %v11449_v32 = vsel %vm1231_vm7, 1.0, %v14968_v3  ;;  %v11453_v34 = vsel %vm2014_vm8, 1.0, %v14968_v3  ;;  %v771_v35 = vand.u32 15, %v663_v17 }
  0x3a   : > { %10070 = vmatmul.mubr.msk.bf16.gmra.mxu0 %vm572_vm1, %v11381_v33  ;;  %15214 = vst [vmem:[#allocation24_spill] sm:$0xff] %v11449_v32  ;;  %15215 = vst [vmem:[#allocation25_spill] sm:$0xff] %v11453_v34  ;;  %v11456_v39 = vld [vmem:[#allocation2 + $0x12] sm:$0xff]  ;;  %v2140_v40 = vmul.f32 %v11437_v24, %v11433_v23  ;;  %v11460_v41 = vld [vmem:[#allocation2 + $0x3a] sm:$0xff]  ;;  %v11466_v44 = vsel %vm1233_vm9, 1.0, %v14968_v3  ;;  %v1956_v46 = vadd.s32 1, %v778_v20  ;;  %v1389_v49 = vmul.f32 %v11425_v16, %v11439_v27 }
  0x3b   : > { %10073 = vmatprep.mubr.msk.bf16.mxu0 %vm572_vm1, %v11383_v38  ;;  %15211 = vst [vmem:[#allocation21_spill] sm:$0xff] %v11431_v22  ;;  %15216 = vst [vmem:[#allocation26_spill] sm:$0xff] %v11456_v39  ;;  %v11462_v43 = vld [vmem:[#allocation2 + $0x30] sm:$0xff]  ;;  %v792_v47 = vand.u32 15, %v666_v21  ;;  %v11476_v53 = vsel %vm2016_vm10, 1.0, %v14968_v3  ;;  %v11480_v54 = vsel %vm1235_vm11, 1.0, %v14968_v3  ;;  %v1391_v61 = vmul.f32 %v11449_v32, %v11445_v31 }
  0x3c   : > { %10086 = vmatmul.mubr.msk.bf16.gmra.mxu1 %vm572_vm1, %v11385_v42  ;;  %15217 = vst [vmem:[#allocation27_spill] sm:$0xff] %v11466_v44  ;;  %15218 = vst [vmem:[#allocation28_spill] sm:$0xff] %v11472_v50  ;;  %v665_v59 = vadd.s32 112, %v11296_v29  ;;  %v11484_v60 = vld [vmem:[#allocation2 + $0x18] sm:$0xff]  ;;  %vm2018_vm12 = vcmp.lt.s32.totalorder %v1954_v25, 16  ;;  %vm1237_vm13 = vcmp.ge.s32.totalorder %v1205_v28, 0  ;;  %v2168_v0 = vpack.c.bf16 %v2138_v30, %v11456_v39 }
  0x3d   : > { %10089 = vmatprep.mubr.msk.bf16.mxu1 %vm572_vm1, %v11391_v48  ;;  %15219 = vst [vmem:[#allocation29_spill] sm:$0xff] %v11476_v53  ;;  %15220 = vst [vmem:[#allocation30_spill] sm:$0xff] %v11480_v54  ;;  %v668_v62 = vadd.s32 136, %v11296_v29  ;;  %v11490_v1 = vld [vmem:[#allocation2 + $0x28] sm:$0xff]  ;;  %v11494_v51 = vmul.f32 %v11453_v34, %v11460_v41  ;;  %v11498_v2 = vmul.f32 %v11466_v44, %v11462_v43  ;;  %v1207_v4 = vadd.s32 4294967295, %v771_v35  ;;  %v11501_v7 = vld [vmem:[#allocation2 + $0x32] sm:$0xff] }
  0x3e   : > { %15221 = vst [vmem:[#allocation31_spill] sm:$0xff] %v11484_v60  ;;  %v2169_v6 = vpack.c.bf16 %v2140_v40, %v11472_v50  ;;  %15222 = vst [vmem:[#allocation32_spill] sm:$0xff] %v11501_v7  ;;  %v11503_v8 = vld [vmem:[#allocation2 + $0x38] sm:$0xff]  ;;  %vm2020_vm14 = vcmp.lt.s32.totalorder %v1956_v46, 16  ;;  %v1958_v9 = vadd.s32 1, %v792_v47  ;;  %v667_v10 = vadd.s32 128, %v11296_v29 }
  0x3f   : > { %v1420_v12 = vpack.c.bf16 %v11484_v60, %v1389_v49  ;;  %v11507_v14 = vld [vmem:[#allocation2 + $0x4a] sm:$0xff]  ;;  %v11509_v17 = vld [vmem:[#allocation2 + $0x40] sm:$0xff]  ;;  %v785_v20 = vand.u32 15, %v665_v59  ;;  %v670_v21 = vadd.s32 152, %v11296_v29  ;;  %v1421_v30 = vpack.c.bf16 %v11490_v1, %v1391_v61  ;;  %v11527_v25 = vld [vmem:[%s14952_s2 + $0x18] sm:$0xf] }
  0x40   : > { %v11520_v35 = vsel %vm1237_vm13, 1.0, %v14968_v3  ;;  %v806_v40 = vand.u32 15, %v668_v62  ;;  %v669_v47 = vadd.s32 144, %v11296_v29  ;;  %15225 = vst [vmem:[#allocation35_spill] sm:$0xff] %v11527_v25  ;;  %v2170_v49 = vpack.c.bf16 %v11494_v51, %v11501_v7  ;;  %v11541_v61 = vld [vmem:[%s14952_s2 + $0x14] sm:$0xf] }
  0x41   : > { %15224 = vst [vmem:[#allocation34_spill] sm:$0xff] %v11520_v35  ;;  %v11536_v59 = vsel %vm2020_vm14, 1.0, %v14968_v3  ;;  %vm1239_vm15 = vcmp.ge.s32.totalorder %v1207_v4, 0  ;;  %15227 = vst [vmem:[#allocation37_spill] sm:$0xff] %v11541_v61  ;;  %v11545_v62 = vld [vmem:[#allocation2 + $0x42] sm:$0xff]  ;;  %v11551_v46 = vmul.f32 %v11480_v54, %v11509_v17  ;;  %v11553_v51 = vld [vmem:[#allocation2 + $0x5a] sm:$0xff] }
  0x42   : > { %10074 = vmatmul.mubr.msk.bf16.gmra.mxu0 %vm572_vm1, %v11421_v13  ;;  %15226 = vst [vmem:[#allocation36_spill] sm:$0xff] %v11536_v59  ;;  %15228 = vst [vmem:[#allocation38_spill] sm:$0xff] %v11545_v62  ;;  %vm2022_vm2 = vcmp.lt.s32.totalorder %v1958_v9, 16  ;;  %v1098_v28 = vld [vmem:[%s11258_s23 + $0xf8] sm:$0xff]  ;;  %v672_v48 = vadd.s32 168, %v11296_v29  ;;  %v671_v42 = vadd.s32 160, %v11296_v29 }
  0x43   : > { %10129 = vmatprep.mubr.msk.bf16.mxu0 %vm572_vm1, %v2167_v18  ;;  %v11513_v18 = vsel %vm2018_vm12, 1.0, %v14968_v3  ;;  %v11557_v3 = vld [vmem:[#allocation2 + $0x48] sm:$0xff]  ;;  %1162 = vst.msk [vmem:[#allocation2 + $0x109] sm:$0xff] %vm572_vm1, %v1098_v28  ;;  %v674_v15 = vadd.s32 184, %v11296_v29  ;;  %v15229_v11 = vmov 0.0   ;;  %v11596_v38 = vld [vmem:[#allocation2 + $0x60] sm:$0xff] }
  0x44   : > { %10090 = vmatmul.mubr.msk.bf16.gmra.mxu1 %vm572_vm1, %v11431_v22  ;;  %15223 = vst [vmem:[#allocation33_spill] sm:$0xff] %v11513_v18  ;;  %v820_v22 = vand.u32 15, %v670_v21  ;;  %v11572_v21 = vmul.f32 %v11513_v18, %v11553_v51  ;;  %v11576_v57 = vsel %vm1239_vm15, 1.0, %v15229_v11  ;;  %v11580_v28 = vsel %vm2022_vm2, 1.0, %v15229_v11  ;;  %v11594_v13 = vld [vmem:[#allocation2 + $0x6a] sm:$0xff]  ;;  %v11598_v33 = vld [vmem:[#allocation2 + $0x7a] sm:$0xff] }
  0x45   : > { %10095 = vmatprep.mubr.msk.bf16.mxu1 %vm572_vm1, %v1419_v26  ;;  %v1097_v26 = vld [vmem:[%s11258_s23 + $0xf0] sm:$0xff]  ;;  %15230 = vst [vmem:[#allocation39_spill] sm:$0xff] %v11576_v57  ;;  %15231 = vst [vmem:[#allocation40_spill] sm:$0xff] %v11580_v28  ;;  %v834_v63 = vand.u32 15, %v672_v48  ;;  %v11603_v37 = vld [vmem:[#allocation2 + $0x58] sm:$0xff]  ;;  %v675_v27 = vadd.s32 192, %v11296_v29 }
  0x46   : > { %1161 = vst.msk [vmem:[#allocation2 + $0x101] sm:$0xff] %vm572_vm1, %v1097_v26  ;;  %v799_v26 = vand.u32 15, %v667_v10  ;;  %v1960_v10 = vadd.s32 1, %v806_v40  ;;  %v1423_v40 = vpack.c.bf16 %v11557_v3, %v11551_v46  ;;  %15233 = vst [vmem:[#allocation42_spill] sm:$0xff] %v11594_v13  ;;  %v1962_v5 = vadd.s32 1, %v820_v22  ;;  %v11611_v48 = vld [vmem:[#allocation2 + $0x68] sm:$0xff] }
  0x47   : > { %15234 = vst [vmem:[#allocation43_spill] sm:$0xff] %v11598_v33  ;;  %v848_v46 = vand.u32 15, %v674_v15  ;;  %15235 = vst [vmem:[#allocation44_spill] sm:$0xff] %v11603_v37  ;;  %v1399_v15 = vmul.f32 %v11576_v57, %v11596_v38  ;;  %v11615_v22 = vld [vmem:[#allocation2 + $0x72] sm:$0xff]  ;;  %v1938_v39 = vld [vmem:[#allocation2 + $0xda] sm:$0xff] }
  0x48   : > { %v1211_v9 = vadd.s32 4294967295, %v799_v26  ;;  %vm2024_vm4 = vcmp.lt.s32.totalorder %v1960_v10, 16  ;;  %v2148_v26 = vmul.f32 %v11536_v59, %v11594_v13  ;;  %15237 = vst [vmem:[#allocation46_spill] sm:$0xff] %v11611_v48  ;;  %15238 = vst [vmem:[#allocation47_spill] sm:$0xff] %v11615_v22  ;;  %vm2026_vm6 = vcmp.lt.s32.totalorder %v1962_v5, 16 }
  0x49   : > { %v1425_v10 = vpack.c.bf16 %v11611_v48, %v1399_v15  ;;  %v677_v5 = vadd.s32 208, %v11296_v29 }
  0x4a   : > { %10130 = vmatmul.mubr.msk.bf16.vlgmr.msra.gmra.mxu0 %vm572_vm1, %v2168_v0  ;;  %v2144_v0 = vmul.f32 %v11476_v53, %v11507_v14  ;;  %vm1243_vm5 = vcmp.ge.s32.totalorder %v1211_v9, 0  ;;  %v11672_v9 = vld [vmem:[#allocation2 + $0x90] sm:$0xff] }
  0x4b   : > { %10196 = vmatpush3.bf16.msra.mxu0 %v11406_v58  ;;  %10133 = vmatprep.mubr.msk.bf16.mxu0 %vm572_vm1, %v2169_v6  ;;  %v11559_v58 = vld [vmem:[#allocation2 + $0x50] sm:$0xff]  ;;  %v1209_v6 = vadd.s32 4294967295, %v785_v20  ;;  %v673_v20 = vadd.s32 176, %v11296_v29  ;;  %15249 = vst [vmem:[#allocation57_spill] sm:$0xff] %v11672_v9  ;;  %v869_v18 = vand.u32 15, %v677_v5 }
  0x4c   : > { %10096 = vmatmul.mubr.msk.bf16.vlgmr.msra.gmra.mxu1 %vm572_vm1, %v1420_v12  ;;  %10850 = vmatprep.subr.msk.bf16.mxu0 %vm1534_vm0, %v11527_v25  ;;  %v813_v12 = vand.u32 15, %v669_v47  ;;  %v11588_v47 = vld [vmem:[#allocation2 + $0x52] sm:$0xff]  ;;  %v11592_v4 = vmul.f32 %v11520_v35, %v11559_v58 }
  0x4d   : > { %10162 = vmatpush3.bf16.msra.mxu1 %v11402_v56  ;;  %10099 = vmatprep.mubr.msk.bf16.mxu1 %vm572_vm1, %v1421_v30  ;;  %v676_v56 = vadd.s32 200, %v11296_v29  ;;  %v2171_v30 = vpack.c.bf16 %v2144_v0, %v11545_v62  ;;  %15232 = vst [vmem:[#allocation41_spill] sm:$0xff] %v11588_v47  ;;  %vm1241_vm3 = vcmp.ge.s32.totalorder %v1209_v6, 0  ;;  %v827_v0 = vand.u32 15, %v671_v42  ;;  %v11609_v42 = vld [vmem:[#allocation2 + $0x62] sm:$0xff] }
  0x4e   : > { %10849 = vmatprep.subr.msk.bf16.mxu1 %vm1534_vm0, %v11541_v61  ;;  %v1213_v61 = vadd.s32 4294967295, %v813_v12  ;;  %v841_v52 = vand.u32 15, %v673_v20  ;;  %v2172_v25 = vpack.c.bf16 %v11572_v21, %v11588_v47  ;;  %15236 = vst [vmem:[#allocation45_spill] sm:$0xff] %v11609_v42  ;;  %v11623_v12 = vsel %vm1241_vm3, 1.0, %v15229_v11  ;;  %v11629_v21 = vld [vmem:[#allocation2 + $0x70] sm:$0xff] }
  0x4f   : > { %v862_v60 = vand.u32 15, %v676_v56  ;;  %15239 = vst [vmem:[#allocation48_spill] sm:$0xff] %v11623_v12  ;;  %v15240_v20 = vpack.c.bf16 %v11503_v8, %v11498_v2  ;;  %v11631_v56 = vld [vmem:[#allocation2 + $0x8a] sm:$0xff]  ;;  %v1215_v59 = vadd.s32 4294967295, %v827_v0  ;;  %v1966_v6 = vadd.s32 1, %v848_v46  ;;  %v11653_v0 = vld [vmem:[#allocation2 + $0x82] sm:$0xff] }
  0x50   : > { %15241 = vst [vmem:[#allocation49_spill] sm:$0xff] %v11631_v56  ;;  %vm1245_vm7 = vcmp.ge.s32.totalorder %v1213_v61, 0  ;;  %v678_v2 = vadd.s32 216, %v11296_v29  ;;  %v2173_v47 = vpack.c.bf16 %v2148_v26, %v11609_v42  ;;  %v855_v62 = vand.u32 15, %v675_v27  ;;  %15243 = vst [vmem:[#allocation51_spill] sm:$0xff] %v11653_v0  ;;  %v11669_v26 = vld [vmem:[#allocation2 + $0x9a] sm:$0xff] }
  0x51   : > { %v1968_v57 = vadd.s32 1, %v862_v60  ;;  %v11659_v27 = vsel %vm1243_vm5, 1.0, %v15229_v11  ;;  %v11663_v60 = vsel %vm2026_vm6, 1.0, %v15229_v11  ;;  %v11667_v46 = vsel %vm1245_vm7, 1.0, %v15229_v11  ;;  %15248 = vst [vmem:[#allocation56_spill] sm:$0xff] %v11669_v26  ;;  %v11677_v61 = vld [vmem:[#allocation2 + $0x78] sm:$0xff] }
  0x52   : > { %10134 = vmatmul.mubr.msk.bf16.gmra.mxu0 %vm572_vm1, %v2170_v49  ;;  %v11619_v49 = vmul.f32 %v11580_v28, %v11598_v33  ;;  %v1964_v28 = vadd.s32 1, %v834_v63  ;;  %v1217_v33 = vadd.s32 4294967295, %v841_v52  ;;  %15245 = vst [vmem:[#allocation53_spill] sm:$0xff] %v11659_v27  ;;  %15246 = vst [vmem:[#allocation54_spill] sm:$0xff] %v11663_v60  ;;  %vm1247_vm9 = vcmp.ge.s32.totalorder %v1215_v59, 0  ;;  %v11695_v42 = vld [vmem:[#allocation2 + $0xa0] sm:$0xff] }
  0x53   : > { %10137 = vmatprep.mubr.msk.bf16.mxu0 %vm572_vm1, %v2171_v30  ;;  %v11635_v30 = vsel %vm2024_vm4, 1.0, %v15229_v11  ;;  %15247 = vst [vmem:[#allocation55_spill] sm:$0xff] %v11667_v46  ;;  %vm2030_vm10 = vcmp.lt.s32.totalorder %v1966_v6, 16  ;;  %v876_v15 = vand.u32 15, %v678_v2  ;;  %vm2032_vm12 = vcmp.lt.s32.totalorder %v1968_v57, 16  ;;  %15252 = vst [vmem:[#allocation60_spill] sm:$0xff] %v11695_v42 }
  0x54   : > { %10100 = vmatmul.mubr.msk.bf16.gmra.mxu1 %vm572_vm1, %v15240_v20  ;;  %15242 = vst [vmem:[#allocation50_spill] sm:$0xff] %v11635_v30  ;;  %v1424_v20 = vpack.c.bf16 %v11603_v37, %v11592_v4  ;;  %v11651_v52 = vmul.f32 %v11635_v30, %v11631_v56  ;;  %v11655_v4 = vld [vmem:[#allocation2 + $0x80] sm:$0xff]  ;;  %vm2028_vm8 = vcmp.lt.s32.totalorder %v1964_v28, 16  ;;  %vm1249_vm11 = vcmp.ge.s32.totalorder %v1217_v33, 0  ;;  %v11729_v37 = vld [vmem:[#allocation2 + $0x98] sm:$0xff] }
  0x55   : > { %10103 = vmatprep.mubr.msk.bf16.mxu1 %vm572_vm1, %v1423_v40  ;;  %v11647_v40 = vmul.f32 %v11623_v12, %v11629_v21  ;;  %15244 = vst [vmem:[#allocation52_spill] sm:$0xff] %v11655_v4  ;;  %v1219_v63 = vadd.s32 4294967295, %v855_v62  ;;  %v680_v30 = vadd.s32 232, %v11296_v29  ;;  %v1403_v2 = vmul.f32 %v11659_v27, %v11655_v4  ;;  %v11683_v12 = vld [vmem:[#allocation2 + $0xaa] sm:$0xff]  ;;  %v15283_v7 = vld [vmem:[#allocation46_spill] sm:$0xff] }
  0x56   : > { %v2175_v56 = vpack.c.bf16 %v11651_v52, %v11653_v0  ;;  %15250 = vst [vmem:[#allocation58_spill] sm:$0xff] %v11683_v12  ;;  %v679_v62 = vadd.s32 224, %v11296_v29  ;;  %v11699_v52 = vsel %vm1247_vm9, 1.0, %v15229_v11  ;;  %v11701_v0 = vld [vmem:[#allocation2 + $0xba] sm:$0xff]  ;;  %v11705_v28 = vsel %vm2030_vm10, 1.0, %v15229_v11  ;;  %v11707_v27 = vld [vmem:[#allocation2 + $0xb0] sm:$0xff] }
  0x57   : > { %15253 = vst [vmem:[#allocation61_spill] sm:$0xff] %v11699_v52  ;;  %15254 = vst [vmem:[#allocation62_spill] sm:$0xff] %v11701_v0  ;;  %v11720_v59 = vmul.f32 %v11667_v46, %v11672_v9  ;;  %v11722_v4 = vld [vmem:[#allocation2 + $0xca] sm:$0xff]  ;;  %v11726_v6 = vsel %vm2032_vm12, 1.0, %v15229_v11  ;;  %v1970_v48 = vadd.s32 1, %v876_v15  ;;  %v682_v33 = vadd.s32 248, %v11296_v29 }
  0x58   : > { %15255 = vst [vmem:[#allocation63_spill] sm:$0xff] %v11705_v28  ;;  %15258 = vst [vmem:[#allocation66_spill] sm:$0xff] %v11722_v4  ;;  %vm1251_vm13 = vcmp.ge.s32.totalorder %v1219_v63, 0  ;;  %v890_v13 = vand.u32 15, %v680_v30  ;;  %v11735_v46 = vld [vmem:[#allocation2 + $0xa2] sm:$0xff]  ;;  %v11739_v9 = vmul.f32 %v11699_v52, %v11695_v42  ;;  %v11743_v57 = vmul.f32 %v11705_v28, %v11701_v0  ;;  %v11756_v52 = vld [vmem:[#allocation2 + $0xb2] sm:$0xff] }
  0x59   : > { %15259 = vst [vmem:[#allocation67_spill] sm:$0xff] %v11726_v6  ;;  %15260 = vst [vmem:[#allocation68_spill] sm:$0xff] %v11735_v46  ;;  %v883_v35 = vand.u32 15, %v679_v62  ;;  %v11758_v42 = vld [vmem:[#allocation2 + $0xb8] sm:$0xff]  ;;  %v11762_v28 = vmul.f32 %v11726_v6, %v11722_v4  ;;  %v1428_v62 = vpack.c.bf16 %v11729_v37, %v11720_v59  ;;  %vm2034_vm14 = vcmp.lt.s32.totalorder %v1970_v48, 16  ;;  %v15290_v63 = vld [vmem:[#allocation36_spill] sm:$0xff] }
  0x5a   : > { %10138 = vmatmul.mubr.msk.bf16.gmra.mxu0 %vm572_vm1, %v2172_v25  ;;  %v11687_v25 = vsel %vm2028_vm8, 1.0, %v15229_v11  ;;  %15261 = vst [vmem:[#allocation69_spill] sm:$0xff] %v11756_v52  ;;  %v15264_v0 = vpack.c.bf16 %v11619_v49, %v11615_v22  ;;  %v11780_v4 = vadd.s32 4294967295, %v869_v18  ;;  %v11782_v59 = vadd.s32 1, %v890_v13 }
  0x5b   : > { %10141 = vmatprep.mubr.msk.bf16.mxu0 %vm572_vm1, %v2173_v47  ;;  %15251 = vst [vmem:[#allocation59_spill] sm:$0xff] %v11687_v25  ;;  %v11693_v47 = vmul.f32 %v11663_v60, %v11669_v26  ;;  %v11714_v60 = vld [vmem:[#allocation2 + $0x88] sm:$0xff]  ;;  %v11716_v26 = vld [vmem:[#allocation2 + $0x92] sm:$0xff]  ;;  %v11804_v18 = vsel %vm2034_vm14, 1.0, %v15229_v11  ;;  %v11849_v13 = vmul.f32 %v11466_v44, %v11559_v58  ;;  %vm609_vm6 = vcmask 58368  }
  0x5c   : > { %10104 = vmatmul.mubr.msk.bf16.gmra.mxu1 %vm572_vm1, %v1424_v20  ;;  %v11711_v20 = vsel %vm1249_vm11, 1.0, %v15229_v11  ;;  %15257 = vst [vmem:[#allocation65_spill] sm:$0xff] %v11716_v26  ;;  %v1427_v30 = vpack.c.bf16 %v11714_v60, %v1403_v2  ;;  %v11772_v2 = vsel %vm1251_vm13, 1.0, %v15229_v11  ;;  %15265 = vst [vmem:[#allocation72_spill] sm:$0xff] %v11804_v18  ;;  %vm1253_vm15 = vcmp.ge.s32.totalorder %v11780_v4, 0  ;;  %v12004_v4 = vld [vmem:[#allocation2 + $0xe2] sm:$0xff] }
  0x5d   : > { %15256 = vst [vmem:[#allocation64_spill] sm:$0xff] %v11711_v20  ;;  %10107 = vmatprep.mubr.msk.bf16.mxu1 %vm572_vm1, %v1425_v10  ;;  %v11733_v10 = vmul.f32 %v11687_v25, %v11683_v12  ;;  %v11747_v15 = vmul.f32 %v11711_v20, %v11707_v27  ;;  %v1426_v25 = vpack.c.bf16 %v11677_v61, %v11647_v40  ;;  %v11754_v12 = vld [vmem:[#allocation2 + $0xa8] sm:$0xff]  ;;  %v11768_v40 = vld [vmem:[#allocation2 + $0xc0] sm:$0xff]  ;;  %15263 = vst [vmem:[#allocation71_spill] sm:$0xff] %v11772_v2  ;;  %vm4968_vm7 = vcmask 15360  }
  0x5e   : > { %v2176_v5 = vpack.c.bf16 %v11693_v47, %v11716_v26  ;;  %v11766_v20 = vld [vmem:[#allocation2 + $0xc2] sm:$0xff]  ;;  %v904_v47 = vand.u32 15, %v682_v33  ;;  %v11785_v26 = vadd.s32 240, %v11296_v29  ;;  %v1429_v48 = vpack.c.bf16 %v11754_v12, %v11739_v9  ;;  %15272 = vst [vmem:[#allocation79_spill] sm:$0xff] %v11849_v13  ;;  %15327 = vst [vmem:[#allocation88_spill] sm:$0xff] %v12004_v4 }
  0x5f   : > { %15262 = vst [vmem:[#allocation70_spill] sm:$0xff] %v11766_v20  ;;  %v2177_v6 = vpack.c.bf16 %v11733_v10, %v11735_v46  ;;  %v11801_v29 = vmul.f32 %v11772_v2, %v11768_v40  ;;  %v11815_v9 = vmul.f32 %v11388_v45, %v11428_v19  ;;  %v11823_v33 = vmul.f32 %v11416_v36, %v11433_v23  ;;  %v15279_v36 = vld [vmem:[#allocation33_spill] sm:$0xff]  ;;  %v15289_v13 = vld [vmem:[#allocation43_spill] sm:$0xff] }
  0x60   : > { %vm2036_vm2 = vcmp.lt.s32.totalorder %v11782_v59, 16  ;;  %v897_v10 = vand.u32 15, %v11785_v26  ;;  %v11832_v19 = vmul.f32 %v11449_v32, %v11509_v17  ;;  %v11843_v26 = vmul.f32 %v11437_v24, %v11460_v41  ;;  %v15278_v24 = vld [vmem:[#allocation42_spill] sm:$0xff]  ;;  %610 = vst.msk [vmem:[#allocation2 + $0x120] sm:$0x3] %vm609_vm6, %v15229_v11 }
  0x61   : > { %15267 = vst [vmem:[#allocation74_spill] sm:$0xff] %v11815_v9  ;;  %15269 = vst [vmem:[#allocation76_spill] sm:$0xff] %v11823_v33  ;;  %v11857_v23 = vmul.f32 %v11480_v54, %v11596_v38  ;;  %v11863_v41 = vmul.f32 %v11476_v53, %v11553_v51  ;;  %v11871_v45 = vmul.f32 %v15279_v36, %v15278_v24  ;;  %v15284_v53 = vld [vmem:[#allocation52_spill] sm:$0xff]  ;;  %v15295_v24 = vld [vmem:[#allocation49_spill] sm:$0xff]  ;;  %v11972_v59 = vsel %vm1253_vm15, 1.0, %v15229_v11 }
  0x62   : > { %10142 = vmatmul.mubr.msk.bf16.gmra.mxu0 %vm572_vm1, %v15264_v0  ;;  %v11794_v0 = vadd.s32 4294967295, %v883_v35  ;;  %v11811_v35 = vadd.s32 1, %v904_v47  ;;  %15270 = vst [vmem:[#allocation77_spill] sm:$0xff] %v11832_v19  ;;  %15271 = vst [vmem:[#allocation78_spill] sm:$0xff] %v11843_v26  ;;  %v11853_v47 = vmul.f32 %v11453_v34, %v11507_v14  ;;  %v15281_v14 = vld [vmem:[#allocation44_spill] sm:$0xff]  ;;  %v15285_v26 = vld [vmem:[#allocation39_spill] sm:$0xff]  ;;  %v11893_v50 = vmul.f32 %v15290_v63, %v15289_v13 }
  0x63   : > { %10145 = vmatprep.mubr.msk.bf16.mxu0 %vm572_vm1, %v2175_v56  ;;  %v11808_v56 = vmul.f32 %v11398_v55, %v11445_v31  ;;  %15274 = vst [vmem:[#allocation81_spill] sm:$0xff] %v11857_v23  ;;  %15275 = vst [vmem:[#allocation82_spill] sm:$0xff] %v11863_v41  ;;  %v11882_v33 = vmul.f32 %v15285_v26, %v15284_v53  ;;  %v15296_v19 = vld [vmem:[#allocation40_spill] sm:$0xff]  ;;  %v15302_v63 = vld [vmem:[#allocation50_spill] sm:$0xff]  ;;  %vm648_vm8 = vcmask 25600  }
  0x64   : > { %10108 = vmatmul.mubr.msk.bf16.gmra.mxu1 %vm572_vm1, %v1426_v25  ;;  %v11819_v25 = vmul.f32 %v11425_v16, %v11462_v43  ;;  %vm1255_vm3 = vcmp.ge.s32.totalorder %v11794_v0, 0  ;;  %15273 = vst [vmem:[#allocation80_spill] sm:$0xff] %v11853_v47  ;;  %15280 = vst [vmem:[#allocation42_spill] sm:$0xff] %v11871_v45  ;;  %v15292_v47 = vld [vmem:[#allocation57_spill] sm:$0xff]  ;;  %v11904_v41 = vmul.f32 %v15296_v19, %v15295_v24  ;;  %v15301_v13 = vld [vmem:[#allocation56_spill] sm:$0xff]  ;;  %vm2038_vm4 = vcmp.lt.s32.totalorder %v11811_v35, 16 }
  0x65   : > { %15266 = vst [vmem:[#allocation73_spill] sm:$0xff] %v11808_v56  ;;  %10111 = vmatprep.mubr.msk.bf16.mxu1 %vm572_vm1, %v1427_v30  ;;  %v15276_v30 = vld [vmem:[#allocation34_spill] sm:$0xff]  ;;  %15286 = vst [vmem:[#allocation44_spill] sm:$0xff] %v11882_v33  ;;  %v11915_v51 = vmul.f32 %v15302_v63, %v15301_v13  ;;  %v15304_v36 = vld [vmem:[#allocation55_spill] sm:$0xff]  ;;  %v15326_v0 = vpack.c.bf16 %v11758_v42, %v11747_v15  ;;  %v12021_v35 = vsel %vm2038_vm4, 1.0, %v15229_v11 }
  0x66   : > { %15268 = vst [vmem:[#allocation75_spill] sm:$0xff] %v11819_v25  ;;  %v11867_v49 = vmul.f32 %v15276_v30, %v11629_v21  ;;  %15291 = vst [vmem:[#allocation46_spill] sm:$0xff] %v11893_v50  ;;  %v11919_v45 = vmul.f32 %v15304_v36, %v11707_v27  ;;  %v15306_v33 = vld [vmem:[#allocation58_spill] sm:$0xff]  ;;  %v11925_v25 = vld [vmem:[#allocation2 + $0xc8] sm:$0xff] }
  0x67   : > { %15297 = vst [vmem:[#allocation43_spill] sm:$0xff] %v11904_v41  ;;  %15303 = vst [vmem:[#allocation49_spill] sm:$0xff] %v11915_v51  ;;  %v15307_v24 = vld [vmem:[#allocation54_spill] sm:$0xff]  ;;  %v15310_v63 = vld [vmem:[#allocation61_spill] sm:$0xff]  ;;  %v11952_v41 = vsel %vm2036_vm2, 1.0, %v15229_v11 }
  0x68   : > { %15277 = vst [vmem:[#allocation83_spill] sm:$0xff] %v11867_v49  ;;  %v15299_v49 = vld [vmem:[#allocation53_spill] sm:$0xff]  ;;  %v11923_v19 = vmul.f32 %v15307_v24, %v15306_v33  ;;  %v11935_v22 = vmul.f32 %v15310_v63, %v11768_v40  ;;  %15316 = vst [vmem:[#allocation84_spill] sm:$0xff] %v11952_v41  ;;  %v15317_v24 = vld [vmem:[#allocation64_spill] sm:$0xff] }
  0x69   : > { %v11937_v50 = vld [vmem:[#allocation2 + $0xd0] sm:$0xff]  ;;  %v15319_v56 = vld [vmem:[#allocation66_spill] sm:$0xff]  ;;  %15322 = vst [vmem:[#allocation86_spill] sm:$0xff] %v11972_v59  ;;  %15328 = vst [vmem:[#allocation89_spill] sm:$0xff] %v12021_v35 }
  0x6a   : > { %10146 = vmatmul.mubr.msk.bf16.gmra.mxu0 %vm572_vm1, %v2176_v5  ;;  %v15298_v5 = vld [vmem:[#allocation60_spill] sm:$0xff]  ;;  %15308 = vst [vmem:[#allocation56_spill] sm:$0xff] %v11923_v19  ;;  %15311 = vst [vmem:[#allocation58_spill] sm:$0xff] %v11935_v22  ;;  %v11958_v33 = vmul.f32 %v15317_v24, %v11937_v50  ;;  %v11967_v46 = vld [vmem:[#allocation2 + $0xd8] sm:$0xff]  ;;  %v15323_v19 = vpack.c.bf16 %v11743_v57, %v11756_v52 }
  0x6b   : > { %10149 = vmatprep.mubr.msk.bf16.mxu0 %vm572_vm1, %v2177_v6  ;;  %v15293_v6 = vld [vmem:[#allocation48_spill] sm:$0xff]  ;;  %v11908_v34 = vmul.f32 %v15299_v49, %v15298_v5  ;;  %15305 = vst [vmem:[#allocation60_spill] sm:$0xff] %v11919_v45  ;;  %v15320_v45 = vld [vmem:[#allocation63_spill] sm:$0xff]  ;;  %v11995_v57 = vld [vmem:[#allocation2 + $0xd2] sm:$0xff] }
  0x6c   : > { %10112 = vmatmul.mubr.msk.bf16.gmra.mxu1 %vm572_vm1, %v1428_v62  ;;  %v11900_v23 = vmul.f32 %v15293_v6, %v15292_v47  ;;  %v15314_v62 = vld [vmem:[#allocation59_spill] sm:$0xff]  ;;  %v1940_v13 = vld [vmem:[#allocation2 + $0xea] sm:$0xff]  ;;  %15318 = vst [vmem:[#allocation85_spill] sm:$0xff] %v11958_v33 }
  0x6d   : > { %15300 = vst [vmem:[#allocation57_spill] sm:$0xff] %v11908_v34  ;;  %10115 = vmatprep.mubr.msk.bf16.mxu1 %vm572_vm1, %v1429_v48  ;;  %v11962_v48 = vmul.f32 %v15320_v45, %v15319_v56  ;;  %v11980_v56 = vld [vmem:[#allocation2 + $0xe0] sm:$0xff]  ;;  %v1225_v45 = vadd.s32 4294967295, %v897_v10  ;;  %v15325_v34 = vpack.c.bf16 %v11762_v28, %v11766_v20  ;;  %v1413_v10 = vmul.f32 %v11972_v59, %v11937_v50  ;;  %v12011_v22 = vld [vmem:[#allocation2 + $0xe8] sm:$0xff]  ;;  %v12013_v20 = vld [vmem:[#allocation2 + $0xf0] sm:$0xff] }
  0x6e   : > { %15294 = vst [vmem:[#allocation52_spill] sm:$0xff] %v11900_v23  ;;  %v15313_v23 = vld [vmem:[#allocation62_spill] sm:$0xff]  ;;  %v12017_v15 = vmul.f32 %v11772_v2, %v11980_v56 }
  0x6f   : > { %v11947_v9 = vmul.f32 %v15314_v62, %v15313_v23  ;;  %15321 = vst [vmem:[#allocation66_spill] sm:$0xff] %v11962_v48  ;;  %v1431_v23 = vpack.c.bf16 %v11925_v25, %v11801_v29  ;;  %v2162_v62 = vmul.f32 %v11804_v18, %v1938_v39  ;;  %v11985_v29 = vsel %vm1255_vm3, 1.0, %v15229_v11  ;;  %v1942_v48 = vld [vmem:[#allocation2 + $0xfa] sm:$0xff] }
  0x70   : > { %15324 = vst [vmem:[#allocation87_spill] sm:$0xff] %v11985_v29  ;;  %vm1257_vm5 = vcmp.ge.s32.totalorder %v1225_v45, 0  ;;  %v1432_v52 = vpack.c.bf16 %v11967_v46, %v1413_v10  ;;  %v12031_v45 = vld [vmem:[#allocation2 + $0xf8] sm:$0xff]  ;;  %v2166_v10 = vmul.f32 %v12021_v35, %v1942_v48 }
  0x71   : > { %15315 = vst [vmem:[#allocation62_spill] sm:$0xff] %v11947_v9  ;;  %v2180_v28 = vpack.c.bf16 %v2162_v62, %v11995_v57  ;;  %v12028_v62 = vmul.f32 %v11972_v59, %v12013_v20 }
  0x72   : > { %10150 = vmatmul.mubr.msk.bf16.gmra.mxu0 %vm572_vm1, %v15323_v19  ;;  %v2164_v19 = vmul.f32 %v11952_v41, %v1940_v13 }
  0x73   : > { %10153 = vmatprep.mubr.msk.bf16.mxu0 %vm572_vm1, %v15325_v34  ;;  %v1415_v34 = vmul.f32 %v11985_v29, %v11980_v56  ;;  %v12040_v29 = vsel %vm1257_vm5, 1.0, %v15229_v11 }
  0x74   : > { %10116 = vmatmul.mubr.msk.bf16.gmra.mxu1 %vm572_vm1, %v15326_v0  ;;  %v2181_v0 = vpack.c.bf16 %v2164_v19, %v12004_v4  ;;  %v12036_v19 = vmul.f32 %v11804_v18, %v1940_v13  ;;  %15330 = vst [vmem:[#allocation90_spill] sm:$0xff] %v12040_v29  ;;  %v12051_v13 = vld [vmem:[#allocation2 + $0xf2] sm:$0xff]  ;;  %v12061_v18 = vmul.f32 %v11952_v41, %v1942_v48 }
  0x75   : > { %10119 = vmatprep.mubr.msk.bf16.mxu1 %vm572_vm1, %v1431_v23  ;;  %v15329_v23 = vld [vmem:[#allocation67_spill] sm:$0xff]  ;;  %v1433_v51 = vpack.c.bf16 %v12011_v22, %v1415_v34  ;;  %v1417_v34 = vmul.f32 %v12040_v29, %v12013_v20  ;;  %v15333_v4 = vld [vmem:[#allocation5_spill] sm:$0xff]  ;;  %v2465_v48 = vmul.f32 %v11449_v32, %v11462_v43  ;;  %v15337_v43 = vld [vmem:[#allocation8_spill] sm:$0xff] }
  0x76   : > { %v12024_v33 = vmul.f32 %v15329_v23, %v1938_v39  ;;  %v15331_v39 = vld [vmem:[#allocation23_spill] sm:$0xff] }
  0x77   : > { %v2461_v23 = vmul.f32 %v11398_v55, %v15331_v39  ;;  %v1434_v9 = vpack.c.bf16 %v12031_v45, %v1417_v34  ;;  %v15334_v39 = vld [vmem:[#allocation35_spill] sm:$0xff]  ;;  %v2495_v34 = vpack.c.bf16 %v11503_v8, %v2465_v48  ;;  %v4008_v55 = vld [vmem:[#allocation2 + $0x8a] sm:$0xff] }
  0x7a   : > { %10154 = vmatmul.mubr.msk.bf16.gmra.mxu0 %vm572_vm1, %v2180_v28  ;;  %v2182_v28 = vpack.c.bf16 %v2166_v10, %v12051_v13  ;;  %v3506_v10 = vsel %vm1534_vm0, %v15334_v39, 0 }
  0x7b   : > { %10157 = vmatprep.mubr.msk.bf16.mxu0 %vm572_vm1, %v2181_v0  ;;  %v15332_v0 = vld [vmem:[#allocation31_spill] sm:$0xff] }
  0x7c   : > { %10120 = vmatmul.mubr.msk.bf16.gmra.mxu1 %vm572_vm1, %v1432_v52  ;;  %v2493_v35 = vpack.c.bf16 %v15332_v0, %v2461_v23  ;;  %v3127_v52 = vpack.c.bf16 %v12061_v18, %v12051_v13  ;;  %v2467_v0 = vmul.f32 %v11466_v44, %v11509_v17  ;;  %v15339_v17 = vld [vmem:[#allocation12_spill] sm:$0xff] }
  0x7d   : > { %10123 = vmatprep.mubr.msk.bf16.mxu1 %vm572_vm1, %v1433_v51  ;;  %v2463_v51 = vmul.f32 %v11425_v16, %v11445_v31  ;;  %v15336_v31 = vld [vmem:[#allocation37_spill] sm:$0xff] }
  0x7e   : > { %v2496_v48 = vpack.c.bf16 %v11557_v3, %v2467_v0  ;;  %v2770_v0 = vld [vmem:[#allocation2 + $0x89] sm:$0xff] }
  0x7f   : > { %v2494_v23 = vpack.c.bf16 %v11490_v1, %v2463_v51  ;;  %v2469_v51 = vmul.f32 %v11480_v54, %v11559_v58  ;;  %v2473_v58 = vmul.f32 %v15285_v26, %v11629_v21  ;;  %v2477_v21 = vmul.f32 %v15299_v49, %v15292_v47  ;;  %v4000_v18 = vld [vmem:[#allocation2 + $0x4a] sm:$0xff] }
  0x80   : > { %v2481_v47 = vmul.f32 %v15310_v63, %v11707_v27  ;;  %v2485_v27 = vmul.f32 %v11772_v2, %v11937_v50  ;;  %v15419_v49 = vld [vmem:[#allocation25_spill] sm:$0xff] }
  0x81   : > { %v2497_v39 = vpack.c.bf16 %v15281_v14, %v2469_v51  ;;  %v2771_v51 = vld [vmem:[#allocation2 + $0x91] sm:$0xff] }
  0x82   : > { %10158 = vmatmul.mubr.msk.bf16.gmra.mxu0 %vm572_vm1, %v2182_v28  ;;  %v12094_v28 = vld [vmem:[%s14952_s2 + $0x1c] sm:$0xf] }
  0x83   : > { %10197 = vmatprep.mubr.msk.bf16.mxu0 %vm572_vm1, %v15333_v4  ;;  %v12083_v4 = vld [vmem:[%s14952_s2 + $0x20] sm:$0xf] }
  0x84   : > { %10124 = vmatmul.mubr.msk.bf16.gmra.mxu1 %vm572_vm1, %v1434_v9  ;;  %v15335_v9 = vld [vmem:[#allocation6_spill] sm:$0xff] }
  0x85   : > { %10163 = vmatprep.mubr.msk.bf16.mxu1 %vm572_vm1, %v2493_v35  ;;  %v3180_v35 = vsel %vm1534_vm0, %v15336_v31, 0  ;;  %v15340_v31 = vld [vmem:[#allocation13_spill] sm:$0xff] }
  0x8a   : > { %10198 = vmatmul.mubr.msk.bf16.vlgmr.msra.gmra.mxu0 %vm572_vm1, %v15335_v9  ;;  %v2499_v9 = vpack.c.bf16 %v11677_v61, %v2473_v58 }
  0x8b   : > { %10264 = vmatpush3.bf16.msra.mxu0 %v3506_v10  ;;  %10201 = vmatprep.mubr.msk.bf16.mxu0 %vm572_vm1, %v15337_v43  ;;  %v2471_v10 = vmul.f32 %v15276_v30, %v11596_v38  ;;  %v2769_v43 = vld [vmem:[#allocation2 + $0x81] sm:$0xff]  ;;  %v2475_v38 = vmul.f32 %v15293_v6, %v15284_v53  ;;  %v2479_v53 = vmul.f32 %v15304_v36, %v15298_v5 }
  0x8c   : > { %10164 = vmatmul.mubr.msk.bf16.vlgmr.msra.gmra.mxu1 %vm572_vm1, %v2494_v23  ;;  %10852 = vmatprep.subr.msk.bf16.mxu0 %vm1534_vm0, %v12083_v4  ;;  %v15338_v23 = vld [vmem:[#allocation9_spill] sm:$0xff]  ;;  %v2483_v5 = vmul.f32 %v15317_v24, %v11768_v40  ;;  %v2487_v40 = vmul.f32 %v11972_v59, %v11980_v56  ;;  %v2785_v56 = vld [vmem:[#allocation2 + $0x101] sm:$0xff] }
  0x8d   : > { %10230 = vmatpush3.bf16.msra.mxu1 %v3180_v35  ;;  %10167 = vmatprep.mubr.msk.bf16.mxu1 %vm572_vm1, %v2495_v34  ;;  %v2498_v34 = vpack.c.bf16 %v15283_v7, %v2471_v10  ;;  %v15341_v35 = vld [vmem:[#allocation19_spill] sm:$0xff]  ;;  %v2501_v10 = vpack.c.bf16 %v11729_v37, %v2477_v21  ;;  %v2502_v58 = vpack.c.bf16 %v11754_v12, %v2479_v53  ;;  %v15348_v53 = vld [vmem:[#allocation21_spill] sm:$0xff] }
  0x8e   : > { %10851 = vmatprep.subr.msk.bf16.mxu1 %vm1534_vm0, %v12094_v28  ;;  %v4004_v24 = vld [vmem:[#allocation2 + $0x6a] sm:$0xff]  ;;  %v4003_v30 = vld [vmem:[#allocation2 + $0x62] sm:$0xff] }
  0x92   : > { %10202 = vmatmul.mubr.msk.bf16.gmra.mxu0 %vm572_vm1, %v15338_v23 }
  0x93   : > { %10205 = vmatprep.mubr.msk.bf16.mxu0 %vm572_vm1, %v15339_v17  ;;  %v2500_v17 = vpack.c.bf16 %v11714_v60, %v2475_v38  ;;  %v15345_v38 = vld [vmem:[#allocation14_spill] sm:$0xff] }
  0x94   : > { %10168 = vmatmul.mubr.msk.bf16.gmra.mxu1 %vm572_vm1, %v2496_v48  ;;  %v2772_v48 = vld [vmem:[#allocation2 + $0x99] sm:$0xff] }
  0x95   : > { %10171 = vmatprep.mubr.msk.bf16.mxu1 %vm572_vm1, %v2497_v39  ;;  %v12130_v39 = vpack.c.bf16 %v2770_v0, %v2769_v43  ;;  %v12132_v23 = vpack.c.bf16 %v2772_v48, %v2771_v51  ;;  %v2505_v43 = vpack.c.bf16 %v11967_v46, %v2485_v27  ;;  %v15344_v0 = vld [vmem:[#allocation11_spill] sm:$0xff]  ;;  %v2506_v48 = vpack.c.bf16 %v12011_v22, %v2487_v40  ;;  %v15351_v27 = vld [vmem:[#allocation74_spill] sm:$0xff] }
  0x96   : > { %v15346_v51 = vld [vmem:[#allocation87_spill] sm:$0xff] }
  0x97   : > { %v2489_v50 = vmul.f32 %v15346_v51, %v12013_v20 }
  0x99   : > { %v2507_v21 = vpack.c.bf16 %v12031_v45, %v2489_v50  ;;  %v15356_v50 = vld [vmem:[#allocation77_spill] sm:$0xff] }
  0x9a   : > { %10206 = vmatmul.mubr.msk.bf16.gmra.mxu0 %vm572_vm1, %v15340_v31  ;;  %v15343_v31 = vld [vmem:[#allocation10_spill] sm:$0xff] }
  0x9b   : > { %10209 = vmatprep.mubr.msk.bf16.mxu0 %vm572_vm1, %v15341_v35  ;;  %v2504_v35 = vpack.c.bf16 %v11925_v25, %v2483_v5 }
  0x9c   : > { %10172 = vmatmul.mubr.msk.bf16.gmra.mxu1 %vm572_vm1, %v2498_v34  ;;  %v2503_v34 = vpack.c.bf16 %v11758_v42, %v2481_v47  ;;  %v2786_v47 = vld [vmem:[#allocation2 + $0x109] sm:$0xff] }
  0x9d   : > { %10175 = vmatprep.mubr.msk.bf16.mxu1 %vm572_vm1, %v2499_v9  ;;  %v15342_v9 = vld [vmem:[#allocation7_spill] sm:$0xff] }
  0xa2   : > { %10210 = vmatmul.mubr.msk.bf16.gmra.mxu0 %vm572_vm1, %v12130_v39 }
  0xa3   : > { %10213 = vmatprep.mubr.msk.bf16.mxu0 %vm572_vm1, %v12132_v23 }
  0xa4   : > { %10176 = vmatmul.mubr.msk.bf16.gmra.mxu1 %vm572_vm1, %v2500_v17  ;;  %v2459_v17 = vld [vmem:[#allocation2 + $0x100] sm:$0xff] }
  0xa5   : > { %10179 = vmatprep.mubr.msk.bf16.mxu1 %vm572_vm1, %v2501_v10  ;;  %v15347_v10 = vld [vmem:[#allocation16_spill] sm:$0xff]  ;;  %v2491_v20 = vmul.f32 %v12040_v29, %v2459_v17 }
  0xaa   : > { %10214 = vmatmul.mubr.msk.bf16.gmra.mxu0 %vm572_vm1, %v15342_v9 }
  0xab   : > { %10217 = vmatprep.mubr.msk.bf16.mxu0 %vm572_vm1, %v15343_v31  ;;  %v15349_v31 = vld [vmem:[#allocation73_spill] sm:$0xff] }
  0xac   : > { %10180 = vmatmul.mubr.msk.bf16.gmra.mxu1 %vm572_vm1, %v2502_v58  ;;  %v2460_v58 = vld [vmem:[#allocation2 + $0x108] sm:$0xff]  ;;  %v15350_v5 = vpack.c.bf16 %v11490_v1, %v15349_v31  ;;  %v3800_v1 = vsel %vm1534_vm0, %v12094_v28, 0  ;;  %v15369_v31 = vld [vmem:[#allocation38_spill] sm:$0xff] }
  0xad   : > { %10183 = vmatprep.mubr.msk.bf16.mxu1 %vm572_vm1, %v2503_v34  ;;  %v12180_v34 = vpack.c.bf16 %v2786_v47, %v2785_v56  ;;  %v2508_v9 = vpack.c.bf16 %v2460_v58, %v2491_v20  ;;  %v15362_v56 = vld [vmem:[#allocation32_spill] sm:$0xff]  ;;  %v15364_v47 = vld [vmem:[#allocation79_spill] sm:$0xff] }
  0xae   : > { %v15365_v28 = vpack.c.bf16 %v15281_v14, %v15364_v47 }
  0xb2   : > { %10218 = vmatmul.mubr.msk.bf16.gmra.mxu0 %vm572_vm1, %v15344_v0  ;;  %v4126_v0 = vsel %vm1534_vm0, %v12083_v4, 0  ;;  %v15361_v4 = vld [vmem:[#allocation78_spill] sm:$0xff]  ;;  %vm4464_vm0 = vcmask 1041408  }
  0xb3   : > { %10221 = vmatprep.mubr.msk.bf16.mxu0 %vm572_vm1, %v15345_v38  ;;  %v15354_v38 = vld [vmem:[#allocation75_spill] sm:$0xff] }
  0xb4   : > { %10184 = vmatmul.mubr.msk.bf16.gmra.mxu1 %vm572_vm1, %v2504_v35  ;;  %v15352_v35 = vld [vmem:[#allocation26_spill] sm:$0xff]  ;;  %v15355_v40 = vpack.c.bf16 %v11503_v8, %v15354_v38  ;;  %v15363_v8 = vpack.c.bf16 %v15361_v4, %v15362_v56  ;;  %v15376_v38 = vld [vmem:[#allocation44_spill] sm:$0xff]  ;;  %v15386_v4 = vld [vmem:[#allocation57_spill] sm:$0xff] }
  0xb5   : > { %10187 = vmatprep.mubr.msk.bf16.mxu1 %vm572_vm1, %v2505_v43  ;;  %v15353_v43 = vpack.c.bf16 %v15351_v27, %v15352_v35  ;;  %v15371_v27 = vld [vmem:[#allocation82_spill] sm:$0xff]  ;;  %v15372_v35 = vld [vmem:[#allocation41_spill] sm:$0xff]  ;;  %v15388_v56 = vld [vmem:[#allocation43_spill] sm:$0xff] }
  0xba   : > { %10222 = vmatmul.mubr.msk.bf16.gmra.mxu0 %vm572_vm1, %v15347_v10  ;;  %v15359_v10 = vld [vmem:[#allocation28_spill] sm:$0xff] }
  0xbb   : > { %10225 = vmatprep.mubr.msk.bf16.mxu0 %vm572_vm1, %v15348_v53 }
  0xbc   : > { %10188 = vmatmul.mubr.msk.bf16.gmra.mxu1 %vm572_vm1, %v2506_v48  ;;  %v15357_v48 = vpack.c.bf16 %v11557_v3, %v15356_v50  ;;  %v15366_v3 = vld [vmem:[#allocation81_spill] sm:$0xff] }
  0xbd   : > { %10191 = vmatprep.mubr.msk.bf16.mxu1 %vm572_vm1, %v2507_v21  ;;  %v15358_v21 = vld [vmem:[#allocation76_spill] sm:$0xff]  ;;  %v15367_v20 = vpack.c.bf16 %v15283_v7, %v15366_v3  ;;  %v15377_v7 = vpack.c.bf16 %v11714_v60, %v15376_v38  ;;  %v15387_v60 = vpack.c.bf16 %v11754_v12, %v15386_v4  ;;  %v15392_v3 = vld [vmem:[#allocation65_spill] sm:$0xff]  ;;  %v15396_v12 = vld [vmem:[#allocation58_spill] sm:$0xff]  ;;  %v3435_v4 = vmul.f32 %v15346_v51, %v2459_v17 }
  0xbe   : > { %v15360_v53 = vpack.c.bf16 %v15358_v21, %v15359_v10  ;;  %v15382_v21 = vld [vmem:[#allocation47_spill] sm:$0xff]  ;;  %v15401_v38 = vld [vmem:[#allocation62_spill] sm:$0xff]  ;;  %v3405_v17 = vld [vmem:[#allocation2 + $0x110] sm:$0xff] }
  0xc2   : > { %10226 = vmatmul.mubr.msk.bf16.gmra.mxu0 %vm572_vm1, %v12180_v34 }
  0xc3   : > { %10265 = vmatprep.mubr.msk.bf16.mxu0 %vm572_vm1, %v15350_v5 }
  0xc4   : > { %10192 = vmatmul.mubr.msk.bf16.gmra.mxu1 %vm572_vm1, %v2508_v9  ;;  %v15368_v9 = vld [vmem:[#allocation80_spill] sm:$0xff] }
  0xc5   : > { %10231 = vmatprep.mubr.msk.bf16.mxu1 %vm572_vm1, %v15353_v43  ;;  %v15370_v5 = vpack.c.bf16 %v15368_v9, %v15369_v31  ;;  %v15373_v43 = vpack.c.bf16 %v15371_v27, %v15372_v35  ;;  %v15398_v35 = vld [vmem:[#allocation56_spill] sm:$0xff] }
  0xca   : > { %10266 = vmatmul.mubr.msk.bf16.vlgmr.msra.gmra.mxu0 %vm572_vm1, %v15355_v40  ;;  %v15378_v40 = vld [vmem:[#allocation42_spill] sm:$0xff] }
  0xcb   : > { %10332 = vmatpush3.bf16.msra.mxu0 %v4126_v0  ;;  %10269 = vmatprep.mubr.msk.bf16.mxu0 %vm572_vm1, %v15357_v48  ;;  %v15374_v0 = vld [vmem:[#allocation83_spill] sm:$0xff]  ;;  %v15381_v48 = vld [vmem:[#allocation46_spill] sm:$0xff] }
  0xcc   : > { %10232 = vmatmul.mubr.msk.bf16.vlgmr.msra.gmra.mxu1 %vm572_vm1, %v15360_v53  ;;  %v15375_v14 = vpack.c.bf16 %v11677_v61, %v15374_v0  ;;  %v15383_v10 = vpack.c.bf16 %v15381_v48, %v15382_v21  ;;  %v15384_v53 = vld [vmem:[#allocation52_spill] sm:$0xff] }
  0xcd   : > { %10298 = vmatpush3.bf16.msra.mxu1 %v3800_v1  ;;  %10235 = vmatprep.mubr.msk.bf16.mxu1 %vm572_vm1, %v15363_v8  ;;  %v15379_v1 = vld [vmem:[#allocation45_spill] sm:$0xff]  ;;  %v15385_v61 = vpack.c.bf16 %v11729_v37, %v15384_v53  ;;  %v15389_v8 = vld [vmem:[#allocation51_spill] sm:$0xff]  ;;  %v15394_v37 = vld [vmem:[#allocation60_spill] sm:$0xff] }
  0xce   : > { %v15380_v50 = vpack.c.bf16 %v15378_v40, %v15379_v1  ;;  %v15390_v47 = vpack.c.bf16 %v15388_v56, %v15389_v8  ;;  %v15395_v31 = vpack.c.bf16 %v11758_v42, %v15394_v37  ;;  %v15407_v56 = vld [vmem:[#allocation66_spill] sm:$0xff] }
  0xcf   : > { %v15408_v8 = vld [vmem:[#allocation70_spill] sm:$0xff] }
  0xd2   : > { %10270 = vmatmul.mubr.msk.bf16.gmra.mxu0 %vm572_vm1, %v15365_v28  ;;  %v15391_v28 = vld [vmem:[#allocation49_spill] sm:$0xff] }
  0xd3   : > { %10273 = vmatprep.mubr.msk.bf16.mxu0 %vm572_vm1, %v15367_v20  ;;  %v15393_v20 = vpack.c.bf16 %v15391_v28, %v15392_v3 }
  0xd4   : > { %10236 = vmatmul.mubr.msk.bf16.gmra.mxu1 %vm572_vm1, %v15370_v5  ;;  %v15397_v5 = vpack.c.bf16 %v11925_v25, %v15396_v12  ;;  %v12324_v12 = vld [vmem:[#allocation2 + $0x10a] sm:$0xff] }
  0xd5   : > { %10239 = vmatprep.mubr.msk.bf16.mxu1 %vm572_vm1, %v15373_v43  ;;  %v15399_v43 = vld [vmem:[#allocation68_spill] sm:$0xff] }
  0xd6   : > { %v15400_v0 = vpack.c.bf16 %v15398_v35, %v15399_v43  ;;  %v15412_v43 = vld [vmem:[#allocation15_spill] sm:$0xff] }
  0xda   : > { %10274 = vmatmul.mubr.msk.bf16.gmra.mxu0 %vm572_vm1, %v15375_v14 }
  0xdb   : > { %10277 = vmatprep.mubr.msk.bf16.mxu0 %vm572_vm1, %v15377_v7  ;;  %v15402_v7 = vld [vmem:[#allocation69_spill] sm:$0xff] }
  0xdc   : > { %10240 = vmatmul.mubr.msk.bf16.gmra.mxu1 %vm572_vm1, %v15380_v50  ;;  %v15403_v40 = vpack.c.bf16 %v15401_v38, %v15402_v7  ;;  %v15413_v7 = vld [vmem:[#allocation88_spill] sm:$0xff] }
  0xdd   : > { %10243 = vmatprep.mubr.msk.bf16.mxu1 %vm572_vm1, %v15383_v10  ;;  %v15404_v10 = vld [vmem:[#allocation85_spill] sm:$0xff] }
  0xde   : > { %v15405_v53 = vpack.c.bf16 %v11967_v46, %v15404_v10  ;;  %v15410_v46 = vpack.c.bf16 %v12024_v33, %v11995_v57  ;;  %v15411_v33 = vpack.c.bf16 %v12031_v45, %v12028_v62  ;;  %v3437_v57 = vmul.f32 %v12040_v29, %v3405_v17  ;;  %v15415_v62 = vld [vmem:[#allocation89_spill] sm:$0xff] }
  0xdf   : > { %v3112_v45 = vmul.f32 %v15415_v62, %v12324_v12 }
  0xe2   : > { %10278 = vmatmul.mubr.msk.bf16.gmra.mxu0 %vm572_vm1, %v15385_v61  ;;  %v15406_v61 = vpack.c.bf16 %v12011_v22, %v12017_v15  ;;  %v3453_v15 = vpack.c.bf16 %v2460_v58, %v3435_v4  ;;  %v3406_v58 = vld [vmem:[#allocation2 + $0x118] sm:$0xff] }
  0xe3   : > { %10281 = vmatprep.mubr.msk.bf16.mxu0 %vm572_vm1, %v15387_v60 }
  0xe4   : > { %10244 = vmatmul.mubr.msk.bf16.gmra.mxu1 %vm572_vm1, %v15390_v47  ;;  %v15409_v47 = vpack.c.bf16 %v15407_v56, %v15408_v8  ;;  %v3701_v8 = vld [vmem:[#allocation2 + $0x21] sm:$0xff] }
  0xe5   : > { %10247 = vmatprep.mubr.msk.bf16.mxu1 %vm572_vm1, %v15393_v20 }
  0xea   : > { %v12261_v9 = vpop.f32.mrf.mxu0  ;;  %10282 = vmatmul.mubr.msk.bf16.gmra.mxu0 %vm572_vm1, %v15395_v31  ;;  %v3996_v31 = vld [vmem:[#allocation2 + $0x2a] sm:$0xff] }
  0xeb   : > { %10285 = vmatprep.mubr.msk.bf16.mxu0 %vm572_vm1, %v15397_v5 }
  0xec   : > { %v12271_v27 = vpop.f32.mrf.mxu1  ;;  %10248 = vmatmul.mubr.msk.bf16.gmra.mxu1 %vm572_vm1, %v15400_v0  ;;  %v12277_v14 = vpop.f32.mrf.mxu0  ;;  %v4028_v0 = vmul.f32 %v15412_v43, %v3996_v31  ;;  %v3704_v43 = vld [vmem:[#allocation2 + $0x39] sm:$0xff] }
  0xed   : > { %10251 = vmatprep.mubr.msk.bf16.mxu1 %vm572_vm1, %v15403_v40  ;;  %v15414_v40 = vpack.c.bf16 %v12036_v19, %v15413_v7  ;;  %v3454_v19 = vpack.c.bf16 %v3406_v58, %v3437_v57  ;;  %v3997_v58 = vld [vmem:[#allocation2 + $0x32] sm:$0xff] }
  0xee   : > { %v12283_v42 = vpop.f32.mrf.mxu1  ;;  %v12285_v1 = vpop.f32.mrf.mxu0 }
  0xf0   : > { %v12287_v25 = vpop.f32.mrf.mxu1  ;;  %v12289_v50 = vpop.f32.mrf.mxu0 }
  0xf2   : > { %v12291_v48 = vpop.f32.mrf.mxu1  ;;  %v12293_v21 = vpop.f32.mrf.mxu0  ;;  %10286 = vmatmul.mubr.msk.bf16.gmra.mxu0 %vm572_vm1, %v15405_v53  ;;  %v3995_v53 = vld [vmem:[#allocation2 + $0x22] sm:$0xff] }
  0xf3   : > { %10289 = vmatprep.mubr.msk.bf16.mxu0 %vm572_vm1, %v15406_v61  ;;  %v12351_v61 = vld [vmem:[#allocation2 + $0x102] sm:$0xff] }
  0xf4   : > { %v12304_v60 = vpop.f32.mrf.mxu1  ;;  %10252 = vmatmul.mubr.msk.bf16.gmra.mxu1 %vm572_vm1, %v15409_v47  ;;  %v12310_v28 = vpop.f32.mrf.mxu0  ;;  %v3702_v47 = vld [vmem:[#allocation2 + $0x29] sm:$0xff] }
  0xf5   : > { %10255 = vmatprep.mubr.msk.bf16.mxu1 %vm572_vm1, %v15410_v46  ;;  %v4059_v46 = vpack.c.bf16 %v4028_v0, %v3995_v53  ;;  %v3733_v13 = vpack.c.bf16 %v3702_v47, %v3701_v8  ;;  %v15417_v0 = vld [vmem:[#allocation22_spill] sm:$0xff]  ;;  %v3999_v8 = vld [vmem:[#allocation2 + $0x42] sm:$0xff]  ;;  %v3703_v47 = vld [vmem:[#allocation2 + $0x31] sm:$0xff] }
  0xf6   : > { %v12316_v3 = vpop.f32.mrf.mxu1  ;;  %v12318_v22 = vpop.f32.mrf.mxu0  ;;  %v4032_v53 = vmul.f32 %v15417_v0, %v4000_v18  ;;  %v4002_v18 = vld [vmem:[#allocation2 + $0x5a] sm:$0xff] }
  0xf7   : > { %v4034_v6 = vmul.f32 %v15419_v49, %v4002_v18  ;;  %v3709_v18 = vld [vmem:[#allocation2 + $0x61] sm:$0xff]  ;;  %v3710_v49 = vld [vmem:[#allocation2 + $0x69] sm:$0xff] }
  0xf8   : > { %v12320_v20 = vpop.f32.mrf.mxu1  ;;  %v12322_v37 = vpop.f32.mrf.mxu0  ;;  %v4061_v59 = vpack.c.bf16 %v4032_v53, %v3999_v8 }
  0xfa   : > { %v12326_v5 = vpop.f32.mrf.mxu1  ;;  %v12328_v35 = vpop.f32.mrf.mxu0  ;;  %10290 = vmatmul.mubr.msk.bf16.gmra.mxu0 %vm572_vm1, %v15411_v33  ;;  %v3128_v33 = vpack.c.bf16 %v3112_v45, %v12351_v61 }
  0xfb   : > { %10293 = vmatprep.mubr.msk.bf16.mxu0 %vm572_vm1, %v3453_v15  ;;  %v3998_v15 = vld [vmem:[#allocation2 + $0x3a] sm:$0xff] }
  0xfc   : > { %v12337_v38 = vpop.f32.mrf.mxu1  ;;  %10256 = vmatmul.mubr.msk.bf16.gmra.mxu1 %vm572_vm1, %v15414_v40  ;;  %v12343_v10 = vpop.f32.mrf.mxu0  ;;  %v15416_v40 = vld [vmem:[#allocation18_spill] sm:$0xff] }
  0xfd   : > { %10259 = vmatprep.mubr.msk.bf16.mxu1 %vm572_vm1, %v3127_v52  ;;  %v4030_v57 = vmul.f32 %v15416_v40, %v3998_v15  ;;  %v3706_v40 = vld [vmem:[#allocation2 + $0x49] sm:$0xff] }
  0xfe   : > { %v12353_v4 = vpop.f32.mrf.mxu1  ;;  %v12355_v56 = vpop.f32.mrf.mxu0 }
  0xff   : > { %v4060_v15 = vpack.c.bf16 %v4030_v57, %v3997_v58  ;;  %v4001_v57 = vld [vmem:[#allocation2 + $0x52] sm:$0xff] }
 0x100   : > { %v12357_v17 = vpop.f32.mrf.mxu1  ;;  %v12359_v31 = vpop.f32.mrf.mxu0  ;;  %v15420_v58 = vld [vmem:[#allocation29_spill] sm:$0xff]  ;;  %v4062_v54 = vpack.c.bf16 %v4034_v6, %v4001_v57 }
 0x101   : > { %v4036_v53 = vmul.f32 %v15420_v58, %v4004_v24  ;;  %v4006_v24 = vld [vmem:[#allocation2 + $0x7a] sm:$0xff]  ;;  %v15421_v6 = vld [vmem:[#allocation33_spill] sm:$0xff] }
 0x102   : > { %v12362_v52 = vpop.f32.mrf.mxu1  ;;  %v12364_v7 = vpop.f32.mrf.mxu0  ;;  %10294 = vmatmul.mubr.msk.bf16.gmra.mxu0 %vm572_vm1, %v3454_v19  ;;  %v4038_v57 = vmul.f32 %v15421_v6, %v4006_v24 }
 0x103   : > { %10333 = vmatprep.mubr.msk.bf16.mxu0 %vm572_vm1, %v4059_v46  ;;  %v3705_v46 = vld [vmem:[#allocation2 + $0x41] sm:$0xff]  ;;  %v4063_v44 = vpack.c.bf16 %v4036_v53, %v4003_v30 }
 0x104   : > { %v12370_v29 = vpop.f32.mrf.mxu1  ;;  %10260 = vmatmul.mubr.msk.bf16.gmra.mxu1 %vm572_vm1, %v3128_v33  ;;  %v12373_v45 = vpop.f32.mrf.mxu0  ;;  %v3734_v33 = vpack.c.bf16 %v3704_v43, %v3703_v47  ;;  %v3735_v63 = vpack.c.bf16 %v3706_v40, %v3705_v46  ;;  %v3707_v40 = vld [vmem:[#allocation2 + $0x51] sm:$0xff]  ;;  %v3708_v47 = vld [vmem:[#allocation2 + $0x59] sm:$0xff] }
 0x105   : > { %10299 = vmatprep.mubr.msk.bf16.mxu1 %vm572_vm1, %v3733_v13  ;;  %v3736_v16 = vpack.c.bf16 %v3708_v47, %v3707_v40  ;;  %v3712_v47 = vld [vmem:[#allocation2 + $0x79] sm:$0xff] }
 0x106   : > { %v12376_v51 = vpop.f32.mrf.mxu1  ;;  %v12378_v19 = vpop.f32.mrf.mxu0 }
 0x108   : > { %v12380_v0 = vpop.f32.mrf.mxu1  ;;  %v12382_v2 = vpop.f32.mrf.mxu0 }
 0x10a   : > { %v12384_v36 = vpop.f32.mrf.mxu1  ;;  %v10131_v13 = vpop.f32.mrf.mxu0  ;;  %10334 = vmatmul.mubr.msk.bf16.vlgmr.msra.gmra.mxu0 %vm572_vm1, %v4060_v15 }
 0x10b   : > { %15418 = vst [vmem:[#allocation23_spill] sm:$0xff] %v12384_v36  ;;  %10337 = vmatprep.mubr.msk.bf16.mxu0 %vm572_vm1, %v4061_v59 }
 0x10c   : > { %v10097_v8 = vpop.f32.mrf.mxu1  ;;  %10300 = vmatmul.mubr.msk.bf16.vlgmr.msra.gmra.mxu1 %vm572_vm1, %v3734_v33  ;;  %v2270_v26 = vpop.f32.mrf.mxu0 }
 0x10d   : > { %v1793_v43 = vadd.f32 %v10097_v8, %v12261_v9  ;;  %10303 = vmatprep.mubr.msk.bf16.mxu1 %vm572_vm1, %v3735_v63  ;;  %v3737_v63 = vpack.c.bf16 %v3710_v49, %v3709_v18  ;;  %v4010_v18 = vld [vmem:[#allocation2 + $0x9a] sm:$0xff] }
 0x10e   : > { %v1784_v46 = vpop.f32.mrf.mxu1  ;;  %v10132_v15 = vpop.f32.mrf.mxu0 }
 0x10f   : > { %v1785_v59 = vadd.f32 %v1784_v46, %v12277_v14  ;;  %v12394_v58 = vadd.f32 %v10131_v13, %v1793_v43  ;;  %v4005_v14 = vld [vmem:[#allocation2 + $0x72] sm:$0xff]  ;;  %v15422_v13 = vld [vmem:[#allocation36_spill] sm:$0xff] }
 0x110   : > { %v10098_v33 = vpop.f32.mrf.mxu1  ;;  %v2273_v32 = vpop.f32.mrf.mxu0  ;;  %v4040_v53 = vmul.f32 %v15422_v13, %v4008_v55 }
 0x111   : > { %v1796_v9 = vadd.f32 %v10098_v33, %v12285_v1  ;;  %v12397_v8 = vadd.f32 %v2270_v26, %v1785_v59  ;;  %v4007_v26 = vld [vmem:[#allocation2 + $0x82] sm:$0xff]  ;;  %v4012_v59 = vld [vmem:[#allocation2 + $0xaa] sm:$0xff] }
 0x112   : > { %v1787_v11 = vpop.f32.mrf.mxu1  ;;  %v10135_v36 = vpop.f32.mrf.mxu0  ;;  %10338 = vmatmul.mubr.msk.bf16.gmra.mxu0 %vm572_vm1, %v4062_v54  ;;  %v3711_v54 = vld [vmem:[#allocation2 + $0x71] sm:$0xff] }
 0x113   : > { %v1788_v30 = vadd.f32 %v1787_v11, %v12289_v50  ;;  %10341 = vmatprep.mubr.msk.bf16.mxu0 %vm572_vm1, %v4063_v44  ;;  %v12404_v43 = vadd.f32 %v10132_v15, %v1796_v9  ;;  %v4064_v50 = vpack.c.bf16 %v4038_v57, %v4005_v14  ;;  %v4065_v15 = vpack.c.bf16 %v4040_v53, %v4007_v26  ;;  %v15424_v14 = vld [vmem:[#allocation50_spill] sm:$0xff]  ;;  %v4011_v26 = vld [vmem:[#allocation2 + $0xa2] sm:$0xff] }
 0x114   : > { %v10101_v40 = vpop.f32.mrf.mxu1  ;;  %10304 = vmatmul.mubr.msk.bf16.gmra.mxu1 %vm572_vm1, %v3736_v16  ;;  %v2286_v49 = vpop.f32.mrf.mxu0  ;;  %v3738_v9 = vpack.c.bf16 %v3712_v47, %v3711_v54 }
 0x115   : > { %v1809_v1 = vadd.f32 %v10101_v40, %v12293_v21  ;;  %10307 = vmatprep.mubr.msk.bf16.mxu1 %vm572_vm1, %v3737_v63  ;;  %v12409_v46 = vadd.f32 %v2273_v32, %v1788_v30  ;;  %v15423_v30 = vld [vmem:[#allocation40_spill] sm:$0xff] }
 0x116   : > { %v1800_v11 = vpop.f32.mrf.mxu1  ;;  %v10136_v44 = vpop.f32.mrf.mxu0  ;;  %v4042_v57 = vmul.f32 %v15423_v30, %v4010_v18  ;;  %v3718_v18 = vld [vmem:[#allocation2 + $0xa9] sm:$0xff] }
 0x117   : > { %v1801_v55 = vadd.f32 %v1800_v11, %v12310_v28  ;;  %v12412_v24 = vadd.f32 %v10135_v36, %v1809_v1  ;;  %v4044_v28 = vmul.f32 %v15424_v14, %v4012_v59  ;;  %v4009_v36 = vld [vmem:[#allocation2 + $0x92] sm:$0xff]  ;;  %v4645_v11 = vld [vmem:[%s14956_s6] sm:$0x3] }
 0x118   : > { %v10102_v16 = vpop.f32.mrf.mxu1  ;;  %v2289_v33 = vpop.f32.mrf.mxu0  ;;  %10854 = vmatprep.subr.msk.bf16.mxu0 %vm4464_vm0, %v4645_v11  ;;  %v4014_v59 = vld [vmem:[#allocation2 + $0xba] sm:$0xff] }
 0x119   : > { %v1812_v21 = vadd.f32 %v10102_v16, %v12318_v22  ;;  %v12415_v63 = vadd.f32 %v2286_v49, %v1801_v55  ;;  %v4066_v55 = vpack.c.bf16 %v4042_v57, %v4009_v36 }
 0x11a   : > { %v1803_v40 = vpop.f32.mrf.mxu1  ;;  %v10139_v32 = vpop.f32.mrf.mxu0  ;;  %10342 = vmatmul.mubr.msk.bf16.gmra.mxu0 %vm572_vm1, %v4064_v50 }
 0x11b   : > { %v1804_v53 = vadd.f32 %v1803_v40, %v12322_v37  ;;  %10345 = vmatprep.mubr.msk.bf16.mxu0 %vm572_vm1, %v4065_v15  ;;  %v12422_v1 = vadd.f32 %v10136_v44, %v1812_v21  ;;  %v4408_v37 = vld [vmem:[%s14954_s4] sm:$0x3] }
 0x11c   : > { %v10105_v54 = vpop.f32.mrf.mxu1  ;;  %10308 = vmatmul.mubr.msk.bf16.gmra.mxu1 %vm572_vm1, %v3738_v9  ;;  %v2302_v22 = vpop.f32.mrf.mxu0  ;;  %v3717_v15 = vld [vmem:[#allocation2 + $0xa1] sm:$0xff]  ;;  %10853 = vmatprep.subr.msk.bf16.mxu1 %vm4464_vm0, %v4408_v37  ;;  %v4702_v9 = vsel %vm4464_vm0, %v4645_v11, 0 }
 0x11d   : > { %v1825_v49 = vadd.f32 %v10105_v54, %v12328_v35  ;;  %10311 = vmatprep.mubr.msk.bf16.mxu1 %vm572_vm1, %v12130_v39  ;;  %v12428_v47 = vadd.f32 %v2289_v33, %v1804_v53  ;;  %v4067_v35 = vpack.c.bf16 %v4044_v28, %v4011_v26  ;;  %v4466_v33 = vsel %vm4464_vm0, %v4408_v37, 0  ;;  %v4016_v53 = vld [vmem:[#allocation2 + $0xca] sm:$0xff]  ;;  %10400 = vmatpush3.bf16.msra.mxu0 %v4702_v9  ;;  %v4013_v37 = vld [vmem:[#allocation2 + $0xb2] sm:$0xff]  ;;  %v15426_v11 = vld [vmem:[#allocation59_spill] sm:$0xff] }
 0x11e   : > { %v1816_v44 = vpop.f32.mrf.mxu1  ;;  %v10140_v50 = vpop.f32.mrf.mxu0  ;;  %10366 = vmatpush3.bf16.msra.mxu1 %v4466_v33  ;;  %v3741_v28 = vpack.c.bf16 %v3718_v18, %v3717_v15  ;;  %v3720_v18 = vld [vmem:[#allocation2 + $0xb9] sm:$0xff] }
 0x11f   : > { %v1817_v39 = vadd.f32 %v1816_v44, %v12343_v10  ;;  %v12439_v16 = vadd.f32 %v10139_v32, %v1825_v49  ;;  %v15425_v10 = vld [vmem:[#allocation54_spill] sm:$0xff]  ;;  %v4048_v44 = vmul.f32 %v15426_v11, %v4016_v53 }
 0x120   : > { %v10106_v21 = vpop.f32.mrf.mxu1  ;;  %v2305_v40 = vpop.f32.mrf.mxu0  ;;  %v4046_v32 = vmul.f32 %v15425_v10, %v4014_v59 }
 0x121   : > { %v1828_v57 = vadd.f32 %v10106_v21, %v12355_v56  ;;  %v12444_v36 = vadd.f32 %v2302_v22, %v1817_v39  ;;  %v4015_v22 = vld [vmem:[#allocation2 + $0xc2] sm:$0xff] }
 0x122   : > { %v1819_v26 = vpop.f32.mrf.mxu1  ;;  %v10143_v54 = vpop.f32.mrf.mxu0  ;;  %10346 = vmatmul.mubr.msk.bf16.gmra.mxu0 %vm572_vm1, %v4066_v55  ;;  %v3719_v55 = vld [vmem:[#allocation2 + $0xb1] sm:$0xff]  ;;  %v4068_v59 = vpack.c.bf16 %v4046_v32, %v4013_v37  ;;  %v3721_v21 = vld [vmem:[#allocation2 + $0xc1] sm:$0xff] }
 0x123   : > { %v1820_v49 = vadd.f32 %v1819_v26, %v12359_v31  ;;  %10349 = vmatprep.mubr.msk.bf16.mxu0 %vm572_vm1, %v4067_v35  ;;  %v12451_v33 = vadd.f32 %v10140_v50, %v1828_v57  ;;  %v3722_v50 = vld [vmem:[#allocation2 + $0xc9] sm:$0xff]  ;;  %v4069_v57 = vpack.c.bf16 %v4048_v44, %v4015_v22  ;;  %v4018_v26 = vld [vmem:[#allocation2 + $0xda] sm:$0xff] }
 0x124   : > { %v10109_v9 = vpop.f32.mrf.mxu1  ;;  %10312 = vmatmul.mubr.msk.bf16.gmra.mxu1 %vm572_vm1, %v12132_v23  ;;  %v2318_v56 = vpop.f32.mrf.mxu0  ;;  %v3743_v14 = vpack.c.bf16 %v3722_v50, %v3721_v21  ;;  %v15427_v32 = vld [vmem:[#allocation63_spill] sm:$0xff] }
 0x125   : > { %v1841_v15 = vadd.f32 %v10109_v9, %v12364_v7  ;;  %10315 = vmatprep.mubr.msk.bf16.mxu1 %vm572_vm1, %v3741_v28  ;;  %v12457_v31 = vadd.f32 %v2305_v40, %v1820_v49  ;;  %v3742_v7 = vpack.c.bf16 %v3720_v18, %v3719_v55  ;;  %v4020_v9 = vld [vmem:[#allocation2 + $0xea] sm:$0xff]  ;;  %v4050_v37 = vmul.f32 %v15427_v32, %v4018_v26  ;;  %v15428_v44 = vld [vmem:[#allocation67_spill] sm:$0xff] }
 0x126   : > { %v1832_v35 = vpop.f32.mrf.mxu1  ;;  %v10144_v39 = vpop.f32.mrf.mxu0  ;;  %v4052_v22 = vmul.f32 %v15428_v44, %v4020_v9  ;;  %v3723_v18 = vld [vmem:[#allocation2 + $0xd1] sm:$0xff]  ;;  %v4022_v9 = vld [vmem:[#allocation2 + $0xfa] sm:$0xff] }
 0x127   : > { %v1833_v53 = vadd.f32 %v1832_v35, %v12373_v45  ;;  %v12460_v23 = vadd.f32 %v10143_v54, %v1841_v15  ;;  %v4017_v54 = vld [vmem:[#allocation2 + $0xd2] sm:$0xff] }
 0x128   : > { %v10110_v11 = vpop.f32.mrf.mxu1  ;;  %v2321_v10 = vpop.f32.mrf.mxu0  ;;  %v3724_v35 = vld [vmem:[#allocation2 + $0xd9] sm:$0xff]  ;;  %v4070_v50 = vpack.c.bf16 %v4050_v37, %v4017_v54  ;;  %v15429_v37 = vld [vmem:[#allocation72_spill] sm:$0xff] }
 0x129   : > { %v1844_v28 = vadd.f32 %v10110_v11, %v12378_v19  ;;  %v12463_v40 = vadd.f32 %v2318_v56, %v1833_v53  ;;  %v4019_v11 = vld [vmem:[#allocation2 + $0xe2] sm:$0xff]  ;;  %v4054_v54 = vmul.f32 %v15429_v37, %v4022_v9 }
 0x12a   : > { %v1835_v49 = vpop.f32.mrf.mxu1  ;;  %v10147_v30 = vpop.f32.mrf.mxu0  ;;  %10350 = vmatmul.mubr.msk.bf16.gmra.mxu0 %vm572_vm1, %v4068_v59  ;;  %v3725_v53 = vld [vmem:[#allocation2 + $0xe1] sm:$0xff]  ;;  %v4071_v26 = vpack.c.bf16 %v4052_v22, %v4019_v11  ;;  %v4056_v22 = vmul.f32 %v11952_v41, %v12324_v12 }
 0x12b   : > { %v1836_v45 = vadd.f32 %v1835_v49, %v12382_v2  ;;  %10353 = vmatprep.mubr.msk.bf16.mxu0 %vm572_vm1, %v4069_v57  ;;  %v12470_v15 = vadd.f32 %v10144_v39, %v1844_v28  ;;  %v3726_v57 = vld [vmem:[#allocation2 + $0xe9] sm:$0xff] }
 0x12c   : > { %v10113_v55 = vpop.f32.mrf.mxu1  ;;  %10316 = vmatmul.mubr.msk.bf16.gmra.mxu1 %vm572_vm1, %v3742_v7  ;;  %v2334_v19 = vpop.f32.mrf.mxu0  ;;  %v4073_v12 = vpack.c.bf16 %v4056_v22, %v12351_v61  ;;  %v4025_v61 = vld [vmem:[#allocation2 + $0x112] sm:$0xff] }
 0x12d   : > { %v1857_v56 = vadd.f32 %v10113_v55, %v12271_v27  ;;  %10319 = vmatprep.mubr.msk.bf16.mxu1 %vm572_vm1, %v3743_v14  ;;  %v12475_v59 = vadd.f32 %v2321_v10, %v1836_v45  ;;  %v3744_v27 = vpack.c.bf16 %v3724_v35, %v3723_v18  ;;  %v3745_v55 = vpack.c.bf16 %v3726_v57, %v3725_v53  ;;  %v3727_v18 = vld [vmem:[#allocation2 + $0xf1] sm:$0xff]  ;;  %v3728_v35 = vld [vmem:[#allocation2 + $0xf9] sm:$0xff] }
 0x12e   : > { %v1848_v2 = vpop.f32.mrf.mxu1  ;;  %v10148_v21 = vpop.f32.mrf.mxu0 }
 0x12f   : > { %v1849_v39 = vadd.f32 %v1848_v2, %v12283_v42  ;;  %v12478_v7 = vadd.f32 %v10147_v30, %v1857_v56  ;;  %v4021_v30 = vld [vmem:[#allocation2 + $0xf2] sm:$0xff] }
 0x130   : > { %v10114_v28 = vpop.f32.mrf.mxu1  ;;  %v2337_v49 = vpop.f32.mrf.mxu0  ;;  %v4072_v53 = vpack.c.bf16 %v4054_v54, %v4021_v30  ;;  %v3732_v30 = vld [vmem:[#allocation2 + $0x119] sm:$0xff] }
 0x131   : > { %v1860_v14 = vadd.f32 %v10114_v28, %v12287_v25  ;;  %v12481_v44 = vadd.f32 %v2334_v19, %v1849_v39  ;;  %v3746_v28 = vpack.c.bf16 %v3728_v35, %v3727_v18 }
 0x132   : > { %v1851_v10 = vpop.f32.mrf.mxu1  ;;  %v10151_v45 = vpop.f32.mrf.mxu0  ;;  %10354 = vmatmul.mubr.msk.bf16.gmra.mxu0 %vm572_vm1, %v4070_v50 }
 0x133   : > { %v1852_v42 = vadd.f32 %v1851_v10, %v12291_v48  ;;  %10357 = vmatprep.mubr.msk.bf16.mxu0 %vm572_vm1, %v4071_v26  ;;  %v12489_v11 = vadd.f32 %v10148_v21, %v1860_v14  ;;  %v4026_v21 = vld [vmem:[#allocation2 + $0x11a] sm:$0xff] }
 0x134   : > { %v10117_v25 = vpop.f32.mrf.mxu1  ;;  %10320 = vmatmul.mubr.msk.bf16.gmra.mxu1 %vm572_vm1, %v3744_v27  ;;  %v2350_v19 = vpop.f32.mrf.mxu0 }
 0x135   : > { %v1873_v56 = vadd.f32 %v10117_v25, %v12304_v60  ;;  %10323 = vmatprep.mubr.msk.bf16.mxu1 %vm572_vm1, %v3745_v55  ;;  %v12494_v2 = vadd.f32 %v2337_v49, %v1852_v42  ;;  %v4058_v55 = vmul.f32 %v15415_v62, %v4026_v21  ;;  %v3731_v42 = vld [vmem:[#allocation2 + $0x111] sm:$0xff] }
 0x136   : > { %v1864_v48 = vpop.f32.mrf.mxu1  ;;  %v10152_v50 = vpop.f32.mrf.mxu0 }
 0x137   : > { %v1865_v57 = vadd.f32 %v1864_v48, %v12316_v3  ;;  %v12498_v39 = vadd.f32 %v10151_v45, %v1873_v56 }
 0x138   : > { %v10118_v26 = vpop.f32.mrf.mxu1  ;;  %v2353_v9 = vpop.f32.mrf.mxu0 }
 0x139   : > { %v1876_v60 = vadd.f32 %v10118_v26, %v12320_v20  ;;  %v12501_v27 = vadd.f32 %v2350_v19, %v1865_v57  ;;  %v4074_v19 = vpack.c.bf16 %v4058_v55, %v4025_v61 }
 0x13a   : > { %v1867_v14 = vpop.f32.mrf.mxu1  ;;  %v10155_v49 = vpop.f32.mrf.mxu0  ;;  %10358 = vmatmul.mubr.msk.bf16.gmra.mxu0 %vm572_vm1, %v4072_v53 }
 0x13b   : > { %v1868_v3 = vadd.f32 %v1867_v14, %v12326_v5  ;;  %10361 = vmatprep.mubr.msk.bf16.mxu0 %vm572_vm1, %v4073_v12  ;;  %v12507_v10 = vadd.f32 %v10152_v50, %v1876_v60  ;;  %v3748_v50 = vpack.c.bf16 %v3732_v30, %v3731_v42 }
 0x13c   : > { %v10121_v45 = vpop.f32.mrf.mxu1  ;;  %10324 = vmatmul.mubr.msk.bf16.gmra.mxu1 %vm572_vm1, %v3746_v28  ;;  %v2366_v54 = vpop.f32.mrf.mxu0 }
 0x13d   : > { %v1889_v20 = vadd.f32 %v10121_v45, %v12337_v38  ;;  %10327 = vmatprep.mubr.msk.bf16.mxu1 %vm572_vm1, %v12180_v34  ;;  %v12513_v22 = vadd.f32 %v2353_v9, %v1868_v3 }
 0x13e   : > { %v1880_v25 = vpop.f32.mrf.mxu1  ;;  %v10156_v5 = vpop.f32.mrf.mxu0 }
 0x13f   : > { %v1881_v56 = vadd.f32 %v1880_v25, %v12353_v4  ;;  %v12516_v18 = vadd.f32 %v10155_v49, %v1889_v20  ;;  %v15431_v20 = vld [vmem:[#allocation23_spill] sm:$0xff] }
 0x140   : > { %v10122_v35 = vpop.f32.mrf.mxu1  ;;  %v2369_v48 = vpop.f32.mrf.mxu0 }
 0x141   : > { %v1892_v53 = vadd.f32 %v10122_v35, %v12357_v17  ;;  %v12519_v38 = vadd.f32 %v2366_v54, %v1881_v56 }
 0x142   : > { %v1883_v57 = vpop.f32.mrf.mxu1  ;;  %v10159_v34 = vpop.f32.mrf.mxu0  ;;  %10362 = vmatmul.mubr.msk.bf16.gmra.mxu0 %vm572_vm1, %v4074_v19 }
 0x143   : > { %v1884_v12 = vadd.f32 %v1883_v57, %v12362_v52  ;;  %v12523_v21 = vadd.f32 %v10156_v5, %v1892_v53 }
 0x144   : > { %v10125_v26 = vpop.f32.mrf.mxu1  ;;  %10328 = vmatmul.mubr.msk.bf16.gmra.mxu1 %vm572_vm1, %v3748_v50  ;;  %v2382_v4 = vpop.f32.mrf.mxu0  ;;  %vm611_vm1 = vcmask 31744  }
 0x145   : > { %v1905_v9 = vadd.f32 %v10125_v26, %v12370_v29  ;;  %v12527_v28 = vadd.f32 %v2369_v48, %v1884_v12 }
 0x146   : > { %v1896_v60 = vpop.f32.mrf.mxu1  ;;  %v10160_v17 = vpop.f32.mrf.mxu0 }
 0x147   : > { %15430 = vst [vmem:[#allocation31_spill] sm:$0xff] %v12527_v28  ;;  %v1897_v14 = vadd.f32 %v1896_v60, %v12376_v51  ;;  %v12530_v49 = vadd.f32 %v10159_v34, %v1905_v9  ;;  %v1100_v9 = vld [vmem:[%s12554_s9 + $0x8] sm:$0xff] }
 0x148   : > { %v10126_v55 = vpop.f32.mrf.mxu1  ;;  %v2385_v3 = vpop.f32.mrf.mxu0 }
 0x149   : > { %v1908_v52 = vadd.f32 %v10126_v55, %v12380_v0  ;;  %v12533_v61 = vadd.f32 %v2382_v4, %v1897_v14 }
 0x14a   : > { %v1899_v45 = vpop.f32.mrf.mxu1  ;;  %v10199_v54 = vpop.f32.mrf.mxu0 }
 0x14b   : > { %v1900_v42 = vadd.f32 %v1899_v45, %v15431_v20  ;;  %v12536_v30 = vadd.f32 %v10160_v17, %v1908_v52  ;;  %v1102_v52 = vld [vmem:[%s12554_s9 + $0x18] sm:$0xff]  ;;  %v15434_v20 = vmov 0.0  }
 0x14c   : > { %v10165_v29 = vpop.f32.mrf.mxu1  ;;  %v2890_v25 = vpop.f32.mrf.mxu0  ;;  %612 = vst.msk [vmem:[#allocation3] sm:$0xff] %vm611_vm1, %v15434_v20  ;;  %613 = vst.msk [vmem:[#allocation3 + $0x8] sm:$0xff] %vm611_vm1, %v15434_v20 }
 0x14d   : > { %v2725_v5 = vadd.f32 %v10165_v29, %v12394_v58  ;;  %v12539_v51 = vadd.f32 %v2385_v3, %v1900_v42  ;;  %v1101_v3 = vld [vmem:[%s12554_s9 + $0x10] sm:$0xff]  ;;  %614 = vst.msk [vmem:[#allocation3 + $0x10] sm:$0xff] %vm611_vm1, %v15434_v20  ;;  %615 = vst.msk [vmem:[#allocation3 + $0x18] sm:$0xff] %vm611_vm1, %v15434_v20 }
 0x14e   : > { %v2596_v19 = vpop.f32.mrf.mxu1  ;;  %v10200_v56 = vpop.f32.mrf.mxu0  ;;  %616 = vst.msk [vmem:[#allocation3 + $0x20] sm:$0xff] %vm611_vm1, %v15434_v20  ;;  %617 = vst.msk [vmem:[#allocation3 + $0x28] sm:$0xff] %vm611_vm1, %v15434_v20 }
 0x14f   : > { %15432 = vst [vmem:[#allocation5_spill] sm:$0xff] %v12539_v51  ;;  %v2723_v35 = vadd.f32 %v2596_v19, %v12397_v8  ;;  %v12542_v0 = vadd.f32 %v10199_v54, %v2725_v5  ;;  %618 = vst.msk [vmem:[#allocation3 + $0x30] sm:$0xff] %vm611_vm1, %v15434_v20 }
 0x150   : > { %v10166_v48 = vpop.f32.mrf.mxu1  ;;  %v2893_v50 = vpop.f32.mrf.mxu0  ;;  %619 = vst.msk [vmem:[#allocation3 + $0x38] sm:$0xff] %vm611_vm1, %v15434_v20  ;;  %620 = vst.msk [vmem:[#allocation3 + $0x40] sm:$0xff] %vm611_vm1, %v15434_v20 }
 0x151   : > { %v2726_v53 = vadd.f32 %v10166_v48, %v12404_v43  ;;  %v12545_v57 = vadd.f32 %v2890_v25, %v2723_v35  ;;  %v1099_v43 = vld [vmem:[%s12554_s9] sm:$0xff]  ;;  %621 = vst.msk [vmem:[#allocation3 + $0x48] sm:$0xff] %vm611_vm1, %v15434_v20  ;;  %622 = vst.msk [vmem:[#allocation3 + $0x50] sm:$0xff] %vm611_vm1, %v15434_v20 }
 0x152   : > { %v2599_v34 = vpop.f32.mrf.mxu1  ;;  %v10203_v12 = vpop.f32.mrf.mxu0  ;;  %623 = vst.msk [vmem:[#allocation3 + $0x58] sm:$0xff] %vm611_vm1, %v15434_v20  ;;  %624 = vst.msk [vmem:[#allocation3 + $0x60] sm:$0xff] %vm611_vm1, %v15434_v20 }
 0x153   : > { %v2724_v26 = vadd.f32 %v2599_v34, %v12409_v46  ;;  %v12548_v4 = vadd.f32 %v10200_v56, %v2726_v53  ;;  %v4629_v46 = vpack.c.bf16 %v1100_v9, %v1099_v43  ;;  %625 = vst.msk [vmem:[#allocation3 + $0x68] sm:$0xff] %vm611_vm1, %v15434_v20  ;;  %626 = vst.msk [vmem:[#allocation3 + $0x70] sm:$0xff] %vm611_vm1, %v15434_v20  ;;  %v1105_v43 = vld [vmem:[%s12554_s9 + $0x30] sm:$0xff]  ;;  %v1106_v9 = vld [vmem:[%s12554_s9 + $0x38] sm:$0xff] }
 0x154   : > { %v10169_v58 = vpop.f32.mrf.mxu1  ;;  %v2906_v8 = vpop.f32.mrf.mxu0  ;;  %627 = vst.msk [vmem:[#allocation3 + $0x78] sm:$0xff] %vm611_vm1, %v15434_v20  ;;  %628 = vst.msk [vmem:[#allocation3 + $0x80] sm:$0xff] %vm611_vm1, %v15434_v20 }
 0x155   : > { %v2729_v60 = vadd.f32 %v10169_v58, %v12412_v24  ;;  %v12559_v17 = vadd.f32 %v2893_v50, %v2724_v26  ;;  %10401 = vmatprep.mubr.msk.bf16.mxu0 %vm611_vm1, %v4629_v46  ;;  %629 = vst.msk [vmem:[#allocation3 + $0x88] sm:$0xff] %vm611_vm1, %v15434_v20  ;;  %630 = vst.msk [vmem:[#allocation3 + $0x90] sm:$0xff] %vm611_vm1, %v15434_v20  ;;  %v4630_v24 = vpack.c.bf16 %v1102_v52, %v1101_v3 }
 0x156   : > { %v2612_v14 = vpop.f32.mrf.mxu1  ;;  %v10204_v55 = vpop.f32.mrf.mxu0  ;;  %631 = vst.msk [vmem:[#allocation3 + $0x98] sm:$0xff] %vm611_vm1, %v15434_v20  ;;  %632 = vst.msk [vmem:[#allocation3 + $0xa0] sm:$0xff] %vm611_vm1, %v15434_v20 }
 0x157   : > { %v2727_v45 = vadd.f32 %v2612_v14, %v12415_v63  ;;  %v12564_v54 = vadd.f32 %v10203_v12, %v2729_v60  ;;  %633 = vst.msk [vmem:[#allocation3 + $0xa8] sm:$0xff] %vm611_vm1, %v15434_v20  ;;  %634 = vst.msk [vmem:[#allocation3 + $0xb0] sm:$0xff] %vm611_vm1, %v15434_v20  ;;  %10402 = vmatmul.mubr.msk.bf16.vlgmr.msra.gmra.mxu0 %vm611_vm1, %v4630_v24  ;;  %v1103_v12 = vld [vmem:[%s12554_s9 + $0x20] sm:$0xff] }
 0x158   : > { %635 = vst.msk [vmem:[#allocation3 + $0xb8] sm:$0xff] %vm611_vm1, %v15434_v20  ;;  %636 = vst.msk [vmem:[#allocation3 + $0xc0] sm:$0xff] %vm611_vm1, %v15434_v20  ;;  %v10170_v63 = vpop.f32.mrf.mxu1  ;;  %v2909_v42 = vpop.f32.mrf.mxu0 }
 0x159   : > { %637 = vst.msk [vmem:[#allocation3 + $0xc8] sm:$0xff] %vm611_vm1, %v15434_v20  ;;  %638 = vst.msk [vmem:[#allocation3 + $0xd0] sm:$0xff] %vm611_vm1, %v15434_v20  ;;  %v2730_v29 = vadd.f32 %v10170_v63, %v12422_v1  ;;  %v12640_v25 = vadd.f32 %v2906_v8, %v2727_v45  ;;  %v1104_v1 = vld [vmem:[%s12554_s9 + $0x28] sm:$0xff] }
 0x15a   : > { %639 = vst.msk [vmem:[#allocation3 + $0xd8] sm:$0xff] %vm611_vm1, %v15434_v20  ;;  %640 = vst.msk [vmem:[#allocation3 + $0xe0] sm:$0xff] %vm611_vm1, %v15434_v20  ;;  %v2615_v5 = vpop.f32.mrf.mxu1  ;;  %v10207_v19 = vpop.f32.mrf.mxu0  ;;  %v4631_v8 = vpack.c.bf16 %v1104_v1, %v1103_v12 }
 0x15b   : > { %641 = vst.msk [vmem:[#allocation3 + $0xe8] sm:$0xff] %vm611_vm1, %v15434_v20  ;;  %642 = vst.msk [vmem:[#allocation3 + $0xf0] sm:$0xff] %vm611_vm1, %v15434_v20  ;;  %v2728_v56 = vadd.f32 %v2615_v5, %v12428_v47  ;;  %v12644_v35 = vadd.f32 %v10204_v55, %v2730_v29  ;;  %v4632_v47 = vpack.c.bf16 %v1106_v9, %v1105_v43  ;;  %v1108_v43 = vld [vmem:[%s12554_s9 + $0x48] sm:$0xff] }
 0x15c   : > { %643 = vst.msk [vmem:[#allocation3 + $0xf8] sm:$0xff] %vm611_vm1, %v15434_v20  ;;  %644 = vst.msk [vmem:[#allocation3 + $0x100] sm:$0xff] %vm611_vm1, %v15434_v20  ;;  %v10173_v48 = vpop.f32.mrf.mxu1  ;;  %v2922_v50 = vpop.f32.mrf.mxu0  ;;  %10405 = vmatprep.mubr.msk.bf16.mxu0 %vm611_vm1, %v4631_v8  ;;  %v1107_v8 = vld [vmem:[%s12554_s9 + $0x40] sm:$0xff] }
 0x15d   : > { %645 = vst.msk [vmem:[#allocation3 + $0x108] sm:$0xff] %vm611_vm1, %v15434_v20  ;;  %646 = vst.msk [vmem:[#allocation3 + $0x110] sm:$0xff] %vm611_vm1, %v15434_v20  ;;  %v2733_v53 = vadd.f32 %v10173_v48, %v12439_v16  ;;  %v12647_v34 = vadd.f32 %v2909_v42, %v2728_v56 }
 0x15e   : > { %647 = vst.msk [vmem:[#allocation3 + $0x118] sm:$0xff] %vm611_vm1, %v15434_v20  ;;  %v2628_v26 = vpop.f32.mrf.mxu1  ;;  %v10208_v58 = vpop.f32.mrf.mxu0  ;;  %v1129_v20 = vld [vmem:[%s12554_s9 + $0xf0] sm:$0xff] }
 0x15f   : > { %v2731_v60 = vadd.f32 %v2628_v26, %v12444_v36  ;;  %v12654_v46 = vadd.f32 %v10207_v19, %v2733_v53  ;;  %10406 = vmatmul.mubr.msk.bf16.gmra.mxu0 %vm611_vm1, %v4632_v47  ;;  %v1109_v47 = vld [vmem:[%s12554_s9 + $0x50] sm:$0xff] }
 0x160   : > { %v10174_v14 = vpop.f32.mrf.mxu1  ;;  %v2925_v55 = vpop.f32.mrf.mxu0 }
 0x161   : > { %v2734_v16 = vadd.f32 %v10174_v14, %v12451_v33  ;;  %v12658_v3 = vadd.f32 %v2922_v50, %v2731_v60  ;;  %v1110_v14 = vld [vmem:[%s12554_s9 + $0x58] sm:$0xff] }
 0x162   : > { %v2631_v52 = vpop.f32.mrf.mxu1  ;;  %v10211_v45 = vpop.f32.mrf.mxu0 }
 0x163   : > { %v2732_v24 = vadd.f32 %v2631_v52, %v12457_v31  ;;  %v12662_v63 = vadd.f32 %v10208_v58, %v2734_v16 }
 0x164   : > { %v10177_v36 = vpop.f32.mrf.mxu1  ;;  %v2938_v42 = vpop.f32.mrf.mxu0 }
 0x165   : > { %v2737_v29 = vadd.f32 %v10177_v36, %v12460_v23  ;;  %v12665_v5 = vadd.f32 %v2925_v55, %v2732_v24 }
 0x166   : > { %v2644_v19 = vpop.f32.mrf.mxu1  ;;  %v10212_v33 = vpop.f32.mrf.mxu0 }
 0x167   : > { %v2735_v56 = vadd.f32 %v2644_v19, %v12463_v40  ;;  %v12668_v48 = vadd.f32 %v10211_v45, %v2737_v29  ;;  %v4633_v40 = vpack.c.bf16 %v1108_v43, %v1107_v8 }
 0x168   : > { %v10178_v50 = vpop.f32.mrf.mxu1  ;;  %v2941_v31 = vpop.f32.mrf.mxu0 }
 0x169   : > { %v2738_v53 = vadd.f32 %v10178_v50, %v12470_v15  ;;  %v12671_v12 = vadd.f32 %v2938_v42, %v2735_v56  ;;  %v4634_v15 = vpack.c.bf16 %v1110_v14, %v1109_v47  ;;  %10409 = vmatprep.mubr.msk.bf16.mxu0 %vm611_vm1, %v4633_v40  ;;  %v1111_v50 = vld [vmem:[%s12554_s9 + $0x60] sm:$0xff] }
 0x16a   : > { %v2647_v1 = vpop.f32.mrf.mxu1  ;;  %v10215_v26 = vpop.f32.mrf.mxu0 }
 0x16b   : > { %v2736_v23 = vadd.f32 %v2647_v1, %v12475_v59  ;;  %v12674_v58 = vadd.f32 %v10212_v33, %v2738_v53  ;;  %10410 = vmatmul.mubr.msk.bf16.gmra.mxu0 %vm611_vm1, %v4634_v15 }
 0x16c   : > { %v10181_v9 = vpop.f32.mrf.mxu1  ;;  %v2954_v60 = vpop.f32.mrf.mxu0 }
 0x16d   : > { %v2741_v55 = vadd.f32 %v10181_v9, %v12478_v7  ;;  %v12681_v16 = vadd.f32 %v2941_v31, %v2736_v23  ;;  %v1112_v31 = vld [vmem:[%s12554_s9 + $0x68] sm:$0xff]  ;;  %v1114_v23 = vld [vmem:[%s12554_s9 + $0x78] sm:$0xff] }
 0x16e   : > { %v2660_v52 = vpop.f32.mrf.mxu1  ;;  %v10216_v45 = vpop.f32.mrf.mxu0  ;;  %v4635_v1 = vpack.c.bf16 %v1112_v31, %v1111_v50  ;;  %v1117_v50 = vld [vmem:[%s12554_s9 + $0x90] sm:$0xff]  ;;  %v1118_v31 = vld [vmem:[%s12554_s9 + $0x98] sm:$0xff] }
 0x16f   : > { %v2739_v59 = vadd.f32 %v2660_v52, %v12481_v44  ;;  %v12685_v24 = vadd.f32 %v10215_v26, %v2741_v55  ;;  %v1113_v26 = vld [vmem:[%s12554_s9 + $0x70] sm:$0xff] }
 0x170   : > { %v10182_v36 = vpop.f32.mrf.mxu1  ;;  %v12688_v42 = vpop.f32.mrf.mxu0  ;;  %v4636_v43 = vpack.c.bf16 %v1114_v23, %v1113_v26  ;;  %10413 = vmatprep.mubr.msk.bf16.mxu0 %vm611_vm1, %v4635_v1  ;;  %v4638_v1 = vpack.c.bf16 %v1118_v31, %v1117_v50 }
 0x171   : > { %v2742_v7 = vadd.f32 %v10182_v36, %v12489_v11  ;;  %v12691_v29 = vadd.f32 %v2954_v60, %v2739_v59  ;;  %v1115_v59 = vld [vmem:[%s12554_s9 + $0x80] sm:$0xff]  ;;  %v1116_v36 = vld [vmem:[%s12554_s9 + $0x88] sm:$0xff] }
 0x172   : > { %v12693_v19 = vpop.f32.mrf.mxu1  ;;  %v10219_v33 = vpop.f32.mrf.mxu0 }
 0x173   : > { %v12695_v56 = vadd.f32 %v10216_v45, %v2742_v7  ;;  %10414 = vmatmul.mubr.msk.bf16.gmra.mxu0 %vm611_vm1, %v4636_v43 }
 0x174   : > { %v10185_v44 = vpop.f32.mrf.mxu1  ;;  %v2970_v53 = vpop.f32.mrf.mxu0 }
 0x175   : > { %v2745_v8 = vadd.f32 %v10185_v44, %v12498_v39 }
 0x176   : > { %v2676_v11 = vpop.f32.mrf.mxu1  ;;  %v10220_v9 = vpop.f32.mrf.mxu0 }
 0x177   : > { %v2743_v60 = vadd.f32 %v2676_v11, %v12501_v27  ;;  %v12704_v40 = vadd.f32 %v10219_v33, %v2745_v8  ;;  %v4637_v33 = vpack.c.bf16 %v1116_v36, %v1115_v59  ;;  %v1120_v59 = vld [vmem:[%s12554_s9 + $0xa8] sm:$0xff] }
 0x178   : > { %v10186_v47 = vpop.f32.mrf.mxu1  ;;  %v12707_v14 = vpop.f32.mrf.mxu0 }
 0x179   : > { %v2746_v55 = vadd.f32 %v10186_v47, %v12507_v10  ;;  %v12710_v39 = vadd.f32 %v2970_v53, %v2743_v60  ;;  %10417 = vmatprep.mubr.msk.bf16.mxu0 %vm611_vm1, %v4637_v33  ;;  %v1122_v33 = vld [vmem:[%s12554_s9 + $0xb8] sm:$0xff] }
 0x17a   : > { %v12712_v15 = vpop.f32.mrf.mxu1  ;;  %v10223_v52 = vpop.f32.mrf.mxu0 }
 0x17b   : > { %v12714_v45 = vadd.f32 %v10220_v9, %v2746_v55  ;;  %10418 = vmatmul.mubr.msk.bf16.gmra.mxu0 %vm611_vm1, %v4638_v1  ;;  %v1119_v55 = vld [vmem:[%s12554_s9 + $0xa0] sm:$0xff] }
 0x17c   : > { %v10189_v27 = vpop.f32.mrf.mxu1  ;;  %v2986_v7 = vpop.f32.mrf.mxu0 }
 0x17d   : > { %v2749_v44 = vadd.f32 %v10189_v27, %v12516_v18  ;;  %v1121_v27 = vld [vmem:[%s12554_s9 + $0xb0] sm:$0xff] }
 0x17e   : > { %v2692_v10 = vpop.f32.mrf.mxu1  ;;  %v10224_v53 = vpop.f32.mrf.mxu0  ;;  %v4640_v31 = vpack.c.bf16 %v1122_v33, %v1121_v27  ;;  %v1125_v27 = vld [vmem:[%s12554_s9 + $0xd0] sm:$0xff]  ;;  %v1126_v33 = vld [vmem:[%s12554_s9 + $0xd8] sm:$0xff] }
 0x17f   : > { %v2747_v26 = vadd.f32 %v2692_v10, %v12519_v38  ;;  %v12723_v23 = vadd.f32 %v10223_v52, %v2749_v44  ;;  %v4639_v52 = vpack.c.bf16 %v1120_v59, %v1119_v55  ;;  %v1123_v59 = vld [vmem:[%s12554_s9 + $0xc0] sm:$0xff] }
 0x180   : > { %v10190_v8 = vpop.f32.mrf.mxu1  ;;  %v12726_v43 = vpop.f32.mrf.mxu0 }
 0x181   : > { %15435 = vst [vmem:[#allocation35_spill] sm:$0xff] %v12726_v43  ;;  %v2750_v11 = vadd.f32 %v10190_v8, %v12523_v21  ;;  %v12729_v18 = vadd.f32 %v2986_v7, %v2747_v26  ;;  %10421 = vmatprep.mubr.msk.bf16.mxu0 %vm611_vm1, %v4639_v52 }
 0x182   : > { %v12731_v9 = vpop.f32.mrf.mxu1  ;;  %v10227_v60 = vpop.f32.mrf.mxu0 }
 0x183   : > { %15436 = vst [vmem:[#allocation6_spill] sm:$0xff] %v12731_v9  ;;  %v12733_v47 = vadd.f32 %v10224_v53, %v2750_v11  ;;  %10422 = vmatmul.mubr.msk.bf16.gmra.mxu0 %vm611_vm1, %v4640_v31  ;;  %v4642_v31 = vpack.c.bf16 %v1126_v33, %v1125_v27 }
 0x184   : > { %v10193_v38 = vpop.f32.mrf.mxu1  ;;  %v3002_v36 = vpop.f32.mrf.mxu0 }
 0x185   : > { %v2753_v50 = vadd.f32 %v10193_v38, %v12530_v49  ;;  %v1124_v38 = vld [vmem:[%s12554_s9 + $0xc8] sm:$0xff] }
 0x186   : > { %v2708_v21 = vpop.f32.mrf.mxu1  ;;  %v10228_v7 = vpop.f32.mrf.mxu0 }
 0x187   : > { %v2751_v44 = vadd.f32 %v2708_v21, %v12533_v61  ;;  %v12742_v1 = vadd.f32 %v10227_v60, %v2753_v50  ;;  %v4641_v60 = vpack.c.bf16 %v1124_v38, %v1123_v59  ;;  %v1127_v38 = vld [vmem:[%s12554_s9 + $0xe0] sm:$0xff] }
 0x188   : > { %v10194_v10 = vpop.f32.mrf.mxu1  ;;  %v12745_v53 = vpop.f32.mrf.mxu0 }
 0x189   : > { %15437 = vst [vmem:[#allocation37_spill] sm:$0xff] %v12745_v53  ;;  %v2754_v26 = vadd.f32 %v10194_v10, %v12536_v30  ;;  %v12748_v49 = vadd.f32 %v3002_v36, %v2751_v44  ;;  %10425 = vmatprep.mubr.msk.bf16.mxu0 %vm611_vm1, %v4641_v60 }
 0x18a   : > { %v12750_v8 = vpop.f32.mrf.mxu1  ;;  %v10267_v11 = vpop.f32.mrf.mxu0 }
 0x18b   : > { %15438 = vst [vmem:[#allocation8_spill] sm:$0xff] %v12750_v8  ;;  %v12752_v55 = vadd.f32 %v10228_v7, %v2754_v26  ;;  %10426 = vmatmul.mubr.msk.bf16.gmra.mxu0 %vm611_vm1, %v4642_v31 }
 0x18c   : > { %v10233_v61 = vpop.f32.mrf.mxu1  ;;  %v3542_v52 = vpop.f32.mrf.mxu0 }
 0x18d   : > { %v3345_v50 = vadd.f32 %v10233_v61, %v12542_v0  ;;  %v1128_v61 = vld [vmem:[%s12554_s9 + $0xe8] sm:$0xff] }
 0x18e   : > { %v3216_v30 = vpop.f32.mrf.mxu1  ;;  %v12759_v36 = vpop.f32.mrf.mxu0  ;;  %v4643_v60 = vpack.c.bf16 %v1128_v61, %v1127_v38  ;;  %v12789_v38 = vld [vmem:[%s14961_s11] sm:$0x3] }
 0x18f   : > { %v3343_v21 = vadd.f32 %v3216_v30, %v12545_v57  ;;  %v12763_v7 = vadd.f32 %v10267_v11, %v3345_v50  ;;  %v1130_v57 = vld [vmem:[%s12554_s9 + $0xf8] sm:$0xff]  ;;  %10855 = vmatprep.subr.msk.bf16.mxu1 %vm4464_vm0, %v12789_v38 }
 0x190   : > { %v12766_v44 = vpop.f32.mrf.mxu1  ;;  %v12768_v10 = vpop.f32.mrf.mxu0  ;;  %v4644_v50 = vpack.c.bf16 %v1130_v57, %v1129_v20  ;;  %10429 = vmatprep.mubr.msk.bf16.mxu0 %vm611_vm1, %v4643_v60 }
 0x191   : > { %v12770_v26 = vadd.f32 %v3542_v52, %v3343_v21 }
 0x192   : > { %v12772_v0 = vpop.f32.mrf.mxu1  ;;  %v10271_v59 = vpop.f32.mrf.mxu0 }
 0x193   : > { %10430 = vmatmul.mubr.msk.bf16.gmra.mxu0 %vm611_vm1, %v4644_v50 }
 0x194   : > { %v10237_v27 = vpop.f32.mrf.mxu1  ;;  %v3558_v33 = vpop.f32.mrf.mxu0 }
 0x195   : > { %v3349_v11 = vadd.f32 %v10237_v27, %v12564_v54 }
 0x196   : > { %v3232_v31 = vpop.f32.mrf.mxu1  ;;  %v10272_v30 = vpop.f32.mrf.mxu0 }
 0x197   : > { %v3347_v52 = vadd.f32 %v3232_v31, %v12640_v25  ;;  %v12781_v21 = vadd.f32 %v10271_v59, %v3349_v11 }
 0x198   : > { %v10238_v62 = vpop.f32.mrf.mxu1  ;;  %v12784_v37 = vpop.f32.mrf.mxu0 }
 0x199   : > { %v3350_v54 = vadd.f32 %v10238_v62, %v12644_v35  ;;  %v12792_v20 = vadd.f32 %v3558_v33, %v3347_v52 }
 0x19a   : > { %v12796_v25 = vpop.f32.mrf.mxu1  ;;  %v10275_v59 = vpop.f32.mrf.mxu0 }
 0x19b   : > { %v12798_v61 = vadd.f32 %v10272_v30, %v3350_v54 }
 0x19c   : > { %v10241_v27 = vpop.f32.mrf.mxu1  ;;  %v3574_v60 = vpop.f32.mrf.mxu0 }
 0x19d   : > { %v3353_v57 = vadd.f32 %v10241_v27, %v12654_v46 }
 0x19e   : > { %v3248_v11 = vpop.f32.mrf.mxu1  ;;  %v10276_v50 = vpop.f32.mrf.mxu0 }
 0x19f   : > { %v3351_v31 = vadd.f32 %v3248_v11, %v12658_v3  ;;  %v12802_v32 = vadd.f32 %v10275_v59, %v3353_v57 }
 0x1a0   : > { %v10242_v62 = vpop.f32.mrf.mxu1  ;;  %v12804_v35 = vpop.f32.mrf.mxu0 }
 0x1a1   : > { %v3354_v33 = vadd.f32 %v10242_v62, %v12662_v63  ;;  %v12807_v52 = vadd.f32 %v3574_v60, %v3351_v31 }
 0x1a2   : > { %v12809_v13 = vpop.f32.mrf.mxu1  ;;  %v10279_v30 = vpop.f32.mrf.mxu0 }
 0x1a3   : > { %v12811_v54 = vadd.f32 %v10276_v50, %v3354_v33 }
 0x1a4   : > { %v10245_v6 = vpop.f32.mrf.mxu1  ;;  %v3590_v46 = vpop.f32.mrf.mxu0 }
 0x1a5   : > { %v3357_v27 = vadd.f32 %v10245_v6, %v12668_v48 }
 0x1a6   : > { %v3264_v41 = vpop.f32.mrf.mxu1  ;;  %v10280_v3 = vpop.f32.mrf.mxu0 }
 0x1a7   : > { %v3355_v59 = vadd.f32 %v3264_v41, %v12671_v12  ;;  %v12815_v57 = vadd.f32 %v10279_v30, %v3357_v27 }
 0x1a8   : > { %v10246_v11 = vpop.f32.mrf.mxu1  ;;  %v12817_v53 = vpop.f32.mrf.mxu0 }
 0x1a9   : > { %v3358_v63 = vadd.f32 %v10246_v11, %v12674_v58  ;;  %v12820_v60 = vadd.f32 %v3590_v46, %v3355_v59 }
 0x1aa   : > { %v12822_v31 = vpop.f32.mrf.mxu1  ;;  %v10283_v50 = vpop.f32.mrf.mxu0 }
 0x1ab   : > { %v12824_v62 = vadd.f32 %v10280_v3, %v3358_v63 }
 0x1ac   : > { %v10249_v33 = vpop.f32.mrf.mxu1  ;;  %v3606_v6 = vpop.f32.mrf.mxu0 }
 0x1ad   : > { %v3361_v48 = vadd.f32 %v10249_v33, %v12685_v24 }
 0x1ae   : > { %v3280_v8 = vpop.f32.mrf.mxu1  ;;  %v10284_v41 = vpop.f32.mrf.mxu0 }
 0x1af   : > { %v3359_v12 = vadd.f32 %v3280_v8, %v12691_v29  ;;  %v12828_v30 = vadd.f32 %v10283_v50, %v3361_v48 }
 0x1b0   : > { %v10250_v27 = vpop.f32.mrf.mxu1  ;;  %v12830_v51 = vpop.f32.mrf.mxu0 }
 0x1b1   : > { %v3362_v58 = vadd.f32 %v10250_v27, %v12695_v56  ;;  %v12833_v46 = vadd.f32 %v3606_v6, %v3359_v12 }
 0x1b2   : > { %v12835_v59 = vpop.f32.mrf.mxu1  ;;  %v10287_v3 = vpop.f32.mrf.mxu0 }
 0x1b3   : > { %v12837_v11 = vadd.f32 %v10284_v41, %v3362_v58 }
 0x1b4   : > { %v10253_v63 = vpop.f32.mrf.mxu1  ;;  %v3622_v24 = vpop.f32.mrf.mxu0 }
 0x1b5   : > { %v3365_v33 = vadd.f32 %v10253_v63, %v12704_v40 }
 0x1b6   : > { %v3296_v43 = vpop.f32.mrf.mxu1  ;;  %v10288_v29 = vpop.f32.mrf.mxu0 }
 0x1b7   : > { %v3363_v8 = vadd.f32 %v3296_v43, %v12710_v39  ;;  %v12841_v50 = vadd.f32 %v10287_v3, %v3365_v33 }
 0x1b8   : > { %v10254_v48 = vpop.f32.mrf.mxu1  ;;  %v12843_v9 = vpop.f32.mrf.mxu0 }
 0x1b9   : > { %15439 = vst [vmem:[#allocation9_spill] sm:$0xff] %v12843_v9  ;;  %v3366_v56 = vadd.f32 %v10254_v48, %v12714_v45  ;;  %v12846_v6 = vadd.f32 %v3622_v24, %v3363_v8 }
 0x1ba   : > { %v12848_v12 = vpop.f32.mrf.mxu1  ;;  %v10291_v41 = vpop.f32.mrf.mxu0 }
 0x1bb   : > { %v12850_v27 = vadd.f32 %v10288_v29, %v3366_v56 }
 0x1bc   : > { %v10257_v58 = vpop.f32.mrf.mxu1  ;;  %v3638_v40 = vpop.f32.mrf.mxu0 }
 0x1bd   : > { %15440 = vst [vmem:[#allocation12_spill] sm:$0xff] %v12850_v27  ;;  %v3369_v63 = vadd.f32 %v10257_v58, %v12723_v23 }
 0x1be   : > { %v3312_v28 = vpop.f32.mrf.mxu1  ;;  %v10292_v39 = vpop.f32.mrf.mxu0 }
 0x1bf   : > { %v3367_v43 = vadd.f32 %v3312_v28, %v12729_v18  ;;  %v12854_v3 = vadd.f32 %v10291_v41, %v3369_v63 }
 0x1c0   : > { %v10258_v33 = vpop.f32.mrf.mxu1  ;;  %v12856_v9 = vpop.f32.mrf.mxu0 }
 0x1c1   : > { %15441 = vst [vmem:[#allocation13_spill] sm:$0xff] %v12856_v9  ;;  %v3370_v45 = vadd.f32 %v10258_v33, %v12733_v47  ;;  %v12859_v24 = vadd.f32 %v3638_v40, %v3367_v43  ;;  %v3346_v33 = vadd.f32 %v12766_v44, %v12548_v4  ;;  %v12888_v4 = vld [vmem:[%s14953_s3] ss:$0 sm:$0xff] }
 0x1c2   : > { %v12861_v8 = vpop.f32.mrf.mxu1  ;;  %v10295_v29 = vpop.f32.mrf.mxu0 }
 0x1c3   : > { %v12863_v48 = vadd.f32 %v10292_v39, %v3370_v45 }
 0x1c4   : > { %v10261_v56 = vpop.f32.mrf.mxu1  ;;  %v3654_v23 = vpop.f32.mrf.mxu0 }
 0x1c5   : > { %v3373_v58 = vadd.f32 %v10261_v56, %v12742_v1 }
 0x1c6   : > { %v3328_v27 = vpop.f32.mrf.mxu1  ;;  %v10296_v28 = vpop.f32.mrf.mxu0 }
 0x1c7   : > { %v3371_v18 = vadd.f32 %v3328_v27, %v12748_v49  ;;  %v12867_v41 = vadd.f32 %v10295_v29, %v3373_v58  ;;  %v3344_v49 = vadd.f32 %v12772_v0, %v12559_v17 }
 0x1c8   : > { %v10262_v63 = vpop.f32.mrf.mxu1  ;;  %v12869_v9 = vpop.f32.mrf.mxu0 }
 0x1c9   : > { %15442 = vst [vmem:[#allocation19_spill] sm:$0xff] %v12869_v9  ;;  %v3374_v47 = vadd.f32 %v10262_v63, %v12752_v55  ;;  %v12872_v40 = vadd.f32 %v3654_v23, %v3371_v18  ;;  %v3672_v18 = vadd.f32 %v12759_v36, %v3346_v33  ;;  %v3670_v17 = vadd.f32 %v12768_v10, %v3344_v49 }
 0x1ca   : > { %v12874_v43 = vpop.f32.mrf.mxu1  ;;  %v10335_v39 = vpop.f32.mrf.mxu0  ;;  %v3348_v36 = vadd.f32 %v12796_v25, %v12647_v34 }
 0x1cb   : > { %v12878_v1 = vadd.f32 %v10296_v28, %v3374_v47 }
 0x1cc   : > { %v10301_v45 = vpop.f32.mrf.mxu1  ;;  %v4162_v56 = vpop.f32.mrf.mxu0 }
 0x1cd   : > { %15443 = vst [vmem:[#allocation7_spill] sm:$0xff] %v12878_v1  ;;  %v3965_v27 = vadd.f32 %v10301_v45, %v12763_v7 }
 0x1ce   : > { %v3836_v29 = vpop.f32.mrf.mxu1  ;;  %v10336_v58 = vpop.f32.mrf.mxu0 }
 0x1cf   : > { %v4291_v55 = vadd.f32 %v10335_v39, %v3965_v27  ;;  %v3963_v23 = vadd.f32 %v3836_v29, %v12770_v26 }
 0x1d0   : > { %v10302_v44 = vpop.f32.mrf.mxu1  ;;  %v4165_v28 = vpop.f32.mrf.mxu0 }
 0x1d1   : > { %v4289_v63 = vadd.f32 %v4162_v56, %v3963_v23  ;;  %v3966_v47 = vadd.f32 %v10302_v44, %v3672_v18  ;;  %v4330_v45 = vadd.f32 %v12888_v4, %v4291_v55 }
 0x1d2   : > { %v3839_v0 = vpop.f32.mrf.mxu1  ;;  %v10339_v7 = vpop.f32.mrf.mxu0 }
 0x1d3   : > { %v4292_v39 = vadd.f32 %v10336_v58, %v3966_v47  ;;  %v3964_v27 = vadd.f32 %v3839_v0, %v3670_v17  ;;  %v4328_v29 = vadd.f32 %v12888_v4, %v4289_v63  ;;  %v4362_v49 = vmax.f32 %v4330_v45, 0.0 }
 0x1d4   : > { %v10305_v26 = vpop.f32.mrf.mxu1  ;;  %v4178_v33 = vpop.f32.mrf.mxu0  ;;  %v3674_v0 = vadd.f32 %v12784_v37, %v3348_v36 }
 0x1d5   : > { %v4331_v1 = vadd.f32 %v12888_v4, %v4292_v39  ;;  %v4290_v9 = vadd.f32 %v4165_v28, %v3964_v27  ;;  %v3969_v56 = vadd.f32 %v10305_v26, %v12781_v21  ;;  %v4360_v25 = vmax.f32 %v4328_v29, 0.0 }
 0x1d6   : > { %v3852_v23 = vpop.f32.mrf.mxu1  ;;  %v10340_v10 = vpop.f32.mrf.mxu0  ;;  %v5507_v29 = vsel %vm4464_vm0, %v12789_v38, 0 }
 0x1d7   : > { %v4363_v18 = vmax.f32 %v4331_v1, 0.0  ;;  %v4329_v55 = vadd.f32 %v12888_v4, %v4290_v9  ;;  %v3967_v58 = vadd.f32 %v3852_v23, %v12792_v20  ;;  %v4295_v44 = vadd.f32 %v10339_v7, %v3969_v56 }
 0x1d8   : > { %v10306_v47 = vpop.f32.mrf.mxu1  ;;  %v4181_v34 = vpop.f32.mrf.mxu0  ;;  %v3352_v56 = vadd.f32 %v12809_v13, %v12665_v5 }
 0x1d9   : > { %v12899_v17 = vpack.c.bf16 %v4363_v18, %v4362_v49  ;;  %v4361_v63 = vmax.f32 %v4329_v55, 0.0  ;;  %v4293_v28 = vadd.f32 %v4178_v33, %v3967_v58  ;;  %v3970_v21 = vadd.f32 %v10306_v47, %v12798_v61 }
 0x1da   : > { %v3855_v39 = vpop.f32.mrf.mxu1  ;;  %v10343_v27 = vpop.f32.mrf.mxu0  ;;  %v4334_v9 = vadd.f32 %v12888_v4, %v4295_v44 }
 0x1db   : > { %v3968_v45 = vadd.f32 %v3855_v39, %v3674_v0  ;;  %v12903_v1 = vpack.c.bf16 %v4361_v63, %v4360_v25  ;;  %v4296_v20 = vadd.f32 %v10340_v10, %v3970_v21  ;;  %v4332_v61 = vadd.f32 %v12888_v4, %v4293_v28 }
 0x1dc   : > { %v10309_v7 = vpop.f32.mrf.mxu1  ;;  %v4194_v26 = vpop.f32.mrf.mxu0  ;;  %v4366_v5 = vmax.f32 %v4334_v9, 0.0 }
 0x1dd   : > { %v4294_v37 = vadd.f32 %v4181_v34, %v3968_v45  ;;  %v3973_v36 = vadd.f32 %v10309_v7, %v12802_v32  ;;  %10367 = vmatprep.mubr.msk.bf16.mxu1 %vm611_vm1, %v12903_v1  ;;  %v4335_v33 = vadd.f32 %v12888_v4, %v4296_v20  ;;  %v3678_v34 = vadd.f32 %v12804_v35, %v3352_v56 }
 0x1de   : > { %v3868_v23 = vpop.f32.mrf.mxu1  ;;  %10368 = vmatmul.mubr.msk.bf16.vlgmr.msra.gmra.mxu1 %vm611_vm1, %v12899_v17  ;;  %v10344_v10 = vpop.f32.mrf.mxu0  ;;  %v4364_v25 = vmax.f32 %v4332_v61, 0.0 }
 0x1df   : > { %v4333_v38 = vadd.f32 %v12888_v4, %v4294_v37  ;;  %v3971_v49 = vadd.f32 %v3868_v23, %v12807_v52  ;;  %v4299_v13 = vadd.f32 %v10343_v27, %v3973_v36  ;;  %10434 = vmatpush3.bf16.msra.mxu1 %v5507_v29  ;;  %v4367_v32 = vmax.f32 %v4335_v33, 0.0 }
 0x1e0   : > { %v10310_v18 = vpop.f32.mrf.mxu1  ;;  %v4197_v55 = vpop.f32.mrf.mxu0  ;;  %v3356_v27 = vadd.f32 %v12822_v31, %v12681_v16  ;;  %v2740_v29 = vadd.f32 %v12693_v19, %v12494_v2 }
 0x1e1   : > { %v4365_v58 = vmax.f32 %v4333_v38, 0.0  ;;  %v3974_v44 = vadd.f32 %v10310_v18, %v12811_v54  ;;  %v4297_v47 = vadd.f32 %v4194_v26, %v3971_v49  ;;  %v12921_v63 = vpack.c.bf16 %v4367_v32, %v4366_v5 }
 0x1e2   : > { %v4338_v0 = vadd.f32 %v12888_v4, %v4299_v13  ;;  %v3871_v28 = vpop.f32.mrf.mxu1  ;;  %v10347_v21 = vpop.f32.mrf.mxu0  ;;  %v3682_v23 = vadd.f32 %v12817_v53, %v3356_v27  ;;  %v3034_v13 = vadd.f32 %v12688_v42, %v2740_v29 }
 0x1e3   : > { %v3972_v52 = vadd.f32 %v3871_v28, %v3678_v34  ;;  %v4300_v39 = vadd.f32 %v10344_v10, %v3974_v44  ;;  %v12926_v9 = vpack.c.bf16 %v4365_v58, %v4364_v25  ;;  %v4336_v54 = vadd.f32 %v12888_v4, %v4297_v47 }
 0x1e4   : > { %v10313_v45 = vpop.f32.mrf.mxu1  ;;  %v4210_v20 = vpop.f32.mrf.mxu0  ;;  %v4370_v56 = vmax.f32 %v4338_v0, 0.0  ;;  %v3360_v53 = vadd.f32 %v12835_v59, %v3034_v13  ;;  %v2744_v28 = vadd.f32 %v12712_v15, %v12513_v22 }
 0x1e5   : > { %v4339_v35 = vadd.f32 %v12888_v4, %v4300_v39  ;;  %v3977_v7 = vadd.f32 %v10313_v45, %v12815_v57  ;;  %v4298_v26 = vadd.f32 %v4197_v55, %v3972_v52  ;;  %10371 = vmatprep.mubr.msk.bf16.mxu1 %vm611_vm1, %v12926_v9  ;;  %v4368_v2 = vmax.f32 %v4336_v54, 0.0 }
 0x1e6   : > { %v3884_v37 = vpop.f32.mrf.mxu1  ;;  %v10348_v16 = vpop.f32.mrf.mxu0  ;;  %10372 = vmatmul.mubr.msk.bf16.gmra.mxu1 %vm611_vm1, %v12921_v63  ;;  %v3686_v54 = vadd.f32 %v12830_v51, %v3360_v53  ;;  %v3038_v29 = vadd.f32 %v12707_v14, %v2744_v28  ;;  %v15448_v28 = vld [vmem:[#allocation35_spill] sm:$0xff] }
 0x1e7   : > { %v4371_v31 = vmax.f32 %v4339_v35, 0.0  ;;  %v4337_v36 = vadd.f32 %v12888_v4, %v4298_v26  ;;  %v3975_v61 = vadd.f32 %v3884_v37, %v12820_v60  ;;  %v4303_v33 = vadd.f32 %v10347_v21, %v3977_v7 }
 0x1e8   : > { %v10314_v57 = vpop.f32.mrf.mxu1  ;;  %v4213_v10 = vpop.f32.mrf.mxu0  ;;  %v3364_v51 = vadd.f32 %v12848_v12, %v3038_v29 }
 0x1e9   : > { %v12940_v19 = vpack.c.bf16 %v4371_v31, %v4370_v56  ;;  %v4369_v38 = vmax.f32 %v4337_v36, 0.0  ;;  %v3978_v49 = vadd.f32 %v10314_v57, %v12824_v62  ;;  %v4342_v5 = vadd.f32 %v12888_v4, %v4303_v33 }
 0x1ea   : > { %v4301_v32 = vadd.f32 %v4210_v20, %v3975_v61  ;;  %v3887_v60 = vpop.f32.mrf.mxu1  ;;  %v10351_v18 = vpop.f32.mrf.mxu0 }
 0x1eb   : > { %v12945_v55 = vpack.c.bf16 %v4369_v38, %v4368_v2  ;;  %v3976_v58 = vadd.f32 %v3887_v60, %v3682_v23  ;;  %v4304_v44 = vadd.f32 %v10348_v16, %v3978_v49  ;;  %v4374_v21 = vmax.f32 %v4342_v5, 0.0  ;;  %v15444_v2 = vld [vmem:[#allocation31_spill] sm:$0xff]  ;;  %v15445_v38 = vld [vmem:[#allocation6_spill] sm:$0xff] }
 0x1ec   : > { %v10317_v47 = vpop.f32.mrf.mxu1  ;;  %v4226_v34 = vpop.f32.mrf.mxu0  ;;  %v4340_v25 = vadd.f32 %v12888_v4, %v4301_v32  ;;  %v2748_v49 = vadd.f32 %v15445_v38, %v15444_v2 }
 0x1ed   : > { %v4343_v0 = vadd.f32 %v12888_v4, %v4304_v44  ;;  %v3981_v62 = vadd.f32 %v10317_v47, %v12828_v30  ;;  %v4302_v42 = vadd.f32 %v4213_v10, %v3976_v58  ;;  %10375 = vmatprep.mubr.msk.bf16.mxu1 %vm611_vm1, %v12945_v55  ;;  %v15446_v44 = vld [vmem:[#allocation9_spill] sm:$0xff] }
 0x1ee   : > { %v3900_v52 = vpop.f32.mrf.mxu1  ;;  %v10352_v39 = vpop.f32.mrf.mxu0  ;;  %10376 = vmatmul.mubr.msk.bf16.gmra.mxu1 %vm611_vm1, %v12940_v19  ;;  %v4372_v7 = vmax.f32 %v4340_v25, 0.0  ;;  %v3690_v53 = vadd.f32 %v15446_v44, %v3364_v51 }
 0x1ef   : > { %v4375_v27 = vmax.f32 %v4343_v0, 0.0  ;;  %v4341_v59 = vadd.f32 %v12888_v4, %v4302_v42  ;;  %v3979_v45 = vadd.f32 %v3900_v52, %v12833_v46  ;;  %v4307_v20 = vadd.f32 %v10351_v18, %v3981_v62  ;;  %v15447_v62 = vld [vmem:[#allocation12_spill] sm:$0xff] }
 0x1f0   : > { %v10318_v30 = vpop.f32.mrf.mxu1  ;;  %v4229_v35 = vpop.f32.mrf.mxu0 }
 0x1f1   : > { %v12960_v26 = vpack.c.bf16 %v4375_v27, %v4374_v21  ;;  %v4373_v22 = vmax.f32 %v4341_v59, 0.0  ;;  %v3982_v15 = vadd.f32 %v10318_v30, %v12837_v11  ;;  %v4346_v56 = vadd.f32 %v12888_v4, %v4307_v20 }
 0x1f2   : > { %v4305_v37 = vadd.f32 %v4226_v34, %v3979_v45  ;;  %v3903_v46 = vpop.f32.mrf.mxu1  ;;  %v10355_v16 = vpop.f32.mrf.mxu0  ;;  %v3042_v21 = vadd.f32 %v15448_v28, %v2748_v49 }
 0x1f3   : > { %v12965_v31 = vpack.c.bf16 %v4373_v22, %v4372_v7  ;;  %v3980_v36 = vadd.f32 %v3903_v46, %v3686_v54  ;;  %v4308_v61 = vadd.f32 %v10352_v39, %v3982_v15  ;;  %v4378_v13 = vmax.f32 %v4346_v56, 0.0  ;;  %v15449_v56 = vld [vmem:[#allocation5_spill] sm:$0xff] }
 0x1f4   : > { %v10321_v33 = vpop.f32.mrf.mxu1  ;;  %v4242_v57 = vpop.f32.mrf.mxu0  ;;  %v4344_v23 = vadd.f32 %v12888_v4, %v4305_v37  ;;  %v3368_v30 = vadd.f32 %v12861_v8, %v3042_v21  ;;  %v15450_v37 = vld [vmem:[#allocation8_spill] sm:$0xff] }
 0x1f5   : > { %v4347_v10 = vadd.f32 %v12888_v4, %v4308_v61  ;;  %v3985_v11 = vadd.f32 %v10321_v33, %v12841_v50  ;;  %v4306_v14 = vadd.f32 %v4229_v35, %v3980_v36  ;;  %10379 = vmatprep.mubr.msk.bf16.mxu1 %vm611_vm1, %v12965_v31  ;;  %v2752_v46 = vadd.f32 %v15450_v37, %v15449_v56 }
 0x1f6   : > { %v3916_v5 = vpop.f32.mrf.mxu1  ;;  %v10356_v32 = vpop.f32.mrf.mxu0  ;;  %10380 = vmatmul.mubr.msk.bf16.gmra.mxu1 %vm611_vm1, %v12960_v26  ;;  %v4376_v34 = vmax.f32 %v4344_v23, 0.0  ;;  %v15451_v23 = vld [vmem:[#allocation13_spill] sm:$0xff] }
 0x1f7   : > { %v4379_v60 = vmax.f32 %v4347_v10, 0.0  ;;  %v4345_v12 = vadd.f32 %v12888_v4, %v4306_v14  ;;  %v3983_v18 = vadd.f32 %v3916_v5, %v12846_v6  ;;  %v4311_v58 = vadd.f32 %v10355_v16, %v3985_v11 }
 0x1f8   : > { %v10322_v50 = vpop.f32.mrf.mxu1  ;;  %v4245_v47 = vpop.f32.mrf.mxu0  ;;  %v3694_v10 = vadd.f32 %v15451_v23, %v3368_v30 }
 0x1f9   : > { %v12980_v25 = vpack.c.bf16 %v4379_v60, %v4378_v13  ;;  %v4377_v0 = vmax.f32 %v4345_v12, 0.0  ;;  %v3986_v42 = vadd.f32 %v10322_v50, %v15447_v62  ;;  %v4350_v52 = vadd.f32 %v12888_v4, %v4311_v58  ;;  %v15452_v13 = vld [vmem:[#allocation37_spill] sm:$0xff] }
 0x1fa   : > { %v4309_v39 = vadd.f32 %v4242_v57, %v3983_v18  ;;  %v3919_v6 = vpop.f32.mrf.mxu1  ;;  %v10359_v27 = vpop.f32.mrf.mxu0  ;;  %v3046_v5 = vadd.f32 %v15452_v13, %v2752_v46  ;;  %v13070_v13 = vld [vmem:[%s14957_s7] ss:$0 sm:$0xff] }
 0x1fb   : > { %v12985_v59 = vpack.c.bf16 %v4377_v0, %v4376_v34  ;;  %v3984_v45 = vadd.f32 %v3919_v6, %v3690_v53  ;;  %v4312_v20 = vadd.f32 %v10356_v32, %v3986_v42  ;;  %v4382_v16 = vmax.f32 %v4350_v52, 0.0 }
 0x1fc   : > { %v10325_v54 = vpop.f32.mrf.mxu1  ;;  %v4258_v35 = vpop.f32.mrf.mxu0  ;;  %v4348_v7 = vadd.f32 %v12888_v4, %v4309_v39  ;;  %v3372_v44 = vadd.f32 %v12874_v43, %v3046_v5  ;;  %v13075_v5 = vld [vmem:[%s14955_s5] ss:$0 sm:$0xff] }
 0x1fd   : > { %v4351_v22 = vadd.f32 %v12888_v4, %v4312_v20  ;;  %v3989_v15 = vadd.f32 %v10325_v54, %v12854_v3  ;;  %v4310_v29 = vadd.f32 %v4245_v47, %v3984_v45  ;;  %10383 = vmatprep.mubr.msk.bf16.mxu1 %vm611_vm1, %v12985_v59  ;;  %v15453_v45 = vld [vmem:[#allocation19_spill] sm:$0xff] }
 0x1fe   : > { %v3932_v36 = vpop.f32.mrf.mxu1  ;;  %v10360_v61 = vpop.f32.mrf.mxu0  ;;  %10384 = vmatmul.mubr.msk.bf16.gmra.mxu1 %vm611_vm1, %v12980_v25  ;;  %v4380_v14 = vmax.f32 %v4348_v7, 0.0  ;;  %v3698_v20 = vadd.f32 %v15453_v45, %v3372_v44 }
 0x1ff   : > { %v4383_v51 = vmax.f32 %v4351_v22, 0.0  ;;  %v4349_v8 = vadd.f32 %v12888_v4, %v4310_v29  ;;  %v3987_v33 = vadd.f32 %v3932_v36, %v12859_v24  ;;  %v4315_v57 = vadd.f32 %v10359_v27, %v3989_v15 }
 0x200   : > { %v10326_v3 = vpop.f32.mrf.mxu1  ;;  %v4261_v11 = vpop.f32.mrf.mxu0 }
 0x201   : > { %v13000_v2 = vpack.c.bf16 %v4383_v51, %v4382_v16  ;;  %v4381_v38 = vmax.f32 %v4349_v8, 0.0  ;;  %v3990_v49 = vadd.f32 %v10326_v3, %v12863_v48  ;;  %v4354_v32 = vadd.f32 %v12888_v4, %v4315_v57 }
 0x202   : > { %v4313_v60 = vadd.f32 %v4258_v35, %v3987_v33  ;;  %v3935_v24 = vpop.f32.mrf.mxu1  ;;  %v10363_v12 = vpop.f32.mrf.mxu0  ;;  %v15454_v35 = vld [vmem:[#allocation7_spill] sm:$0xff] }
 0x203   : > { %v4402_v18 = vpack.c.bf16 %v4381_v38, %v4380_v14  ;;  %v3988_v58 = vadd.f32 %v3935_v24, %v3694_v10  ;;  %v4316_v50 = vadd.f32 %v10360_v61, %v3990_v49  ;;  %v4386_v42 = vmax.f32 %v4354_v32, 0.0 }
 0x204   : > { %v10329_v53 = vpop.f32.mrf.mxu1  ;;  %v4274_v47 = vpop.f32.mrf.mxu0  ;;  %v4352_v34 = vadd.f32 %v12888_v4, %v4313_v60 }
 0x205   : > { %v4355_v0 = vadd.f32 %v12888_v4, %v4316_v50  ;;  %v3993_v48 = vadd.f32 %v10329_v53, %v12867_v41  ;;  %v4314_v62 = vadd.f32 %v4261_v11, %v3988_v58  ;;  %10387 = vmatprep.mubr.msk.bf16.mxu1 %vm611_vm1, %v4402_v18 }
 0x206   : > { %v3948_v28 = vpop.f32.mrf.mxu1  ;;  %v10364_v21 = vpop.f32.mrf.mxu0  ;;  %10388 = vmatmul.mubr.msk.bf16.gmra.mxu1 %vm611_vm1, %v13000_v2  ;;  %v4384_v30 = vmax.f32 %v4352_v34, 0.0  ;;  %v13088_v34 = vld [vmem:[%s14958_s8] ss:$0 sm:$0xff] }
 0x207   : > { %v4387_v52 = vmax.f32 %v4355_v0, 0.0  ;;  %v4353_v39 = vadd.f32 %v12888_v4, %v4314_v62  ;;  %v3991_v6 = vadd.f32 %v3948_v28, %v12872_v40  ;;  %v4319_v43 = vadd.f32 %v10363_v12, %v3993_v48 }
 0x208   : > { %v10330_v27 = vpop.f32.mrf.mxu1  ;;  %v4277_v29 = vpop.f32.mrf.mxu0 }
 0x209   : > { %v4405_v41 = vpack.c.bf16 %v4387_v52, %v4386_v42  ;;  %v4385_v54 = vmax.f32 %v4353_v39, 0.0  ;;  %v3994_v7 = vadd.f32 %v10330_v27, %v15454_v35  ;;  %v4317_v22 = vadd.f32 %v4274_v47, %v3991_v6 }
 0x20a   : > { %v3951_v15 = vpop.f32.mrf.mxu1  ;;  %v4358_v37 = vadd.f32 %v12888_v4, %v4319_v43 }
 0x20b   : > { %v4404_v56 = vpack.c.bf16 %v4385_v54, %v4384_v30  ;;  %v3992_v46 = vadd.f32 %v3951_v15, %v3698_v20  ;;  %v4320_v40 = vadd.f32 %v10364_v21, %v3994_v7  ;;  %v4356_v16 = vadd.f32 %v12888_v4, %v4317_v22 }
 0x20c   : > { %v4390_v51 = vmax.f32 %v4358_v37, 0.0 }
 0x20d   : > { %v4359_v36 = vadd.f32 %v12888_v4, %v4320_v40  ;;  %v4318_v61 = vadd.f32 %v4277_v29, %v3992_v46  ;;  %10391 = vmatprep.mubr.msk.bf16.mxu1 %vm611_vm1, %v4404_v56  ;;  %v4388_v57 = vmax.f32 %v4356_v16, 0.0 }
 0x20e   : > { %10392 = vmatmul.mubr.msk.bf16.gmra.mxu1 %vm611_vm1, %v4405_v41 }
 0x20f   : > { %v4391_v8 = vmax.f32 %v4359_v36, 0.0  ;;  %v4357_v33 = vadd.f32 %v12888_v4, %v4318_v61 }
 0x211   : > { %v4407_v3 = vpack.c.bf16 %v4391_v8, %v4390_v51  ;;  %v4389_v23 = vmax.f32 %v4357_v33, 0.0 }
 0x213   : > { %v4406_v10 = vpack.c.bf16 %v4389_v23, %v4388_v57 }
 0x215   : > { %10395 = vmatprep.mubr.msk.bf16.mxu1 %vm611_vm1, %v4406_v10 }
 0x216   : > { %10396 = vmatmul.mubr.msk.bf16.gmra.mxu1 %vm611_vm1, %v4407_v3 }
 0x217   : > { %10435 = vmatprep.mubr.msk.bf16.mxu1 %vm611_vm1, %v12903_v1  ;;  %v10403_v4 = vpop.f32.mrf.mxu0 }
 0x218   : > { %v4747_v32 = vadd.f32 %v10403_v4, %v13070_v13 }
 0x21e   : > { %10436 = vmatmul.mubr.msk.bf16.vlgmr.msra.gmra.mxu1 %vm611_vm1, %v12899_v17  ;;  %v4738_v17 = vpop.f32.mrf.mxu0 }
 0x21f   : > { %10439 = vmatprep.mubr.msk.bf16.mxu1 %vm611_vm1, %v12926_v9  ;;  %v4739_v58 = vadd.f32 %v13070_v13, %v4738_v17 }
 0x220   : > { %v10404_v1 = vpop.f32.mrf.mxu0 }
 0x221   : > { %v4750_v0 = vadd.f32 %v10404_v1, %v13070_v13 }
 0x226   : > { %10440 = vmatmul.mubr.msk.bf16.gmra.mxu1 %vm611_vm1, %v12921_v63  ;;  %v4741_v63 = vpop.f32.mrf.mxu0 }
 0x227   : > { %10443 = vmatprep.mubr.msk.bf16.mxu1 %vm611_vm1, %v12945_v55  ;;  %v4742_v28 = vadd.f32 %v13070_v13, %v4741_v63 }
 0x228   : > { %v10407_v9 = vpop.f32.mrf.mxu0 }
 0x229   : > { %v4763_v45 = vadd.f32 %v10407_v9, %v13070_v13 }
 0x22e   : > { %10444 = vmatmul.mubr.msk.bf16.gmra.mxu1 %vm611_vm1, %v12940_v19  ;;  %v4754_v19 = vpop.f32.mrf.mxu0 }
 0x22f   : > { %10447 = vmatprep.mubr.msk.bf16.mxu1 %vm611_vm1, %v12965_v31  ;;  %v4755_v46 = vadd.f32 %v13070_v13, %v4754_v19 }
 0x230   : > { %v10408_v55 = vpop.f32.mrf.mxu0 }
 0x231   : > { %v4766_v8 = vadd.f32 %v10408_v55, %v13070_v13 }
 0x236   : > { %10448 = vmatmul.mubr.msk.bf16.gmra.mxu1 %vm611_vm1, %v12960_v26  ;;  %v4757_v26 = vpop.f32.mrf.mxu0 }
 0x237   : > { %10451 = vmatprep.mubr.msk.bf16.mxu1 %vm611_vm1, %v12985_v59  ;;  %v4758_v23 = vadd.f32 %v13070_v13, %v4757_v26 }
 0x238   : > { %v13051_v31 = vpop.f32.mrf.mxu0 }
 0x239   : > { %v4779_v19 = vadd.f32 %v13051_v31, %v13070_v13 }
 0x23e   : > { %10452 = vmatmul.mubr.msk.bf16.gmra.mxu1 %vm611_vm1, %v12980_v25  ;;  %v13053_v25 = vpop.f32.mrf.mxu0 }
 0x23f   : > { %10455 = vmatprep.mubr.msk.bf16.mxu1 %vm611_vm1, %v4402_v18 }
 0x240   : > { %v13055_v59 = vpop.f32.mrf.mxu0 }
 0x242   : > { %v13057_v11 = vpop.f32.mrf.mxu0 }
 0x244   : > { %v13059_v14 = vpop.f32.mrf.mxu0 }
 0x246   : > { %10456 = vmatmul.mubr.msk.bf16.gmra.mxu1 %vm611_vm1, %v13000_v2  ;;  %v13061_v2 = vpop.f32.mrf.mxu0 }
 0x247   : > { %10459 = vmatprep.mubr.msk.bf16.mxu1 %vm611_vm1, %v4404_v56 }
 0x248   : > { %v13063_v38 = vpop.f32.mrf.mxu0 }
 0x24a   : > { %v13065_v49 = vpop.f32.mrf.mxu0 }
 0x24c   : > { %v13078_v60 = vpop.f32.mrf.mxu0 }
 0x24e   : > { %10460 = vmatmul.mubr.msk.bf16.gmra.mxu1 %vm611_vm1, %v4405_v41  ;;  %v13083_v53 = vpop.f32.mrf.mxu0 }
 0x24f   : > { %10463 = vmatprep.mubr.msk.bf16.mxu1 %vm611_vm1, %v4406_v10 }
 0x250   : > { %v13095_v27 = vpop.f32.mrf.mxu0 }
 0x252   : > { %v13103_v37 = vpop.f32.mrf.mxu0 }
 0x254   : > { %v13113_v17 = vpop.f32.mrf.mxu0 }
 0x256   : > { %10464 = vmatmul.mubr.msk.bf16.gmra.mxu1 %vm611_vm1, %v4407_v3 }
 0x29e   : > { %v10369_v24 = vpop.f32.mrf.mxu1 }
 0x29f   : > { %v4511_v12 = vadd.f32 %v10369_v24, %v13075_v5 }
 0x2a0   : > { %v4502_v18 = vpop.f32.mrf.mxu1 }
 0x2a1   : > { %v4867_v50 = vadd.f32 %v4747_v32, %v4511_v12  ;;  %v4503_v44 = vadd.f32 %v13075_v5, %v4502_v18  ;;  %v4771_v32 = vadd.f32 %v13070_v13, %v13053_v25 }
 0x2a2   : > { %v10370_v47 = vpop.f32.mrf.mxu1 }
 0x2a3   : > { %v4899_v48 = vmax.f32 %v4867_v50, 0.0  ;;  %v4865_v62 = vadd.f32 %v4739_v58, %v4503_v44  ;;  %v4514_v42 = vadd.f32 %v10370_v47, %v13075_v5  ;;  %v4782_v50 = vadd.f32 %v13055_v59, %v13070_v13  ;;  %v13125_v47 = vpop.f32.mrf.mxu0 }
 0x2a4   : > { %v4505_v21 = vpop.f32.mrf.mxu1  ;;  %v4774_v59 = vadd.f32 %v13070_v13, %v13057_v11  ;;  %v4787_v11 = vadd.f32 %v13070_v13, %v13061_v2 }
 0x2a5   : > { %v4897_v52 = vmax.f32 %v4865_v62, 0.0  ;;  %v4868_v39 = vadd.f32 %v4750_v0, %v4514_v42  ;;  %v4506_v6 = vadd.f32 %v13075_v5, %v4505_v21  ;;  %v4938_v43 = vmul.f32 %v13088_v34, %v4899_v48 }
 0x2a6   : > { %v10373_v41 = vpop.f32.mrf.mxu1 }
 0x2a7   : > { %v4900_v20 = vmax.f32 %v4868_v39, 0.0  ;;  %v4866_v30 = vadd.f32 %v4742_v28, %v4506_v6  ;;  %v4975_v54 = vsel %vm4968_vm7, %v4938_v43, 0.0  ;;  %v4936_v35 = vmul.f32 %v13088_v34, %v4897_v52 }
 0x2a8   : > { %v4527_v7 = vadd.f32 %v10373_v41, %v13075_v5  ;;  %4976 = vadd.xlane.f32.xlu1 %v4975_v54  ;;  %v4518_v15 = vpop.f32.mrf.mxu1  ;;  %v4795_v43 = vadd.f32 %v13059_v14, %v13070_v13 }
 0x2a9   : > { %v4898_v22 = vmax.f32 %v4866_v30, 0.0  ;;  %v4969_v29 = vsel %vm4968_vm7, %v4936_v35, 0.0  ;;  %v4939_v56 = vmul.f32 %v13088_v34, %v4900_v20  ;;  %v4519_v16 = vadd.f32 %v13075_v5, %v4518_v15  ;;  %v13137_v20 = vpop.f32.mrf.mxu0 }
 0x2aa   : > { %v4871_v40 = vadd.f32 %v4763_v45, %v4527_v7  ;;  %4970 = vadd.xlane.f32.xlu0 %v4969_v29  ;;  %v10374_v36 = vpop.f32.mrf.mxu1 }
 0x2ab   : > { %v4978_v61 = vsel %vm4968_vm7, %v4939_v56, 0.0  ;;  %v4937_v51 = vmul.f32 %v13088_v34, %v4898_v22  ;;  %v4869_v33 = vadd.f32 %v4755_v46, %v4519_v16  ;;  %v4530_v57 = vadd.f32 %v10374_v36, %v13075_v5  ;;  %v13149_v36 = vpop.f32.mrf.mxu0 }
 0x2ac   : > { %4979 = vadd.xlane.f32.xlu1 %v4978_v61  ;;  %v4903_v3 = vmax.f32 %v4871_v40, 0.0  ;;  %v4521_v10 = vpop.f32.mrf.mxu1  ;;  %v4798_v40 = vadd.f32 %v13063_v38, %v13070_v13  ;;  %v4790_v38 = vadd.f32 %v13070_v13, %v13065_v49  ;;  %v4803_v49 = vadd.f32 %v13070_v13, %v13083_v53 }
 0x2ad   : > { %v4972_v4 = vsel %vm4968_vm7, %v4937_v51, 0.0  ;;  %v4901_v1 = vmax.f32 %v4869_v33, 0.0  ;;  %v4872_v63 = vadd.f32 %v4766_v8, %v4530_v57  ;;  %v4522_v9 = vadd.f32 %v13075_v5, %v4521_v10 }
 0x2ae   : > { %4973 = vadd.xlane.f32.xlu0 %v4972_v4  ;;  %v10377_v55 = vpop.f32.mrf.mxu1  ;;  %v4942_v44 = vmul.f32 %v13088_v34, %v4903_v3 }
 0x2af   : > { %v4904_v24 = vmax.f32 %v4872_v63, 0.0  ;;  %v4870_v12 = vadd.f32 %v4758_v23, %v4522_v9  ;;  %v4543_v26 = vadd.f32 %v10377_v55, %v13075_v5  ;;  %v4940_v18 = vmul.f32 %v13088_v34, %v4901_v1 }
 0x2b0   : > { %v4534_v58 = vpop.f32.mrf.mxu1  ;;  %v4987_v35 = vsel %vm4968_vm7, %v4942_v44, 0.0  ;;  %v4811_v63 = vadd.f32 %v13078_v60, %v13070_v13 }
 0x2b1   : > { %v4902_v31 = vmax.f32 %v4870_v12, 0.0  ;;  %v4875_v0 = vadd.f32 %v4779_v19, %v4543_v26  ;;  %v4535_v48 = vadd.f32 %v13075_v5, %v4534_v58  ;;  %v4981_v25 = vsel %vm4968_vm7, %v4940_v18, 0.0  ;;  %v13161_v19 = vpop.f32.mrf.mxu0 }
 0x2b2   : > { %v10378_v62 = vpop.f32.mrf.mxu1  ;;  %4982 = vadd.xlane.f32.xlu0 %v4981_v25  ;;  %v4943_v42 = vmul.f32 %v13088_v34, %v4904_v24 }
 0x2b3   : > { %v4873_v28 = vadd.f32 %v4771_v32, %v4535_v48  ;;  %v4546_v21 = vadd.f32 %v10378_v62, %v13075_v5  ;;  %v4907_v52 = vmax.f32 %v4875_v0, 0.0  ;;  %v4941_v45 = vmul.f32 %v13088_v34, %v4902_v31  ;;  %v4834_v25 = vpop.f32.mrf.mxu0 }
 0x2b4   : > { %v4990_v39 = vsel %vm4968_vm7, %v4943_v42, 0.0  ;;  %v4537_v6 = vpop.f32.mrf.mxu1  ;;  %v4814_v0 = vadd.f32 %v13095_v27, %v13070_v13  ;;  %v4806_v27 = vadd.f32 %v13070_v13, %v13103_v37  ;;  %v4819_v37 = vadd.f32 %v13070_v13, %v13125_v47 }
 0x2b5   : > { %v4905_v30 = vmax.f32 %v4873_v28, 0.0  ;;  %v4876_v41 = vadd.f32 %v4782_v50, %v4546_v21  ;;  %4991 = vadd.xlane.f32.xlu1 %v4990_v39  ;;  %v4538_v54 = vadd.f32 %v13075_v5, %v4537_v6  ;;  %v4984_v46 = vsel %vm4968_vm7, %v4941_v45, 0.0 }
 0x2b6   : > { %v10381_v7 = vpop.f32.mrf.mxu1  ;;  %4988 = vadd.xlane.f32.xlu0 %v4987_v35  ;;  %v4946_v16 = vmul.f32 %v13088_v34, %v4907_v52 }
 0x2b7   : > { %v4908_v22 = vmax.f32 %v4876_v41, 0.0  ;;  %v4874_v15 = vadd.f32 %v4774_v59, %v4538_v54  ;;  %v4559_v14 = vadd.f32 %v10381_v7, %v13075_v5  ;;  %v4944_v29 = vmul.f32 %v13088_v34, %v4905_v30  ;;  %v10428_v54 = vpop.f32.mrf.mxu0 }
 0x2b8   : > { %v4550_v56 = vpop.f32.mrf.mxu1  ;;  %v4999_v12 = vsel %vm4968_vm7, %v4946_v16, 0.0  ;;  %v4827_v30 = vadd.f32 %v13113_v17, %v13070_v13  ;;  %v4830_v16 = vadd.f32 %v13137_v20, %v13070_v13  ;;  %v4822_v20 = vadd.f32 %v13070_v13, %v13149_v36 }
 0x2b9   : > { %v4906_v61 = vmax.f32 %v4874_v15, 0.0  ;;  %v4879_v51 = vadd.f32 %v4795_v43, %v4559_v14  ;;  %v4551_v2 = vadd.f32 %v13075_v5, %v4550_v56  ;;  %4985 = vadd.xlane.f32.xlu1 %v4984_v46  ;;  %v4993_v8 = vsel %vm4968_vm7, %v4944_v29, 0.0 }
 0x2ba   : > { %v10382_v33 = vpop.f32.mrf.mxu1  ;;  %4994 = vadd.xlane.f32.xlu0 %v4993_v8  ;;  %v4947_v57 = vmul.f32 %v13088_v34, %v4908_v22  ;;  %v4835_v36 = vadd.f32 %v13070_v13, %v4834_v25 }
 0x2bb   : > { %v4877_v3 = vadd.f32 %v4787_v11, %v4551_v2  ;;  %v4562_v23 = vadd.f32 %v10382_v33, %v13075_v5  ;;  %v4911_v10 = vmax.f32 %v4879_v51, 0.0  ;;  %v4945_v9 = vmul.f32 %v13088_v34, %v4906_v61  ;;  %v4837_v51 = vpop.f32.mrf.mxu0 }
 0x2bc   : > { %v4553_v4 = vpop.f32.mrf.mxu1  ;;  %v5002_v1 = vsel %vm4968_vm7, %v4947_v57, 0.0 }
 0x2bd   : > { %v4909_v55 = vmax.f32 %v4877_v3, 0.0  ;;  %v4880_v32 = vadd.f32 %v4798_v40, %v4562_v23  ;;  %v4554_v24 = vadd.f32 %v13075_v5, %v4553_v4  ;;  %5003 = vadd.xlane.f32.xlu1 %v5002_v1  ;;  %v4996_v31 = vsel %vm4968_vm7, %v4945_v9, 0.0 }
 0x2be   : > { %v10385_v26 = vpop.f32.mrf.mxu1  ;;  %5000 = vadd.xlane.f32.xlu0 %v4999_v12  ;;  %v4950_v48 = vmul.f32 %v13088_v34, %v4911_v10 }
 0x2bf   : > { %v4912_v18 = vmax.f32 %v4880_v32, 0.0  ;;  %v4878_v58 = vadd.f32 %v4790_v38, %v4554_v24  ;;  %v4575_v60 = vadd.f32 %v10385_v26, %v13075_v5  ;;  %v4948_v50 = vmul.f32 %v13088_v34, %v4909_v55  ;;  %v10431_v55 = vpop.f32.mrf.mxu0 }
 0x2c0   : > { %v4566_v44 = vpop.f32.mrf.mxu1  ;;  %v5011_v22 = vsel %vm4968_vm7, %v4950_v48, 0.0 }
 0x2c1   : > { %v4910_v62 = vmax.f32 %v4878_v58, 0.0  ;;  %v4883_v42 = vadd.f32 %v4811_v63, %v4575_v60  ;;  %v4567_v28 = vadd.f32 %v13075_v5, %v4566_v44  ;;  %4997 = vadd.xlane.f32.xlu1 %v4996_v31  ;;  %v5005_v53 = vsel %vm4968_vm7, %v4948_v50, 0.0  ;;  %v4850_v48 = vpop.f32.mrf.mxu0 }
 0x2c2   : > { %v10386_v21 = vpop.f32.mrf.mxu1  ;;  %5006 = vadd.xlane.f32.xlu0 %v5005_v53  ;;  %v4951_v59 = vmul.f32 %v13088_v34, %v4912_v18  ;;  %v4843_v63 = vadd.f32 %v13161_v19, %v13070_v13  ;;  %v4846_v31 = vadd.f32 %v10428_v54, %v13070_v13 }
 0x2c3   : > { %v4881_v52 = vadd.f32 %v4803_v49, %v4567_v28  ;;  %v4578_v39 = vadd.f32 %v10386_v21, %v13075_v5  ;;  %v4915_v6 = vmax.f32 %v4883_v42, 0.0  ;;  %v4949_v41 = vmul.f32 %v13088_v34, %v4910_v62 }
 0x2c4   : > { %v4569_v43 = vpop.f32.mrf.mxu1  ;;  %v5014_v45 = vsel %vm4968_vm7, %v4951_v59, 0.0 }
 0x2c5   : > { %v4913_v35 = vmax.f32 %v4881_v52, 0.0  ;;  %v4884_v7 = vadd.f32 %v4814_v0, %v4578_v39  ;;  %v4570_v11 = vadd.f32 %v13075_v5, %v4569_v43  ;;  %5015 = vadd.xlane.f32.xlu1 %v5014_v45  ;;  %v5008_v40 = vsel %vm4968_vm7, %v4949_v41, 0.0  ;;  %v10432_v41 = vpop.f32.mrf.mxu0 }
 0x2c6   : > { %v10389_v15 = vpop.f32.mrf.mxu1  ;;  %5012 = vadd.xlane.f32.xlu0 %v5011_v22  ;;  %v4954_v61 = vmul.f32 %v13088_v34, %v4915_v6  ;;  %v4838_v39 = vadd.f32 %v13070_v13, %v4837_v51  ;;  %v4859_v45 = vadd.f32 %v10431_v55, %v13070_v13 }
 0x2c7   : > { %v4916_v14 = vmax.f32 %v4884_v7, 0.0  ;;  %v4882_v29 = vadd.f32 %v4806_v27, %v4570_v11  ;;  %v4591_v56 = vadd.f32 %v10389_v15, %v13075_v5  ;;  %v4952_v17 = vmul.f32 %v13088_v34, %v4913_v35 }
 0x2c8   : > { %v4582_v46 = vpop.f32.mrf.mxu1  ;;  %v5023_v26 = vsel %vm4968_vm7, %v4954_v61, 0.0  ;;  %v4851_v15 = vadd.f32 %v13070_v13, %v4850_v48  ;;  %v4853_v61 = vpop.f32.mrf.mxu0  ;;  %v13250_v48 = vld [vmem:[#allocation4] ss:$0 sm:$0xff] }
 0x2c9   : > { %v4914_v2 = vmax.f32 %v4882_v29, 0.0  ;;  %v4887_v8 = vadd.f32 %v4827_v30, %v4591_v56  ;;  %v4583_v33 = vadd.f32 %v13075_v5, %v4582_v46  ;;  %5009 = vadd.xlane.f32.xlu1 %v5008_v40  ;;  %v5017_v47 = vsel %vm4968_vm7, %v4952_v17, 0.0 }
 0x2ca   : > { %v10390_v57 = vpop.f32.mrf.mxu1  ;;  %5018 = vadd.xlane.f32.xlu0 %v5017_v47  ;;  %v4955_v3 = vmul.f32 %v13088_v34, %v4916_v14  ;;  %v11048_v17 = vmov 0  }
 0x2cb   : > { %v4885_v23 = vadd.f32 %v4819_v37, %v4583_v33  ;;  %v4594_v38 = vadd.f32 %v10390_v57, %v13075_v5  ;;  %v4919_v10 = vmax.f32 %v4887_v8, 0.0  ;;  %v4953_v9 = vmul.f32 %v13088_v34, %v4914_v2  ;;  %10878 = vset.pattern.permute.xlu1 %v11048_v17  ;;  %10877 = vset.pattern.permute.xlu0 %v11048_v17 }
 0x2cc   : > { %v4585_v4 = vpop.f32.mrf.mxu1  ;;  %v5026_v1 = vsel %vm4968_vm7, %v4955_v3, 0.0 }
 0x2cd   : > { %v4917_v32 = vmax.f32 %v4885_v23, 0.0  ;;  %v4888_v24 = vadd.f32 %v4830_v16, %v4594_v38  ;;  %v4586_v12 = vadd.f32 %v13075_v5, %v4585_v4  ;;  %5027 = vadd.xlane.f32.xlu1 %v5026_v1  ;;  %v5020_v44 = vsel %vm4968_vm7, %v4953_v9, 0.0 }
 0x2ce   : > { %v10393_v49 = vpop.f32.mrf.mxu1  ;;  %5024 = vadd.xlane.f32.xlu0 %v5023_v26  ;;  %v4958_v0 = vmul.f32 %v13088_v34, %v4919_v10  ;;  %v4862_v16 = vadd.f32 %v10432_v41, %v13070_v13 }
 0x2cf   : > { %v4920_v18 = vmax.f32 %v4888_v24, 0.0  ;;  %v4886_v58 = vadd.f32 %v4822_v20, %v4586_v12  ;;  %v4607_v60 = vadd.f32 %v10393_v49, %v13075_v5  ;;  %v4956_v19 = vmul.f32 %v13088_v34, %v4917_v32 }
 0x2d0   : > { %v4598_v50 = vpop.f32.mrf.mxu1  ;;  %v5035_v11 = vsel %vm4968_vm7, %v4958_v0, 0.0  ;;  %v4854_v20 = vadd.f32 %v13070_v13, %v4853_v61 }
 0x2d1   : > { %v4918_v62 = vmax.f32 %v4886_v58, 0.0  ;;  %v4891_v42 = vadd.f32 %v4843_v63, %v4607_v60  ;;  %v4599_v28 = vadd.f32 %v13075_v5, %v4598_v50  ;;  %5021 = vadd.xlane.f32.xlu1 %v5020_v44  ;;  %v5029_v25 = vsel %vm4968_vm7, %v4956_v19, 0.0 }
 0x2d2   : > { %v10394_v53 = vpop.f32.mrf.mxu1  ;;  %5030 = vadd.xlane.f32.xlu0 %v5029_v25  ;;  %v4959_v21 = vmul.f32 %v13088_v34, %v4920_v18 }
 0x2d3   : > { %v4889_v59 = vadd.f32 %v4835_v36, %v4599_v28  ;;  %v4610_v52 = vadd.f32 %v10394_v53, %v13075_v5  ;;  %v4923_v27 = vmax.f32 %v4891_v42, 0.0  ;;  %v4957_v30 = vmul.f32 %v13088_v34, %v4918_v62 }
 0x2d4   : > { %v4601_v6 = vpop.f32.mrf.mxu1  ;;  %v5038_v43 = vsel %vm4968_vm7, %v4959_v21, 0.0 }
 0x2d5   : > { %v4921_v54 = vmax.f32 %v4889_v59, 0.0  ;;  %v4892_v35 = vadd.f32 %v4846_v31, %v4610_v52  ;;  %v4602_v7 = vadd.f32 %v13075_v5, %v4601_v6  ;;  %5039 = vadd.xlane.f32.xlu1 %v5038_v43  ;;  %v5032_v40 = vsel %vm4968_vm7, %v4957_v30, 0.0  ;;  %v5504_v31 = vld [vmem:[%s14960_s10] sm:$0x3] }
 0x2d6   : > { %v10397_v22 = vpop.f32.mrf.mxu1  ;;  %5036 = vadd.xlane.f32.xlu0 %v5035_v11  ;;  %v4962_v51 = vmul.f32 %v13088_v34, %v4923_v27  ;;  %10856 = vmatprep.subr.msk.bf16.mxu0 %vm4464_vm0, %v5504_v31  ;;  %v5719_v0 = vsel %vm4464_vm0, %v5504_v31, 0 }
 0x2d7   : > { %v4924_v37 = vmax.f32 %v4892_v35, 0.0  ;;  %v4890_v14 = vadd.f32 %v4838_v39, %v4602_v7  ;;  %v4623_v29 = vadd.f32 %v10397_v22, %v13075_v5  ;;  %v4960_v56 = vmul.f32 %v13088_v34, %v4921_v54  ;;  %10468 = vmatpush3.bf16.msra.mxu0 %v5719_v0 }
 0x2d8   : > { %v4614_v46 = vpop.f32.mrf.mxu1  ;;  %v5047_v1 = vsel %vm4968_vm7, %v4962_v51, 0.0 }
 0x2d9   : > { %v4922_v2 = vmax.f32 %v4890_v14, 0.0  ;;  %v4895_v8 = vadd.f32 %v4859_v45, %v4623_v29  ;;  %v4615_v33 = vadd.f32 %v13075_v5, %v4614_v46  ;;  %5033 = vadd.xlane.f32.xlu1 %v5032_v40  ;;  %v5041_v47 = vsel %vm4968_vm7, %v4960_v56, 0.0 }
 0x2da   : > { %v10398_v57 = vpop.f32.mrf.mxu1  ;;  %5042 = vadd.xlane.f32.xlu0 %v5041_v47  ;;  %v4963_v3 = vmul.f32 %v13088_v34, %v4924_v37 }
 0x2db   : > { %v4893_v23 = vadd.f32 %v4851_v15, %v4615_v33  ;;  %v4626_v38 = vadd.f32 %v10398_v57, %v13075_v5  ;;  %v4961_v63 = vmul.f32 %v13088_v34, %v4922_v2  ;;  %v4927_v9 = vmax.f32 %v4895_v8, 0.0 }
 0x2dc   : > { %v4617_v10 = vpop.f32.mrf.mxu1  ;;  %v5050_v4 = vsel %vm4968_vm7, %v4963_v3, 0.0 }
 0x2dd   : > { %v4925_v55 = vmax.f32 %v4893_v23, 0.0  ;;  %v4896_v32 = vadd.f32 %v4862_v16, %v4626_v38  ;;  %v4618_v24 = vadd.f32 %v13075_v5, %v4617_v10  ;;  %5051 = vadd.xlane.f32.xlu1 %v5050_v4  ;;  %v5044_v13 = vsel %vm4968_vm7, %v4961_v63, 0.0 }
 0x2de   : > { %5048 = vadd.xlane.f32.xlu0 %v5047_v1  ;;  %v4966_v60 = vmul.f32 %v13088_v34, %v4927_v9 }
 0x2df   : > { %v4928_v12 = vmax.f32 %v4896_v32, 0.0  ;;  %v4894_v26 = vadd.f32 %v4854_v20, %v4618_v24  ;;  %v4964_v49 = vmul.f32 %v13088_v34, %v4925_v55 }
 0x2e0   : > { %v5059_v50 = vsel %vm4968_vm7, %v4966_v60, 0.0 }
 0x2e1   : > { %v4926_v36 = vmax.f32 %v4894_v26, 0.0  ;;  %5045 = vadd.xlane.f32.xlu1 %v5044_v13  ;;  %v5053_v18 = vsel %vm4968_vm7, %v4964_v49, 0.0  ;;  %v4967_v58 = vmul.f32 %v13088_v34, %v4928_v12 }
 0x2e2   : > { %5054 = vadd.xlane.f32.xlu0 %v5053_v18 }
 0x2e3   : > { %v5062_v19 = vsel %vm4968_vm7, %v4967_v58, 0.0  ;;  %v4965_v5 = vmul.f32 %v13088_v34, %v4926_v36 }
 0x2e5   : > { %5063 = vadd.xlane.f32.xlu1 %v5062_v19  ;;  %v5056_v44 = vsel %vm4968_vm7, %v4965_v5, 0.0 }
 0x2e6   : > { %5060 = vadd.xlane.f32.xlu0 %v5059_v50 }
 0x2e9   : > { %5057 = vadd.xlane.f32.xlu1 %v5056_v44 }
 0x331   : > { %v4977_v62 = vpop.xlane.xlu1 %4976 }
 0x332   : > { %v5074_v34 = vadd.f32 %v13250_v48, %v4977_v62 }
 0x333   : > { %v4971_v42 = vpop.xlane.xlu0 %4970 }
 0x334   : > { %v9430_v28 = vmul.f32 -1.442695, %v5074_v34  ;;  %v5072_v25 = vadd.f32 %v13250_v48, %v4971_v42 }
 0x335   : > { %v4980_v53 = vpop.xlane.xlu1 %4979 }
 0x336   : > { %10879 = vpow2.f32 %v9430_v28  ;;  %v9428_v21 = vmul.f32 -1.442695, %v5072_v25  ;;  %v5075_v59 = vadd.f32 %v13250_v48, %v4980_v53 }
 0x337   : > { %v4974_v52 = vpop.xlane.xlu0 %4973 }
 0x338   : > { %10881 = vpow2.f32 %v9428_v21  ;;  %v9431_v39 = vmul.f32 -1.442695, %v5075_v59  ;;  %v5073_v27 = vadd.f32 %v13250_v48, %v4974_v52 }
 0x33a   : > { %10883 = vpow2.f32 %v9431_v39  ;;  %v9429_v6 = vmul.f32 -1.442695, %v5073_v27 }
 0x33b   : > { %v4983_v43 = vpop.xlane.xlu0 %4982 }
 0x33c   : > { %10885 = vpow2.f32 %v9429_v6  ;;  %v5076_v45 = vadd.f32 %v13250_v48, %v4983_v43 }
 0x33e   : > { %v9432_v30 = vmul.f32 -1.442695, %v5076_v45  ;;  %v4992_v41 = vpop.xlane.xlu1 %4991 }
 0x33f   : > { %v5079_v54 = vadd.f32 %v13250_v48, %v4992_v41  ;;  %v4989_v35 = vpop.xlane.xlu0 %4988 }
 0x340   : > { %v5078_v7 = vadd.f32 %v13250_v48, %v4989_v35  ;;  %10887 = vpow2.f32 %v9432_v30 }
 0x341   : > { %v9435_v22 = vmul.f32 -1.442695, %v5079_v54 }
 0x342   : > { %v9434_v15 = vmul.f32 -1.442695, %v5078_v7  ;;  %v4986_v37 = vpop.xlane.xlu1 %4985 }
 0x343   : > { %v10880_v11 = vpop.eup %10879  ;;  %v5077_v29 = vadd.f32 %v13250_v48, %v4986_v37  ;;  %v4995_v56 = vpop.xlane.xlu0 %4994 }
 0x344   : > { %v5202_v14 = vadd.f32 1.0, %v10880_v11  ;;  %10889 = vpow2.f32 %v9434_v15  ;;  %v5080_v46 = vadd.f32 %v13250_v48, %v4995_v56 }
 0x345   : > { %v10882_v17 = vpop.eup %10881  ;;  %v9433_v16 = vmul.f32 -1.442695, %v5077_v29 }
 0x346   : > { %10891 = vrcp.f32 %v5202_v14  ;;  %v5200_v40 = vadd.f32 1.0, %v10882_v17  ;;  %v5004_v51 = vpop.xlane.xlu1 %5003  ;;  %v9436_v57 = vmul.f32 -1.442695, %v5080_v46 }
 0x347   : > { %v10884_v61 = vpop.eup %10883  ;;  %10893 = vpow2.f32 %v9435_v22  ;;  %v5083_v8 = vadd.f32 %v13250_v48, %v5004_v51  ;;  %v5001_v33 = vpop.xlane.xlu0 %5000 }
 0x348   : > { %10895 = vrcp.f32 %v5200_v40  ;;  %v5203_v2 = vadd.f32 1.0, %v10884_v61  ;;  %v5082_v3 = vadd.f32 %v13250_v48, %v5001_v33 }
 0x349   : > { %v10886_v47 = vpop.eup %10885  ;;  %10897 = vpow2.f32 %v9433_v16  ;;  %v9439_v38 = vmul.f32 -1.442695, %v5083_v8 }
 0x34a   : > { %10899 = vrcp.f32 %v5203_v2  ;;  %v5201_v23 = vadd.f32 1.0, %v10886_v47  ;;  %v4998_v20 = vpop.xlane.xlu1 %4997  ;;  %v9438_v1 = vmul.f32 -1.442695, %v5082_v3 }
 0x34b   : > { %v5081_v10 = vadd.f32 %v13250_v48, %v4998_v20  ;;  %v5007_v4 = vpop.xlane.xlu0 %5006  ;;  %10901 = vpow2.f32 %v9436_v57 }
 0x34c   : > { %v5084_v63 = vadd.f32 %v13250_v48, %v5007_v4  ;;  %10903 = vrcp.f32 %v5201_v23 }
 0x34d   : > { %v9437_v9 = vmul.f32 -1.442695, %v5081_v10  ;;  %v10888_v55 = vpop.eup %10887  ;;  %10905 = vpow2.f32 %v9439_v38 }
 0x34e   : > { %v5016_v32 = vpop.xlane.xlu1 %5015  ;;  %v9440_v24 = vmul.f32 -1.442695, %v5084_v63  ;;  %v5204_v36 = vadd.f32 1.0, %v10888_v55 }
 0x34f   : > { %10907 = vpow2.f32 %v9437_v9  ;;  %v5087_v12 = vadd.f32 %v13250_v48, %v5016_v32  ;;  %v5013_v26 = vpop.xlane.xlu0 %5012 }
 0x350   : > { %10909 = vpow2.f32 %v9438_v1  ;;  %v5086_v49 = vadd.f32 %v13250_v48, %v5013_v26 }
 0x351   : > { %v10890_v13 = vpop.eup %10889  ;;  %v9443_v60 = vmul.f32 -1.442695, %v5087_v12  ;;  %10911 = vpow2.f32 %v9440_v24 }
 0x352   : > { %v5206_v58 = vadd.f32 1.0, %v10890_v13  ;;  %v5010_v19 = vpop.xlane.xlu1 %5009  ;;  %v9442_v0 = vmul.f32 -1.442695, %v5086_v49 }
 0x353   : > { %v10892_v18 = vpop.eup %10891  ;;  %v5085_v50 = vadd.f32 %v13250_v48, %v5010_v19  ;;  %v5019_v44 = vpop.xlane.xlu0 %5018 }
 0x354   : > { %v10894_v5 = vpop.eup %10893  ;;  %5308 = vperm.xlu1 %10878, %v10892_v18   ;;  %10913 = vrcp.f32 %v5206_v58  ;;  %v5088_v62 = vadd.f32 %v13250_v48, %v5019_v44 }
 0x355   : > { %v10896_v31 = vpop.eup %10895  ;;  %10915 = vrcp.f32 %v5204_v36  ;;  %v9441_v42 = vmul.f32 -1.442695, %v5085_v50  ;;  %v5207_v25 = vadd.f32 1.0, %v10894_v5 }
 0x356   : > { %v10898_v34 = vpop.eup %10897  ;;  %5298 = vperm.xlu0 %10877, %v10896_v31   ;;  %10917 = vpow2.f32 %v9443_v60  ;;  %v5028_v53 = vpop.xlane.xlu1 %5027  ;;  %v9444_v39 = vmul.f32 -1.442695, %v5088_v62 }
 0x357   : > { %v10900_v28 = vpop.eup %10899  ;;  %v5205_v21 = vadd.f32 1.0, %v10898_v34  ;;  %10919 = vpow2.f32 %v9441_v42  ;;  %v5091_v59 = vadd.f32 %v13250_v48, %v5028_v53  ;;  %v5025_v52 = vpop.xlane.xlu0 %5024 }
 0x358   : > { %5313 = vperm.xlu1 %10878, %v10900_v28   ;;  %10921 = vpow2.f32 %v9442_v0  ;;  %v5090_v27 = vadd.f32 %v13250_v48, %v5025_v52  ;;  %v10902_v6 = vpop.eup %10901 }
 0x359   : > { %v9447_v43 = vmul.f32 -1.442695, %v5091_v59  ;;  %v10904_v45 = vpop.eup %10903  ;;  %10923 = vrcp.f32 %v5207_v25  ;;  %v5208_v29 = vadd.f32 1.0, %v10902_v6 }
 0x35a   : > { %v9446_v30 = vmul.f32 -1.442695, %v5090_v27  ;;  %v5022_v41 = vpop.xlane.xlu1 %5021  ;;  %v10906_v54 = vpop.eup %10905  ;;  %10925 = vrcp.f32 %v5205_v21 }
 0x35b   : > { %v5089_v35 = vadd.f32 %v13250_v48, %v5022_v41  ;;  %v5031_v7 = vpop.xlane.xlu0 %5030  ;;  %10927 = vpow2.f32 %v9444_v39  ;;  %v5211_v17 = vadd.f32 1.0, %v10906_v54 }
 0x35c   : > { %5303 = vperm.xlu1 %10878, %v10904_v45   ;;  %v10908_v11 = vpop.eup %10907  ;;  %10929 = vpow2.f32 %v9447_v43  ;;  %v5092_v14 = vadd.f32 %v13250_v48, %v5031_v7 }
 0x35d   : > { %v10910_v22 = vpop.eup %10909  ;;  %v5209_v15 = vadd.f32 1.0, %v10908_v11  ;;  %v9445_v37 = vmul.f32 -1.442695, %v5089_v35  ;;  %10931 = vpow2.f32 %v9446_v30 }
 0x35e   : > { %v5040_v56 = vpop.xlane.xlu1 %5039  ;;  %v10912_v16 = vpop.eup %10911  ;;  %v5210_v61 = vadd.f32 1.0, %v10910_v22  ;;  %v9448_v2 = vmul.f32 -1.442695, %v5092_v14 }
 0x35f   : > { %10933 = vrcp.f32 %v5209_v15  ;;  %v5095_v46 = vadd.f32 %v13250_v48, %v5040_v56  ;;  %v5037_v40 = vpop.xlane.xlu0 %5036  ;;  %v5212_v10 = vadd.f32 1.0, %v10912_v16 }
 0x360   : > { %10935 = vpow2.f32 %v9445_v37  ;;  %v5094_v47 = vadd.f32 %v13250_v48, %v5037_v40 }
 0x361   : > { %v10914_v51 = vpop.eup %10913  ;;  %10937 = vrcp.f32 %v5208_v29  ;;  %v9451_v33 = vmul.f32 -1.442695, %v5095_v46 }
 0x362   : > { %v10916_v8 = vpop.eup %10915  ;;  %v5034_v57 = vpop.xlane.xlu1 %5033  ;;  %5328 = vperm.xlu1 %10878, %v10914_v51   ;;  %10939 = vrcp.f32 %v5211_v17  ;;  %v9450_v55 = vmul.f32 -1.442695, %v5094_v47 }
 0x363   : > { %v10918_v3 = vpop.eup %10917  ;;  %v5093_v23 = vadd.f32 %v13250_v48, %v5034_v57  ;;  %v5043_v38 = vpop.xlane.xlu0 %5042  ;;  %10941 = vrcp.f32 %v5210_v61 }
 0x364   : > { %v10920_v20 = vpop.eup %10919  ;;  %10943 = vpow2.f32 %v9448_v2  ;;  %v5096_v9 = vadd.f32 %v13250_v48, %v5043_v38  ;;  %v5215_v12 = vadd.f32 1.0, %v10918_v3 }
 0x365   : > { %v10922_v4 = vpop.eup %10921  ;;  %v5213_v1 = vadd.f32 1.0, %v10920_v20  ;;  %v9449_v63 = vmul.f32 -1.442695, %v5093_v23  ;;  %10945 = vpow2.f32 %v9451_v33 }
 0x366   : > { %v5052_v32 = vpop.xlane.xlu1 %5051  ;;  %5318 = vperm.xlu1 %10878, %v10916_v8   ;;  %v10924_v24 = vpop.eup %10923  ;;  %v5214_v36 = vadd.f32 1.0, %v10922_v4  ;;  %v9452_v58 = vmul.f32 -1.442695, %v5096_v9 }
 0x367   : > { %10947 = vrcp.f32 %v5213_v1  ;;  %v5099_v26 = vadd.f32 %v13250_v48, %v5052_v32  ;;  %v5049_v49 = vpop.xlane.xlu0 %5048  ;;  %v10926_v13 = vpop.eup %10925 }
 0x368   : > { %10949 = vpow2.f32 %v9449_v63  ;;  %v10928_v18 = vpop.eup %10927  ;;  %v5098_v44 = vadd.f32 %v13250_v48, %v5049_v49 }
 0x369   : > { %10951 = vrcp.f32 %v5212_v10  ;;  %v10930_v60 = vpop.eup %10929  ;;  %v9455_v19 = vmul.f32 -1.442695, %v5099_v26  ;;  %v5216_v42 = vadd.f32 1.0, %v10928_v18 }
 0x36a   : > { %10953 = vpow2.f32 %v9450_v55  ;;  %v5046_v5 = vpop.xlane.xlu1 %5045  ;;  %5323 = vperm.xlu1 %10878, %v10926_v13   ;;  %v10932_v50 = vpop.eup %10931  ;;  %v5219_v53 = vadd.f32 1.0, %v10930_v60  ;;  %v9454_v39 = vmul.f32 -1.442695, %v5098_v44 }
 0x36b   : > { %10955 = vrcp.f32 %v5215_v12  ;;  %v5097_v31 = vadd.f32 %v13250_v48, %v5046_v5  ;;  %v5055_v0 = vpop.xlane.xlu0 %5054  ;;  %v5218_v43 = vadd.f32 1.0, %v10932_v50 }
 0x36c   : > { %v10934_v62 = vpop.eup %10933  ;;  %10957 = vrcp.f32 %v5214_v36  ;;  %v5100_v25 = vadd.f32 %v13250_v48, %v5055_v0 }
 0x36d   : > { %v10936_v34 = vpop.eup %10935  ;;  %10959 = vpow2.f32 %v9452_v58  ;;  %v9453_v28 = vmul.f32 -1.442695, %v5097_v31  ;;  %5343 = vperm.xlu0 %10877, %v10934_v62  }
 0x36e   : > { %v5217_v21 = vadd.f32 1.0, %v10936_v34  ;;  %10961 = vpow2.f32 %v9455_v19  ;;  %v5064_v59 = vpop.xlane.xlu1 %5063  ;;  %5333 = vperm.xlu1 %10878, %v10924_v24   ;;  %v10938_v52 = vpop.eup %10937  ;;  %v9456_v30 = vmul.f32 -1.442695, %v5100_v25 }
 0x36f   : > { %10963 = vpow2.f32 %v9453_v28  ;;  %v5103_v27 = vadd.f32 %v13250_v48, %v5064_v59  ;;  %v10940_v6 = vpop.eup %10939  ;;  %v5061_v41 = vpop.xlane.xlu0 %5060  ;;  %v11007_v59 = vld [vmem:[%s12554_s9 + $0x18] sm:$0xff] }
 0x370   : > { %10965 = vrcp.f32 %v5217_v21  ;;  %v10942_v45 = vpop.eup %10941  ;;  %v5102_v37 = vadd.f32 %v13250_v48, %v5061_v41 }
 0x371   : > { %10967 = vrcp.f32 %v5216_v42  ;;  %5353 = vperm.xlu0 %10877, %v10940_v6   ;;  %v10944_v54 = vpop.eup %10943  ;;  %v9459_v35 = vmul.f32 -1.442695, %v5103_v27  ;;  %v9493_v42 = vld [vmem:[%s14963_s13 + $0x2] sm:$0x3] }
 0x372   : > { %10969 = vrcp.f32 %v5219_v53  ;;  %v5058_v7 = vpop.xlane.xlu1 %5057  ;;  %5338 = vperm.xlu1 %10878, %v10938_v52   ;;  %v10946_v11 = vpop.eup %10945  ;;  %v5220_v17 = vadd.f32 1.0, %v10944_v54  ;;  %v9458_v51 = vmul.f32 -1.442695, %v5102_v37  ;;  %10857 = vmatprep.subr.msk.bf16.mxu1 %vm4464_vm0, %v9493_v42  ;;  %v6133_v28 = vsel %vm4464_vm0, %v9493_v42, 0  ;;  %v11008_v27 = vld [vmem:[%s12554_s9] sm:$0xff] }
 0x373   : > { %10971 = vpow2.f32 %v9454_v39  ;;  %v5101_v22 = vadd.f32 %v13250_v48, %v5058_v7  ;;  %v5223_v16 = vadd.f32 1.0, %v10946_v11  ;;  %10502 = vmatpush3.bf16.msra.mxu1 %v6133_v28 }
 0x374   : > { %v10948_v15 = vpop.eup %10947  ;;  %10973 = vrcp.f32 %v5218_v43  ;;  %v11009_v43 = vld [vmem:[%s12554_s9 + $0x8] sm:$0xff] }
 0x375   : > { %v10950_v14 = vpop.eup %10949  ;;  %10975 = vpow2.f32 %v9456_v30  ;;  %v9457_v29 = vmul.f32 -1.442695, %v5101_v22  ;;  %5363 = vperm.xlu0 %10877, %v10948_v15   ;;  %v11010_v30 = vld [vmem:[%s12554_s9 + $0x10] sm:$0xff]  ;;  %v11011_v15 = vld [vmem:[%s12554_s9 + $0x20] sm:$0xff] }
 0x376   : > { %v10952_v56 = vpop.eup %10951  ;;  %v5221_v46 = vadd.f32 1.0, %v10950_v14  ;;  %10977 = vpow2.f32 %v9459_v35  ;;  %5348 = vperm.xlu1 %10878, %v10942_v45   ;;  %v11012_v14 = vld [vmem:[%s12554_s9 + $0x28] sm:$0xff] }
 0x377   : > { %v10954_v40 = vpop.eup %10953  ;;  %10979 = vpow2.f32 %v9457_v29 }
 0x378   : > { %v10956_v61 = vpop.eup %10955  ;;  %10981 = vrcp.f32 %v5221_v46  ;;  %v5222_v47 = vadd.f32 1.0, %v10954_v40  ;;  %v11013_v40 = vld [vmem:[%s12554_s9 + $0x30] sm:$0xff] }
 0x379   : > { %v10958_v2 = vpop.eup %10957  ;;  %5373 = vperm.xlu0 %10877, %v10956_v61   ;;  %10983 = vrcp.f32 %v5220_v17  ;;  %v11014_v61 = vld [vmem:[%s12554_s9 + $0x38] sm:$0xff] }
 0x37a   : > { %v10960_v8 = vpop.eup %10959  ;;  %5358 = vperm.xlu1 %10878, %v10952_v56   ;;  %10985 = vrcp.f32 %v5223_v16 }
 0x37b   : > { %v10962_v48 = vpop.eup %10961  ;;  %10987 = vpow2.f32 %v9458_v51  ;;  %v5224_v20 = vadd.f32 1.0, %v10960_v8 }
 0x37c   : > { %v10964_v33 = vpop.eup %10963  ;;  %v5227_v4 = vadd.f32 1.0, %v10962_v48 }
 0x37d   : > { %v10966_v57 = vpop.eup %10965  ;;  %v5225_v3 = vadd.f32 1.0, %v10964_v33  ;;  %v11015_v33 = vld [vmem:[%s12554_s9 + $0x48] sm:$0xff] }
 0x37e   : > { %v10968_v23 = vpop.eup %10967  ;;  %5383 = vperm.xlu0 %10877, %v10966_v57   ;;  %5368 = vperm.xlu1 %10878, %v10958_v2   ;;  %v11016_v57 = vld [vmem:[%s12554_s9 + $0x40] sm:$0xff] }
 0x37f   : > { %v10970_v38 = vpop.eup %10969  ;;  %10989 = vrcp.f32 %v5225_v3 }
 0x380   : > { %v10972_v10 = vpop.eup %10971  ;;  %10991 = vrcp.f32 %v5222_v47 }
 0x381   : > { %v10974_v1 = vpop.eup %10973  ;;  %10993 = vrcp.f32 %v5224_v20  ;;  %v5226_v32 = vadd.f32 1.0, %v10972_v10  ;;  %v11017_v10 = vld [vmem:[%s12554_s9 + $0x58] sm:$0xff] }
 0x382   : > { %v10976_v63 = vpop.eup %10975  ;;  %5393 = vperm.xlu0 %10877, %v10970_v38   ;;  %5378 = vperm.xlu1 %10878, %v10968_v23   ;;  %10995 = vrcp.f32 %v5227_v4 }
 0x383   : > { %v10978_v9 = vpop.eup %10977  ;;  %v5228_v49 = vadd.f32 1.0, %v10976_v63 }
 0x384   : > { %v10980_v55 = vpop.eup %10979  ;;  %v5231_v36 = vadd.f32 1.0, %v10978_v9 }
 0x385   : > { %v10982_v24 = vpop.eup %10981  ;;  %v5229_v12 = vadd.f32 1.0, %v10980_v55 }
 0x386   : > { %5403 = vperm.xlu0 %10877, %v10982_v24   ;;  %5388 = vperm.xlu1 %10878, %v10974_v1   ;;  %v10984_v26 = vpop.eup %10983  ;;  %v11018_v1 = vld [vmem:[%s12554_s9 + $0x50] sm:$0xff]  ;;  %v11019_v24 = vld [vmem:[%s12554_s9 + $0x68] sm:$0xff] }
 0x387   : > { %10997 = vrcp.f32 %v5229_v12  ;;  %v10986_v13 = vpop.eup %10985 }
 0x388   : > { %10999 = vrcp.f32 %v5226_v32  ;;  %v10988_v18 = vpop.eup %10987 }
 0x389   : > { %11001 = vrcp.f32 %v5228_v49  ;;  %v5230_v60 = vadd.f32 1.0, %v10988_v18 }
 0x38a   : > { %5413 = vperm.xlu0 %10877, %v10986_v13   ;;  %5398 = vperm.xlu1 %10878, %v10984_v26   ;;  %11003 = vrcp.f32 %v5231_v36  ;;  %v11020_v26 = vld [vmem:[%s12554_s9 + $0x60] sm:$0xff] }
 0x38b   : > { %11005 = vrcp.f32 %v5230_v60 }
 0x38c   : > { %v10990_v58 = vpop.eup %10989 }
 0x38d   : > { %v10992_v19 = vpop.eup %10991 }
 0x38e   : > { %5423 = vperm.xlu0 %10877, %v10990_v58   ;;  %5408 = vperm.xlu1 %10878, %v10992_v19   ;;  %v10994_v5 = vpop.eup %10993  ;;  %v11021_v58 = vld [vmem:[%s12554_s9 + $0x78] sm:$0xff]  ;;  %v11022_v19 = vld [vmem:[%s12554_s9 + $0x70] sm:$0xff] }
 0x38f   : > { %v10996_v50 = vpop.eup %10995 }
 0x392   : > { %5433 = vperm.xlu0 %10877, %v10996_v50   ;;  %5418 = vperm.xlu1 %10878, %v10994_v5  }
 0x394   : > { %v10998_v44 = vpop.eup %10997 }
 0x395   : > { %v11000_v31 = vpop.eup %10999 }
 0x396   : > { %5443 = vperm.xlu0 %10877, %v10998_v44   ;;  %5428 = vperm.xlu1 %10878, %v11000_v31   ;;  %v11002_v0 = vpop.eup %11001 }
 0x397   : > { %v11004_v62 = vpop.eup %11003 }
 0x398   : > { %v11006_v34 = vpop.eup %11005 }
 0x39a   : > { %5453 = vperm.xlu0 %10877, %v11004_v62   ;;  %5438 = vperm.xlu1 %10878, %v11002_v0   ;;  %v11023_v0 = vld [vmem:[%s12554_s9 + $0x88] sm:$0xff] }
 0x39e   : > { %5448 = vperm.xlu1 %10878, %v11006_v34   ;;  %v11024_v34 = vld [vmem:[%s12554_s9 + $0x80] sm:$0xff] }
 0x3cf   : > { %v5309_v25 = vpop.permute.xlu1 %5308 }
 0x3d0   : > { %v5458_v41 = vmul.f32 %v11010_v30, %v5309_v25 }
 0x3d1   : > { %v5299_v21 = vpop.permute.xlu0 %5298 }
 0x3d2   : > { %v5456_v6 = vmul.f32 %v11008_v27, %v5299_v21  ;;  %v11025_v21 = vld [vmem:[%s12554_s9 + $0x98] sm:$0xff] }
 0x3d3   : > { %v5314_v53 = vpop.permute.xlu1 %5313 }
 0x3d4   : > { %v5459_v52 = vmul.f32 %v11007_v59, %v5314_v53 }
 0x3d6   : > { %v5489_v35 = vpack.c.bf16 %v5459_v52, %v5458_v41  ;;  %v11026_v52 = vld [vmem:[%s12554_s9 + $0x90] sm:$0xff]  ;;  %v11028_v41 = vld [vmem:[%s12554_s9 + $0xa0] sm:$0xff] }
 0x3d7   : > { %v5304_v39 = vpop.permute.xlu1 %5303 }
 0x3d8   : > { %v5457_v45 = vmul.f32 %v11009_v43, %v5304_v39 }
 0x3da   : > { %v5488_v54 = vpack.c.bf16 %v5457_v45, %v5456_v6  ;;  %v11027_v45 = vld [vmem:[%s12554_s9 + $0xa8] sm:$0xff] }
 0x3dc   : > { %10469 = vmatprep.mubr.msk.bf16.mxu0 %vm611_vm1, %v5488_v54 }
 0x3dd   : > { %10470 = vmatmul.mubr.msk.bf16.vlgmr.msra.gmra.mxu0 %vm611_vm1, %v5489_v35  ;;  %v5329_v7 = vpop.permute.xlu1 %5328 }
 0x3de   : > { %v5462_v16 = vmul.f32 %v11013_v40, %v5329_v7 }
 0x3e1   : > { %v5319_v11 = vpop.permute.xlu1 %5318 }
 0x3e2   : > { %v5460_v37 = vmul.f32 %v11011_v15, %v5319_v11 }
 0x3e5   : > { %v5324_v22 = vpop.permute.xlu1 %5323 }
 0x3e6   : > { %v5461_v29 = vmul.f32 %v11012_v14, %v5324_v22  ;;  %v11029_v22 = vld [vmem:[%s12554_s9 + $0xb8] sm:$0xff] }
 0x3e8   : > { %v5490_v56 = vpack.c.bf16 %v5461_v29, %v5460_v37  ;;  %v5344_v17 = vpop.permute.xlu0 %5343  ;;  %v11030_v37 = vld [vmem:[%s12554_s9 + $0xb0] sm:$0xff] }
 0x3e9   : > { %v5334_v46 = vpop.permute.xlu1 %5333  ;;  %v5465_v47 = vmul.f32 %v11015_v33, %v5344_v17 }
 0x3ea   : > { %v5463_v51 = vmul.f32 %v11014_v61, %v5334_v46  ;;  %10473 = vmatprep.mubr.msk.bf16.mxu0 %vm611_vm1, %v5490_v56  ;;  %v11031_v46 = vld [vmem:[%s12554_s9 + $0xc8] sm:$0xff] }
 0x3ec   : > { %v5491_v2 = vpack.c.bf16 %v5463_v51, %v5462_v16  ;;  %v5354_v8 = vpop.permute.xlu0 %5353  ;;  %v11032_v16 = vld [vmem:[%s12554_s9 + $0xc0] sm:$0xff] }
 0x3ed   : > { %v5339_v48 = vpop.permute.xlu1 %5338  ;;  %v5467_v4 = vmul.f32 %v11017_v10, %v5354_v8  ;;  %v11036_v10 = vld [vmem:[%s12554_s9 + $0xe0] sm:$0xff] }
 0x3ee   : > { %v5464_v3 = vmul.f32 %v11016_v57, %v5339_v48  ;;  %10474 = vmatmul.mubr.msk.bf16.gmra.mxu0 %vm611_vm1, %v5491_v2  ;;  %v11033_v48 = vld [vmem:[%s12554_s9 + $0xd8] sm:$0xff] }
 0x3f0   : > { %v5492_v23 = vpack.c.bf16 %v5465_v47, %v5464_v3  ;;  %v5364_v38 = vpop.permute.xlu0 %5363  ;;  %v11034_v47 = vld [vmem:[%s12554_s9 + $0xd0] sm:$0xff] }
 0x3f1   : > { %v5349_v20 = vpop.permute.xlu1 %5348  ;;  %v5469_v12 = vmul.f32 %v11019_v24, %v5364_v38  ;;  %v11035_v38 = vld [vmem:[%s12554_s9 + $0xe8] sm:$0xff]  ;;  %v11038_v24 = vld [vmem:[%s12554_s9 + $0xf0] sm:$0xff] }
 0x3f2   : > { %v5466_v63 = vmul.f32 %v11018_v1, %v5349_v20  ;;  %10477 = vmatprep.mubr.msk.bf16.mxu0 %vm611_vm1, %v5492_v23 }
 0x3f4   : > { %v5493_v9 = vpack.c.bf16 %v5467_v4, %v5466_v63  ;;  %v5374_v55 = vpop.permute.xlu0 %5373 }
 0x3f5   : > { %v5359_v32 = vpop.permute.xlu1 %5358  ;;  %v5471_v60 = vmul.f32 %v11021_v58, %v5374_v55  ;;  %v11037_v55 = vld [vmem:[%s12554_s9 + $0xf8] sm:$0xff] }
 0x3f6   : > { %v5468_v49 = vmul.f32 %v11020_v26, %v5359_v32  ;;  %10478 = vmatmul.mubr.msk.bf16.gmra.mxu0 %vm611_vm1, %v5493_v9 }
 0x3f8   : > { %v5494_v13 = vpack.c.bf16 %v5469_v12, %v5468_v49  ;;  %v5953_v49 = vld [vmem:[#allocation3] sm:$0xff] }
 0x3f9   : > { %v5384_v36 = vpop.permute.xlu0 %5383  ;;  %v5369_v18 = vpop.permute.xlu1 %5368 }
 0x3fa   : > { %v5470_v5 = vmul.f32 %v11022_v19, %v5369_v18  ;;  %10481 = vmatprep.mubr.msk.bf16.mxu0 %vm611_vm1, %v5494_v13  ;;  %v5473_v62 = vmul.f32 %v11023_v0, %v5384_v36  ;;  %v6033_v13 = vld [vmem:[%s14963_s13] sm:$0x3]  ;;  %v15455_v36 = vld [vmem:[#allocation17_spill] sm:$0xff]  ;;  %v10437_v0 = vpop.f32.mrf.mxu1 }
 0x3fb   : > { %v5985_v18 = vmul.f32 %v15455_v36, %v5953_v49  ;;  %10858 = vmatprep.subr.msk.bf16.mxu0 %vm4464_vm0, %v6033_v13  ;;  %v6345_v58 = vsel %vm4464_vm0, %v6033_v13, 0  ;;  %v6035_v19 = vld [vmem:[#allocation3 + $0x9] sm:$0xff] }
 0x3fc   : > { %v5495_v50 = vpack.c.bf16 %v5471_v60, %v5470_v5  ;;  %v6034_v60 = vld [vmem:[#allocation3 + $0x1] sm:$0xff]  ;;  %10536 = vmatpush3.bf16.msra.mxu0 %v6345_v58 }
 0x3fd   : > { %v5394_v44 = vpop.permute.xlu0 %5393  ;;  %v5379_v31 = vpop.permute.xlu1 %5378  ;;  %v5954_v5 = vld [vmem:[#allocation3 + $0x8] sm:$0xff] }
 0x3fe   : > { %v5472_v42 = vmul.f32 %v11024_v34, %v5379_v31  ;;  %10482 = vmatmul.mubr.msk.bf16.gmra.mxu0 %vm611_vm1, %v5495_v50  ;;  %v5475_v59 = vmul.f32 %v11025_v21, %v5394_v44  ;;  %v6066_v50 = vpack.c.bf16 %v6035_v19, %v6034_v60  ;;  %v6017_v44 = vpack.c.bf16 %v5954_v5, %v5985_v18  ;;  %v9526_v31 = vld [vmem:[%s14963_s13 + $0x4] sm:$0x3]  ;;  %v13435_v5 = vld [vmem:[%s14963_s13 + $0x8] sm:$0x3] }
 0x3ff   : > { %10859 = vmatprep.subr.msk.bf16.mxu1 %vm4464_vm0, %v9526_v31 }
 0x400   : > { %v5496_v28 = vpack.c.bf16 %v5473_v62, %v5472_v42  ;;  %10503 = vmatprep.mubr.msk.bf16.mxu1 %vm611_vm1, %v6066_v50  ;;  %v5543_v62 = vpop.f32.mrf.mxu1 }
 0x401   : > { %v5404_v25 = vpop.permute.xlu0 %5403  ;;  %v5389_v53 = vpop.permute.xlu1 %5388 }
 0x402   : > { %v5474_v39 = vmul.f32 %v11026_v52, %v5389_v53  ;;  %10485 = vmatprep.mubr.msk.bf16.mxu0 %vm611_vm1, %v5496_v28  ;;  %v5477_v30 = vmul.f32 %v11027_v45, %v5404_v25  ;;  %v10438_v34 = vpop.f32.mrf.mxu1  ;;  %v9543_v28 = vld [vmem:[%s14963_s13 + $0x6] sm:$0x3] }
 0x403   : > { %10860 = vmatprep.subr.msk.bf16.mxu0 %vm4464_vm0, %v9543_v28  ;;  %v6965_v13 = vsel %vm4464_vm0, %v9543_v28, 0 }
 0x404   : > { %v5497_v27 = vpack.c.bf16 %v5475_v59, %v5474_v39  ;;  %v5546_v42 = vpop.f32.mrf.mxu1 }
 0x405   : > { %v5414_v6 = vpop.permute.xlu0 %5413  ;;  %v5399_v43 = vpop.permute.xlu1 %5398 }
 0x406   : > { %v5476_v54 = vmul.f32 %v11028_v41, %v5399_v43  ;;  %10486 = vmatmul.mubr.msk.bf16.gmra.mxu0 %vm611_vm1, %v5497_v27  ;;  %v5479_v15 = vmul.f32 %v11029_v22, %v5414_v6  ;;  %v10441_v25 = vpop.f32.mrf.mxu1  ;;  %v13372_v41 = vld [vmem:[%s14962_s12] ss:$0 sm:$0xff] }
 0x408   : > { %v5498_v35 = vpack.c.bf16 %v5477_v30, %v5476_v54  ;;  %v5559_v53 = vpop.f32.mrf.mxu1 }
 0x409   : > { %v5424_v7 = vpop.permute.xlu0 %5423  ;;  %v5409_v11 = vpop.permute.xlu1 %5408 }
 0x40a   : > { %v5478_v14 = vmul.f32 %v11030_v37, %v5409_v11  ;;  %10489 = vmatprep.mubr.msk.bf16.mxu0 %vm611_vm1, %v5498_v35  ;;  %v5481_v40 = vmul.f32 %v11031_v46, %v5424_v7  ;;  %v13353_v21 = vpop.f32.mrf.mxu1 }
 0x40c   : > { %v5499_v29 = vpack.c.bf16 %v5479_v15, %v5478_v14  ;;  %v13355_v59 = vpop.f32.mrf.mxu1 }
 0x40d   : > { %v5434_v56 = vpop.permute.xlu0 %5433  ;;  %v5419_v17 = vpop.permute.xlu1 %5418 }
 0x40e   : > { %v5480_v61 = vmul.f32 %v11032_v16, %v5419_v17  ;;  %10490 = vmatmul.mubr.msk.bf16.gmra.mxu0 %vm611_vm1, %v5499_v29  ;;  %v5483_v33 = vmul.f32 %v11033_v48, %v5434_v56  ;;  %v13357_v52 = vpop.f32.mrf.mxu1 }
 0x410   : > { %v5500_v51 = vpack.c.bf16 %v5481_v40, %v5480_v61  ;;  %v13359_v39 = vpop.f32.mrf.mxu1 }
 0x411   : > { %v5444_v2 = vpop.permute.xlu0 %5443  ;;  %v5429_v8 = vpop.permute.xlu1 %5428 }
 0x412   : > { %v5482_v57 = vmul.f32 %v11034_v47, %v5429_v8  ;;  %10493 = vmatprep.mubr.msk.bf16.mxu0 %vm611_vm1, %v5500_v51  ;;  %v5485_v20 = vmul.f32 %v11035_v38, %v5444_v2  ;;  %v13361_v27 = vpop.f32.mrf.mxu1  ;;  %v15460_v8 = vld [vmem:[#allocation20_spill] sm:$0xff]  ;;  %v6639_v38 = vsel %vm4464_vm0, %v9526_v31, 0 }
 0x414   : > { %v5501_v3 = vpack.c.bf16 %v5483_v33, %v5482_v57  ;;  %v13363_v6 = vpop.f32.mrf.mxu1 }
 0x415   : > { %v5439_v23 = vpop.permute.xlu1 %5438  ;;  %v5454_v1 = vpop.permute.xlu0 %5453 }
 0x416   : > { %v5484_v4 = vmul.f32 %v11036_v10, %v5439_v23  ;;  %10494 = vmatmul.mubr.msk.bf16.gmra.mxu0 %vm611_vm1, %v5501_v3  ;;  %v5487_v32 = vmul.f32 %v11037_v55, %v5454_v1  ;;  %v13365_v43 = vpop.f32.mrf.mxu1 }
 0x418   : > { %v5502_v63 = vpack.c.bf16 %v5485_v20, %v5484_v4  ;;  %v13367_v45 = vpop.f32.mrf.mxu1 }
 0x419   : > { %v5449_v9 = vpop.permute.xlu1 %5448 }
 0x41a   : > { %v5486_v12 = vmul.f32 %v11038_v24, %v5449_v9  ;;  %10497 = vmatprep.mubr.msk.bf16.mxu0 %vm611_vm1, %v5502_v63  ;;  %v13377_v22 = vpop.f32.mrf.mxu1  ;;  %v15461_v9 = vld [vmem:[#allocation24_spill] sm:$0xff] }
 0x41c   : > { %v5503_v26 = vpack.c.bf16 %v5487_v32, %v5486_v12  ;;  %v13389_v46 = vpop.f32.mrf.mxu1 }
 0x41e   : > { %10498 = vmatmul.mubr.msk.bf16.gmra.mxu0 %vm611_vm1, %v5503_v26  ;;  %v13398_v16 = vpop.f32.mrf.mxu1 }
 0x41f   : > { %10537 = vmatprep.mubr.msk.bf16.mxu0 %vm611_vm1, %v6017_v44 }
 0x420   : > { %v13400_v51 = vpop.f32.mrf.mxu1 }
 0x422   : > { %v13413_v32 = vpop.f32.mrf.mxu1 }
 0x49d   : > { %v10471_v30 = vpop.f32.mrf.mxu0 }
 0x49e   : > { %v5764_v54 = vadd.f32 %v10471_v30, %v10437_v0 }
 0x49f   : > { %v5755_v35 = vpop.f32.mrf.mxu0 }
 0x4a0   : > { %v13375_v7 = vadd.f32 %v13372_v41, %v5764_v54  ;;  %v5756_v11 = vadd.f32 %v5755_v35, %v5543_v62  ;;  %v13448_v62 = vpop.f32.mrf.mxu1 }
 0x4a1   : > { %v10472_v15 = vpop.f32.mrf.mxu0 }
 0x4a2   : > { %15456 = vst [vmem:[#allocation10_spill] sm:$0xff] %v13375_v7  ;;  %5923 = vst.msk [vmem:[#allocation3 + $0x21] sm:$0xff] %vm611_vm1, %v13375_v7  ;;  %v13382_v37 = vadd.f32 %v13372_v41, %v5756_v11  ;;  %v5767_v14 = vadd.f32 %v10472_v15, %v10438_v34  ;;  %v13471_v54 = vpop.f32.mrf.mxu1  ;;  %v15514_v7 = vld [vmem:[#allocation71_spill] sm:$0xff] }
 0x4a3   : > { %v5758_v29 = vpop.f32.mrf.mxu0 }
 0x4a4   : > { %15457 = vst [vmem:[#allocation11_spill] sm:$0xff] %v13382_v37  ;;  %5921 = vst.msk [vmem:[#allocation3 + $0x11] sm:$0xff] %vm611_vm1, %v13382_v37  ;;  %v13387_v56 = vadd.f32 %v13372_v41, %v5767_v14  ;;  %v5759_v17 = vadd.f32 %v5758_v29, %v5546_v42  ;;  %v13455_v42 = vld [vmem:[%s14963_s13 + $0xa] sm:$0x3]  ;;  %v13485_v29 = vpop.f32.mrf.mxu1 }
 0x4a6   : > { %15458 = vst [vmem:[#allocation14_spill] sm:$0xff] %v13387_v56  ;;  %5924 = vst.msk [vmem:[#allocation3 + $0x29] sm:$0xff] %vm611_vm1, %v13387_v56  ;;  %v13394_v40 = vadd.f32 %v13372_v41, %v5759_v17 }
 0x4a8   : > { %15459 = vst [vmem:[#allocation16_spill] sm:$0xff] %v13394_v40  ;;  %5922 = vst.msk [vmem:[#allocation3 + $0x19] sm:$0xff] %vm611_vm1, %v13394_v40 }
 0x4a9   : > { %v6038_v63 = vld [vmem:[#allocation3 + $0x21] sm:$0xff] }
 0x4ab   : > { %v5955_v61 = vld [vmem:[#allocation3 + $0x10] sm:$0xff] }
 0x4ac   : > { %v6036_v2 = vld [vmem:[#allocation3 + $0x11] sm:$0xff]  ;;  %v5987_v48 = vmul.f32 %v15460_v8, %v5955_v61  ;;  %v13407_v20 = vmul.f32 %v15455_v36, %v5955_v61 }
 0x4ad   : > { %v6039_v33 = vld [vmem:[#allocation3 + $0x29] sm:$0xff] }
 0x4ae   : > { %v10475_v47 = vpop.f32.mrf.mxu0  ;;  %v13415_v12 = vpack.c.bf16 %v6039_v33, %v6038_v63  ;;  %v13417_v26 = vld [vmem:[#allocation3 + $0x28] sm:$0xff] }
 0x4af   : > { %v6037_v57 = vld [vmem:[#allocation3 + $0x19] sm:$0xff]  ;;  %v5780_v10 = vadd.f32 %v10475_v47, %v10441_v25 }
 0x4b0   : > { %v13403_v3 = vld [vmem:[#allocation3 + $0x18] sm:$0xff]  ;;  %v5957_v23 = vld [vmem:[#allocation3 + $0x20] sm:$0xff]  ;;  %v13409_v4 = vpack.c.bf16 %v6037_v57, %v6036_v2  ;;  %v5771_v24 = vpop.f32.mrf.mxu0  ;;  %15462 = vst [vmem:[#allocation21_spill] sm:$0xff] %v13415_v12 }
 0x4b1   : > { %v6018_v1 = vpack.c.bf16 %v13403_v3, %v5987_v48  ;;  %v5989_v55 = vmul.f32 %v15461_v9, %v5957_v23  ;;  %v13423_v18 = vmul.f32 %v15460_v8, %v5957_v23  ;;  %v13426_v58 = vadd.f32 %v13372_v41, %v5780_v10  ;;  %v15471_v57 = vld [vmem:[#allocation27_spill] sm:$0xff]  ;;  %v13503_v10 = vpop.f32.mrf.mxu1 }
 0x4b2   : > { %v5772_v60 = vadd.f32 %v5771_v24, %v5559_v53  ;;  %10504 = vmatmul.mubr.msk.bf16.vlgmr.msra.gmra.mxu1 %vm611_vm1, %v13409_v4  ;;  %v10476_v50 = vpop.f32.mrf.mxu0 }
 0x4b3   : > { %15463 = vst [vmem:[#allocation73_spill] sm:$0xff] %v13426_v58  ;;  %10538 = vmatmul.mubr.msk.bf16.vlgmr.msra.gmra.mxu0 %vm611_vm1, %v6018_v1  ;;  %v6019_v19 = vpack.c.bf16 %v13417_v26, %v5989_v55  ;;  %10507 = vmatprep.mubr.msk.bf16.mxu1 %vm611_vm1, %v13415_v12  ;;  %5927 = vst.msk [vmem:[#allocation3 + $0x41] sm:$0xff] %vm611_vm1, %v13426_v58  ;;  %v5783_v0 = vadd.f32 %v10476_v50, %v13353_v21  ;;  %v15502_v58 = vld [vmem:[#allocation61_spill] sm:$0xff]  ;;  %v13848_v12 = vld [vmem:[%s14963_s13 + $0xc] sm:$0x3] }
 0x4b4   : > { %10570 = vmatpush3.bf16.msra.mxu1 %v6639_v38  ;;  %v13444_v31 = vadd.f32 %v13372_v41, %v5772_v60  ;;  %10604 = vmatpush3.bf16.msra.mxu0 %v6965_v13  ;;  %v5774_v34 = vpop.f32.mrf.mxu0 }
 0x4b5   : > { %10541 = vmatprep.mubr.msk.bf16.mxu0 %vm611_vm1, %v6019_v19  ;;  %10861 = vmatprep.subr.msk.bf16.mxu1 %vm4464_vm0, %v13435_v5  ;;  %v13460_v28 = vadd.f32 %v13372_v41, %v5783_v0  ;;  %v5775_v25 = vadd.f32 %v5774_v34, %v13355_v59  ;;  %v15475_v34 = vld [vmem:[#allocation30_spill] sm:$0xff] }
 0x4b6   : > { %15464 = vst [vmem:[#allocation74_spill] sm:$0xff] %v13444_v31  ;;  %5925 = vst.msk [vmem:[#allocation3 + $0x31] sm:$0xff] %vm611_vm1, %v13444_v31  ;;  %10862 = vmatprep.subr.msk.bf16.mxu0 %vm4464_vm0, %v13455_v42  ;;  %v10479_v53 = vpop.f32.mrf.mxu0 }
 0x4b7   : > { %15465 = vst [vmem:[#allocation26_spill] sm:$0xff] %v13460_v28  ;;  %5928 = vst.msk [vmem:[#allocation3 + $0x49] sm:$0xff] %vm611_vm1, %v13460_v28  ;;  %v13468_v21 = vadd.f32 %v13372_v41, %v5775_v25  ;;  %v5796_v30 = vadd.f32 %v10479_v53, %v13357_v52 }
 0x4b8   : > { %v5787_v35 = vpop.f32.mrf.mxu0 }
 0x4b9   : > { %15466 = vst [vmem:[#allocation75_spill] sm:$0xff] %v13468_v21  ;;  %5926 = vst.msk [vmem:[#allocation3 + $0x39] sm:$0xff] %vm611_vm1, %v13468_v21  ;;  %v13476_v59 = vadd.f32 %v13372_v41, %v5796_v30  ;;  %v5788_v11 = vadd.f32 %v5787_v35, %v13359_v39  ;;  %v13533_v35 = vpop.f32.mrf.mxu1 }
 0x4ba   : > { %v10480_v15 = vpop.f32.mrf.mxu0  ;;  %v6042_v19 = vld [vmem:[#allocation3 + $0x41] sm:$0xff] }
 0x4bb   : > { %15467 = vst [vmem:[#allocation77_spill] sm:$0xff] %v13476_v59  ;;  %5931 = vst.msk [vmem:[#allocation3 + $0x61] sm:$0xff] %vm611_vm1, %v13476_v59  ;;  %v13482_v14 = vadd.f32 %v13372_v41, %v5788_v11  ;;  %v5799_v52 = vadd.f32 %v10480_v15, %v13361_v27 }
 0x4bc   : > { %v5790_v17 = vpop.f32.mrf.mxu0 }
 0x4bd   : > { %15468 = vst [vmem:[#allocation76_spill] sm:$0xff] %v13482_v14  ;;  %v13487_v61 = vld [vmem:[#allocation3 + $0x30] sm:$0xff]  ;;  %5929 = vst.msk [vmem:[#allocation3 + $0x51] sm:$0xff] %vm611_vm1, %v13482_v14  ;;  %v13492_v2 = vadd.f32 %v13372_v41, %v5799_v52  ;;  %v5791_v39 = vadd.f32 %v5790_v17, %v13363_v6 }
 0x4be   : > { %v10483_v48 = vpop.f32.mrf.mxu0  ;;  %v6040_v47 = vld [vmem:[#allocation3 + $0x31] sm:$0xff]  ;;  %v5991_v23 = vmul.f32 %v15471_v57, %v13487_v61  ;;  %v6043_v38 = vld [vmem:[#allocation3 + $0x49] sm:$0xff] }
 0x4bf   : > { %15469 = vst [vmem:[#allocation28_spill] sm:$0xff] %v13492_v2  ;;  %5932 = vst.msk [vmem:[#allocation3 + $0x69] sm:$0xff] %vm611_vm1, %v13492_v2  ;;  %v13498_v33 = vadd.f32 %v13372_v41, %v5791_v39  ;;  %v5812_v27 = vadd.f32 %v10483_v48, %v13365_v43  ;;  %v13518_v0 = vpack.c.bf16 %v6043_v38, %v6042_v19 }
 0x4c0   : > { %v5803_v1 = vpop.f32.mrf.mxu0  ;;  %v6041_v63 = vld [vmem:[#allocation3 + $0x39] sm:$0xff] }
 0x4c1   : > { %15470 = vst [vmem:[#allocation78_spill] sm:$0xff] %v13498_v33  ;;  %v13505_v55 = vld [vmem:[#allocation3 + $0x38] sm:$0xff]  ;;  %v13507_v6 = vld [vmem:[#allocation3 + $0x40] sm:$0xff]  ;;  %5930 = vst.msk [vmem:[#allocation3 + $0x59] sm:$0xff] %vm611_vm1, %v13498_v33  ;;  %v13512_v24 = vadd.f32 %v13372_v41, %v5812_v27  ;;  %v5804_v43 = vadd.f32 %v5803_v1, %v13367_v45  ;;  %v13515_v13 = vpack.c.bf16 %v6041_v63, %v6040_v47  ;;  %v13555_v63 = vpop.f32.mrf.mxu1 }
 0x4c2   : > { %v6020_v60 = vpack.c.bf16 %v13505_v55, %v5991_v23  ;;  %v10484_v50 = vpop.f32.mrf.mxu0  ;;  %15474 = vst [vmem:[#allocation81_spill] sm:$0xff] %v13518_v0  ;;  %v5993_v25 = vmul.f32 %v15475_v34, %v13507_v6  ;;  %v13531_v45 = vld [vmem:[#allocation3 + $0x48] sm:$0xff]  ;;  %v15479_v23 = vld [vmem:[#allocation34_spill] sm:$0xff] }
 0x4c3   : > { %15472 = vst [vmem:[#allocation32_spill] sm:$0xff] %v13512_v24  ;;  %15473 = vst [vmem:[#allocation79_spill] sm:$0xff] %v13515_v13  ;;  %v13525_v53 = vadd.f32 %v13372_v41, %v5804_v43  ;;  %v5815_v30 = vadd.f32 %v10484_v50, %v13377_v22  ;;  %10508 = vmatmul.mubr.msk.bf16.gmra.mxu1 %vm611_vm1, %v13515_v13  ;;  %v15491_v33 = vld [vmem:[#allocation53_spill] sm:$0xff] }
 0x4c4   : > { %5935 = vst.msk [vmem:[#allocation3 + $0x81] sm:$0xff] %vm611_vm1, %v13512_v24  ;;  %10542 = vmatmul.mubr.msk.bf16.gmra.mxu0 %vm611_vm1, %v6020_v60  ;;  %v5806_v11 = vpop.f32.mrf.mxu0  ;;  %10511 = vmatprep.mubr.msk.bf16.mxu1 %vm611_vm1, %v13518_v0  ;;  %v6021_v15 = vpack.c.bf16 %v13531_v45, %v5993_v25  ;;  %v13538_v52 = vld [vmem:[#allocation3 + $0x50] sm:$0xff] }
 0x4c5   : > { %15476 = vst [vmem:[#allocation80_spill] sm:$0xff] %v13525_v53  ;;  %5933 = vst.msk [vmem:[#allocation3 + $0x71] sm:$0xff] %vm611_vm1, %v13525_v53  ;;  %v13543_v22 = vadd.f32 %v13372_v41, %v5815_v30  ;;  %v5807_v17 = vadd.f32 %v5806_v11, %v13389_v46  ;;  %v6044_v47 = vld [vmem:[#allocation3 + $0x51] sm:$0xff]  ;;  %v5995_v38 = vmul.f32 %v15479_v23, %v13538_v52  ;;  %v6046_v11 = vld [vmem:[#allocation3 + $0x61] sm:$0xff] }
 0x4c6   : > { %10545 = vmatprep.mubr.msk.bf16.mxu0 %vm611_vm1, %v6021_v15  ;;  %v10487_v39 = vpop.f32.mrf.mxu0  ;;  %v6047_v1 = vld [vmem:[#allocation3 + $0x69] sm:$0xff]  ;;  %v13831_v0 = vld [vmem:[#allocation3 + $0x12] sm:$0xff] }
 0x4c7   : > { %15477 = vst [vmem:[#allocation38_spill] sm:$0xff] %v13543_v22  ;;  %5936 = vst.msk [vmem:[#allocation3 + $0x89] sm:$0xff] %vm611_vm1, %v13543_v22  ;;  %v13550_v48 = vadd.f32 %v13372_v41, %v5807_v17  ;;  %v5828_v27 = vadd.f32 %v10487_v39, %v13398_v16  ;;  %v13570_v17 = vpack.c.bf16 %v6047_v1, %v6046_v11  ;;  %v15483_v39 = vld [vmem:[#allocation39_spill] sm:$0xff] }
 0x4c8   : > { %v5819_v43 = vpop.f32.mrf.mxu0  ;;  %v6045_v46 = vld [vmem:[#allocation3 + $0x59] sm:$0xff] }
 0x4c9   : > { %15478 = vst [vmem:[#allocation82_spill] sm:$0xff] %v13550_v48  ;;  %v13557_v60 = vld [vmem:[#allocation3 + $0x58] sm:$0xff]  ;;  %v13559_v19 = vld [vmem:[#allocation3 + $0x60] sm:$0xff]  ;;  %5934 = vst.msk [vmem:[#allocation3 + $0x79] sm:$0xff] %vm611_vm1, %v13550_v48  ;;  %v13564_v50 = vadd.f32 %v13372_v41, %v5828_v27  ;;  %v5820_v16 = vadd.f32 %v5819_v43, %v13400_v51  ;;  %v13567_v25 = vpack.c.bf16 %v6045_v46, %v6044_v47  ;;  %v5639_v47 = vpop.f32.mrf.mxu1 }
 0x4ca   : > { %v6022_v30 = vpack.c.bf16 %v13557_v60, %v5995_v38  ;;  %v10488_v15 = vpop.f32.mrf.mxu0  ;;  %15482 = vst [vmem:[#allocation44_spill] sm:$0xff] %v13570_v17  ;;  %v5997_v44 = vmul.f32 %v15483_v39, %v13559_v19  ;;  %v13583_v51 = vld [vmem:[#allocation3 + $0x68] sm:$0xff] }
 0x4cb   : > { %15480 = vst [vmem:[#allocation41_spill] sm:$0xff] %v13564_v50  ;;  %15481 = vst [vmem:[#allocation83_spill] sm:$0xff] %v13567_v25  ;;  %v13577_v49 = vadd.f32 %v13372_v41, %v5820_v16  ;;  %v5831_v27 = vadd.f32 %v10488_v15, %v13413_v32  ;;  %10512 = vmatmul.mubr.msk.bf16.gmra.mxu1 %vm611_vm1, %v13567_v25  ;;  %v15487_v15 = vld [vmem:[#allocation48_spill] sm:$0xff] }
 0x4cc   : > { %5939 = vst.msk [vmem:[#allocation3 + $0xa1] sm:$0xff] %vm611_vm1, %v13564_v50  ;;  %10546 = vmatmul.mubr.msk.bf16.gmra.mxu0 %vm611_vm1, %v6022_v30  ;;  %v5822_v38 = vpop.f32.mrf.mxu0  ;;  %10515 = vmatprep.mubr.msk.bf16.mxu1 %vm611_vm1, %v13570_v17  ;;  %v6023_v1 = vpack.c.bf16 %v13583_v51, %v5997_v44  ;;  %v13588_v43 = vld [vmem:[#allocation3 + $0x70] sm:$0xff]  ;;  %v13805_v17 = vld [vmem:[#allocation3 + $0x1a] sm:$0xff] }
 0x4cd   : > { %15484 = vst [vmem:[#allocation42_spill] sm:$0xff] %v13577_v49  ;;  %5937 = vst.msk [vmem:[#allocation3 + $0x91] sm:$0xff] %vm611_vm1, %v13577_v49  ;;  %v13593_v32 = vadd.f32 %v13372_v41, %v5831_v27  ;;  %v5823_v46 = vadd.f32 %v5822_v38, %v13448_v62  ;;  %v6048_v11 = vld [vmem:[#allocation3 + $0x71] sm:$0xff]  ;;  %v5999_v49 = vmul.f32 %v15487_v15, %v13588_v43  ;;  %v10462_v27 = vpop.f32.mrf.mxu1 }
 0x4ce   : > { %10549 = vmatprep.mubr.msk.bf16.mxu0 %vm611_vm1, %v6023_v1  ;;  %v10491_v16 = vpop.f32.mrf.mxu0  ;;  %v6051_v50 = vld [vmem:[#allocation3 + $0x89] sm:$0xff] }
 0x4cf   : > { %15485 = vst [vmem:[#allocation45_spill] sm:$0xff] %v13593_v32  ;;  %5940 = vst.msk [vmem:[#allocation3 + $0xa9] sm:$0xff] %vm611_vm1, %v13593_v32  ;;  %v13600_v30 = vadd.f32 %v13372_v41, %v5823_v46  ;;  %v5844_v44 = vadd.f32 %v10491_v16, %v13471_v54  ;;  %v6050_v32 = vld [vmem:[#allocation3 + $0x81] sm:$0xff] }
 0x4d0   : > { %v5835_v48 = vpop.f32.mrf.mxu0  ;;  %v6049_v53 = vld [vmem:[#allocation3 + $0x79] sm:$0xff]  ;;  %v13618_v24 = vpack.c.bf16 %v6051_v50, %v6050_v32 }
 0x4d1   : > { %15486 = vst [vmem:[#allocation46_spill] sm:$0xff] %v13600_v30  ;;  %v13605_v62 = vld [vmem:[#allocation3 + $0x78] sm:$0xff]  ;;  %v13607_v38 = vld [vmem:[#allocation3 + $0x80] sm:$0xff]  ;;  %5938 = vst.msk [vmem:[#allocation3 + $0x99] sm:$0xff] %vm611_vm1, %v13600_v30  ;;  %v13612_v1 = vadd.f32 %v13372_v41, %v5844_v44  ;;  %v5836_v54 = vadd.f32 %v5835_v48, %v13485_v29  ;;  %v13615_v46 = vpack.c.bf16 %v6049_v53, %v6048_v11  ;;  %v5642_v29 = vpop.f32.mrf.mxu1 }
 0x4d2   : > { %v6024_v16 = vpack.c.bf16 %v13605_v62, %v5999_v49  ;;  %v10492_v22 = vpop.f32.mrf.mxu0  ;;  %15490 = vst [vmem:[#allocation57_spill] sm:$0xff] %v13618_v24  ;;  %v6001_v14 = vmul.f32 %v15491_v33, %v13607_v38  ;;  %v13631_v49 = vld [vmem:[#allocation3 + $0x88] sm:$0xff] }
 0x4d3   : > { %15488 = vst [vmem:[#allocation47_spill] sm:$0xff] %v13612_v1  ;;  %15489 = vst [vmem:[#allocation52_spill] sm:$0xff] %v13615_v46  ;;  %v13625_v30 = vadd.f32 %v13372_v41, %v5836_v54  ;;  %v5847_v44 = vadd.f32 %v10492_v22, %v13503_v10  ;;  %10516 = vmatmul.mubr.msk.bf16.gmra.mxu1 %vm611_vm1, %v13615_v46  ;;  %v6054_v21 = vld [vmem:[#allocation3 + $0xa1] sm:$0xff] }
 0x4d4   : > { %5943 = vst.msk [vmem:[#allocation3 + $0xc1] sm:$0xff] %vm611_vm1, %v13612_v1  ;;  %10550 = vmatmul.mubr.msk.bf16.gmra.mxu0 %vm611_vm1, %v6024_v16  ;;  %15493 = vst [vmem:[#allocation51_spill] sm:$0xff] %v13631_v49  ;;  %v5838_v53 = vpop.f32.mrf.mxu0  ;;  %10519 = vmatprep.mubr.msk.bf16.mxu1 %vm611_vm1, %v13618_v24  ;;  %v6025_v48 = vpack.c.bf16 %v13631_v49, %v6001_v14  ;;  %v13636_v50 = vld [vmem:[#allocation3 + $0x90] sm:$0xff]  ;;  %v15496_v16 = vld [vmem:[#allocation55_spill] sm:$0xff] }
 0x4d5   : > { %15492 = vst [vmem:[#allocation43_spill] sm:$0xff] %v13625_v30  ;;  %5941 = vst.msk [vmem:[#allocation3 + $0xb1] sm:$0xff] %vm611_vm1, %v13625_v30  ;;  %v13641_v10 = vadd.f32 %v13372_v41, %v5847_v44  ;;  %v5839_v22 = vadd.f32 %v5838_v53, %v13533_v35  ;;  %v6052_v54 = vld [vmem:[#allocation3 + $0x91] sm:$0xff]  ;;  %v6003_v30 = vmul.f32 %v15496_v16, %v13636_v50  ;;  %v10465_v44 = vpop.f32.mrf.mxu1 }
 0x4d6   : > { %10553 = vmatprep.mubr.msk.bf16.mxu0 %vm611_vm1, %v6025_v48  ;;  %v10495_v32 = vpop.f32.mrf.mxu0  ;;  %v6055_v1 = vld [vmem:[#allocation3 + $0xa9] sm:$0xff]  ;;  %v13659_v48 = vmul.f32 %v15483_v39, %v13607_v38 }
 0x4d7   : > { %15494 = vst [vmem:[#allocation49_spill] sm:$0xff] %v13641_v10  ;;  %5944 = vst.msk [vmem:[#allocation3 + $0xc9] sm:$0xff] %vm611_vm1, %v13641_v10  ;;  %v13648_v11 = vadd.f32 %v13372_v41, %v5839_v22  ;;  %v5860_v14 = vadd.f32 %v10495_v32, %v13555_v63  ;;  %v13669_v28 = vpack.c.bf16 %v6055_v1, %v6054_v21 }
 0x4d8   : > { %v5851_v2 = vpop.f32.mrf.mxu0  ;;  %v6053_v59 = vld [vmem:[#allocation3 + $0x99] sm:$0xff]  ;;  %15498 = vst [vmem:[#allocation58_spill] sm:$0xff] %v13659_v48 }
 0x4d9   : > { %15495 = vst [vmem:[#allocation65_spill] sm:$0xff] %v13648_v11  ;;  %v13653_v35 = vld [vmem:[#allocation3 + $0x98] sm:$0xff]  ;;  %v13655_v53 = vld [vmem:[#allocation3 + $0xa0] sm:$0xff]  ;;  %5942 = vst.msk [vmem:[#allocation3 + $0xb9] sm:$0xff] %vm611_vm1, %v13648_v11  ;;  %v13664_v63 = vadd.f32 %v13372_v41, %v5860_v14  ;;  %v5852_v22 = vadd.f32 %v5851_v2, %v5639_v47  ;;  %v13666_v32 = vpack.c.bf16 %v6053_v59, %v6052_v54  ;;  %v5655_v2 = vpop.f32.mrf.mxu1 }
 0x4da   : > { %15497 = vst [vmem:[#allocation60_spill] sm:$0xff] %v13653_v35  ;;  %v6026_v10 = vpack.c.bf16 %v13653_v35, %v6003_v30  ;;  %v10496_v31 = vpop.f32.mrf.mxu0  ;;  %15501 = vst [vmem:[#allocation62_spill] sm:$0xff] %v13669_v28  ;;  %v6005_v40 = vmul.f32 %v15502_v58, %v13655_v53  ;;  %v13681_v59 = vld [vmem:[#allocation3 + $0xa8] sm:$0xff]  ;;  %v13698_v54 = vmul.f32 %v15487_v15, %v13636_v50 }
 0x4db   : > { %15499 = vst [vmem:[#allocation56_spill] sm:$0xff] %v13664_v63  ;;  %15500 = vst [vmem:[#allocation68_spill] sm:$0xff] %v13666_v32  ;;  %v13676_v11 = vadd.f32 %v13372_v41, %v5852_v22  ;;  %v5863_v14 = vadd.f32 %v10496_v31, %v10462_v27  ;;  %10520 = vmatmul.mubr.msk.bf16.gmra.mxu1 %vm611_vm1, %v13666_v32  ;;  %v6058_v8 = vld [vmem:[#allocation3 + $0xc1] sm:$0xff] }
 0x4dc   : > { %5947 = vst.msk [vmem:[#allocation3 + $0xe1] sm:$0xff] %vm611_vm1, %v13664_v63  ;;  %10554 = vmatmul.mubr.msk.bf16.gmra.mxu0 %vm611_vm1, %v6026_v10  ;;  %15504 = vst [vmem:[#allocation85_spill] sm:$0xff] %v13681_v59  ;;  %v5854_v21 = vpop.f32.mrf.mxu0  ;;  %10523 = vmatprep.mubr.msk.bf16.mxu1 %vm611_vm1, %v13669_v28  ;;  %v6027_v47 = vpack.c.bf16 %v13681_v59, %v6005_v40  ;;  %v13686_v30 = vld [vmem:[#allocation3 + $0xb0] sm:$0xff] }
 0x4dd   : > { %15503 = vst [vmem:[#allocation69_spill] sm:$0xff] %v13676_v11  ;;  %5945 = vst.msk [vmem:[#allocation3 + $0xd1] sm:$0xff] %vm611_vm1, %v13676_v11  ;;  %v13693_v31 = vadd.f32 %v13372_v41, %v5863_v14  ;;  %v5855_v27 = vadd.f32 %v5854_v21, %v5642_v29  ;;  %v6056_v1 = vld [vmem:[#allocation3 + $0xb1] sm:$0xff]  ;;  %v15508_v11 = vld [vmem:[#allocation64_spill] sm:$0xff]  ;;  %v10466_v29 = vpop.f32.mrf.mxu1 }
 0x4de   : > { %10557 = vmatprep.mubr.msk.bf16.mxu0 %vm611_vm1, %v6027_v47  ;;  %v10499_v10 = vpop.f32.mrf.mxu0  ;;  %15506 = vst [vmem:[#allocation70_spill] sm:$0xff] %v13698_v54  ;;  %v6007_v14 = vmul.f32 %v15508_v11, %v13686_v30  ;;  %v6059_v63 = vld [vmem:[#allocation3 + $0xc9] sm:$0xff] }
 0x4df   : > { %15505 = vst [vmem:[#allocation66_spill] sm:$0xff] %v13693_v31  ;;  %5948 = vst.msk [vmem:[#allocation3 + $0xe9] sm:$0xff] %vm611_vm1, %v13693_v31  ;;  %v13703_v40 = vadd.f32 %v13372_v41, %v5855_v27  ;;  %v5876_v22 = vadd.f32 %v10499_v10, %v10465_v44  ;;  %v13715_v27 = vmul.f32 %v15491_v33, %v13655_v53 }
 0x4e0   : > { %v5867_v21 = vpop.f32.mrf.mxu0  ;;  %v6057_v47 = vld [vmem:[#allocation3 + $0xb9] sm:$0xff]  ;;  %v13725_v28 = vpack.c.bf16 %v6059_v63, %v6058_v8 }
 0x4e1   : > { %15507 = vst [vmem:[#allocation88_spill] sm:$0xff] %v13703_v40  ;;  %v13707_v37 = vld [vmem:[#allocation3 + $0xb8] sm:$0xff]  ;;  %v13709_v56 = vld [vmem:[#allocation3 + $0xc0] sm:$0xff]  ;;  %15510 = vst [vmem:[#allocation31_spill] sm:$0xff] %v13715_v27  ;;  %v13720_v44 = vadd.f32 %v13372_v41, %v5876_v22  ;;  %v5868_v10 = vadd.f32 %v5867_v21, %v5655_v2  ;;  %v13722_v31 = vpack.c.bf16 %v6057_v47, %v6056_v1  ;;  %v5658_v1 = vpop.f32.mrf.mxu1 }
 0x4e2   : > { %15509 = vst [vmem:[#allocation23_spill] sm:$0xff] %v13707_v37  ;;  %5946 = vst.msk [vmem:[#allocation3 + $0xd9] sm:$0xff] %vm611_vm1, %v13703_v40  ;;  %v6028_v48 = vpack.c.bf16 %v13707_v37, %v6007_v14  ;;  %v10500_v36 = vpop.f32.mrf.mxu0  ;;  %v6009_v54 = vmul.f32 %v15514_v7, %v13709_v56  ;;  %v13737_v2 = vld [vmem:[#allocation3 + $0xc8] sm:$0xff]  ;;  %v15518_v47 = vld [vmem:[#allocation86_spill] sm:$0xff] }
 0x4e3   : > { %15511 = vst [vmem:[#allocation6_spill] sm:$0xff] %v13720_v44  ;;  %15512 = vst [vmem:[#allocation9_spill] sm:$0xff] %v13722_v31  ;;  %v13732_v40 = vadd.f32 %v13372_v41, %v5868_v10  ;;  %v5879_v22 = vadd.f32 %v10500_v36, %v10466_v29  ;;  %10524 = vmatmul.mubr.msk.bf16.gmra.mxu1 %vm611_vm1, %v13722_v31 }
 0x4e4   : > { %15513 = vst [vmem:[#allocation12_spill] sm:$0xff] %v13725_v28  ;;  %5951 = vst.msk [vmem:[#allocation3 + $0x101] sm:$0xff] %vm611_vm1, %v13720_v44  ;;  %10558 = vmatmul.mubr.msk.bf16.gmra.mxu0 %vm611_vm1, %v6028_v48  ;;  %v5870_v8 = vpop.f32.mrf.mxu0  ;;  %10527 = vmatprep.mubr.msk.bf16.mxu1 %vm611_vm1, %v13725_v28  ;;  %v6029_v63 = vpack.c.bf16 %v13737_v2, %v6009_v54  ;;  %v13742_v14 = vld [vmem:[#allocation3 + $0xd0] sm:$0xff] }
 0x4e5   : > { %15515 = vst [vmem:[#allocation35_spill] sm:$0xff] %v13732_v40  ;;  %5949 = vst.msk [vmem:[#allocation3 + $0xf1] sm:$0xff] %vm611_vm1, %v13732_v40  ;;  %v13749_v36 = vadd.f32 %v13372_v41, %v5879_v22  ;;  %v5871_v48 = vadd.f32 %v5870_v8, %v5658_v1  ;;  %v6060_v54 = vld [vmem:[#allocation3 + $0xd1] sm:$0xff]  ;;  %v6011_v10 = vmul.f32 %v15518_v47, %v13742_v14 }
 0x4e6   : > { %10561 = vmatprep.mubr.msk.bf16.mxu0 %vm611_vm1, %v6029_v63  ;;  %v6063_v21 = vld [vmem:[#allocation3 + $0xe9] sm:$0xff]  ;;  %v13765_v22 = vmul.f32 %v15496_v16, %v13686_v30  ;;  %v13769_v1 = vmul.f32 %v15502_v58, %v13709_v56  ;;  %v6062_v63 = vld [vmem:[#allocation3 + $0xe1] sm:$0xff] }
 0x4e7   : > { %15516 = vst [vmem:[#allocation5_spill] sm:$0xff] %v13749_v36  ;;  %5952 = vst.msk [vmem:[#allocation3 + $0x109] sm:$0xff] %vm611_vm1, %v13749_v36  ;;  %v13755_v29 = vadd.f32 %v13372_v41, %v5871_v48  ;;  %v15522_v48 = vld [vmem:[#allocation87_spill] sm:$0xff]  ;;  %v13778_v28 = vpack.c.bf16 %v6063_v21, %v6062_v63  ;;  %v13780_v31 = vld [vmem:[#allocation3 + $0xe8] sm:$0xff] }
 0x4e8   : > { %15519 = vst [vmem:[#allocation13_spill] sm:$0xff] %v13765_v22  ;;  %15520 = vst [vmem:[#allocation37_spill] sm:$0xff] %v13769_v1  ;;  %v15524_v63 = vld [vmem:[#allocation15_spill] sm:$0xff] }
 0x4e9   : > { %15517 = vst [vmem:[#allocation8_spill] sm:$0xff] %v13755_v29  ;;  %v6061_v44 = vld [vmem:[#allocation3 + $0xd9] sm:$0xff]  ;;  %5950 = vst.msk [vmem:[#allocation3 + $0xf9] sm:$0xff] %vm611_vm1, %v13755_v29  ;;  %v15525_v29 = vld [vmem:[#allocation90_spill] sm:$0xff] }
 0x4ea   : > { %v13759_v27 = vld [vmem:[#allocation3 + $0xd8] sm:$0xff]  ;;  %v13761_v40 = vld [vmem:[#allocation3 + $0xe0] sm:$0xff]  ;;  %v13773_v41 = vpack.c.bf16 %v6061_v44, %v6060_v54  ;;  %15523 = vst [vmem:[#allocation7_spill] sm:$0xff] %v13778_v28  ;;  %v6509_v54 = vld [vmem:[#allocation3 + $0xa] sm:$0xff] }
 0x4eb   : > { %v6030_v8 = vpack.c.bf16 %v13759_v27, %v6011_v10  ;;  %v6013_v36 = vmul.f32 %v15522_v48, %v13761_v40  ;;  %v6541_v32 = vmul.f32 %v15524_v63, %v6509_v54 }
 0x4ec   : > { %15521 = vst [vmem:[#allocation19_spill] sm:$0xff] %v13773_v41  ;;  %10528 = vmatmul.mubr.msk.bf16.gmra.mxu1 %vm611_vm1, %v13773_v41  ;;  %v13792_v21 = vld [vmem:[#allocation3 + $0xf0] sm:$0xff]  ;;  %v6508_v41 = vld [vmem:[#allocation3 + $0x2] sm:$0xff] }
 0x4ed   : > { %10562 = vmatmul.mubr.msk.bf16.gmra.mxu0 %vm611_vm1, %v6030_v8  ;;  %v6031_v44 = vpack.c.bf16 %v13780_v31, %v6013_v36  ;;  %10531 = vmatprep.mubr.msk.bf16.mxu1 %vm611_vm1, %v13778_v28  ;;  %v6015_v22 = vmul.f32 %v15525_v29, %v13792_v21  ;;  %v6064_v8 = vld [vmem:[#allocation3 + $0xf1] sm:$0xff]  ;;  %v6572_v28 = vpack.c.bf16 %v6541_v32, %v6508_v41 }
 0x4ee   : > { %v13821_v32 = vld [vmem:[#allocation3 + $0x108] sm:$0xff] }
 0x4ef   : > { %10565 = vmatprep.mubr.msk.bf16.mxu0 %vm611_vm1, %v6031_v44  ;;  %v13810_v44 = vld [vmem:[#allocation3 + $0x2a] sm:$0xff] }
 0x4f0   : > { %v6065_v24 = vld [vmem:[#allocation3 + $0xf9] sm:$0xff]  ;;  %v13829_v25 = vld [vmem:[#allocation3 + $0x10a] sm:$0xff] }
 0x4f1   : > { %v13798_v36 = vld [vmem:[#allocation3 + $0xf8] sm:$0xff]  ;;  %v13800_v46 = vpack.c.bf16 %v6065_v24, %v6064_v8  ;;  %v13803_v1 = vld [vmem:[#allocation3 + $0x100] sm:$0xff]  ;;  %v15528_v24 = vpack.c.bf16 %v13403_v3, %v13407_v20  ;;  %15531 = vst [vmem:[#allocation53_spill] sm:$0xff] %v13829_v25  ;;  %v7259_v3 = vsel %vm4464_vm0, %v13435_v5, 0 }
 0x4f2   : > { %v6032_v10 = vpack.c.bf16 %v13798_v36, %v6015_v22  ;;  %v13814_v54 = vmul.f32 %v15522_v48, %v13803_v1  ;;  %v15529_v22 = vld [vmem:[#allocation18_spill] sm:$0xff]  ;;  %v13836_v20 = vld [vmem:[#allocation3 + $0x22] sm:$0xff] }
 0x4f3   : > { %15526 = vst [vmem:[#allocation39_spill] sm:$0xff] %v13800_v46  ;;  %v6543_v41 = vmul.f32 %v15529_v22, %v13805_v17  ;;  %v15530_v8 = vld [vmem:[#allocation22_spill] sm:$0xff]  ;;  %15532 = vst [vmem:[#allocation55_spill] sm:$0xff] %v13836_v20 }
 0x4f4   : > { %10532 = vmatmul.mubr.msk.bf16.gmra.mxu1 %vm611_vm1, %v13800_v46  ;;  %15527 = vst [vmem:[#allocation48_spill] sm:$0xff] %v13814_v54  ;;  %v6545_v46 = vmul.f32 %v15530_v8, %v13810_v44  ;;  %v7585_v54 = vsel %vm4464_vm0, %v13455_v42, 0  ;;  %v13862_v42 = vld [vmem:[#allocation3 + $0x102] sm:$0xff] }
 0x4f5   : > { %10566 = vmatmul.mubr.msk.bf16.gmra.mxu0 %vm611_vm1, %v6032_v10  ;;  %10571 = vmatprep.mubr.msk.bf16.mxu1 %vm611_vm1, %v6572_v28  ;;  %v6573_v28 = vpack.c.bf16 %v6543_v41, %v13831_v0  ;;  %v13841_v10 = vld [vmem:[#allocation3 + $0x3a] sm:$0xff]  ;;  %15536 = vst [vmem:[#allocation86_spill] sm:$0xff] %v13862_v42  ;;  %v13897_v42 = vld [vmem:[#allocation3 + $0x6a] sm:$0xff] }
 0x4f6   : > { %10605 = vmatprep.mubr.msk.bf16.mxu0 %vm611_vm1, %v15528_v24  ;;  %v6870_v24 = vmul.f32 %v15461_v9, %v13487_v61  ;;  %v6574_v13 = vpack.c.bf16 %v6545_v46, %v13836_v20  ;;  %v15533_v41 = vld [vmem:[#allocation84_spill] sm:$0xff]  ;;  %v15535_v61 = vpack.c.bf16 %v13417_v26, %v13423_v18  ;;  %v13860_v9 = vld [vmem:[#allocation3 + $0x4a] sm:$0xff] }
 0x4f7   : > { %v13852_v5 = vmul.f32 %v15533_v41, %v13829_v25  ;;  %v13867_v20 = vld [vmem:[%s14963_s13 + $0xe] sm:$0x3]  ;;  %v15537_v26 = vld [vmem:[#allocation25_spill] sm:$0xff]  ;;  %v13917_v25 = vld [vmem:[#allocation3 + $0x7a] sm:$0xff] }
 0x4f8   : > { %v6900_v46 = vpack.c.bf16 %v13505_v55, %v6870_v24  ;;  %v6547_v18 = vmul.f32 %v15537_v26, %v13841_v10  ;;  %v6872_v55 = vmul.f32 %v15471_v57, %v13507_v6  ;;  %v15538_v24 = vld [vmem:[#allocation29_spill] sm:$0xff]  ;;  %v13893_v57 = vld [vmem:[#allocation3 + $0x5a] sm:$0xff] }
 0x4f9   : > { %15534 = vst [vmem:[#allocation61_spill] sm:$0xff] %v13852_v5  ;;  %v13889_v6 = vld [vmem:[#allocation3 + $0x42] sm:$0xff] }
 0x4fc   : > { %10572 = vmatmul.mubr.msk.bf16.vlgmr.msra.gmra.mxu1 %vm611_vm1, %v6573_v28  ;;  %v6901_v28 = vpack.c.bf16 %v13531_v45, %v6872_v55  ;;  %v15539_v45 = vld [vmem:[#allocation33_spill] sm:$0xff] }
 0x4fd   : > { %10606 = vmatmul.mubr.msk.bf16.vlgmr.msra.gmra.mxu0 %vm611_vm1, %v15535_v61  ;;  %10638 = vmatpush3.bf16.msra.mxu1 %v7259_v3  ;;  %v6549_v61 = vmul.f32 %v15538_v24, %v13860_v9  ;;  %v6874_v3 = vmul.f32 %v15475_v34, %v13538_v52  ;;  %v6551_v52 = vmul.f32 %v15539_v45, %v13893_v57 }
 0x4fe   : > { %10575 = vmatprep.mubr.msk.bf16.mxu1 %vm611_vm1, %v6574_v13  ;;  %10609 = vmatprep.mubr.msk.bf16.mxu0 %vm611_vm1, %v6900_v46  ;;  %v13883_v13 = vld [vmem:[#allocation3 + $0x32] sm:$0xff] }
 0x4ff   : > { %10672 = vmatpush3.bf16.msra.mxu0 %v7585_v54  ;;  %10863 = vmatprep.subr.msk.bf16.mxu1 %vm4464_vm0, %v13848_v12  ;;  %v6575_v46 = vpack.c.bf16 %v6547_v18, %v13883_v13  ;;  %v6576_v54 = vpack.c.bf16 %v6549_v61, %v13889_v6  ;;  %v6902_v5 = vpack.c.bf16 %v13557_v60, %v6874_v3  ;;  %v15540_v60 = vld [vmem:[#allocation36_spill] sm:$0xff]  ;;  %v13907_v61 = vld [vmem:[#allocation3 + $0x52] sm:$0xff] }
 0x500   : > { %10864 = vmatprep.subr.msk.bf16.mxu0 %vm4464_vm0, %v13867_v20  ;;  %v6876_v18 = vmul.f32 %v15479_v23, %v13559_v19  ;;  %v6553_v55 = vmul.f32 %v15540_v60, %v13897_v42  ;;  %v6577_v3 = vpack.c.bf16 %v6551_v52, %v13907_v61  ;;  %v13921_v19 = vld [vmem:[#allocation3 + $0x8a] sm:$0xff]  ;;  %v13941_v23 = vld [vmem:[#allocation3 + $0x9a] sm:$0xff] }
 0x504   : > { %10576 = vmatmul.mubr.msk.bf16.gmra.mxu1 %vm611_vm1, %v6575_v46  ;;  %v6903_v46 = vpack.c.bf16 %v13583_v51, %v6876_v18  ;;  %v13931_v18 = vld [vmem:[#allocation3 + $0x72] sm:$0xff] }
 0x505   : > { %10610 = vmatmul.mubr.msk.bf16.gmra.mxu0 %vm611_vm1, %v6901_v28  ;;  %10579 = vmatprep.mubr.msk.bf16.mxu1 %vm611_vm1, %v6576_v54  ;;  %v6878_v28 = vmul.f32 %v15483_v39, %v13588_v43  ;;  %v13913_v54 = vld [vmem:[#allocation3 + $0x62] sm:$0xff]  ;;  %v6880_v43 = vmul.f32 %v15487_v15, %v13607_v38  ;;  %v13945_v15 = vld [vmem:[#allocation3 + $0xaa] sm:$0xff] }
 0x506   : > { %10613 = vmatprep.mubr.msk.bf16.mxu0 %vm611_vm1, %v6902_v5  ;;  %v6578_v5 = vpack.c.bf16 %v6553_v55, %v13913_v54  ;;  %v15541_v39 = vld [vmem:[#allocation40_spill] sm:$0xff]  ;;  %v6882_v55 = vmul.f32 %v15491_v33, %v13636_v50  ;;  %v15543_v33 = vld [vmem:[#allocation54_spill] sm:$0xff]  ;;  %v6884_v50 = vmul.f32 %v15496_v16, %v13655_v53 }
 0x507   : > { %v6904_v34 = vpack.c.bf16 %v13605_v62, %v6878_v28  ;;  %v6555_v51 = vmul.f32 %v15541_v39, %v13917_v25  ;;  %v15542_v62 = vld [vmem:[#allocation50_spill] sm:$0xff]  ;;  %v6559_v38 = vmul.f32 %v15543_v33, %v13941_v23 }
 0x508   : > { %v6557_v52 = vmul.f32 %v15542_v62, %v13921_v19  ;;  %v13969_v16 = vld [vmem:[#allocation3 + $0xca] sm:$0xff] }
 0x509   : > { %v6579_v28 = vpack.c.bf16 %v6555_v51, %v13931_v18  ;;  %v15544_v51 = vld [vmem:[#allocation59_spill] sm:$0xff] }
 0x50c   : > { %10580 = vmatmul.mubr.msk.bf16.gmra.mxu1 %vm611_vm1, %v6577_v3  ;;  %v6905_v3 = vpack.c.bf16 %v13631_v49, %v6880_v43  ;;  %v6561_v43 = vmul.f32 %v15544_v51, %v13945_v15  ;;  %v13965_v49 = vld [vmem:[#allocation3 + $0xba] sm:$0xff] }
 0x50d   : > { %10614 = vmatmul.mubr.msk.bf16.gmra.mxu0 %vm611_vm1, %v6903_v46  ;;  %10583 = vmatprep.mubr.msk.bf16.mxu1 %vm611_vm1, %v6578_v5  ;;  %v13937_v46 = vld [vmem:[#allocation3 + $0x82] sm:$0xff]  ;;  %v6906_v5 = vpack.c.bf16 %v13653_v35, %v6882_v55  ;;  %v6886_v55 = vmul.f32 %v15502_v58, %v13686_v30  ;;  %v15545_v58 = vld [vmem:[#allocation63_spill] sm:$0xff]  ;;  %v6888_v30 = vmul.f32 %v15508_v11, %v13709_v56  ;;  %v13993_v56 = vld [vmem:[#allocation3 + $0xea] sm:$0xff] }
 0x50e   : > { %10617 = vmatprep.mubr.msk.bf16.mxu0 %vm611_vm1, %v6904_v34  ;;  %v6580_v34 = vpack.c.bf16 %v6557_v52, %v13937_v46  ;;  %v13955_v52 = vld [vmem:[#allocation3 + $0x92] sm:$0xff]  ;;  %v6563_v53 = vmul.f32 %v15545_v58, %v13965_v49 }
 0x50f   : > { %v6908_v35 = vpack.c.bf16 %v13707_v37, %v6886_v55  ;;  %v6890_v55 = vmul.f32 %v15514_v7, %v13742_v14  ;;  %v15547_v14 = vld [vmem:[#allocation72_spill] sm:$0xff] }
 0x510   : > { %v14013_v7 = vld [vmem:[#allocation3 + $0xfa] sm:$0xff] }
 0x511   : > { %v6910_v37 = vpack.c.bf16 %v13759_v27, %v6890_v55  ;;  %v6569_v27 = vmul.f32 %v15533_v41, %v13993_v56  ;;  %v6894_v55 = vmul.f32 %v15522_v48, %v13792_v21  ;;  %v7487_v21 = vmul.f32 %v15524_v63, %v13805_v17 }
 0x512   : > { %v7489_v17 = vmul.f32 %v15529_v22, %v13810_v44 }
 0x513   : > { %v6912_v11 = vpack.c.bf16 %v13798_v36, %v6894_v55  ;;  %v14025_v36 = vld [vmem:[#allocation3 + $0xf2] sm:$0xff] }
 0x514   : > { %10584 = vmatmul.mubr.msk.bf16.gmra.mxu1 %vm611_vm1, %v6579_v28  ;;  %v6581_v28 = vpack.c.bf16 %v6559_v38, %v13955_v52  ;;  %v15546_v38 = vld [vmem:[#allocation67_spill] sm:$0xff] }
 0x515   : > { %10618 = vmatmul.mubr.msk.bf16.gmra.mxu0 %vm611_vm1, %v6905_v3  ;;  %10587 = vmatprep.mubr.msk.bf16.mxu1 %vm611_vm1, %v6580_v34  ;;  %v6907_v3 = vpack.c.bf16 %v13681_v59, %v6884_v50  ;;  %v13961_v34 = vld [vmem:[#allocation3 + $0xa2] sm:$0xff]  ;;  %v6565_v50 = vmul.f32 %v15546_v38, %v13969_v16  ;;  %v13989_v59 = vld [vmem:[#allocation3 + $0xda] sm:$0xff] }
 0x516   : > { %10621 = vmatprep.mubr.msk.bf16.mxu0 %vm611_vm1, %v6906_v5  ;;  %v6582_v5 = vpack.c.bf16 %v6561_v43, %v13961_v34  ;;  %v13979_v43 = vld [vmem:[#allocation3 + $0xb2] sm:$0xff] }
 0x517   : > { %v15550_v55 = vld [vmem:[#allocation55_spill] sm:$0xff] }
 0x51c   : > { %10588 = vmatmul.mubr.msk.bf16.gmra.mxu1 %vm611_vm1, %v6581_v28  ;;  %v6583_v28 = vpack.c.bf16 %v6563_v53, %v13979_v43  ;;  %v6567_v53 = vmul.f32 %v15547_v14, %v13989_v59 }
 0x51d   : > { %10622 = vmatmul.mubr.msk.bf16.gmra.mxu0 %vm611_vm1, %v6907_v3  ;;  %10591 = vmatprep.mubr.msk.bf16.mxu1 %vm611_vm1, %v6582_v5  ;;  %v6909_v3 = vpack.c.bf16 %v13737_v2, %v6888_v30  ;;  %v13985_v5 = vld [vmem:[#allocation3 + $0xc2] sm:$0xff]  ;;  %v6892_v30 = vmul.f32 %v15518_v47, %v13761_v40 }
 0x51e   : > { %10625 = vmatprep.mubr.msk.bf16.mxu0 %vm611_vm1, %v6908_v35  ;;  %v6584_v35 = vpack.c.bf16 %v6565_v50, %v13985_v5  ;;  %v14003_v50 = vld [vmem:[#allocation3 + $0xd2] sm:$0xff]  ;;  %v15548_v40 = vld [vmem:[#allocation89_spill] sm:$0xff] }
 0x51f   : > { %v6571_v48 = vmul.f32 %v15548_v40, %v14013_v7 }
 0x524   : > { %10592 = vmatmul.mubr.msk.bf16.gmra.mxu1 %vm611_vm1, %v6583_v28  ;;  %v6585_v28 = vpack.c.bf16 %v6567_v53, %v14003_v50  ;;  %v6587_v53 = vpack.c.bf16 %v6571_v48, %v14025_v36 }
 0x525   : > { %10626 = vmatmul.mubr.msk.bf16.gmra.mxu0 %vm611_vm1, %v6909_v3  ;;  %10595 = vmatprep.mubr.msk.bf16.mxu1 %vm611_vm1, %v6584_v35  ;;  %v6911_v3 = vpack.c.bf16 %v13780_v31, %v6892_v30  ;;  %v14009_v35 = vld [vmem:[#allocation3 + $0xe2] sm:$0xff]  ;;  %v6896_v31 = vmul.f32 %v15525_v29, %v13803_v1  ;;  %v15549_v1 = vmov 0.0  }
 0x526   : > { %10629 = vmatprep.mubr.msk.bf16.mxu0 %vm611_vm1, %v6910_v37  ;;  %v6586_v37 = vpack.c.bf16 %v6569_v27, %v14009_v35  ;;  %v7518_v27 = vpack.c.bf16 %v7487_v21, %v13831_v0  ;;  %649 = vst.msk [vmem:[#allocation3 + $0x120] sm:$0x3] %vm648_vm8, %v15549_v1  ;;  %v7519_v0 = vpack.c.bf16 %v7489_v17, %v15550_v55  ;;  %v15554_v21 = vld [vmem:[#allocation83_spill] sm:$0xff]  ;;  %v15558_v17 = vld [vmem:[#allocation68_spill] sm:$0xff]  ;;  %v15560_v1 = vld [vmem:[#allocation9_spill] sm:$0xff] }
 0x527   : > { %v6913_v30 = vpack.c.bf16 %v13821_v32, %v6896_v31  ;;  %v15553_v31 = vld [vmem:[#allocation81_spill] sm:$0xff]  ;;  %v15561_v55 = vld [vmem:[#allocation12_spill] sm:$0xff] }
 0x52c   : > { %10596 = vmatmul.mubr.msk.bf16.gmra.mxu1 %vm611_vm1, %v6585_v28  ;;  %v7911_v28 = vsel %vm4464_vm0, %v13848_v12, 0  ;;  %v7493_v12 = vmul.f32 %v15537_v26, %v13860_v9  ;;  %v7497_v9 = vmul.f32 %v15539_v45, %v13897_v42  ;;  %v7501_v42 = vmul.f32 %v15541_v39, %v13921_v19 }
 0x52d   : > { %10630 = vmatmul.mubr.msk.bf16.gmra.mxu0 %vm611_vm1, %v6911_v3  ;;  %10599 = vmatprep.mubr.msk.bf16.mxu1 %vm611_vm1, %v6586_v37  ;;  %v8205_v3 = vsel %vm4464_vm0, %v13867_v20, 0  ;;  %v15552_v37 = vld [vmem:[#allocation79_spill] sm:$0xff]  ;;  %v7495_v20 = vmul.f32 %v15538_v24, %v13893_v57  ;;  %v7499_v57 = vmul.f32 %v15540_v60, %v13917_v25  ;;  %v7503_v25 = vmul.f32 %v15542_v62, %v13941_v23 }
 0x52e   : > { %10633 = vmatprep.mubr.msk.bf16.mxu0 %vm611_vm1, %v6912_v11  ;;  %v7491_v11 = vmul.f32 %v15530_v8, %v13841_v10  ;;  %v14052_v10 = vld [vmem:[%s14963_s13 + $0x10] sm:$0x3]  ;;  %v7505_v19 = vmul.f32 %v15543_v33, %v13945_v15  ;;  %v7507_v23 = vmul.f32 %v15544_v51, %v13965_v49  ;;  %v7509_v15 = vmul.f32 %v15545_v58, %v13969_v16 }
 0x52f   : > { %v7522_v48 = vpack.c.bf16 %v7495_v20, %v13907_v61  ;;  %v7524_v61 = vpack.c.bf16 %v7499_v57, %v13931_v18  ;;  %v7526_v18 = vpack.c.bf16 %v7503_v25, %v13955_v52  ;;  %v7511_v49 = vmul.f32 %v15546_v38, %v13989_v59 }
 0x530   : > { %v7520_v44 = vpack.c.bf16 %v7491_v11, %v13883_v13  ;;  %v7521_v13 = vpack.c.bf16 %v7493_v12, %v13889_v6  ;;  %v7523_v6 = vpack.c.bf16 %v7497_v9, %v13913_v54  ;;  %v7525_v54 = vpack.c.bf16 %v7501_v42, %v13937_v46  ;;  %v15559_v11 = vld [vmem:[#allocation62_spill] sm:$0xff]  ;;  %v7190_v12 = vld [vmem:[#allocation3 + $0x101] sm:$0xff] }
 0x531   : > { %v7527_v46 = vpack.c.bf16 %v7505_v19, %v13961_v34  ;;  %v7528_v52 = vpack.c.bf16 %v7507_v23, %v13979_v43  ;;  %v7529_v34 = vpack.c.bf16 %v7509_v15, %v13985_v5  ;;  %v7530_v43 = vpack.c.bf16 %v7511_v49, %v14003_v50  ;;  %v8106_v9 = vld [vmem:[#allocation3 + $0x21] sm:$0xff]  ;;  %v7783_v19 = vld [vmem:[#allocation3 + $0x38] sm:$0xff] }
 0x532   : > { %v7513_v16 = vmul.f32 %v15547_v14, %v13993_v56  ;;  %v7515_v59 = vmul.f32 %v15533_v41, %v14013_v7  ;;  %v15566_v7 = vld [vmem:[#allocation17_spill] sm:$0xff]  ;;  %v7784_v42 = vld [vmem:[#allocation3 + $0x40] sm:$0xff] }
 0x533   : > { %v8109_v23 = vld [vmem:[#allocation3 + $0x39] sm:$0xff]  ;;  %v15569_v15 = vld [vmem:[#allocation20_spill] sm:$0xff] }
 0x534   : > { %10600 = vmatmul.mubr.msk.bf16.gmra.mxu1 %vm611_vm1, %v6587_v53  ;;  %v15555_v53 = vld [vmem:[#allocation44_spill] sm:$0xff]  ;;  %v7531_v5 = vpack.c.bf16 %v7513_v16, %v14009_v35  ;;  %v7532_v50 = vpack.c.bf16 %v7515_v59, %v14025_v36  ;;  %v8107_v35 = vld [vmem:[#allocation3 + $0x29] sm:$0xff] }
 0x535   : > { %10634 = vmatmul.mubr.msk.bf16.gmra.mxu0 %vm611_vm1, %v6913_v30  ;;  %10639 = vmatprep.mubr.msk.bf16.mxu1 %vm611_vm1, %v13409_v4  ;;  %v15551_v4 = vld [vmem:[#allocation21_spill] sm:$0xff]  ;;  %v15556_v30 = vld [vmem:[#allocation52_spill] sm:$0xff] }
 0x536   : > { %10673 = vmatprep.mubr.msk.bf16.mxu0 %vm611_vm1, %v7518_v27  ;;  %v15557_v27 = vld [vmem:[#allocation57_spill] sm:$0xff] }
 0x53c   : > { %10640 = vmatmul.mubr.msk.bf16.vlgmr.msra.gmra.mxu1 %vm611_vm1, %v15551_v4  ;;  %v15564_v4 = vld [vmem:[#allocation39_spill] sm:$0xff] }
 0x53d   : > { %10674 = vmatmul.mubr.msk.bf16.vlgmr.msra.gmra.mxu0 %vm611_vm1, %v7519_v0  ;;  %10706 = vmatpush3.bf16.msra.mxu1 %v7911_v28  ;;  %v15562_v0 = vld [vmem:[#allocation19_spill] sm:$0xff] }
 0x53e   : > { %10643 = vmatprep.mubr.msk.bf16.mxu1 %vm611_vm1, %v15552_v37  ;;  %10677 = vmatprep.mubr.msk.bf16.mxu0 %vm611_vm1, %v7520_v44  ;;  %v15563_v28 = vld [vmem:[#allocation7_spill] sm:$0xff]  ;;  %v15565_v44 = vld [vmem:[#allocation53_spill] sm:$0xff] }
 0x53f   : > { %10740 = vmatpush3.bf16.msra.mxu0 %v8205_v3  ;;  %10865 = vmatprep.subr.msk.bf16.mxu1 %vm4464_vm0, %v14052_v10  ;;  %v7780_v3 = vld [vmem:[#allocation3 + $0x20] sm:$0xff]  ;;  %v7517_v56 = vmul.f32 %v15548_v40, %v15565_v44  ;;  %v7191_v37 = vld [vmem:[#allocation3 + $0x109] sm:$0xff] }
 0x540   : > { %v7812_v41 = vmul.f32 %v15566_v7, %v7780_v3  ;;  %v8110_v3 = vld [vmem:[#allocation3 + $0x41] sm:$0xff]  ;;  %v8113_v7 = vld [vmem:[#allocation3 + $0x59] sm:$0xff] }
 0x541   : > { %v7788_v44 = vld [vmem:[#allocation3 + $0x60] sm:$0xff] }
 0x544   : > { %10644 = vmatmul.mubr.msk.bf16.gmra.mxu1 %vm611_vm1, %v15553_v31 }
 0x545   : > { %10678 = vmatmul.mubr.msk.bf16.gmra.mxu0 %vm611_vm1, %v7521_v13  ;;  %10647 = vmatprep.mubr.msk.bf16.mxu1 %vm611_vm1, %v15554_v21  ;;  %v14134_v13 = vpack.c.bf16 %v7191_v37, %v7190_v12  ;;  %v7781_v21 = vld [vmem:[#allocation3 + $0x28] sm:$0xff]  ;;  %v7787_v37 = vld [vmem:[#allocation3 + $0x58] sm:$0xff] }
 0x546   : > { %10681 = vmatprep.mubr.msk.bf16.mxu0 %vm611_vm1, %v7522_v48  ;;  %v15567_v48 = vld [vmem:[#allocation86_spill] sm:$0xff] }
 0x547   : > { %v7533_v31 = vpack.c.bf16 %v7517_v56, %v15567_v48  ;;  %v7786_v56 = vld [vmem:[#allocation3 + $0x50] sm:$0xff] }
 0x54c   : > { %10648 = vmatmul.mubr.msk.bf16.gmra.mxu1 %vm611_vm1, %v15555_v53 }
 0x54d   : > { %10682 = vmatmul.mubr.msk.bf16.gmra.mxu0 %vm611_vm1, %v7523_v6  ;;  %10651 = vmatprep.mubr.msk.bf16.mxu1 %vm611_vm1, %v15556_v30  ;;  %v7844_v6 = vpack.c.bf16 %v7781_v21, %v7812_v41  ;;  %v15570_v41 = vld [vmem:[#allocation30_spill] sm:$0xff] }
 0x54e   : > { %10685 = vmatprep.mubr.msk.bf16.mxu0 %vm611_vm1, %v7524_v61  ;;  %v8138_v61 = vpack.c.bf16 %v8107_v35, %v8106_v9  ;;  %v7820_v35 = vmul.f32 %v15570_v41, %v7788_v44  ;;  %v7789_v9 = vld [vmem:[#allocation3 + $0x68] sm:$0xff]  ;;  %v15573_v41 = vld [vmem:[#allocation51_spill] sm:$0xff] }
 0x554   : > { %10652 = vmatmul.mubr.msk.bf16.gmra.mxu1 %vm611_vm1, %v15557_v27 }
 0x555   : > { %10686 = vmatmul.mubr.msk.bf16.gmra.mxu0 %vm611_vm1, %v7525_v54  ;;  %10655 = vmatprep.mubr.msk.bf16.mxu1 %vm611_vm1, %v15558_v17  ;;  %v7782_v54 = vld [vmem:[#allocation3 + $0x30] sm:$0xff] }
 0x556   : > { %10689 = vmatprep.mubr.msk.bf16.mxu0 %vm611_vm1, %v7526_v18  ;;  %v7814_v49 = vmul.f32 %v15569_v15, %v7782_v54  ;;  %v15572_v15 = vld [vmem:[#allocation34_spill] sm:$0xff] }
 0x558   : > { %v7845_v16 = vpack.c.bf16 %v7783_v19, %v7814_v49 }
 0x55c   : > { %10656 = vmatmul.mubr.msk.bf16.gmra.mxu1 %vm611_vm1, %v15559_v11 }
 0x55d   : > { %10690 = vmatmul.mubr.msk.bf16.gmra.mxu0 %vm611_vm1, %v7527_v46  ;;  %10659 = vmatprep.mubr.msk.bf16.mxu1 %vm611_vm1, %v15560_v1  ;;  %v15568_v46 = vld [vmem:[#allocation24_spill] sm:$0xff] }
 0x55e   : > { %10693 = vmatprep.mubr.msk.bf16.mxu0 %vm611_vm1, %v7528_v52  ;;  %v7816_v52 = vmul.f32 %v15568_v46, %v7784_v42  ;;  %v7791_v46 = vld [vmem:[#allocation3 + $0x78] sm:$0xff] }
 0x564   : > { %10660 = vmatmul.mubr.msk.bf16.gmra.mxu1 %vm611_vm1, %v15561_v55 }
 0x565   : > { %10694 = vmatmul.mubr.msk.bf16.gmra.mxu0 %vm611_vm1, %v7529_v34  ;;  %10663 = vmatprep.mubr.msk.bf16.mxu1 %vm611_vm1, %v15562_v0  ;;  %v8111_v0 = vld [vmem:[#allocation3 + $0x49] sm:$0xff] }
 0x566   : > { %10697 = vmatprep.mubr.msk.bf16.mxu0 %vm611_vm1, %v7530_v43  ;;  %v8108_v43 = vld [vmem:[#allocation3 + $0x31] sm:$0xff] }
 0x567   : > { %v8139_v59 = vpack.c.bf16 %v8109_v23, %v8108_v43  ;;  %v8119_v43 = vld [vmem:[#allocation3 + $0x89] sm:$0xff] }
 0x56c   : > { %10664 = vmatmul.mubr.msk.bf16.gmra.mxu1 %vm611_vm1, %v15563_v28 }
 0x56d   : > { %10698 = vmatmul.mubr.msk.bf16.gmra.mxu0 %vm611_vm1, %v7531_v5  ;;  %10667 = vmatprep.mubr.msk.bf16.mxu1 %vm611_vm1, %v15564_v4  ;;  %v8531_v5 = vsel %vm4464_vm0, %v14052_v10, 0  ;;  %v8140_v4 = vpack.c.bf16 %v8111_v0, %v8110_v3  ;;  %v15571_v10 = vld [vmem:[#allocation27_spill] sm:$0xff]  ;;  %v8118_v3 = vld [vmem:[#allocation3 + $0x81] sm:$0xff] }
 0x56e   : > { %10701 = vmatprep.mubr.msk.bf16.mxu0 %vm611_vm1, %v7532_v50  ;;  %v7785_v50 = vld [vmem:[#allocation3 + $0x48] sm:$0xff]  ;;  %v7818_v12 = vmul.f32 %v15571_v10, %v7786_v56  ;;  %v8144_v44 = vpack.c.bf16 %v8119_v43, %v8118_v3 }
 0x56f   : > { %v7846_v28 = vpack.c.bf16 %v7785_v50, %v7816_v52  ;;  %v8117_v52 = vld [vmem:[#allocation3 + $0x79] sm:$0xff] }
 0x572   : > { %v10505_v36 = vpop.f32.mrf.mxu1 }
 0x573   : > { %v10539_v20 = vpop.f32.mrf.mxu0 }
 0x574   : > { %v14137_v57 = vadd.f32 %v10539_v20, %v10505_v36  ;;  %10668 = vmatmul.mubr.msk.bf16.gmra.mxu1 %vm611_vm1, %v14134_v13  ;;  %v6169_v53 = vpop.f32.mrf.mxu1  ;;  %v8115_v36 = vld [vmem:[#allocation3 + $0x69] sm:$0xff]  ;;  %v8112_v20 = vld [vmem:[#allocation3 + $0x51] sm:$0xff] }
 0x575   : > { %10702 = vmatmul.mubr.msk.bf16.gmra.mxu0 %vm611_vm1, %v7533_v31  ;;  %v6381_v30 = vpop.f32.mrf.mxu0  ;;  %10707 = vmatprep.mubr.msk.bf16.mxu1 %vm611_vm1, %v7844_v6  ;;  %v7847_v31 = vpack.c.bf16 %v7787_v37, %v7818_v12  ;;  %v8141_v21 = vpack.c.bf16 %v8113_v7, %v8112_v20  ;;  %v8114_v6 = vld [vmem:[#allocation3 + $0x61] sm:$0xff] }
 0x576   : > { %v14142_v25 = vadd.f32 %v6381_v30, %v6169_v53  ;;  %10741 = vmatprep.mubr.msk.bf16.mxu0 %vm611_vm1, %v8138_v61  ;;  %v10506_v18 = vpop.f32.mrf.mxu1  ;;  %v7848_v61 = vpack.c.bf16 %v7789_v9, %v7820_v35  ;;  %v8142_v53 = vpack.c.bf16 %v8115_v36, %v8114_v6  ;;  %v15574_v35 = vld [vmem:[#allocation58_spill] sm:$0xff]  ;;  %v8123_v6 = vld [vmem:[#allocation3 + $0xa9] sm:$0xff] }
 0x577   : > { %v10540_v27 = vpop.f32.mrf.mxu0  ;;  %v15575_v10 = vpack.c.bf16 %v15573_v41, %v15574_v35  ;;  %v8124_v35 = vld [vmem:[#allocation3 + $0xb1] sm:$0xff] }
 0x578   : > { %v14146_v17 = vadd.f32 %v10540_v27, %v10506_v18  ;;  %v6172_v11 = vpop.f32.mrf.mxu1  ;;  %v7790_v18 = vld [vmem:[#allocation3 + $0x70] sm:$0xff] }
 0x579   : > { %v6384_v1 = vpop.f32.mrf.mxu0  ;;  %v7822_v49 = vmul.f32 %v15572_v15, %v7790_v18  ;;  %v15577_v15 = vld [vmem:[#allocation70_spill] sm:$0xff] }
 0x57a   : > { %v14150_v34 = vadd.f32 %v6384_v1, %v6172_v11 }
 0x57b   : > { %v7849_v50 = vpack.c.bf16 %v7791_v46, %v7822_v49 }
 0x57c   : > { %10708 = vmatmul.mubr.msk.bf16.vlgmr.msra.gmra.mxu1 %vm611_vm1, %v7845_v16  ;;  %v8116_v16 = vld [vmem:[#allocation3 + $0x71] sm:$0xff] }
 0x57d   : > { %10742 = vmatmul.mubr.msk.bf16.vlgmr.msra.gmra.mxu0 %vm611_vm1, %v8139_v59  ;;  %10774 = vmatpush3.bf16.msra.mxu1 %v8531_v5 }
 0x57e   : > { %10711 = vmatprep.mubr.msk.bf16.mxu1 %vm611_vm1, %v7846_v28  ;;  %10745 = vmatprep.mubr.msk.bf16.mxu0 %vm611_vm1, %v8140_v4  ;;  %v8143_v28 = vpack.c.bf16 %v8117_v52, %v8116_v16  ;;  %v15579_v16 = vld [vmem:[#allocation85_spill] sm:$0xff] }
 0x583   : > { %v10509_v30 = vpop.f32.mrf.mxu1 }
 0x584   : > { %v10543_v42 = vpop.f32.mrf.mxu0  ;;  %10712 = vmatmul.mubr.msk.bf16.gmra.mxu1 %vm611_vm1, %v7847_v31  ;;  %v8121_v31 = vld [vmem:[#allocation3 + $0x99] sm:$0xff] }
 0x585   : > { %10746 = vmatmul.mubr.msk.bf16.gmra.mxu0 %vm611_vm1, %v8141_v21  ;;  %v14162_v54 = vadd.f32 %v10543_v42, %v10509_v30  ;;  %10715 = vmatprep.mubr.msk.bf16.mxu1 %vm611_vm1, %v7848_v61  ;;  %v6185_v27 = vpop.f32.mrf.mxu1 }
 0x586   : > { %10749 = vmatprep.mubr.msk.bf16.mxu0 %vm611_vm1, %v8142_v53  ;;  %v6397_v19 = vpop.f32.mrf.mxu0  ;;  %v8120_v53 = vld [vmem:[#allocation3 + $0x91] sm:$0xff] }
 0x587   : > { %v14166_v23 = vadd.f32 %v6397_v19, %v6185_v27  ;;  %v10510_v11 = vpop.f32.mrf.mxu1  ;;  %v8145_v18 = vpack.c.bf16 %v8121_v31, %v8120_v53  ;;  %v8122_v27 = vld [vmem:[#allocation3 + $0xa1] sm:$0xff]  ;;  %v15583_v53 = vld [vmem:[#allocation13_spill] sm:$0xff] }
 0x588   : > { %v10544_v1 = vpop.f32.mrf.mxu0  ;;  %v8146_v46 = vpack.c.bf16 %v8123_v6, %v8122_v27  ;;  %v15582_v6 = vld [vmem:[#allocation23_spill] sm:$0xff]  ;;  %v15585_v27 = vld [vmem:[#allocation37_spill] sm:$0xff] }
 0x589   : > { %v14169_v0 = vadd.f32 %v10544_v1, %v10510_v11  ;;  %v6188_v59 = vpop.f32.mrf.mxu1  ;;  %v15576_v1 = vld [vmem:[#allocation60_spill] sm:$0xff] }
 0x58a   : > { %v6400_v5 = vpop.f32.mrf.mxu0  ;;  %v15578_v49 = vpack.c.bf16 %v15576_v1, %v15577_v15 }
 0x58b   : > { %v14171_v4 = vadd.f32 %v6400_v5, %v6188_v59  ;;  %v10513_v56 = vpop.f32.mrf.mxu1  ;;  %v15580_v59 = vld [vmem:[#allocation31_spill] sm:$0xff] }
 0x58c   : > { %v10547_v37 = vpop.f32.mrf.mxu0  ;;  %10716 = vmatmul.mubr.msk.bf16.gmra.mxu1 %vm611_vm1, %v7849_v50  ;;  %v15581_v5 = vpack.c.bf16 %v15579_v16, %v15580_v59  ;;  %v8129_v16 = vld [vmem:[#allocation3 + $0xd9] sm:$0xff] }
 0x58d   : > { %10750 = vmatmul.mubr.msk.bf16.gmra.mxu0 %vm611_vm1, %v8143_v28  ;;  %v14175_v7 = vadd.f32 %v10547_v37, %v10513_v56  ;;  %10719 = vmatprep.mubr.msk.bf16.mxu1 %vm611_vm1, %v15575_v10  ;;  %v6201_v12 = vpop.f32.mrf.mxu1  ;;  %v15587_v59 = vld [vmem:[#allocation71_spill] sm:$0xff] }
 0x58e   : > { %10753 = vmatprep.mubr.msk.bf16.mxu0 %vm611_vm1, %v8144_v44  ;;  %v6413_v36 = vpop.f32.mrf.mxu0  ;;  %v8125_v44 = vld [vmem:[#allocation3 + $0xb9] sm:$0xff] }
 0x58f   : > { %v14182_v20 = vadd.f32 %v6413_v36, %v6201_v12  ;;  %v10514_v21 = vpop.f32.mrf.mxu1  ;;  %v8147_v36 = vpack.c.bf16 %v8125_v44, %v8124_v35  ;;  %v15588_v44 = vld [vmem:[#allocation64_spill] sm:$0xff]  ;;  %v8128_v35 = vld [vmem:[#allocation3 + $0xd1] sm:$0xff] }
 0x590   : > { %v10548_v9 = vpop.f32.mrf.mxu0 }
 0x591   : > { %v14184_v61 = vadd.f32 %v10548_v9, %v10514_v21  ;;  %v6204_v30 = vpop.f32.mrf.mxu1 }
 0x592   : > { %v6416_v42 = vpop.f32.mrf.mxu0 }
 0x593   : > { %v14186_v19 = vadd.f32 %v6416_v42, %v6204_v30  ;;  %v10517_v52 = vpop.f32.mrf.mxu1  ;;  %v15584_v30 = vpack.c.bf16 %v15582_v6, %v15583_v53  ;;  %v7804_v42 = vld [vmem:[#allocation3 + $0xe0] sm:$0xff] }
 0x594   : > { %v10551_v11 = vpop.f32.mrf.mxu0  ;;  %10720 = vmatmul.mubr.msk.bf16.gmra.mxu1 %vm611_vm1, %v15578_v49  ;;  %v7803_v49 = vld [vmem:[#allocation3 + $0xd8] sm:$0xff] }
 0x595   : > { %10754 = vmatmul.mubr.msk.bf16.gmra.mxu0 %vm611_vm1, %v8145_v18  ;;  %v14193_v43 = vadd.f32 %v10551_v11, %v10517_v52  ;;  %10723 = vmatprep.mubr.msk.bf16.mxu1 %vm611_vm1, %v15581_v5  ;;  %v6217_v50 = vpop.f32.mrf.mxu1  ;;  %v7802_v52 = vld [vmem:[#allocation3 + $0xd0] sm:$0xff]  ;;  %v7836_v5 = vmul.f32 %v15587_v59, %v7804_v42 }
 0x596   : > { %10757 = vmatprep.mubr.msk.bf16.mxu0 %vm611_vm1, %v8146_v46  ;;  %v6429_v28 = vpop.f32.mrf.mxu0  ;;  %v15586_v46 = vpack.c.bf16 %v13737_v2, %v15585_v27 }
 0x597   : > { %v14200_v3 = vadd.f32 %v6429_v28, %v6217_v50  ;;  %v10518_v56 = vpop.f32.mrf.mxu1 }
 0x598   : > { %v10552_v37 = vpop.f32.mrf.mxu0 }
 0x599   : > { %v14202_v41 = vadd.f32 %v10552_v37, %v10518_v56  ;;  %v6220_v10 = vpop.f32.mrf.mxu1  ;;  %v7834_v56 = vmul.f32 %v15588_v44, %v7802_v52  ;;  %v8131_v37 = vld [vmem:[#allocation3 + $0xe9] sm:$0xff]  ;;  %v8132_v44 = vld [vmem:[#allocation3 + $0xf1] sm:$0xff] }
 0x59a   : > { %v6432_v12 = vpop.f32.mrf.mxu0 }
 0x59b   : > { %v14204_v31 = vadd.f32 %v6432_v12, %v6220_v10  ;;  %v10521_v21 = vpop.f32.mrf.mxu1  ;;  %v7855_v12 = vpack.c.bf16 %v7803_v49, %v7834_v56  ;;  %v7807_v49 = vld [vmem:[#allocation3 + $0xf8] sm:$0xff] }
 0x59c   : > { %v10555_v9 = vpop.f32.mrf.mxu0  ;;  %10724 = vmatmul.mubr.msk.bf16.gmra.mxu1 %vm611_vm1, %v15584_v30 }
 0x59d   : > { %10758 = vmatmul.mubr.msk.bf16.gmra.mxu0 %vm611_vm1, %v8147_v36  ;;  %v14211_v18 = vadd.f32 %v10555_v9, %v10521_v21  ;;  %10727 = vmatprep.mubr.msk.bf16.mxu1 %vm611_vm1, %v15586_v46  ;;  %v6233_v11 = vpop.f32.mrf.mxu1  ;;  %v8149_v36 = vpack.c.bf16 %v8129_v16, %v8128_v35  ;;  %v7805_v21 = vld [vmem:[#allocation3 + $0xe8] sm:$0xff]  ;;  %v7806_v46 = vld [vmem:[#allocation3 + $0xf0] sm:$0xff]  ;;  %v8133_v16 = vld [vmem:[#allocation3 + $0xf9] sm:$0xff] }
 0x59e   : > { %10761 = vmatprep.mubr.msk.bf16.mxu0 %vm611_vm1, %v15561_v55  ;;  %v6445_v1 = vpop.f32.mrf.mxu0  ;;  %v8130_v9 = vld [vmem:[#allocation3 + $0xe1] sm:$0xff]  ;;  %v7856_v6 = vpack.c.bf16 %v7805_v21, %v7836_v5 }
 0x59f   : > { %v14219_v15 = vadd.f32 %v6445_v1, %v6233_v11  ;;  %v10522_v50 = vpop.f32.mrf.mxu1  ;;  %v8150_v53 = vpack.c.bf16 %v8131_v37, %v8130_v9 }
 0x5a0   : > { %v10556_v28 = vpop.f32.mrf.mxu0 }
 0x5a1   : > { %v14223_v2 = vadd.f32 %v10556_v28, %v10522_v50  ;;  %v14225_v10 = vpop.f32.mrf.mxu1  ;;  %v7838_v50 = vmul.f32 %v15518_v47, %v7806_v46  ;;  %v15589_v47 = vld [vmem:[#allocation48_spill] sm:$0xff]  ;;  %v8137_v46 = vld [vmem:[#allocation3 + $0x119] sm:$0xff] }
 0x5a2   : > { %v14227_v55 = vpop.f32.mrf.mxu0 }
 0x5a3   : > { %v10525_v30 = vpop.f32.mrf.mxu1  ;;  %v7857_v35 = vpack.c.bf16 %v7807_v49, %v7838_v50 }
 0x5a4   : > { %v10559_v42 = vpop.f32.mrf.mxu0  ;;  %10728 = vmatmul.mubr.msk.bf16.gmra.mxu1 %vm611_vm1, %v7855_v12  ;;  %v8151_v12 = vpack.c.bf16 %v8133_v16, %v8132_v44 }
 0x5a5   : > { %10762 = vmatmul.mubr.msk.bf16.gmra.mxu0 %vm611_vm1, %v8149_v36  ;;  %v14231_v27 = vadd.f32 %v10559_v42, %v10525_v30  ;;  %10731 = vmatprep.mubr.msk.bf16.mxu1 %vm611_vm1, %v7856_v6  ;;  %v6249_v52 = vpop.f32.mrf.mxu1  ;;  %v7810_v36 = vld [vmem:[#allocation3 + $0x110] sm:$0xff]  ;;  %v15590_v30 = vpack.c.bf16 %v13821_v32, %v15589_v47 }
 0x5a6   : > { %10765 = vmatprep.mubr.msk.bf16.mxu0 %vm611_vm1, %v8150_v53  ;;  %v6461_v11 = vpop.f32.mrf.mxu0  ;;  %v8401_v6 = vld [vmem:[#allocation3 + $0x2a] sm:$0xff]  ;;  %v7842_v49 = vmul.f32 %v15525_v29, %v7810_v36 }
 0x5a7   : > { %v14235_v1 = vadd.f32 %v6461_v11, %v6249_v52  ;;  %v10526_v59 = vpop.f32.mrf.mxu1  ;;  %v8136_v42 = vld [vmem:[#allocation3 + $0x111] sm:$0xff] }
 0x5a8   : > { %v10560_v5 = vpop.f32.mrf.mxu0 }
 0x5a9   : > { %v14238_v28 = vadd.f32 %v10560_v5, %v10526_v59  ;;  %v14240_v56 = vpop.f32.mrf.mxu1  ;;  %v7811_v59 = vld [vmem:[#allocation3 + $0x118] sm:$0xff]  ;;  %v8433_v5 = vmul.f32 %v15524_v63, %v8401_v6  ;;  %v8405_v63 = vld [vmem:[#allocation3 + $0x4a] sm:$0xff] }
 0x5aa   : > { %v14242_v37 = vpop.f32.mrf.mxu0 }
 0x5ac   : > { %v10529_v21 = vpop.f32.mrf.mxu1  ;;  %10732 = vmatmul.mubr.msk.bf16.gmra.mxu1 %vm611_vm1, %v7857_v35  ;;  %v8153_v35 = vpack.c.bf16 %v8137_v46, %v8136_v42 }
 0x5ad   : > { %v10563_v9 = vpop.f32.mrf.mxu0  ;;  %10766 = vmatmul.mubr.msk.bf16.gmra.mxu0 %vm611_vm1, %v8151_v12  ;;  %10735 = vmatprep.mubr.msk.bf16.mxu1 %vm611_vm1, %v15590_v30  ;;  %v8403_v30 = vld [vmem:[#allocation3 + $0x3a] sm:$0xff] }
 0x5ae   : > { %v14246_v53 = vadd.f32 %v10563_v9, %v10529_v21  ;;  %10769 = vmatprep.mubr.msk.bf16.mxu0 %vm611_vm1, %v14134_v13  ;;  %v6265_v52 = vpop.f32.mrf.mxu1  ;;  %v7859_v13 = vpack.c.bf16 %v7811_v59, %v7842_v49  ;;  %v8400_v9 = vld [vmem:[#allocation3 + $0x22] sm:$0xff]  ;;  %v8435_v46 = vmul.f32 %v15529_v22, %v8403_v30  ;;  %v8409_v22 = vld [vmem:[#allocation3 + $0x6a] sm:$0xff] }
 0x5af   : > { %v6477_v11 = vpop.f32.mrf.mxu0  ;;  %v8464_v47 = vpack.c.bf16 %v8433_v5, %v8400_v9 }
 0x5b0   : > { %v14255_v16 = vadd.f32 %v6477_v11, %v6265_v52  ;;  %v10530_v50 = vpop.f32.mrf.mxu1  ;;  %v8437_v11 = vmul.f32 %v15530_v8, %v8405_v63 }
 0x5b1   : > { %v10564_v44 = vpop.f32.mrf.mxu0 }
 0x5b2   : > { %v14258_v32 = vadd.f32 %v10564_v44, %v10530_v50  ;;  %v14260_v12 = vpop.f32.mrf.mxu1  ;;  %v8402_v50 = vld [vmem:[#allocation3 + $0x32] sm:$0xff] }
 0x5b3   : > { %v14262_v21 = vpop.f32.mrf.mxu0 }
 0x5b4   : > { %v10533_v48 = vpop.f32.mrf.mxu1  ;;  %10736 = vmatmul.mubr.msk.bf16.gmra.mxu1 %vm611_vm1, %v7859_v13  ;;  %v8404_v13 = vld [vmem:[#allocation3 + $0x42] sm:$0xff] }
 0x5b5   : > { %v10567_v29 = vpop.f32.mrf.mxu0  ;;  %10770 = vmatmul.mubr.msk.bf16.gmra.mxu0 %vm611_vm1, %v8153_v35  ;;  %10775 = vmatprep.mubr.msk.bf16.mxu1 %vm611_vm1, %v8464_v47  ;;  %v8466_v9 = vpack.c.bf16 %v8437_v11, %v8404_v13  ;;  %v8407_v47 = vld [vmem:[#allocation3 + $0x5a] sm:$0xff]  ;;  %v8441_v11 = vmul.f32 %v15538_v24, %v8409_v22  ;;  %v8406_v13 = vld [vmem:[#allocation3 + $0x52] sm:$0xff]  ;;  %v8413_v22 = vld [vmem:[#allocation3 + $0x8a] sm:$0xff] }
 0x5b6   : > { %v14266_v36 = vadd.f32 %v10567_v29, %v10533_v48  ;;  %v6281_v6 = vpop.f32.mrf.mxu1  ;;  %v8465_v48 = vpack.c.bf16 %v8435_v46, %v8402_v50 }
 0x5b7   : > { %v6493_v42 = vpop.f32.mrf.mxu0 }
 0x5b8   : > { %15591 = vst [vmem:[#allocation87_spill] sm:$0xff] %v14266_v36  ;;  %v14270_v52 = vadd.f32 %v6493_v42, %v6281_v6  ;;  %v10534_v49 = vpop.f32.mrf.mxu1  ;;  %v8439_v6 = vmul.f32 %v15537_v26, %v8407_v47 }
 0x5b9   : > { %v10568_v59 = vpop.f32.mrf.mxu0 }
 0x5ba   : > { %v14273_v5 = vadd.f32 %v10568_v59, %v10534_v49  ;;  %v14275_v44 = vpop.f32.mrf.mxu1 }
 0x5bb   : > { %v14277_v35 = vpop.f32.mrf.mxu0 }
 0x5bc   : > { %15592 = vst [vmem:[#allocation15_spill] sm:$0xff] %v14273_v5  ;;  %15593 = vst [vmem:[#allocation90_spill] sm:$0xff] %v14277_v35  ;;  %v10573_v29 = vpop.f32.mrf.mxu1  ;;  %10776 = vmatmul.mubr.msk.bf16.vlgmr.msra.gmra.mxu1 %vm611_vm1, %v8465_v48  ;;  %v8408_v5 = vld [vmem:[#allocation3 + $0x62] sm:$0xff] }
 0x5bd   : > { %v10607_v36 = vpop.f32.mrf.mxu0  ;;  %v6804_v8 = vadd.f32 %v10573_v29, %v14137_v57  ;;  %10779 = vmatprep.mubr.msk.bf16.mxu1 %vm611_vm1, %v8466_v9  ;;  %v8467_v9 = vpack.c.bf16 %v8439_v6, %v8406_v13 }
 0x5be   : > { %v6675_v30 = vpop.f32.mrf.mxu1 }
 0x5bf   : > { %v7001_v63 = vpop.f32.mrf.mxu0  ;;  %v14283_v42 = vadd.f32 %v10607_v36, %v6804_v8  ;;  %v6802_v46 = vadd.f32 %v6675_v30, %v14142_v25  ;;  %v8468_v25 = vpack.c.bf16 %v8441_v11, %v8408_v5  ;;  %v8411_v36 = vld [vmem:[#allocation3 + $0x7a] sm:$0xff]  ;;  %v8445_v5 = vmul.f32 %v15540_v60, %v8413_v22 }
 0x5c0   : > { %v10574_v49 = vpop.f32.mrf.mxu1 }
 0x5c1   : > { %v10608_v59 = vpop.f32.mrf.mxu0  ;;  %v14287_v50 = vadd.f32 %v7001_v63, %v6802_v46  ;;  %v6805_v48 = vadd.f32 %v10574_v49, %v14146_v17  ;;  %v8443_v63 = vmul.f32 %v15539_v45, %v8411_v36  ;;  %v8415_v36 = vld [vmem:[#allocation3 + $0x9a] sm:$0xff] }
 0x5c2   : > { %v6678_v57 = vpop.f32.mrf.mxu1 }
 0x5c3   : > { %v14290_v29 = vpop.f32.mrf.mxu0  ;;  %v14292_v35 = vadd.f32 %v10608_v59, %v6805_v48  ;;  %v14295_v26 = vadd.f32 %v6678_v57, %v14150_v34  ;;  %v8410_v48 = vld [vmem:[#allocation3 + $0x72] sm:$0xff] }
 0x5c4   : > { %v10577_v24 = vpop.f32.mrf.mxu1  ;;  %10780 = vmatmul.mubr.msk.bf16.gmra.mxu1 %vm611_vm1, %v8467_v9  ;;  %v8469_v57 = vpack.c.bf16 %v8443_v63, %v8410_v48  ;;  %v8412_v9 = vld [vmem:[#allocation3 + $0x82] sm:$0xff] }
 0x5c5   : > { %v10611_v47 = vpop.f32.mrf.mxu0  ;;  %v6808_v17 = vadd.f32 %v10577_v24, %v14162_v54  ;;  %10783 = vmatprep.mubr.msk.bf16.mxu1 %vm611_vm1, %v8468_v25 }
 0x5c6   : > { %v6691_v8 = vpop.f32.mrf.mxu1 }
 0x5c7   : > { %v7017_v30 = vpop.f32.mrf.mxu0  ;;  %v14301_v6 = vadd.f32 %v10611_v47, %v6808_v17  ;;  %v6806_v34 = vadd.f32 %v6691_v8, %v14166_v23  ;;  %v8470_v23 = vpack.c.bf16 %v8445_v5, %v8412_v9  ;;  %v8417_v47 = vld [vmem:[#allocation3 + $0xaa] sm:$0xff]  ;;  %v8447_v8 = vmul.f32 %v15541_v39, %v8415_v36  ;;  %v8419_v36 = vld [vmem:[#allocation3 + $0xba] sm:$0xff] }
 0x5c8   : > { %v10578_v46 = vpop.f32.mrf.mxu1  ;;  %v8449_v63 = vmul.f32 %v15542_v62, %v8417_v47  ;;  %v8416_v62 = vld [vmem:[#allocation3 + $0xa2] sm:$0xff] }
 0x5c9   : > { %v10612_v11 = vpop.f32.mrf.mxu0  ;;  %v14305_v49 = vadd.f32 %v7017_v30, %v6806_v34  ;;  %v6809_v59 = vadd.f32 %v10578_v46, %v14169_v0  ;;  %v8845_v34 = vld [vmem:[%s14965_s15] sm:$0x3] }
 0x5ca   : > { %v6694_v54 = vpop.f32.mrf.mxu1  ;;  %10866 = vmatprep.subr.msk.bf16.mxu0 %vm4464_vm0, %v8845_v34  ;;  %v8902_v39 = vsel %vm4464_vm0, %v8845_v34, 0 }
 0x5cb   : > { %v14308_v13 = vpop.f32.mrf.mxu0  ;;  %v14310_v25 = vadd.f32 %v10612_v11, %v6809_v59  ;;  %v14313_v45 = vadd.f32 %v6694_v54, %v14171_v4  ;;  %v8414_v59 = vld [vmem:[#allocation3 + $0x92] sm:$0xff]  ;;  %10808 = vmatpush3.bf16.msra.mxu0 %v8902_v39 }
 0x5cc   : > { %v10581_v60 = vpop.f32.mrf.mxu1  ;;  %10784 = vmatmul.mubr.msk.bf16.gmra.mxu1 %vm611_vm1, %v8469_v57 }
 0x5cd   : > { %v10615_v24 = vpop.f32.mrf.mxu0  ;;  %v6812_v0 = vadd.f32 %v10581_v60, %v14175_v7  ;;  %10787 = vmatprep.mubr.msk.bf16.mxu1 %vm611_vm1, %v8470_v23  ;;  %v8472_v23 = vpack.c.bf16 %v8449_v63, %v8416_v62  ;;  %v8423_v62 = vld [vmem:[#allocation3 + $0xda] sm:$0xff] }
 0x5ce   : > { %v6707_v22 = vpop.f32.mrf.mxu1 }
 0x5cf   : > { %v7033_v17 = vpop.f32.mrf.mxu0  ;;  %v14319_v30 = vadd.f32 %v10615_v24, %v6812_v0  ;;  %v6810_v4 = vadd.f32 %v6707_v22, %v14182_v20  ;;  %v8471_v20 = vpack.c.bf16 %v8447_v8, %v8414_v59 }
 0x5d0   : > { %v10582_v5 = vpop.f32.mrf.mxu1 }
 0x5d1   : > { %v10616_v46 = vpop.f32.mrf.mxu0  ;;  %v14327_v7 = vadd.f32 %v7033_v17, %v6810_v4  ;;  %v6813_v11 = vadd.f32 %v10582_v5, %v14184_v61  ;;  %v8421_v61 = vld [vmem:[#allocation3 + $0xca] sm:$0xff]  ;;  %v8451_v17 = vmul.f32 %v15543_v33, %v8419_v36 }
 0x5d2   : > { %v6710_v48 = vpop.f32.mrf.mxu1  ;;  %v8453_v4 = vmul.f32 %v15544_v51, %v8421_v61  ;;  %v8425_v36 = vld [vmem:[#allocation3 + $0xea] sm:$0xff]  ;;  %v8455_v61 = vmul.f32 %v15545_v58, %v8423_v62  ;;  %v8424_v58 = vld [vmem:[#allocation3 + $0xe2] sm:$0xff] }
 0x5d3   : > { %v14331_v54 = vpop.f32.mrf.mxu0  ;;  %v14333_v57 = vadd.f32 %v10616_v46, %v6813_v11  ;;  %v14336_v9 = vadd.f32 %v6710_v48, %v14186_v19  ;;  %v8418_v11 = vld [vmem:[#allocation3 + $0xb2] sm:$0xff]  ;;  %v8420_v48 = vld [vmem:[#allocation3 + $0xc2] sm:$0xff] }
 0x5d4   : > { %v10585_v60 = vpop.f32.mrf.mxu1  ;;  %10788 = vmatmul.mubr.msk.bf16.gmra.mxu1 %vm611_vm1, %v8471_v20  ;;  %v8473_v39 = vpack.c.bf16 %v8451_v17, %v8418_v11 }
 0x5d5   : > { %v10619_v24 = vpop.f32.mrf.mxu0  ;;  %v6816_v47 = vadd.f32 %v10585_v60, %v14193_v43  ;;  %10791 = vmatprep.mubr.msk.bf16.mxu1 %vm611_vm1, %v8472_v23 }
 0x5d6   : > { %v6723_v0 = vpop.f32.mrf.mxu1 }
 0x5d7   : > { %v7049_v22 = vpop.f32.mrf.mxu0  ;;  %v14342_v8 = vadd.f32 %v10619_v24, %v6816_v47  ;;  %v6814_v19 = vadd.f32 %v6723_v0, %v14200_v3  ;;  %v8474_v3 = vpack.c.bf16 %v8453_v4, %v8420_v48  ;;  %v8457_v0 = vmul.f32 %v15546_v38, %v8425_v36  ;;  %v8427_v48 = vld [vmem:[#allocation3 + $0xfa] sm:$0xff] }
 0x5d8   : > { %v10586_v63 = vpop.f32.mrf.mxu1 }
 0x5d9   : > { %v10620_v34 = vpop.f32.mrf.mxu0  ;;  %v14346_v5 = vadd.f32 %v7049_v22, %v6814_v19  ;;  %v6817_v46 = vadd.f32 %v10586_v63, %v14202_v41  ;;  %v6449_v19 = vadd.f32 %v14227_v55, %v14225_v10  ;;  %v8422_v63 = vld [vmem:[#allocation3 + $0xd2] sm:$0xff] }
 0x5da   : > { %v6726_v43 = vpop.f32.mrf.mxu1  ;;  %v8475_v11 = vpack.c.bf16 %v8455_v61, %v8422_v63 }
 0x5db   : > { %v14349_v59 = vpop.f32.mrf.mxu0  ;;  %v14351_v20 = vadd.f32 %v10620_v34, %v6817_v46  ;;  %v14354_v33 = vadd.f32 %v6726_v43, %v14204_v31 }
 0x5dc   : > { %v10589_v51 = vpop.f32.mrf.mxu1  ;;  %10792 = vmatmul.mubr.msk.bf16.gmra.mxu1 %vm611_vm1, %v8473_v39 }
 0x5dd   : > { %v10623_v23 = vpop.f32.mrf.mxu0  ;;  %v6820_v41 = vadd.f32 %v10589_v51, %v14211_v18  ;;  %10795 = vmatprep.mubr.msk.bf16.mxu1 %vm611_vm1, %v8474_v3  ;;  %v8459_v51 = vmul.f32 %v15547_v14, %v8427_v48 }
 0x5de   : > { %v6739_v60 = vpop.f32.mrf.mxu1 }
 0x5df   : > { %v7065_v24 = vpop.f32.mrf.mxu0  ;;  %v14360_v47 = vadd.f32 %v10623_v23, %v6820_v41  ;;  %v6818_v31 = vadd.f32 %v6739_v60, %v14219_v15  ;;  %v8476_v15 = vpack.c.bf16 %v8457_v0, %v8424_v58  ;;  %v8431_v0 = vld [vmem:[#allocation3 + $0x11a] sm:$0xff]  ;;  %v8430_v58 = vld [vmem:[#allocation3 + $0x112] sm:$0xff] }
 0x5e0   : > { %v10590_v22 = vpop.f32.mrf.mxu1 }
 0x5e1   : > { %v10624_v17 = vpop.f32.mrf.mxu0  ;;  %v14366_v4 = vadd.f32 %v7065_v24, %v6818_v31  ;;  %v6821_v18 = vadd.f32 %v10590_v22, %v14223_v2  ;;  %v6465_v24 = vadd.f32 %v14242_v37, %v14240_v56  ;;  %v15594_v37 = vld [vmem:[#allocation61_spill] sm:$0xff] }
 0x5e2   : > { %v6742_v34 = vpop.f32.mrf.mxu1 }
 0x5e3   : > { %v7068_v46 = vpop.f32.mrf.mxu0  ;;  %v14369_v43 = vadd.f32 %v10624_v17, %v6821_v18  ;;  %v6819_v39 = vadd.f32 %v6742_v34, %v6449_v19 }
 0x5e4   : > { %v10593_v38 = vpop.f32.mrf.mxu1  ;;  %10796 = vmatmul.mubr.msk.bf16.gmra.mxu1 %vm611_vm1, %v8475_v11 }
 0x5e5   : > { %v10627_v3 = vpop.f32.mrf.mxu0  ;;  %v14372_v62 = vadd.f32 %v7068_v46, %v6819_v39  ;;  %v6824_v10 = vadd.f32 %v10593_v38, %v14231_v27  ;;  %10799 = vmatprep.mubr.msk.bf16.mxu1 %vm611_vm1, %v8476_v15  ;;  %v8426_v27 = vld [vmem:[#allocation3 + $0xf2] sm:$0xff] }
 0x5e6   : > { %v6755_v2 = vpop.f32.mrf.mxu1  ;;  %v8477_v19 = vpack.c.bf16 %v8459_v51, %v8426_v27  ;;  %v15597_v27 = vld [vmem:[#allocation87_spill] sm:$0xff] }
 0x5e7   : > { %v7081_v55 = vpop.f32.mrf.mxu0  ;;  %v14377_v23 = vadd.f32 %v10627_v3, %v6824_v10  ;;  %v6822_v36 = vadd.f32 %v6755_v2, %v14235_v1  ;;  %v8463_v1 = vmul.f32 %v15548_v40, %v8431_v0  ;;  %v6481_v40 = vadd.f32 %v14262_v21, %v14260_v12 }
 0x5e8   : > { %v10594_v41 = vpop.f32.mrf.mxu1 }
 0x5e9   : > { %v10628_v60 = vpop.f32.mrf.mxu0  ;;  %v14382_v61 = vadd.f32 %v7081_v55, %v6822_v36  ;;  %v6825_v31 = vadd.f32 %v10594_v41, %v14238_v28  ;;  %v15595_v28 = vld [vmem:[#allocation86_spill] sm:$0xff]  ;;  %v8479_v2 = vpack.c.bf16 %v8463_v1, %v8430_v58  ;;  %v15599_v1 = vld [vmem:[#allocation15_spill] sm:$0xff] }
 0x5ea   : > { %v6758_v22 = vpop.f32.mrf.mxu1  ;;  %v15596_v11 = vpack.c.bf16 %v15594_v37, %v15595_v28 }
 0x5eb   : > { %v7084_v17 = vpop.f32.mrf.mxu0  ;;  %v14385_v18 = vadd.f32 %v10628_v60, %v6825_v31  ;;  %v6823_v14 = vadd.f32 %v6758_v22, %v6465_v24 }
 0x5ec   : > { %v10597_v63 = vpop.f32.mrf.mxu1  ;;  %10800 = vmatmul.mubr.msk.bf16.gmra.mxu1 %vm611_vm1, %v8477_v19 }
 0x5ed   : > { %v10631_v34 = vpop.f32.mrf.mxu0  ;;  %v14389_v46 = vadd.f32 %v7084_v17, %v6823_v14  ;;  %v6828_v56 = vadd.f32 %v10597_v63, %v14246_v53  ;;  %10803 = vmatprep.mubr.msk.bf16.mxu1 %vm611_vm1, %v15596_v11  ;;  %v15598_v14 = vld [vmem:[#allocation90_spill] sm:$0xff] }
 0x5ee   : > { %v6771_v39 = vpop.f32.mrf.mxu1  ;;  %v6497_v63 = vadd.f32 %v15598_v14, %v14275_v44 }
 0x5ef   : > { %v7097_v15 = vpop.f32.mrf.mxu0  ;;  %v14396_v48 = vadd.f32 %v10631_v34, %v6828_v56  ;;  %v6826_v38 = vadd.f32 %v6771_v39, %v14255_v16 }
 0x5f0   : > { %v10598_v3 = vpop.f32.mrf.mxu1 }
 0x5f1   : > { %v10632_v10 = vpop.f32.mrf.mxu0  ;;  %v14401_v55 = vadd.f32 %v7097_v15, %v6826_v38  ;;  %v6829_v53 = vadd.f32 %v10598_v3, %v14258_v32 }
 0x5f2   : > { %v6774_v51 = vpop.f32.mrf.mxu1 }
 0x5f3   : > { %v7100_v36 = vpop.f32.mrf.mxu0  ;;  %v14404_v41 = vadd.f32 %v10632_v10, %v6829_v53  ;;  %v6827_v60 = vadd.f32 %v6774_v51, %v6481_v40  ;;  %v7129_v51 = vadd.f32 %v14290_v29, %v14295_v26 }
 0x5f4   : > { %v10601_v24 = vpop.f32.mrf.mxu1  ;;  %10804 = vmatmul.mubr.msk.bf16.gmra.mxu1 %vm611_vm1, %v8479_v2 }
 0x5f5   : > { %v10635_v31 = vpop.f32.mrf.mxu0  ;;  %v14407_v16 = vadd.f32 %v7100_v36, %v6827_v60  ;;  %v6832_v0 = vadd.f32 %v10601_v24, %v15597_v27 }
 0x5f6   : > { %v6787_v22 = vpop.f32.mrf.mxu1 }
 0x5f7   : > { %v7113_v17 = vpop.f32.mrf.mxu0  ;;  %v14410_v12 = vadd.f32 %v10635_v31, %v6832_v0  ;;  %v6830_v21 = vadd.f32 %v6787_v22, %v14270_v52 }
 0x5f8   : > { %v10602_v32 = vpop.f32.mrf.mxu1 }
 0x5f9   : > { %v10636_v19 = vpop.f32.mrf.mxu0  ;;  %v14415_v34 = vadd.f32 %v7113_v17, %v6830_v21  ;;  %v6833_v56 = vadd.f32 %v10602_v32, %v15599_v1 }
 0x5fa   : > { %v6790_v37 = vpop.f32.mrf.mxu1 }
 0x5fb   : > { %v7116_v28 = vpop.f32.mrf.mxu0  ;;  %v14418_v11 = vadd.f32 %v10636_v19, %v6833_v56  ;;  %v6831_v58 = vadd.f32 %v6790_v37, %v6497_v63 }
 0x5fc   : > { %v10641_v39 = vpop.f32.mrf.mxu1 }
 0x5fd   : > { %v10675_v15 = vpop.f32.mrf.mxu0  ;;  %v14420_v38 = vadd.f32 %v7116_v28, %v6831_v58  ;;  %v7424_v52 = vadd.f32 %v10641_v39, %v14283_v42 }
 0x5fe   : > { %v7295_v3 = vpop.f32.mrf.mxu1 }
 0x5ff   : > { %v7621_v10 = vpop.f32.mrf.mxu0  ;;  %v14423_v2 = vadd.f32 %v10675_v15, %v7424_v52  ;;  %v7422_v44 = vadd.f32 %v7295_v3, %v14287_v50 }
 0x600   : > { %v10642_v40 = vpop.f32.mrf.mxu1 }
 0x601   : > { %v14426_v53 = vpop.f32.mrf.mxu0  ;;  %v14430_v36 = vadd.f32 %v7621_v10, %v7422_v44  ;;  %v14433_v60 = vadd.f32 %v10642_v40, %v14292_v35  ;;  %v7133_v35 = vadd.f32 %v14308_v13, %v14313_v45 }
 0x602   : > { %v7298_v24 = vpop.f32.mrf.mxu1 }
 0x603   : > { %v14435_v31 = vpop.f32.mrf.mxu0  ;;  %v14437_v42 = vadd.f32 %v7298_v24, %v7129_v51 }
 0x604   : > { %v10645_v27 = vpop.f32.mrf.mxu1 }
 0x605   : > { %v10679_v0 = vpop.f32.mrf.mxu0  ;;  %v7428_v50 = vadd.f32 %v10645_v27, %v14301_v6 }
 0x606   : > { %v7311_v22 = vpop.f32.mrf.mxu1 }
 0x607   : > { %v7637_v17 = vpop.f32.mrf.mxu0  ;;  %v14440_v21 = vadd.f32 %v10679_v0, %v7428_v50  ;;  %v7426_v29 = vadd.f32 %v7311_v22, %v14305_v49 }
 0x608   : > { %v10646_v26 = vpop.f32.mrf.mxu1 }
 0x609   : > { %v14443_v32 = vpop.f32.mrf.mxu0  ;;  %v14447_v19 = vadd.f32 %v7637_v17, %v7426_v29  ;;  %v14450_v14 = vadd.f32 %v10646_v26, %v14310_v25  ;;  %v7137_v25 = vadd.f32 %v14331_v54, %v14336_v9 }
 0x60a   : > { %v7314_v63 = vpop.f32.mrf.mxu1 }
 0x60b   : > { %v14452_v1 = vpop.f32.mrf.mxu0  ;;  %v14454_v6 = vadd.f32 %v7314_v63, %v7133_v35 }
 0x60c   : > { %v10649_v56 = vpop.f32.mrf.mxu1 }
 0x60d   : > { %v10683_v37 = vpop.f32.mrf.mxu0  ;;  %v7432_v49 = vadd.f32 %v10649_v56, %v14319_v30 }
 0x60e   : > { %v7327_v28 = vpop.f32.mrf.mxu1 }
 0x60f   : > { %v7653_v58 = vpop.f32.mrf.mxu0  ;;  %v14457_v39 = vadd.f32 %v10683_v37, %v7432_v49  ;;  %v7430_v13 = vadd.f32 %v7327_v28, %v14327_v7 }
 0x610   : > { %v10650_v45 = vpop.f32.mrf.mxu1 }
 0x611   : > { %v10684_v15 = vpop.f32.mrf.mxu0  ;;  %v14462_v52 = vadd.f32 %v7653_v58, %v7430_v13  ;;  %v7433_v3 = vadd.f32 %v10650_v45, %v14333_v57  ;;  %v7141_v57 = vadd.f32 %v14349_v59, %v14354_v33 }
 0x612   : > { %v7330_v10 = vpop.f32.mrf.mxu1 }
 0x613   : > { %v14465_v44 = vpop.f32.mrf.mxu0  ;;  %v14467_v40 = vadd.f32 %v10684_v15, %v7433_v3  ;;  %v14469_v30 = vadd.f32 %v7330_v10, %v7137_v25 }
 0x614   : > { %v10653_v51 = vpop.f32.mrf.mxu1 }
 0x615   : > { %v10687_v24 = vpop.f32.mrf.mxu0  ;;  %v7436_v7 = vadd.f32 %v10653_v51, %v14342_v8 }
 0x616   : > { %v7343_v27 = vpop.f32.mrf.mxu1 }
 0x617   : > { %v7669_v0 = vpop.f32.mrf.mxu0  ;;  %v14472_v50 = vadd.f32 %v10687_v24, %v7436_v7  ;;  %v7434_v54 = vadd.f32 %v7343_v27, %v14346_v5 }
 0x618   : > { %v10654_v9 = vpop.f32.mrf.mxu1 }
 0x619   : > { %v10688_v22 = vpop.f32.mrf.mxu0  ;;  %v14477_v17 = vadd.f32 %v7669_v0, %v7434_v54  ;;  %v7437_v29 = vadd.f32 %v10654_v9, %v14351_v20 }
 0x61a   : > { %v7346_v26 = vpop.f32.mrf.mxu1 }
 0x61b   : > { %v14480_v35 = vpop.f32.mrf.mxu0  ;;  %v14482_v63 = vadd.f32 %v10688_v22, %v7437_v29  ;;  %v14484_v8 = vadd.f32 %v7346_v26, %v7141_v57 }
 0x61c   : > { %v10657_v56 = vpop.f32.mrf.mxu1 }
 0x61d   : > { %v10691_v37 = vpop.f32.mrf.mxu0  ;;  %v7440_v5 = vadd.f32 %v10657_v56, %v14360_v47 }
 0x61e   : > { %v7359_v49 = vpop.f32.mrf.mxu1 }
 0x61f   : > { %v7685_v28 = vpop.f32.mrf.mxu0  ;;  %v14487_v58 = vadd.f32 %v10691_v37, %v7440_v5  ;;  %v7438_v59 = vadd.f32 %v7359_v49, %v14366_v4 }
 0x620   : > { %v10658_v33 = vpop.f32.mrf.mxu1 }
 0x621   : > { %v10692_v13 = vpop.f32.mrf.mxu0  ;;  %v14490_v20 = vadd.f32 %v7685_v28, %v7438_v59  ;;  %v7441_v45 = vadd.f32 %v10658_v33, %v14369_v43 }
 0x622   : > { %v7362_v15 = vpop.f32.mrf.mxu1 }
 0x623   : > { %v14493_v25 = vpop.f32.mrf.mxu0  ;;  %v14495_v3 = vadd.f32 %v10692_v13, %v7441_v45  ;;  %v14498_v10 = vadd.f32 %v7362_v15, %v14372_v62 }
 0x624   : > { %v10661_v47 = vpop.f32.mrf.mxu1 }
 0x625   : > { %v10695_v51 = vpop.f32.mrf.mxu0  ;;  %v7444_v24 = vadd.f32 %v10661_v47, %v14377_v23 }
 0x626   : > { %v7375_v7 = vpop.f32.mrf.mxu1 }
 0x627   : > { %v7701_v4 = vpop.f32.mrf.mxu0  ;;  %v14501_v27 = vadd.f32 %v10695_v51, %v7444_v24  ;;  %v7442_v0 = vadd.f32 %v7375_v7, %v14382_v61 }
 0x628   : > { %v10662_v54 = vpop.f32.mrf.mxu1 }
 0x629   : > { %v10696_v43 = vpop.f32.mrf.mxu0  ;;  %v14504_v9 = vadd.f32 %v7701_v4, %v7442_v0  ;;  %v7445_v22 = vadd.f32 %v10662_v54, %v14385_v18 }
 0x62a   : > { %v7378_v57 = vpop.f32.mrf.mxu1 }
 0x62b   : > { %v14507_v29 = vpop.f32.mrf.mxu0  ;;  %v14509_v62 = vadd.f32 %v10696_v43, %v7445_v22  ;;  %v14512_v26 = vadd.f32 %v7378_v57, %v14389_v46 }
 0x62c   : > { %15600 = vst [vmem:[#allocation18_spill] sm:$0xff] %v14507_v29  ;;  %v10665_v23 = vpop.f32.mrf.mxu1 }
 0x62d   : > { %15601 = vst [vmem:[#allocation22_spill] sm:$0xff] %v14512_v26  ;;  %v10699_v56 = vpop.f32.mrf.mxu0  ;;  %v7448_v37 = vadd.f32 %v10665_v23, %v14396_v48 }
 0x62e   : > { %v7391_v5 = vpop.f32.mrf.mxu1 }
 0x62f   : > { %v7717_v61 = vpop.f32.mrf.mxu0  ;;  %v14515_v49 = vadd.f32 %v10699_v56, %v7448_v37  ;;  %v7446_v28 = vadd.f32 %v7391_v5, %v14401_v55 }
 0x630   : > { %v10666_v59 = vpop.f32.mrf.mxu1 }
 0x631   : > { %v10700_v18 = vpop.f32.mrf.mxu0  ;;  %v14518_v33 = vadd.f32 %v7717_v61, %v7446_v28  ;;  %v7449_v13 = vadd.f32 %v10666_v59, %v14404_v41 }
 0x632   : > { %v7394_v45 = vpop.f32.mrf.mxu1 }
 0x633   : > { %v14521_v15 = vpop.f32.mrf.mxu0  ;;  %v14523_v46 = vadd.f32 %v10700_v18, %v7449_v13  ;;  %v14526_v47 = vadd.f32 %v7394_v45, %v14407_v16 }
 0x634   : > { %15602 = vst [vmem:[#allocation84_spill] sm:$0xff] %v14521_v15  ;;  %v10669_v48 = vpop.f32.mrf.mxu1 }
 0x635   : > { %15603 = vst [vmem:[#allocation25_spill] sm:$0xff] %v14526_v47  ;;  %v10703_v51 = vpop.f32.mrf.mxu0  ;;  %v7452_v24 = vadd.f32 %v10669_v48, %v14410_v12 }
 0x636   : > { %v7407_v7 = vpop.f32.mrf.mxu1 }
 0x637   : > { %v7733_v55 = vpop.f32.mrf.mxu0  ;;  %v14529_v4 = vadd.f32 %v10703_v51, %v7452_v24  ;;  %v7450_v0 = vadd.f32 %v7407_v7, %v14415_v34 }
 0x638   : > { %v10670_v54 = vpop.f32.mrf.mxu1 }
 0x639   : > { %v10704_v41 = vpop.f32.mrf.mxu0  ;;  %v14532_v43 = vadd.f32 %v7733_v55, %v7450_v0  ;;  %v7453_v22 = vadd.f32 %v10670_v54, %v14418_v11 }
 0x63a   : > { %v7410_v57 = vpop.f32.mrf.mxu1 }
 0x63b   : > { %v14535_v23 = vpop.f32.mrf.mxu0  ;;  %v14537_v16 = vadd.f32 %v10704_v41, %v7453_v22  ;;  %v14540_v56 = vadd.f32 %v7410_v57, %v14420_v38 }
 0x63c   : > { %15604 = vst [vmem:[#allocation29_spill] sm:$0xff] %v14535_v23  ;;  %v10709_v12 = vpop.f32.mrf.mxu1 }
 0x63d   : > { %15605 = vst [vmem:[#allocation33_spill] sm:$0xff] %v14540_v56  ;;  %v14542_v37 = vpop.f32.mrf.mxu0  ;;  %v14545_v5 = vadd.f32 %v10709_v12, %v14423_v2 }
 0x63e   : > { %v7947_v34 = vpop.f32.mrf.mxu1 }
 0x63f   : > { %v14548_v61 = vadd.f32 %v7947_v34, %v14430_v36  ;;  %v14550_v28 = vpop.f32.mrf.mxu0 }
 0x640   : > { %v14552_v11 = vpop.f32.mrf.mxu1 }
 0x641   : > { %v14556_v18 = vpop.f32.mrf.mxu0 }
 0x642   : > { %v14554_v59 = vpop.f32.mrf.mxu1 }
 0x643   : > { %v14561_v48 = vpop.f32.mrf.mxu0 }
 0x644   : > { %v10713_v38 = vpop.f32.mrf.mxu1 }
 0x645   : > { %v14559_v13 = vadd.f32 %v10713_v38, %v14440_v21  ;;  %v14570_v24 = vpop.f32.mrf.mxu0 }
 0x646   : > { %v7963_v45 = vpop.f32.mrf.mxu1 }
 0x647   : > { %v14564_v2 = vadd.f32 %v7963_v45, %v14447_v19  ;;  %v14575_v54 = vpop.f32.mrf.mxu0 }
 0x648   : > { %v14566_v36 = vpop.f32.mrf.mxu1 }
 0x649   : > { %v14585_v57 = vpop.f32.mrf.mxu0 }
 0x64a   : > { %v14568_v51 = vpop.f32.mrf.mxu1 }
 0x64b   : > { %v14590_v38 = vpop.f32.mrf.mxu0 }
 0x64c   : > { %v10717_v7 = vpop.f32.mrf.mxu1 }
 0x64d   : > { %v14573_v55 = vadd.f32 %v10717_v7, %v14457_v39 }
 0x64e   : > { %v7979_v0 = vpop.f32.mrf.mxu1 }
 0x64f   : > { %v14578_v21 = vadd.f32 %v7979_v0, %v14462_v52  ;;  %v14600_v0 = vpop.f32.mrf.mxu0 }
 0x650   : > { %v10718_v41 = vpop.f32.mrf.mxu1 }
 0x651   : > { %v14581_v19 = vadd.f32 %v10718_v41, %v14467_v40 }
 0x652   : > { %v14583_v22 = vpop.f32.mrf.mxu1 }
 0x654   : > { %v10721_v12 = vpop.f32.mrf.mxu1 }
 0x655   : > { %v14588_v34 = vadd.f32 %v10721_v12, %v14472_v50  ;;  %v14605_v12 = vpop.f32.mrf.mxu0 }
 0x656   : > { %v7995_v39 = vpop.f32.mrf.mxu1 }
 0x657   : > { %v14593_v45 = vadd.f32 %v7995_v39, %v14477_v17 }
 0x658   : > { %v10722_v52 = vpop.f32.mrf.mxu1 }
 0x659   : > { %v14596_v7 = vadd.f32 %v10722_v52, %v14482_v63  ;;  %v14615_v52 = vpop.f32.mrf.mxu0 }
 0x65a   : > { %v14598_v40 = vpop.f32.mrf.mxu1 }
 0x65c   : > { %v10725_v41 = vpop.f32.mrf.mxu1 }
 0x65d   : > { %v14603_v23 = vadd.f32 %v10725_v41, %v14487_v58  ;;  %v14620_v41 = vpop.f32.mrf.mxu0 }
 0x65e   : > { %v8011_v50 = vpop.f32.mrf.mxu1 }
 0x65f   : > { %v14608_v56 = vadd.f32 %v8011_v50, %v14490_v20 }
 0x660   : > { %v10726_v17 = vpop.f32.mrf.mxu1 }
 0x661   : > { %v14611_v39 = vadd.f32 %v10726_v17, %v14495_v3  ;;  %v14630_v17 = vpop.f32.mrf.mxu0 }
 0x662   : > { %v14613_v63 = vpop.f32.mrf.mxu1 }
 0x663   : > { %15606 = vst [vmem:[#allocation36_spill] sm:$0xff] %v14611_v39 }
 0x664   : > { %v10729_v15 = vpop.f32.mrf.mxu1 }
 0x665   : > { %v14618_v47 = vadd.f32 %v10729_v15, %v14501_v27  ;;  %v14635_v15 = vpop.f32.mrf.mxu0 }
 0x666   : > { %v8027_v58 = vpop.f32.mrf.mxu1 }
 0x667   : > { %15607 = vst [vmem:[#allocation40_spill] sm:$0xff] %v14618_v47  ;;  %v14623_v29 = vadd.f32 %v8027_v58, %v14504_v9 }
 0x668   : > { %v10730_v20 = vpop.f32.mrf.mxu1 }
 0x669   : > { %v14626_v50 = vadd.f32 %v10730_v20, %v14509_v62  ;;  %v14645_v20 = vpop.f32.mrf.mxu0 }
 0x66a   : > { %v14628_v3 = vpop.f32.mrf.mxu1 }
 0x66b   : > { %15608 = vst [vmem:[#allocation50_spill] sm:$0xff] %v14626_v50  ;;  %15609 = vst [vmem:[#allocation54_spill] sm:$0xff] %v14628_v3 }
 0x66c   : > { %v10733_v26 = vpop.f32.mrf.mxu1 }
 0x66d   : > { %v14633_v39 = vadd.f32 %v10733_v26, %v14515_v49  ;;  %v14650_v49 = vpop.f32.mrf.mxu0 }
 0x66e   : > { %v8043_v27 = vpop.f32.mrf.mxu1 }
 0x66f   : > { %15610 = vst [vmem:[#allocation59_spill] sm:$0xff] %v14633_v39  ;;  %v14638_v47 = vadd.f32 %v8043_v27, %v14518_v33  ;;  %v7751_v27 = vadd.f32 %v14426_v53, %v14433_v60  ;;  %v14672_v53 = vld [vmem:[%s14964_s14] ss:$0 sm:$0xff]  ;;  %v8368_v60 = vadd.f32 %v14550_v28, %v14548_v61  ;;  %v7755_v61 = vadd.f32 %v14443_v32, %v14450_v14 }
 0x670   : > { %v10734_v9 = vpop.f32.mrf.mxu1  ;;  %v7753_v28 = vadd.f32 %v14452_v1, %v14454_v6 }
 0x671   : > { %v14641_v58 = vadd.f32 %v10734_v9, %v14523_v46 }
 0x672   : > { %v14643_v62 = vpop.f32.mrf.mxu1  ;;  %v8079_v32 = vadd.f32 %v14568_v51, %v7753_v28  ;;  %v15618_v28 = vld [vmem:[#allocation16_spill] sm:$0xff] }
 0x673   : > { %15611 = vst [vmem:[#allocation63_spill] sm:$0xff] %v14641_v58  ;;  %v7749_v58 = vadd.f32 %v14435_v31, %v14437_v42 }
 0x674   : > { %v10737_v50 = vpop.f32.mrf.mxu1 }
 0x675   : > { %v14648_v3 = vadd.f32 %v10737_v50, %v14529_v4  ;;  %v8370_v4 = vadd.f32 %v14542_v37, %v14545_v5  ;;  %v8077_v50 = vadd.f32 %v14552_v11, %v7751_v27 }
 0x676   : > { %v8059_v26 = vpop.f32.mrf.mxu1 }
 0x677   : > { %15612 = vst [vmem:[#allocation67_spill] sm:$0xff] %v14648_v3  ;;  %v14653_v39 = vadd.f32 %v8059_v26, %v14532_v43  ;;  %v14667_v3 = vpop.f32.mrf.mxu0  ;;  %v8371_v42 = vadd.f32 %v14556_v18, %v8077_v50  ;;  %v8374_v18 = vadd.f32 %v14570_v24, %v14559_v13 }
 0x678   : > { %v10738_v33 = vpop.f32.mrf.mxu1 }
 0x679   : > { %v14658_v46 = vadd.f32 %v10738_v33, %v14537_v16  ;;  %v8075_v16 = vadd.f32 %v14554_v59, %v7749_v58  ;;  %v14678_v37 = vpop.f32.mrf.mxu0 }
 0x67a   : > { %v14660_v9 = vpop.f32.mrf.mxu1 }
 0x67b   : > { %15613 = vst [vmem:[#allocation72_spill] sm:$0xff] %v14658_v46  ;;  %15614 = vst [vmem:[#allocation89_spill] sm:$0xff] %v14660_v9  ;;  %v8369_v27 = vadd.f32 %v14561_v48, %v8075_v16  ;;  %v14689_v58 = vpop.f32.mrf.mxu0  ;;  %v8372_v48 = vadd.f32 %v14575_v54, %v14564_v2 }
 0x67c   : > { %v10777_v43 = vpop.f32.mrf.mxu1 }
 0x67d   : > { %v8696_v26 = vadd.f32 %v10777_v43, %v8370_v4  ;;  %v14697_v24 = vpop.f32.mrf.mxu0 }
 0x67e   : > { %v8567_v31 = vpop.f32.mrf.mxu1 }
 0x67f   : > { %v8735_v5 = vadd.f32 %v14672_v53, %v8696_v26  ;;  %v8694_v11 = vadd.f32 %v8567_v31, %v8368_v60  ;;  %v8081_v60 = vadd.f32 %v14566_v36, %v7755_v61  ;;  %v15615_v31 = vld [vmem:[#allocation10_spill] sm:$0xff]  ;;  %v8373_v36 = vadd.f32 %v14590_v38, %v8079_v32 }
 0x680   : > { %v10778_v33 = vpop.f32.mrf.mxu1  ;;  %v7757_v38 = vadd.f32 %v14465_v44, %v14469_v30  ;;  %v8379_v44 = vadd.f32 %v14615_v52, %v14581_v19 }
 0x681   : > { %v8733_v46 = vadd.f32 %v14672_v53, %v8694_v11  ;;  %v8697_v9 = vadd.f32 %v10778_v33, %v8371_v42  ;;  %v8767_v4 = vmax.f32 %v8735_v5, 0.0  ;;  %v8375_v2 = vadd.f32 %v14585_v57, %v8081_v60 }
 0x682   : > { %v8570_v59 = vpop.f32.mrf.mxu1 }
 0x683   : > { %v8736_v50 = vadd.f32 %v14672_v53, %v8697_v9  ;;  %v8695_v43 = vadd.f32 %v8570_v59, %v8369_v27  ;;  %v8765_v16 = vmax.f32 %v8733_v46, 0.0  ;;  %v8799_v42 = vadd.f32 %v8767_v4, %v15615_v31  ;;  %v15616_v9 = vld [vmem:[#allocation14_spill] sm:$0xff]  ;;  %v15617_v46 = vld [vmem:[#allocation11_spill] sm:$0xff] }
 0x684   : > { %v10781_v14 = vpop.f32.mrf.mxu1 }
 0x685   : > { %v8768_v1 = vmax.f32 %v8736_v50, 0.0  ;;  %v8734_v6 = vadd.f32 %v14672_v53, %v8695_v43  ;;  %v8700_v26 = vadd.f32 %v10781_v14, %v8374_v18  ;;  %v8797_v27 = vadd.f32 %v8765_v16, %v15617_v46 }
 0x686   : > { %v8583_v13 = vpop.f32.mrf.mxu1  ;;  %v8378_v43 = vadd.f32 %v14600_v0, %v14573_v55  ;;  %v8083_v55 = vadd.f32 %v14583_v22, %v7757_v38 }
 0x687   : > { %v8800_v5 = vadd.f32 %v8768_v1, %v15616_v9  ;;  %v8766_v11 = vmax.f32 %v8734_v6, 0.0  ;;  %v8698_v33 = vadd.f32 %v8583_v13, %v8372_v48  ;;  %v8739_v51 = vadd.f32 %v14672_v53, %v8700_v26  ;;  %v14709_v48 = vpop.f32.mrf.mxu0  ;;  %v15619_v9 = vld [vmem:[#allocation73_spill] sm:$0xff] }
 0x688   : > { %v10782_v54 = vpop.f32.mrf.mxu1  ;;  %v8376_v1 = vadd.f32 %v14605_v12, %v14578_v21  ;;  %v8377_v19 = vadd.f32 %v14620_v41, %v8083_v55 }
 0x689   : > { %v8830_v61 = vpack.c.bf16 %v8800_v5, %v8799_v42  ;;  %v8798_v59 = vadd.f32 %v8766_v11, %v15618_v28  ;;  %v8737_v18 = vadd.f32 %v14672_v53, %v8698_v33  ;;  %v8701_v50 = vadd.f32 %v10782_v54, %v8375_v2  ;;  %v14722_v30 = vpop.f32.mrf.mxu0  ;;  %v15620_v11 = vld [vmem:[#allocation26_spill] sm:$0xff] }
 0x68a   : > { %v8586_v4 = vpop.f32.mrf.mxu1  ;;  %v8771_v32 = vmax.f32 %v8739_v51, 0.0  ;;  %v15622_v51 = vld [vmem:[#allocation75_spill] sm:$0xff] }
 0x68b   : > { %v8829_v57 = vpack.c.bf16 %v8798_v59, %v8797_v27  ;;  %v8699_v60 = vadd.f32 %v8586_v4, %v8373_v36  ;;  %v8740_v14 = vadd.f32 %v14672_v53, %v8701_v50  ;;  %v8769_v6 = vmax.f32 %v8737_v18, 0.0  ;;  %v15621_v36 = vld [vmem:[#allocation74_spill] sm:$0xff]  ;;  %v14735_v18 = vpop.f32.mrf.mxu0 }
 0x68c   : > { %v10785_v16 = vpop.f32.mrf.mxu1  ;;  %v8803_v5 = vadd.f32 %v8771_v32, %v15619_v9  ;;  %v7761_v27 = vadd.f32 %v14480_v35, %v14484_v8  ;;  %v8382_v59 = vadd.f32 %v14630_v17, %v14588_v34  ;;  %v8380_v35 = vadd.f32 %v14635_v15, %v14593_v45  ;;  %v15624_v45 = vld [vmem:[#allocation28_spill] sm:$0xff] }
 0x68d   : > { %v8738_v26 = vadd.f32 %v14672_v53, %v8699_v60  ;;  %v8704_v13 = vadd.f32 %v10785_v16, %v8378_v43  ;;  %10809 = vmatprep.mubr.msk.bf16.mxu0 %vm611_vm1, %v8829_v57  ;;  %v8772_v0 = vmax.f32 %v8740_v14, 0.0  ;;  %v8801_v22 = vadd.f32 %v8769_v6, %v15621_v36  ;;  %v14746_v16 = vpop.f32.mrf.mxu0 }
 0x68e   : > { %v8599_v31 = vpop.f32.mrf.mxu1  ;;  %10810 = vmatmul.mubr.msk.bf16.vlgmr.msra.gmra.mxu0 %vm611_vm1, %v8830_v61  ;;  %v8087_v8 = vadd.f32 %v14598_v40, %v7761_v27  ;;  %v8383_v34 = vadd.f32 %v14645_v20, %v14596_v7 }
 0x68f   : > { %v8770_v42 = vmax.f32 %v8738_v26, 0.0  ;;  %v8743_v21 = vadd.f32 %v14672_v53, %v8704_v13  ;;  %v8702_v12 = vadd.f32 %v8599_v31, %v8376_v1  ;;  %v8804_v33 = vadd.f32 %v8772_v0, %v15620_v11  ;;  %v15623_v1 = vld [vmem:[#allocation77_spill] sm:$0xff] }
 0x690   : > { %v10786_v2 = vpop.f32.mrf.mxu1  ;;  %v8381_v0 = vadd.f32 %v14650_v49, %v8087_v8  ;;  %v8386_v11 = vadd.f32 %v14667_v3, %v14603_v23 }
 0x691   : > { %v8802_v54 = vadd.f32 %v8770_v42, %v15622_v51  ;;  %v8705_v46 = vadd.f32 %v10786_v2, %v8379_v44  ;;  %v8832_v52 = vpack.c.bf16 %v8804_v33, %v8803_v5  ;;  %v8741_v61 = vadd.f32 %v14672_v53, %v8702_v12  ;;  %v15625_v42 = vld [vmem:[#allocation76_spill] sm:$0xff]  ;;  %v15626_v12 = vld [vmem:[#allocation78_spill] sm:$0xff]  ;;  %v14759_v33 = vpop.f32.mrf.mxu0 }
 0x692   : > { %v8602_v28 = vpop.f32.mrf.mxu1  ;;  %v8775_v4 = vmax.f32 %v8743_v21, 0.0  ;;  %v7765_v44 = vadd.f32 %v14493_v25, %v14498_v10 }
 0x693   : > { %v8831_v50 = vpack.c.bf16 %v8802_v54, %v8801_v22  ;;  %v8744_v43 = vadd.f32 %v14672_v53, %v8705_v46  ;;  %v8703_v57 = vadd.f32 %v8602_v28, %v8377_v19  ;;  %v8773_v17 = vmax.f32 %v8741_v61, 0.0  ;;  %v8337_v3 = vpop.f32.mrf.mxu0  ;;  %v15628_v28 = vld [vmem:[#allocation38_spill] sm:$0xff] }
 0x694   : > { %v10789_v60 = vpop.f32.mrf.mxu1  ;;  %v8807_v6 = vadd.f32 %v8775_v4, %v15623_v1  ;;  %v8384_v22 = vadd.f32 %v14678_v37, %v14608_v56  ;;  %v8091_v51 = vadd.f32 %v14613_v63, %v7765_v44  ;;  %v15629_v56 = vld [vmem:[#allocation36_spill] sm:$0xff] }
 0x695   : > { %v8776_v41 = vmax.f32 %v8744_v43, 0.0  ;;  %v8708_v38 = vadd.f32 %v10789_v60, %v8382_v59  ;;  %10813 = vmatprep.mubr.msk.bf16.mxu0 %vm611_vm1, %v8831_v50  ;;  %v8742_v32 = vadd.f32 %v14672_v53, %v8703_v57  ;;  %v8805_v21 = vadd.f32 %v8773_v17, %v15625_v42  ;;  %v15630_v60 = vld [vmem:[#allocation80_spill] sm:$0xff] }
 0x696   : > { %v8615_v14 = vpop.f32.mrf.mxu1  ;;  %10814 = vmatmul.mubr.msk.bf16.gmra.mxu0 %vm611_vm1, %v8832_v52  ;;  %v15627_v52 = vld [vmem:[#allocation32_spill] sm:$0xff]  ;;  %v8387_v63 = vadd.f32 %v14689_v58, %v15629_v56  ;;  %v8385_v37 = vadd.f32 %v14697_v24, %v8091_v51  ;;  %v15634_v24 = vld [vmem:[#allocation18_spill] sm:$0xff] }
 0x697   : > { %v8808_v15 = vadd.f32 %v8776_v41, %v15624_v45  ;;  %v8747_v40 = vadd.f32 %v14672_v53, %v8708_v38  ;;  %v8706_v26 = vadd.f32 %v8615_v14, %v8380_v35  ;;  %v8774_v13 = vmax.f32 %v8742_v32, 0.0  ;;  %v15631_v41 = vld [vmem:[#allocation82_spill] sm:$0xff]  ;;  %v15632_v14 = vld [vmem:[#allocation40_spill] sm:$0xff] }
 0x698   : > { %v10790_v55 = vpop.f32.mrf.mxu1  ;;  %v8390_v1 = vadd.f32 %v14709_v48, %v15632_v14  ;;  %v15635_v48 = vld [vmem:[#allocation54_spill] sm:$0xff] }
 0x699   : > { %v8834_v7 = vpack.c.bf16 %v8808_v15, %v8807_v6  ;;  %v8745_v20 = vadd.f32 %v14672_v53, %v8706_v26  ;;  %v8709_v31 = vadd.f32 %v10790_v55, %v8383_v34  ;;  %v8806_v9 = vadd.f32 %v8774_v13, %v15626_v12  ;;  %v10768_v6 = vpop.f32.mrf.mxu0  ;;  %v15633_v15 = vld [vmem:[#allocation22_spill] sm:$0xff] }
 0x69a   : > { %v8618_v5 = vpop.f32.mrf.mxu1  ;;  %v8779_v2 = vmax.f32 %v8747_v40, 0.0  ;;  %v7769_v40 = vadd.f32 %v15634_v24, %v15633_v15  ;;  %v15636_v12 = vld [vmem:[#allocation50_spill] sm:$0xff] }
 0x69b   : > { %v8748_v49 = vadd.f32 %v14672_v53, %v8709_v31  ;;  %v8707_v36 = vadd.f32 %v8618_v5, %v8381_v0  ;;  %v8833_v25 = vpack.c.bf16 %v8806_v9, %v8805_v21  ;;  %v8777_v54 = vmax.f32 %v8745_v20, 0.0  ;;  %v8340_v5 = vpop.f32.mrf.mxu0 }
 0x69c   : > { %v10793_v10 = vpop.f32.mrf.mxu1  ;;  %v8811_v61 = vadd.f32 %v8779_v2, %v15627_v52  ;;  %v8388_v0 = vadd.f32 %v14722_v30, %v14623_v29  ;;  %v8095_v44 = vadd.f32 %v15635_v48, %v7769_v40  ;;  %v8391_v9 = vadd.f32 %v14735_v18, %v15636_v12  ;;  %v15637_v29 = vld [vmem:[#allocation41_spill] sm:$0xff]  ;;  %v15642_v18 = vld [vmem:[#allocation84_spill] sm:$0xff]  ;;  %v15651_v12 = vld [vmem:[#allocation67_spill] sm:$0xff] }
 0x69d   : > { %v8780_v46 = vmax.f32 %v8748_v49, 0.0  ;;  %v8746_v27 = vadd.f32 %v14672_v53, %v8707_v36  ;;  %v8712_v19 = vadd.f32 %v10793_v10, %v8386_v11  ;;  %10817 = vmatprep.mubr.msk.bf16.mxu0 %vm611_vm1, %v8833_v25  ;;  %v8809_v35 = vadd.f32 %v8777_v54, %v15630_v60  ;;  %v15638_v36 = vld [vmem:[#allocation45_spill] sm:$0xff]  ;;  %v10771_v25 = vpop.f32.mrf.mxu0  ;;  %v15639_v10 = vld [vmem:[#allocation42_spill] sm:$0xff] }
 0x69e   : > { %v8631_v23 = vpop.f32.mrf.mxu1  ;;  %10818 = vmatmul.mubr.msk.bf16.gmra.mxu0 %vm611_vm1, %v8834_v7 }
 0x69f   : > { %v8812_v59 = vadd.f32 %v8780_v46, %v15628_v28  ;;  %v8778_v50 = vmax.f32 %v8746_v27, 0.0  ;;  %v8710_v4 = vadd.f32 %v8631_v23, %v8384_v22  ;;  %v8751_v43 = vadd.f32 %v14672_v53, %v8712_v19  ;;  %v15640_v46 = vld [vmem:[#allocation46_spill] sm:$0xff]  ;;  %v15641_v23 = vld [vmem:[#allocation25_spill] sm:$0xff] }
 0x6a0   : > { %v10794_v57 = vpop.f32.mrf.mxu1  ;;  %v7773_v52 = vadd.f32 %v15642_v18, %v15641_v23  ;;  %v15654_v18 = vld [vmem:[#allocation66_spill] sm:$0xff] }
 0x6a1   : > { %v8836_v8 = vpack.c.bf16 %v8812_v59, %v8811_v61  ;;  %v8810_v38 = vadd.f32 %v8778_v50, %v15631_v41  ;;  %v8749_v34 = vadd.f32 %v14672_v53, %v8710_v4  ;;  %v8713_v17 = vadd.f32 %v10794_v57, %v8387_v63  ;;  %v15643_v4 = vld [vmem:[#allocation59_spill] sm:$0xff]  ;;  %v8353_v41 = vpop.f32.mrf.mxu0 }
 0x6a2   : > { %v8634_v32 = vpop.f32.mrf.mxu1  ;;  %v8783_v26 = vmax.f32 %v8751_v43, 0.0  ;;  %v8389_v61 = vadd.f32 %v14746_v16, %v8095_v44  ;;  %v8394_v56 = vadd.f32 %v14759_v33, %v15643_v4  ;;  %v15650_v44 = vld [vmem:[#allocation65_spill] sm:$0xff] }
 0x6a3   : > { %v8835_v45 = vpack.c.bf16 %v8810_v38, %v8809_v35  ;;  %v8711_v58 = vadd.f32 %v8634_v32, %v8385_v37  ;;  %v8752_v13 = vadd.f32 %v14672_v53, %v8713_v17  ;;  %v8781_v7 = vmax.f32 %v8749_v34, 0.0  ;;  %v15644_v34 = vld [vmem:[#allocation63_spill] sm:$0xff] }
 0x6a4   : > { %v10797_v55 = vpop.f32.mrf.mxu1  ;;  %v8815_v30 = vadd.f32 %v8783_v26, %v15637_v29  ;;  %v8392_v35 = vadd.f32 %v8337_v3, %v14638_v47  ;;  %v8395_v17 = vadd.f32 %v10768_v6, %v15644_v34  ;;  %v10772_v26 = vpop.f32.mrf.mxu0  ;;  %v15652_v29 = vld [vmem:[#allocation89_spill] sm:$0xff] }
 0x6a5   : > { %v8750_v20 = vadd.f32 %v14672_v53, %v8711_v58  ;;  %v8716_v31 = vadd.f32 %v10797_v55, %v8390_v1  ;;  %10821 = vmatprep.mubr.msk.bf16.mxu0 %vm611_vm1, %v8835_v45  ;;  %v8784_v42 = vmax.f32 %v8752_v13, 0.0  ;;  %v8813_v54 = vadd.f32 %v8781_v7, %v15639_v10  ;;  %v15645_v1 = vld [vmem:[#allocation47_spill] sm:$0xff]  ;;  %v15646_v58 = vld [vmem:[#allocation49_spill] sm:$0xff] }
 0x6a6   : > { %v8647_v21 = vpop.f32.mrf.mxu1  ;;  %10822 = vmatmul.mubr.msk.bf16.gmra.mxu0 %vm611_vm1, %v8836_v8  ;;  %v8099_v8 = vadd.f32 %v14643_v62, %v7773_v52  ;;  %v15648_v7 = vld [vmem:[#allocation29_spill] sm:$0xff] }
 0x6a7   : > { %v8782_v11 = vmax.f32 %v8750_v20, 0.0  ;;  %v8755_v2 = vadd.f32 %v14672_v53, %v8716_v31  ;;  %v8714_v49 = vadd.f32 %v8647_v21, %v8388_v0  ;;  %v8816_v22 = vadd.f32 %v8784_v42, %v15638_v36  ;;  %v15647_v0 = vld [vmem:[#allocation33_spill] sm:$0xff]  ;;  %v15649_v31 = vld [vmem:[#allocation43_spill] sm:$0xff] }
 0x6a8   : > { %v10798_v51 = vpop.f32.mrf.mxu1  ;;  %v8393_v40 = vadd.f32 %v8340_v5, %v8099_v8  ;;  %v7777_v20 = vadd.f32 %v15648_v7, %v15647_v0  ;;  %v8396_v5 = vadd.f32 %v8353_v41, %v14653_v39  ;;  %v15655_v39 = vld [vmem:[#allocation72_spill] sm:$0xff] }
 0x6a9   : > { %v8814_v27 = vadd.f32 %v8782_v11, %v15640_v46  ;;  %v8717_v19 = vadd.f32 %v10798_v51, %v8391_v9  ;;  %v8838_v28 = vpack.c.bf16 %v8816_v22, %v8815_v30  ;;  %v8753_v59 = vadd.f32 %v14672_v53, %v8714_v49  ;;  %v8356_v51 = vpop.f32.mrf.mxu0 }
 0x6aa   : > { %v8650_v50 = vpop.f32.mrf.mxu1  ;;  %v8787_v37 = vmax.f32 %v8755_v2, 0.0  ;;  %v8398_v9 = vadd.f32 %v10771_v25, %v15651_v12  ;;  %v8103_v30 = vadd.f32 %v15652_v29, %v7777_v20  ;;  %v15653_v25 = vld [vmem:[#allocation56_spill] sm:$0xff] }
 0x6ab   : > { %v8837_v63 = vpack.c.bf16 %v8814_v27, %v8813_v54  ;;  %v8756_v43 = vadd.f32 %v14672_v53, %v8717_v19  ;;  %v8715_v57 = vadd.f32 %v8650_v50, %v8389_v61  ;;  %v8785_v32 = vmax.f32 %v8753_v59, 0.0 }
 0x6ac   : > { %v10801_v60 = vpop.f32.mrf.mxu1  ;;  %v8819_v45 = vadd.f32 %v8787_v37, %v15645_v1  ;;  %v8399_v59 = vadd.f32 %v10772_v26, %v15655_v39  ;;  %v8397_v50 = vadd.f32 %v8356_v51, %v8103_v30 }
 0x6ad   : > { %v8788_v38 = vmax.f32 %v8756_v43, 0.0  ;;  %v8720_v16 = vadd.f32 %v10801_v60, %v8394_v56  ;;  %10825 = vmatprep.mubr.msk.bf16.mxu0 %vm611_vm1, %v8837_v63  ;;  %v8754_v33 = vadd.f32 %v14672_v53, %v8715_v57  ;;  %v8817_v48 = vadd.f32 %v8785_v32, %v15649_v31  ;;  %v15656_v63 = vld [vmem:[#allocation69_spill] sm:$0xff]  ;;  %v15657_v57 = vld [vmem:[#allocation88_spill] sm:$0xff] }
 0x6ae   : > { %v8663_v14 = vpop.f32.mrf.mxu1  ;;  %10826 = vmatmul.mubr.msk.bf16.gmra.mxu0 %vm611_vm1, %v8838_v28 }
 0x6af   : > { %v8820_v15 = vadd.f32 %v8788_v38, %v15646_v58  ;;  %v8759_v24 = vadd.f32 %v14672_v53, %v8720_v16  ;;  %v8718_v47 = vadd.f32 %v8663_v14, %v8392_v35  ;;  %v8786_v62 = vmax.f32 %v8754_v33, 0.0 }
 0x6b0   : > { %v10802_v3 = vpop.f32.mrf.mxu1 }
 0x6b1   : > { %v8840_v13 = vpack.c.bf16 %v8820_v15, %v8819_v45  ;;  %v8757_v6 = vadd.f32 %v14672_v53, %v8718_v47  ;;  %v8721_v55 = vadd.f32 %v10802_v3, %v8395_v17  ;;  %v8818_v42 = vadd.f32 %v8786_v62, %v15650_v44  ;;  %v15658_v45 = vld [vmem:[#allocation6_spill] sm:$0xff]  ;;  %v15659_v15 = vld [vmem:[#allocation5_spill] sm:$0xff]  ;;  %v15660_v47 = vld [vmem:[#allocation35_spill] sm:$0xff] }
 0x6b2   : > { %v8666_v21 = vpop.f32.mrf.mxu1  ;;  %v8791_v11 = vmax.f32 %v8759_v24, 0.0  ;;  %v15661_v3 = vld [vmem:[#allocation8_spill] sm:$0xff] }
 0x6b3   : > { %v8760_v2 = vadd.f32 %v14672_v53, %v8721_v55  ;;  %v8719_v49 = vadd.f32 %v8666_v21, %v8393_v40  ;;  %v8839_v36 = vpack.c.bf16 %v8818_v42, %v8817_v48  ;;  %v8789_v10 = vmax.f32 %v8757_v6, 0.0 }
 0x6b4   : > { %v10805_v22 = vpop.f32.mrf.mxu1  ;;  %v8823_v23 = vadd.f32 %v8791_v11, %v15653_v25 }
 0x6b5   : > { %v8792_v54 = vmax.f32 %v8760_v2, 0.0  ;;  %v8758_v46 = vadd.f32 %v14672_v53, %v8719_v49  ;;  %v8724_v27 = vadd.f32 %v10805_v22, %v8398_v9  ;;  %10829 = vmatprep.mubr.msk.bf16.mxu0 %vm611_vm1, %v8839_v36  ;;  %v8821_v37 = vadd.f32 %v8789_v10, %v15656_v63 }
 0x6b6   : > { %v8679_v19 = vpop.f32.mrf.mxu1  ;;  %10830 = vmatmul.mubr.msk.bf16.gmra.mxu0 %vm611_vm1, %v8840_v13 }
 0x6b7   : > { %v8824_v52 = vadd.f32 %v8792_v54, %v15654_v18  ;;  %v8790_v61 = vmax.f32 %v8758_v46, 0.0  ;;  %v8722_v28 = vadd.f32 %v8679_v19, %v8396_v5  ;;  %v8763_v4 = vadd.f32 %v14672_v53, %v8724_v27 }
 0x6b8   : > { %v10806_v56 = vpop.f32.mrf.mxu1 }
 0x6b9   : > { %v8842_v43 = vpack.c.bf16 %v8824_v52, %v8823_v23  ;;  %v8822_v60 = vadd.f32 %v8790_v61, %v15657_v57  ;;  %v8761_v35 = vadd.f32 %v14672_v53, %v8722_v28  ;;  %v8725_v8 = vadd.f32 %v10806_v56, %v8399_v59 }
 0x6ba   : > { %v8682_v41 = vpop.f32.mrf.mxu1  ;;  %v8795_v34 = vmax.f32 %v8763_v4, 0.0 }
 0x6bb   : > { %v8841_v38 = vpack.c.bf16 %v8822_v60, %v8821_v37  ;;  %v8723_v16 = vadd.f32 %v8682_v41, %v8397_v50  ;;  %v8764_v17 = vadd.f32 %v14672_v53, %v8725_v8  ;;  %v8793_v32 = vmax.f32 %v8761_v35, 0.0 }
 0x6bc   : > { %v8827_v58 = vadd.f32 %v8795_v34, %v15658_v45 }
 0x6bd   : > { %v8762_v33 = vadd.f32 %v14672_v53, %v8723_v16  ;;  %10833 = vmatprep.mubr.msk.bf16.mxu0 %vm611_vm1, %v8841_v38  ;;  %v8796_v14 = vmax.f32 %v8764_v17, 0.0  ;;  %v8825_v62 = vadd.f32 %v8793_v32, %v15660_v47  ;;  %v14843_v53 = vld [vmem:[%s14966_s16] ss:$0 sm:$0xff] }
 0x6be   : > { %10834 = vmatmul.mubr.msk.bf16.gmra.mxu0 %vm611_vm1, %v8842_v43 }
 0x6bf   : > { %v8794_v1 = vmax.f32 %v8762_v33, 0.0  ;;  %v8828_v24 = vadd.f32 %v8796_v14, %v15659_v15 }
 0x6c1   : > { %v8826_v40 = vadd.f32 %v8794_v1, %v15661_v3  ;;  %v8844_v26 = vpack.c.bf16 %v8828_v24, %v8827_v58 }
 0x6c3   : > { %v8843_v13 = vpack.c.bf16 %v8826_v40, %v8825_v62 }
 0x6c5   : > { %10837 = vmatprep.mubr.msk.bf16.mxu0 %vm611_vm1, %v8843_v13 }
 0x6c6   : > { %10838 = vmatmul.mubr.msk.bf16.gmra.mxu0 %vm611_vm1, %v8844_v26 }
 0x74e   : > { %v10811_v6 = vpop.f32.mrf.mxu0 }
 0x74f   : > { %v8947_v55 = vadd.f32 %v10811_v6, %v14843_v53 }
 0x750   : > { %v8938_v0 = vpop.f32.mrf.mxu0 }
 0x751   : > { %v9067_v7 = vmax.f32 %v8947_v55, 0.0  ;;  %v8939_v20 = vadd.f32 %v14843_v53, %v8938_v0 }
 0x752   : > { %v10812_v31 = vpop.f32.mrf.mxu0 }
 0x753   : > { %9099 = vst.msk [vmem:[%s14850_s29 + $0x10] sm:$0xff] %vm611_vm1, %v9067_v7  ;;  %v9065_v48 = vmax.f32 %v8939_v20, 0.0  ;;  %v8950_v44 = vadd.f32 %v10812_v31, %v14843_v53 }
 0x754   : > { %v8941_v42 = vpop.f32.mrf.mxu0 }
 0x755   : > { %9097 = vst.msk [vmem:[%s14850_s29] sm:$0xff] %vm611_vm1, %v9065_v48  ;;  %v9068_v21 = vmax.f32 %v8950_v44, 0.0  ;;  %v8942_v12 = vadd.f32 %v14843_v53, %v8941_v42 }
 0x756   : > { %v10815_v9 = vpop.f32.mrf.mxu0 }
 0x757   : > { %9100 = vst.msk [vmem:[%s14850_s29 + $0x18] sm:$0xff] %vm611_vm1, %v9068_v21  ;;  %v9066_v11 = vmax.f32 %v8942_v12, 0.0  ;;  %v8963_v2 = vadd.f32 %v10815_v9, %v14843_v53 }
 0x758   : > { %v8954_v49 = vpop.f32.mrf.mxu0 }
 0x759   : > { %9098 = vst.msk [vmem:[%s14850_s29 + $0x8] sm:$0xff] %vm611_vm1, %v9066_v11  ;;  %v9071_v5 = vmax.f32 %v8963_v2, 0.0  ;;  %v8955_v29 = vadd.f32 %v14843_v53, %v8954_v49 }
 0x75a   : > { %v10816_v30 = vpop.f32.mrf.mxu0 }
 0x75b   : > { %9103 = vst.msk [vmem:[%s14850_s29 + $0x30] sm:$0xff] %vm611_vm1, %v9071_v5  ;;  %v9069_v36 = vmax.f32 %v8955_v29, 0.0  ;;  %v8966_v22 = vadd.f32 %v10816_v30, %v14843_v53 }
 0x75c   : > { %v8957_v51 = vpop.f32.mrf.mxu0 }
 0x75d   : > { %9101 = vst.msk [vmem:[%s14850_s29 + $0x20] sm:$0xff] %vm611_vm1, %v9069_v36  ;;  %v9072_v10 = vmax.f32 %v8966_v22, 0.0  ;;  %v8958_v54 = vadd.f32 %v14843_v53, %v8957_v51 }
 0x75e   : > { %v10819_v27 = vpop.f32.mrf.mxu0 }
 0x75f   : > { %9104 = vst.msk [vmem:[%s14850_s29 + $0x38] sm:$0xff] %vm611_vm1, %v9072_v10  ;;  %v9070_v46 = vmax.f32 %v8958_v54, 0.0  ;;  %v8979_v19 = vadd.f32 %v10819_v27, %v14843_v53 }
 0x760   : > { %v8970_v25 = vpop.f32.mrf.mxu0 }
 0x761   : > { %9102 = vst.msk [vmem:[%s14850_s29 + $0x28] sm:$0xff] %vm611_vm1, %v9070_v46  ;;  %v9075_v23 = vmax.f32 %v8979_v19, 0.0  ;;  %v8971_v18 = vadd.f32 %v14843_v53, %v8970_v25 }
 0x762   : > { %v10820_v52 = vpop.f32.mrf.mxu0 }
 0x763   : > { %9107 = vst.msk [vmem:[%s14850_s29 + $0x50] sm:$0xff] %vm611_vm1, %v9075_v23  ;;  %v9073_v61 = vmax.f32 %v8971_v18, 0.0  ;;  %v8982_v28 = vadd.f32 %v10820_v52, %v14843_v53 }
 0x764   : > { %v8973_v39 = vpop.f32.mrf.mxu0 }
 0x765   : > { %9105 = vst.msk [vmem:[%s14850_s29 + $0x40] sm:$0xff] %vm611_vm1, %v9073_v61  ;;  %v9076_v59 = vmax.f32 %v8982_v28, 0.0  ;;  %v8974_v50 = vadd.f32 %v14843_v53, %v8973_v39 }
 0x766   : > { %v10823_v4 = vpop.f32.mrf.mxu0 }
 0x767   : > { %9108 = vst.msk [vmem:[%s14850_s29 + $0x58] sm:$0xff] %vm611_vm1, %v9076_v59  ;;  %v9074_v56 = vmax.f32 %v8974_v50, 0.0  ;;  %v8995_v63 = vadd.f32 %v10823_v4, %v14843_v53 }
 0x768   : > { %v8986_v37 = vpop.f32.mrf.mxu0 }
 0x769   : > { %9106 = vst.msk [vmem:[%s14850_s29 + $0x48] sm:$0xff] %vm611_vm1, %v9074_v56  ;;  %v9079_v43 = vmax.f32 %v8995_v63, 0.0  ;;  %v8987_v57 = vadd.f32 %v14843_v53, %v8986_v37 }
 0x76a   : > { %v10824_v60 = vpop.f32.mrf.mxu0 }
 0x76b   : > { %9111 = vst.msk [vmem:[%s14850_s29 + $0x70] sm:$0xff] %vm611_vm1, %v9079_v43  ;;  %v9077_v35 = vmax.f32 %v8987_v57, 0.0  ;;  %v8998_v8 = vadd.f32 %v10824_v60, %v14843_v53 }
 0x76c   : > { %v8989_v41 = vpop.f32.mrf.mxu0 }
 0x76d   : > { %9109 = vst.msk [vmem:[%s14850_s29 + $0x60] sm:$0xff] %vm611_vm1, %v9077_v35  ;;  %v9080_v38 = vmax.f32 %v8998_v8, 0.0  ;;  %v8990_v16 = vadd.f32 %v14843_v53, %v8989_v41 }
 0x76e   : > { %v10827_v34 = vpop.f32.mrf.mxu0 }
 0x76f   : > { %9112 = vst.msk [vmem:[%s14850_s29 + $0x78] sm:$0xff] %vm611_vm1, %v9080_v38  ;;  %v9078_v17 = vmax.f32 %v8990_v16, 0.0  ;;  %v9011_v32 = vadd.f32 %v10827_v34, %v14843_v53 }
 0x770   : > { %v9002_v33 = vpop.f32.mrf.mxu0 }
 0x771   : > { %9110 = vst.msk [vmem:[%s14850_s29 + $0x68] sm:$0xff] %vm611_vm1, %v9078_v17  ;;  %v9083_v14 = vmax.f32 %v9011_v32, 0.0  ;;  %v9003_v1 = vadd.f32 %v14843_v53, %v9002_v33 }
 0x772   : > { %v10828_v45 = vpop.f32.mrf.mxu0 }
 0x773   : > { %9115 = vst.msk [vmem:[%s14850_s29 + $0x90] sm:$0xff] %vm611_vm1, %v9083_v14  ;;  %v9081_v58 = vmax.f32 %v9003_v1, 0.0  ;;  %v9014_v15 = vadd.f32 %v10828_v45, %v14843_v53 }
 0x774   : > { %v9005_v24 = vpop.f32.mrf.mxu0 }
 0x775   : > { %9113 = vst.msk [vmem:[%s14850_s29 + $0x80] sm:$0xff] %vm611_vm1, %v9081_v58  ;;  %v9084_v47 = vmax.f32 %v9014_v15, 0.0  ;;  %v9006_v62 = vadd.f32 %v14843_v53, %v9005_v24 }
 0x776   : > { %v10831_v3 = vpop.f32.mrf.mxu0 }
 0x777   : > { %9116 = vst.msk [vmem:[%s14850_s29 + $0x98] sm:$0xff] %vm611_vm1, %v9084_v47  ;;  %v9082_v40 = vmax.f32 %v9006_v62, 0.0  ;;  %v9027_v26 = vadd.f32 %v10831_v3, %v14843_v53 }
 0x778   : > { %v9018_v13 = vpop.f32.mrf.mxu0 }
 0x779   : > { %9114 = vst.msk [vmem:[%s14850_s29 + $0x88] sm:$0xff] %vm611_vm1, %v9082_v40  ;;  %v9087_v6 = vmax.f32 %v9027_v26, 0.0  ;;  %v9019_v55 = vadd.f32 %v14843_v53, %v9018_v13 }
 0x77a   : > { %v10832_v0 = vpop.f32.mrf.mxu0 }
 0x77b   : > { %9119 = vst.msk [vmem:[%s14850_s29 + $0xb0] sm:$0xff] %vm611_vm1, %v9087_v6  ;;  %v9085_v7 = vmax.f32 %v9019_v55, 0.0  ;;  %v9030_v20 = vadd.f32 %v10832_v0, %v14843_v53 }
 0x77c   : > { %v9021_v31 = vpop.f32.mrf.mxu0 }
 0x77d   : > { %9117 = vst.msk [vmem:[%s14850_s29 + $0xa0] sm:$0xff] %vm611_vm1, %v9085_v7  ;;  %v9088_v48 = vmax.f32 %v9030_v20, 0.0  ;;  %v9022_v44 = vadd.f32 %v14843_v53, %v9021_v31 }
 0x77e   : > { %v10835_v42 = vpop.f32.mrf.mxu0 }
 0x77f   : > { %9120 = vst.msk [vmem:[%s14850_s29 + $0xb8] sm:$0xff] %vm611_vm1, %v9088_v48  ;;  %v9086_v21 = vmax.f32 %v9022_v44, 0.0  ;;  %v9043_v12 = vadd.f32 %v10835_v42, %v14843_v53 }
 0x780   : > { %v9034_v9 = vpop.f32.mrf.mxu0 }
 0x781   : > { %9118 = vst.msk [vmem:[%s14850_s29 + $0xa8] sm:$0xff] %vm611_vm1, %v9086_v21  ;;  %v9091_v11 = vmax.f32 %v9043_v12, 0.0  ;;  %v9035_v2 = vadd.f32 %v14843_v53, %v9034_v9 }
 0x782   : > { %v10836_v49 = vpop.f32.mrf.mxu0 }
 0x783   : > { %9123 = vst.msk [vmem:[%s14850_s29 + $0xd0] sm:$0xff] %vm611_vm1, %v9091_v11  ;;  %v9089_v5 = vmax.f32 %v9035_v2, 0.0  ;;  %v9046_v29 = vadd.f32 %v10836_v49, %v14843_v53 }
 0x784   : > { %v9037_v30 = vpop.f32.mrf.mxu0 }
 0x785   : > { %9121 = vst.msk [vmem:[%s14850_s29 + $0xc0] sm:$0xff] %vm611_vm1, %v9089_v5  ;;  %v9092_v36 = vmax.f32 %v9046_v29, 0.0  ;;  %v9038_v22 = vadd.f32 %v14843_v53, %v9037_v30 }
 0x786   : > { %v10839_v51 = vpop.f32.mrf.mxu0 }
 0x787   : > { %9124 = vst.msk [vmem:[%s14850_s29 + $0xd8] sm:$0xff] %vm611_vm1, %v9092_v36  ;;  %v9090_v10 = vmax.f32 %v9038_v22, 0.0  ;;  %v9059_v54 = vadd.f32 %v10839_v51, %v14843_v53 }
 0x788   : > { %v9050_v46 = vpop.f32.mrf.mxu0 }
 0x789   : > { %9122 = vst.msk [vmem:[%s14850_s29 + $0xc8] sm:$0xff] %vm611_vm1, %v9090_v10  ;;  %v9095_v27 = vmax.f32 %v9059_v54, 0.0  ;;  %v9051_v19 = vadd.f32 %v14843_v53, %v9050_v46 }
 0x78a   : > { %v10840_v25 = vpop.f32.mrf.mxu0 }
 0x78b   : > { %9127 = vst.msk [vmem:[%s14850_s29 + $0xf0] sm:$0xff] %vm611_vm1, %v9095_v27  ;;  %v9093_v23 = vmax.f32 %v9051_v19, 0.0  ;;  %v9062_v18 = vadd.f32 %v10840_v25, %v14843_v53 }
 0x78c   : > { %v9053_v52 = vpop.f32.mrf.mxu0 }
 0x78d   : > { %9125 = vst.msk [vmem:[%s14850_s29 + $0xe0] sm:$0xff] %vm611_vm1, %v9093_v23  ;;  %v9096_v61 = vmax.f32 %v9062_v18, 0.0  ;;  %v9054_v28 = vadd.f32 %v14843_v53, %v9053_v52 }
 0x78f   : > { %9128 = vst.msk [vmem:[%s14850_s29 + $0xf8] sm:$0xff] %vm611_vm1, %v9096_v61  ;;  %v9094_v39 = vmax.f32 %v9054_v28, 0.0 }
 0x791   : > { %9126 = vst.msk [vmem:[%s14850_s29 + $0xe8] sm:$0xff] %vm611_vm1, %v9094_v39 }
 0x792 PF: > { %s29_s26 = sadd.s32 1, %s11045_s26  }
 0x793   : > { %p26_p4 = scmp.ge.s32.totalorder %s29_s26, 4  }
 0x795   :  { %28 = sbr.rel (!%p26_p4) target bundleno = 3 (0x3), region = 137 }

</bundles_post_ra>
